<compile_context>
chip_gen: v7x
topology: tpu7x:2x2x1
jax: 0.10.0
libtpu: 0.0.40
codegen_flags: <defaults>
</compile_context>

<pallas_src>
import jax
import jax.numpy as jnp
from jax.experimental import pallas as pl
from jax.experimental.pallas import tpu as pltpu


# ---------------------------------------------------------------------------
# Small helpers
# ---------------------------------------------------------------------------
def _round_up(x, m):
    return (x + m - 1) // m * m


def _pick_tile(dim, candidates, align):
    """Largest candidate tile dividing round_up(dim, align)."""
    dp = _round_up(dim, align)
    for t in candidates:
        if t <= dp and dp % t == 0:
            return t, dp
    return dp, dp


def _pad2d(a, rows, cols, dtype):
    a = a.astype(dtype)
    r, c = a.shape
    if r == rows and c == cols:
        return a
    return jnp.pad(a, ((0, rows - r), (0, cols - c)))


def _fold_lanes(rows, cols, target=512):
    """Largest power-of-two f (dividing rows) with cols*f <= target, so that
    reshaping (rows, cols) -> (rows//f, cols*f) gives lane-dense stores."""
    f = 1
    while cols * f * 2 <= target and rows % (f * 2) == 0:
        f *= 2
    return f


_MM_M_TILES = (1024, 512, 256, 128, 64, 32, 16)
_MM_K_TILES = (512, 256, 128)
_MM_N_TILES = (512, 256, 128)
_EW_ROW_TILES = (1024, 512, 256, 128, 64, 32, 16)


# ---------------------------------------------------------------------------
# Tiled matmul kernel: bf16 operands, f32 scratch accumulator, fused bias +
# optional ReLU epilogue, optional per-column sum / sum-of-squares outputs
# (used to fuse BatchNorm batch statistics into the conv pass).
# ---------------------------------------------------------------------------
def _make_matmul_kernel(apply_relu, emit_stats):
    def kernel(a_ref, b_ref, bias_ref, o_ref, *rest):
        if emit_stats:
            sum_ref, sq_ref, acc_ref = rest
        else:
            (acc_ref,) = rest

        @pl.when(pl.program_id(2) == 0)
        def _init():
            acc_ref[...] = jnp.zeros_like(acc_ref)

        acc_ref[...] += jnp.dot(a_ref[...], b_ref[...],
                                preferred_element_type=jnp.float32)

        @pl.when(pl.program_id(2) == pl.num_programs(2) - 1)
        def _finalize():
            out = acc_ref[...] + bias_ref[...]
            if apply_relu:
                out = jnp.maximum(out, 0.0)
            o_ref[...] = out.astype(o_ref.dtype)
            if emit_stats:
                # per-block column sums (XLU work, overlapped with next MXU block)
                sum_ref[...] = jnp.sum(out, axis=0, keepdims=True)[None]
                sq_ref[...] = jnp.sum(out * out, axis=0, keepdims=True)[None]

    return kernel


def pallas_matmul(a, b, bias=None, relu=False, out_dtype=jnp.float32,
                  emit_stats=False):
    """out = relu?(a @ b + bias); a:(M,K), b:(K,N). bf16 operands, f32 accum.
    If emit_stats, also returns per-column sum and sum-of-squares of out."""
    M, K = a.shape
    K2, N = b.shape
    assert K == K2
    tm, Mp = _pick_tile(M, _MM_M_TILES, 16)
    tk, Kp = _pick_tile(K, _MM_K_TILES, 128)
    tn, Np = _pick_tile(N, _MM_N_TILES, 128)

    a_p = _pad2d(a, Mp, Kp, jnp.bfloat16)
    b_p = _pad2d(b, Kp, Np, jnp.bfloat16)
    if bias is None:
        bias = jnp.zeros((N,), jnp.float32)
    bias_p = _pad2d(bias.reshape(1, N).astype(jnp.float32), 1, Np, jnp.float32)

    gm, gn, gk = Mp // tm, Np // tn, Kp // tk

    out_shapes = [jax.ShapeDtypeStruct((Mp, Np), out_dtype)]
    out_specs = [pl.BlockSpec((tm, tn), lambda i, j, k: (i, j))]
    if emit_stats:
        out_shapes += [jax.ShapeDtypeStruct((gm, 1, Np), jnp.float32)] * 2
        out_specs += [pl.BlockSpec((1, 1, tn), lambda i, j, k: (i, 0, j))] * 2

    res = pl.pallas_call(
        _make_matmul_kernel(relu, emit_stats),
        out_shape=tuple(out_shapes) if emit_stats else out_shapes[0],
        grid_spec=pltpu.PrefetchScalarGridSpec(
            num_scalar_prefetch=0,
            grid=(gm, gn, gk),
            in_specs=[
                pl.BlockSpec((tm, tk), lambda i, j, k: (i, k)),
                pl.BlockSpec((tk, tn), lambda i, j, k: (k, j)),
                pl.BlockSpec((1, tn), lambda i, j, k: (0, j)),
            ],
            out_specs=tuple(out_specs) if emit_stats else out_specs[0],
            scratch_shapes=[pltpu.VMEM((tm, tn), jnp.float32)]),
        compiler_params=pltpu.CompilerParams(
            dimension_semantics=("parallel", "parallel", "arbitrary")),
    )(a_p, b_p, bias_p)

    if emit_stats:
        out, psum, psq = res
        out = out if (Mp == M and Np == N) else out[:M, :N]
        csum = psum.reshape(gm, Np).sum(axis=0)[:N]
        csq = psq.reshape(gm, Np).sum(axis=0)[:N]
        return out, csum, csq
    out = res
    return out if (Mp == M and Np == N) else out[:M, :N]


# ---------------------------------------------------------------------------
# Gridded elementwise kernels (rows folded into lanes for lane-dense stores).
# ---------------------------------------------------------------------------
def _ssr_kernel(x_ref, scale_ref, shift_ref, o_ref):
    o_ref[...] = jnp.maximum(
        x_ref[...] * scale_ref[...] + shift_ref[...], 0.0).astype(o_ref.dtype)


def pallas_scale_shift_relu(x2d, scale, shift, out_dtype=jnp.bfloat16):
    M, C = x2d.shape
    f = _fold_lanes(M, C)
    Mf, Cf = M // f, C * f
    x = x2d.astype(jnp.float32).reshape(Mf, Cf)          # free reshape
    scale_t = jnp.tile(scale.astype(jnp.float32), f).reshape(1, Cf)
    shift_t = jnp.tile(shift.astype(jnp.float32), f).reshape(1, Cf)
    tm, Mp = _pick_tile(Mf, _EW_ROW_TILES, 16)
    x_p = x if Mp == Mf else jnp.pad(x, ((0, Mp - Mf), (0, 0)))
    out = pl.pallas_call(
        _ssr_kernel,
        out_shape=jax.ShapeDtypeStruct((Mp, Cf), out_dtype),
        grid=(Mp // tm,),
        in_specs=[pl.BlockSpec((tm, Cf), lambda i: (i, 0)),
                  pl.BlockSpec((1, Cf), lambda i: (0, 0)),
                  pl.BlockSpec((1, Cf), lambda i: (0, 0))],
        out_specs=pl.BlockSpec((tm, Cf), lambda i: (i, 0)),
        compiler_params=pltpu.CompilerParams(dimension_semantics=("parallel",)),
    )(x_p, scale_t, shift_t)
    out = out if Mp == Mf else out[:Mf]
    return out.reshape(M, C)


def _max4_kernel(a_ref, b_ref, c_ref, d_ref, o_ref):
    o_ref[...] = jnp.maximum(jnp.maximum(a_ref[...], b_ref[...]),
                             jnp.maximum(c_ref[...], d_ref[...]))


def pallas_maxpool2x2(x):
    """x: (N,H,W,C) -> (N,H//2,W//2,C), 2x2 max pool stride 2 (dtype preserved)."""
    N, H, W, C = x.shape
    Ho, Wo = H // 2, W // 2
    M = N * Ho * Wo
    dt = x.dtype
    # TODO(synk): the four strided gathers could be folded into the kernel's
    # index_map to shave one extra (minor) HBM pass on this op.
    taps = [x[:, 0::2, 0::2, :], x[:, 0::2, 1::2, :],
            x[:, 1::2, 0::2, :], x[:, 1::2, 1::2, :]]
    f = _fold_lanes(M, C)
    Mf, Cf = M // f, C * f
    tm, Mp = _pick_tile(Mf, _EW_ROW_TILES, 16)

    def prep(t):
        t = t.reshape(Mf, Cf)
        return t if Mp == Mf else jnp.pad(t, ((0, Mp - Mf), (0, 0)))

    out = pl.pallas_call(
        _max4_kernel,
        out_shape=jax.ShapeDtypeStruct((Mp, Cf), dt),
        grid=(Mp // tm,),
        in_specs=[pl.BlockSpec((tm, Cf), lambda i: (i, 0))] * 4,
        out_specs=pl.BlockSpec((tm, Cf), lambda i: (i, 0)),
        compiler_params=pltpu.CompilerParams(dimension_semantics=("parallel",)),
    )(*[prep(t) for t in taps])
    out = out if Mp == Mf else out[:Mf]
    return out.reshape(N, Ho, Wo, C)


# ---------------------------------------------------------------------------
# Layer-level ops (glue in plain JAX; heavy math through Pallas).
# ---------------------------------------------------------------------------
def conv3x3(x, w, relu=False, out_dtype=jnp.bfloat16, emit_stats=False):
    """x: (N,H,W,Cin); w: (Cout,Cin,3,3) PyTorch layout; stride 1, pad 1, no bias."""
    N, H, W, Cin = x.shape
    Cout = w.shape[0]
    K = 9 * Cin
    Kp = _round_up(K, 128)
    # im2col built directly in bf16 and K-padded: the expanded tensor hits HBM once.
    xp = jnp.pad(x.astype(jnp.bfloat16), ((0, 0), (1, 1), (1, 1), (0, 0)))
    taps = [xp[:, ki:ki + H, kj:kj + W, :] for ki in range(3) for kj in range(3)]
    if Kp > K:
        taps.append(jnp.zeros((N, H, W, Kp - K), jnp.bfloat16))
    a = jnp.concatenate(taps, axis=-1).reshape(N * H * W, Kp)
    b = jnp.transpose(w, (2, 3, 1, 0)).reshape(K, Cout)
    if Kp > K:
        b = jnp.pad(b, ((0, Kp - K), (0, 0)))
    res = pallas_matmul(a, b, relu=relu, out_dtype=out_dtype,
                        emit_stats=emit_stats)
    if emit_stats:
        out2d, csum, csq = res
        return out2d.reshape(N, H, W, Cout), csum, csq
    return res.reshape(N, H, W, Cout)


def twice_conv(x, p, eps=1e-5):
    """Conv3x3 -> BatchNorm2d(train, batch stats) -> ReLU -> Conv3x3 -> ReLU."""
    N, H, W, _ = x.shape
    cout = p["w1"].shape[0]
    M = N * H * W
    # conv1 in f32 with fused column sum / sumsq (BN stats need no extra pass).
    y, csum, csq = conv3x3(x, p["w1"], relu=False, out_dtype=jnp.float32,
                           emit_stats=True)
    mean = csum / M
    var = jnp.maximum(csq / M - mean * mean, 0.0)   # biased variance, PyTorch-style
    scale = p["gamma"] * jax.lax.rsqrt(var + eps)
    shift = p["beta"] - mean * scale
    y = pallas_scale_shift_relu(y.reshape(M, cout), scale, shift,
                                out_dtype=jnp.bfloat16).reshape(N, H, W, cout)
    # conv2 + ReLU, bf16 output (only ever consumed as a bf16 matmul operand).
    return conv3x3(y, p["w2"], relu=True, out_dtype=jnp.bfloat16)


def conv_transpose2x2(x, w, bias):
    """x: (N,H,W,Cin); w: (Cin,Cout,2,2) PyTorch layout; stride 2 -> (N,2H,2W,Cout).
    All four kernel taps fused into one matmul over a (Cin, 4*Cout) matrix."""
    N, H, W, Cin = x.shape
    Cout = w.shape[1]
    a = x.reshape(N * H * W, Cin)
    w_cat = jnp.concatenate(
        [w[:, :, di, dj] for di in range(2) for dj in range(2)], axis=1)
    b_cat = jnp.tile(bias, 4)
    y = pallas_matmul(a, w_cat, bias=b_cat, out_dtype=jnp.bfloat16)  # (M, 4*Cout)
    y = y.reshape(N, H, W, 2, 2, Cout)               # (N,H,W,di,dj,C)
    y = jnp.transpose(y, (0, 1, 3, 2, 4, 5))         # (N,H,di,W,dj,C)
    return y.reshape(N, 2 * H, 2 * W, Cout)


def conv1x1(x, w, bias):
    """x: (N,H,W,Cin); w: (Cout,Cin,1,1). Final layer: f32 output."""
    N, H, W, Cin = x.shape
    Cout = w.shape[0]
    a = x.reshape(N * H * W, Cin)
    b = w.reshape(Cout, Cin).T
    out = pallas_matmul(a, b, bias=bias, out_dtype=jnp.float32)
    return out.reshape(N, H, W, Cout)


# ---------------------------------------------------------------------------
# Parameter init (deterministic) and full forward pass.
# ---------------------------------------------------------------------------
def init_params(key, input_channels=3, output_channels=3,
                feature_list=(8, 16, 32, 64)):
    def conv_w(k, cout, cin, ksz):
        fan_in = cin * ksz * ksz
        return jax.random.normal(k, (cout, cin, ksz, ksz), jnp.float32) / jnp.sqrt(fan_in)

    def twice(k, cin, cout):
        k1, k2 = jax.random.split(k)
        return {"w1": conv_w(k1, cout, cin, 3),
                "gamma": jnp.ones((cout,), jnp.float32),
                "beta": jnp.zeros((cout,), jnp.float32),
                "w2": conv_w(k2, cout, cout, 3)}

    keys = iter(jax.random.split(key, 32))
    params = {"encoders": [], "decoders": []}
    cin = input_channels
    for f in feature_list:
        params["encoders"].append(twice(next(keys), cin, f))
        cin = f
    nf = len(feature_list)
    for idx in range(1, nf + 1):
        f = feature_list[nf - idx]
        kup = next(keys)
        wup = jax.random.normal(kup, (2 * f, f, 2, 2), jnp.float32) / jnp.sqrt(2 * f * 4)
        bup = jnp.zeros((f,), jnp.float32)
        params["decoders"].append({"up_w": wup, "up_b": bup,
                                   "tc": twice(next(keys), 2 * f, f)})
    params["bridge"] = twice(next(keys), feature_list[-1], feature_list[-1] * 2)
    params["last_w"] = jax.random.normal(
        next(keys), (output_channels, feature_list[0], 1, 1), jnp.float32
    ) / jnp.sqrt(feature_list[0])
    params["last_b"] = jnp.zeros((output_channels,), jnp.float32)
    return params


def unet_forward(x_nchw, params):
    x = jnp.transpose(x_nchw, (0, 2, 3, 1))  # NCHW -> NHWC
    skips = []
    for p in params["encoders"]:
        x = twice_conv(x, p)
        skips.append(x)
        x = pallas_maxpool2x2(x)
    x = twice_conv(x, params["bridge"])
    skips = skips[::-1]
    for i, p in enumerate(params["decoders"]):
        x = conv_transpose2x2(x, p["up_w"], p["up_b"])
        skip = skips[i]
        # TODO(synk): TF.resize branch for mismatched spatial sizes is not
        # implemented; shapes always match for power-of-2 spatial inputs.
        x = jnp.concatenate([skip, x], axis=-1)  # (skip, x) like torch.cat dim=1
        x = twice_conv(x, p["tc"])
    x = conv1x1(x, params["last_w"], params["last_b"])
    return jnp.transpose(x, (0, 3, 1, 2))  # NHWC -> NCHW


if __name__ == "__main__":
    key = jax.random.PRNGKey(0)
    kx, kp = jax.random.split(key)
    # Small shapes: batch=2, channels=3, spatial=16x16, feature_list scaled down.
    x = jax.random.normal(kx, (2, 3, 16, 16), jnp.float32)
    params = init_params(kp, input_channels=3, output_channels=3,
                         feature_list=(8, 16, 32, 64))
    fwd = jax.jit(unet_forward)
    out = fwd(x, params)
    out = jax.block_until_ready(out)
    assert out.shape == (2, 3, 16, 16), out.shape
    assert jnp.all(jnp.isfinite(out))
    print("KERNEL_OK")
</pallas_src>

<mosaic_0001>
module attributes {stable_mosaic.version = 11 : i64} {
  func.func @kernel(%arg0: i32, %arg1: i32, %arg2: i32, %arg3: memref<512x128xbf16, #tpu.memory_space<vmem>>, %arg4: memref<128x128xbf16, #tpu.memory_space<vmem>>, %arg5: memref<1x128xf32, #tpu.memory_space<vmem>>, %arg6: memref<512x128xf32, #tpu.memory_space<vmem>>, %arg7: memref<1x1x128xf32, #tpu.memory_space<vmem>>, %arg8: memref<1x1x128xf32, #tpu.memory_space<vmem>>, %arg9: memref<512x128xf32, #tpu.memory_space<vmem>>) attributes {dimension_semantics = [#tpu.dimension_semantics<parallel>, #tpu.dimension_semantics<parallel>, #tpu.dimension_semantics<arbitrary>], iteration_bounds = array<i64: 1, 1, 1>, scalar_prefetch = 0 : i64, scratch_operands = 1 : i64, tpu.core_type = #tpu.core_type<tc>, window_params = [{transform_indices = @transform_0, window_bounds = array<i64: 512, 128>}, {transform_indices = @transform_1, window_bounds = array<i64: 128, 128>}, {transform_indices = @transform_2, window_bounds = array<i64: 1, 128>}, {transform_indices = @transform_3, window_bounds = array<i64: 512, 128>}, {transform_indices = @transform_4, window_bounds = array<i64: 1, 1, 128>}, {transform_indices = @transform_5, window_bounds = array<i64: 1, 1, 128>}]} {
    %c0_i32 = arith.constant 0 : i32
    %0 = arith.cmpi eq, %arg2, %c0_i32 : i32
    %1 = arith.extui %0 : i1 to i32
    %c0_i32_0 = arith.constant 0 : i32
    %2 = arith.cmpi ne, %1, %c0_i32_0 : i32
    scf.if %2 {
      %cst_10 = arith.constant 0.000000e+00 : f32
      %12 = vector.broadcast %cst_10 : f32 to vector<512x128xf32>
      %c0_11 = arith.constant 0 : index
      %c0_12 = arith.constant 0 : index
      %13 = vector.load %arg9[%c0_11, %c0_12] : memref<512x128xf32, #tpu.memory_space<vmem>>, vector<512x128xf32>
      tpu.vector_store %arg9[%c0_11, %c0_12], %12 {strides = array<i32>} : memref<512x128xf32, #tpu.memory_space<vmem>>, vector<512x128xf32>,
    } else {
    }
    %c0 = arith.constant 0 : index
    %c0_1 = arith.constant 0 : index
    %3 = vector.load %arg9[%c0, %c0_1] : memref<512x128xf32, #tpu.memory_space<vmem>>, vector<512x128xf32>
    %c0_2 = arith.constant 0 : index
    %c0_3 = arith.constant 0 : index
    %4 = vector.load %arg3[%c0_2, %c0_3] : memref<512x128xbf16, #tpu.memory_space<vmem>>, vector<512x128xbf16>
    %c0_4 = arith.constant 0 : index
    %c0_5 = arith.constant 0 : index
    %5 = vector.load %arg4[%c0_4, %c0_5] : memref<128x128xbf16, #tpu.memory_space<vmem>>, vector<128x128xbf16>
    %cst = arith.constant dense<0.000000e+00> : vector<512x128xf32>
    %6 = tpu.matmul %4, %5, %cst {dimension_numbers = #tpu.dot_dimension_numbers<[1], [0], [0], [1], [0, 0, 1, 1], [], []>} : vector<512x128xbf16>, vector<128x128xbf16>, vector<512x128xf32> -> vector<512x128xf32>
    %7 = arith.addf %3, %6 : vector<512x128xf32>
    %c0_6 = arith.constant 0 : index
    %c0_7 = arith.constant 0 : index
    %8 = vector.load %arg9[%c0_6, %c0_7] : memref<512x128xf32, #tpu.memory_space<vmem>>, vector<512x128xf32>
    tpu.vector_store %arg9[%c0_6, %c0_7], %7 {strides = array<i32>} : memref<512x128xf32, #tpu.memory_space<vmem>>, vector<512x128xf32>,
    %c0_i32_8 = arith.constant 0 : i32
    %9 = arith.cmpi eq, %arg2, %c0_i32_8 : i32
    %10 = arith.extui %9 : i1 to i32
    %c0_i32_9 = arith.constant 0 : i32
    %11 = arith.cmpi ne, %10, %c0_i32_9 : i32
    scf.if %11 {
      %c0_10 = arith.constant 0 : index
      %c0_11 = arith.constant 0 : index
      %12 = vector.load %arg9[%c0_10, %c0_11] : memref<512x128xf32, #tpu.memory_space<vmem>>, vector<512x128xf32>
      %c0_12 = arith.constant 0 : index
      %c0_13 = arith.constant 0 : index
      %13 = vector.load %arg5[%c0_12, %c0_13] : memref<1x128xf32, #tpu.memory_space<vmem>>, vector<1x128xf32>
      %14 = vector.broadcast %13 : vector<1x128xf32> to vector<512x128xf32>
      %15 = arith.addf %12, %14 : vector<512x128xf32>
      %c0_14 = arith.constant 0 : index
      %c0_15 = arith.constant 0 : index
      %16 = vector.load %arg6[%c0_14, %c0_15] : memref<512x128xf32, #tpu.memory_space<vmem>>, vector<512x128xf32>
      tpu.vector_store %arg6[%c0_14, %c0_15], %15 {strides = array<i32>} : memref<512x128xf32, #tpu.memory_space<vmem>>, vector<512x128xf32>,
      %cst_16 = arith.constant dense<0.000000e+00> : vector<128xf32>
      %17 = vector.multi_reduction <add>, %15, %cst_16 [0] : vector<512x128xf32> to vector<128xf32>
      %18 = vector.shape_cast %17 : vector<128xf32> to vector<1x128xf32>
      %19 = vector.shape_cast %18 : vector<1x128xf32> to vector<1x1x128xf32>
      %c0_17 = arith.constant 0 : index
      %c0_18 = arith.constant 0 : index
      %c0_19 = arith.constant 0 : index
      %20 = vector.load %arg7[%c0_17, %c0_18, %c0_19] : memref<1x1x128xf32, #tpu.memory_space<vmem>>, vector<1x1x128xf32>
      tpu.vector_store %arg7[%c0_17, %c0_18, %c0_19], %19 {strides = array<i32>} : memref<1x1x128xf32, #tpu.memory_space<vmem>>, vector<1x1x128xf32>,
      %21 = arith.mulf %15, %15 : vector<512x128xf32>
      %cst_20 = arith.constant dense<0.000000e+00> : vector<128xf32>
      %22 = vector.multi_reduction <add>, %21, %cst_20 [0] : vector<512x128xf32> to vector<128xf32>
      %23 = vector.shape_cast %22 : vector<128xf32> to vector<1x128xf32>
      %24 = vector.shape_cast %23 : vector<1x128xf32> to vector<1x1x128xf32>
      %c0_21 = arith.constant 0 : index
      %c0_22 = arith.constant 0 : index
      %c0_23 = arith.constant 0 : index
      %25 = vector.load %arg8[%c0_21, %c0_22, %c0_23] : memref<1x1x128xf32, #tpu.memory_space<vmem>>, vector<1x1x128xf32>
      tpu.vector_store %arg8[%c0_21, %c0_22, %c0_23], %24 {strides = array<i32>} : memref<1x1x128xf32, #tpu.memory_space<vmem>>, vector<1x1x128xf32>,
    } else {
    }
    return
  }
  func.func @transform_0(%arg0: i32, %arg1: i32, %arg2: i32) -> (i32, i32) {
    %c0_i32 = arith.constant 0 : i32
    return %arg0, %arg2 : i32, i32
  }
  func.func @transform_1(%arg0: i32, %arg1: i32, %arg2: i32) -> (i32, i32) {
    %c0_i32 = arith.constant 0 : i32
    return %arg2, %arg1 : i32, i32
  }
  func.func @transform_2(%arg0: i32, %arg1: i32, %arg2: i32) -> (i32, i32) {
    %c0_i32 = arith.constant 0 : i32
    %c0_i32_0 = arith.constant 0 : i32
    return %c0_i32, %arg1 : i32, i32
  }
  func.func @transform_3(%arg0: i32, %arg1: i32, %arg2: i32) -> (i32, i32) {
    %c0_i32 = arith.constant 0 : i32
    return %arg0, %arg1 : i32, i32
  }
  func.func @transform_4(%arg0: i32, %arg1: i32, %arg2: i32) -> (i32, i32, i32) {
    %c0_i32 = arith.constant 0 : i32
    %c0_i32_0 = arith.constant 0 : i32
    return %arg0, %c0_i32, %arg1 : i32, i32, i32
  }
  func.func @transform_5(%arg0: i32, %arg1: i32, %arg2: i32) -> (i32, i32, i32) {
    %c0_i32 = arith.constant 0 : i32
    %c0_i32_0 = arith.constant 0 : i32
    return %arg0, %c0_i32, %arg1 : i32, i32, i32
  }
}

module attributes {stable_mosaic.version = 11 : i64} {
  func.func @_ssr_kernel(%arg0: i32, %arg1: memref<16x512xf32, #tpu.memory_space<vmem>>, %arg2: memref<1x512xf32, #tpu.memory_space<vmem>>, %arg3: memref<1x512xf32, #tpu.memory_space<vmem>>, %arg4: memref<16x512xbf16, #tpu.memory_space<vmem>>) attributes {dimension_semantics = [#tpu.dimension_semantics<parallel>], iteration_bounds = array<i64: 1>, scalar_prefetch = 0 : i64, scratch_operands = 0 : i64, tpu.core_type = #tpu.core_type<tc>, window_params = [{transform_indices = @transform_0, window_bounds = array<i64: 16, 512>}, {pipeline_mode = #tpu.pipeline_mode<synchronous>, transform_indices = @transform_1, window_bounds = array<i64: 1, 512>}, {pipeline_mode = #tpu.pipeline_mode<synchronous>, transform_indices = @transform_2, window_bounds = array<i64: 1, 512>}, {transform_indices = @transform_3, window_bounds = array<i64: 16, 512>}]} {
    %c0 = arith.constant 0 : index
    %c0_0 = arith.constant 0 : index
    %0 = vector.load %arg1[%c0, %c0_0] : memref<16x512xf32, #tpu.memory_space<vmem>>, vector<16x512xf32>
    %c0_1 = arith.constant 0 : index
    %c0_2 = arith.constant 0 : index
    %1 = vector.load %arg2[%c0_1, %c0_2] : memref<1x512xf32, #tpu.memory_space<vmem>>, vector<1x512xf32>
    %2 = vector.broadcast %1 : vector<1x512xf32> to vector<16x512xf32>
    %3 = arith.mulf %0, %2 : vector<16x512xf32>
    %c0_3 = arith.constant 0 : index
    %c0_4 = arith.constant 0 : index
    %4 = vector.load %arg3[%c0_3, %c0_4] : memref<1x512xf32, #tpu.memory_space<vmem>>, vector<1x512xf32>
    %5 = vector.broadcast %4 : vector<1x512xf32> to vector<16x512xf32>
    %6 = arith.addf %3, %5 : vector<16x512xf32>
    %cst = arith.constant 0.000000e+00 : f32
    %7 = vector.broadcast %cst : f32 to vector<16x512xf32>
    %8 = arith.maximumf %6, %7 : vector<16x512xf32>
    %9 = arith.truncf %8 : vector<16x512xf32> to vector<16x512xbf16>
    %c0_5 = arith.constant 0 : index
    %c0_6 = arith.constant 0 : index
    %10 = vector.load %arg4[%c0_5, %c0_6] : memref<16x512xbf16, #tpu.memory_space<vmem>>, vector<16x512xbf16>
    tpu.vector_store %arg4[%c0_5, %c0_6], %9 {strides = array<i32>} : memref<16x512xbf16, #tpu.memory_space<vmem>>, vector<16x512xbf16>,
    return
  }
  func.func @transform_0(%arg0: i32) -> (i32, i32) {
    %c0_i32 = arith.constant 0 : i32
    %c0_i32_0 = arith.constant 0 : i32
    return %arg0, %c0_i32 : i32, i32
  }
  func.func @transform_1(%arg0: i32) -> (i32, i32) {
    %c0_i32 = arith.constant 0 : i32
    %c0_i32_0 = arith.constant 0 : i32
    %c0_i32_1 = arith.constant 0 : i32
    return %c0_i32, %c0_i32_0 : i32, i32
  }
  func.func @transform_2(%arg0: i32) -> (i32, i32) {
    %c0_i32 = arith.constant 0 : i32
    %c0_i32_0 = arith.constant 0 : i32
    %c0_i32_1 = arith.constant 0 : i32
    return %c0_i32, %c0_i32_0 : i32, i32
  }
  func.func @transform_3(%arg0: i32) -> (i32, i32) {
    %c0_i32 = arith.constant 0 : i32
    %c0_i32_0 = arith.constant 0 : i32
    return %arg0, %c0_i32 : i32, i32
  }
}

module attributes {stable_mosaic.version = 11 : i64} {
  func.func @kernel(%arg0: i32, %arg1: i32, %arg2: i32, %arg3: memref<512x128xbf16, #tpu.memory_space<vmem>>, %arg4: memref<128x128xbf16, #tpu.memory_space<vmem>>, %arg5: memref<1x128xf32, #tpu.memory_space<vmem>>, %arg6: memref<512x128xbf16, #tpu.memory_space<vmem>>, %arg7: memref<512x128xf32, #tpu.memory_space<vmem>>) attributes {dimension_semantics = [#tpu.dimension_semantics<parallel>, #tpu.dimension_semantics<parallel>, #tpu.dimension_semantics<arbitrary>], iteration_bounds = array<i64: 1, 1, 1>, scalar_prefetch = 0 : i64, scratch_operands = 1 : i64, tpu.core_type = #tpu.core_type<tc>, window_params = [{transform_indices = @transform_0, window_bounds = array<i64: 512, 128>}, {transform_indices = @transform_1, window_bounds = array<i64: 128, 128>}, {transform_indices = @transform_2, window_bounds = array<i64: 1, 128>}, {transform_indices = @transform_3, window_bounds = array<i64: 512, 128>}]} {
    %c0_i32 = arith.constant 0 : i32
    %0 = arith.cmpi eq, %arg2, %c0_i32 : i32
    %1 = arith.extui %0 : i1 to i32
    %c0_i32_0 = arith.constant 0 : i32
    %2 = arith.cmpi ne, %1, %c0_i32_0 : i32
    scf.if %2 {
      %cst_10 = arith.constant 0.000000e+00 : f32
      %12 = vector.broadcast %cst_10 : f32 to vector<512x128xf32>
      %c0_11 = arith.constant 0 : index
      %c0_12 = arith.constant 0 : index
      %13 = vector.load %arg7[%c0_11, %c0_12] : memref<512x128xf32, #tpu.memory_space<vmem>>, vector<512x128xf32>
      tpu.vector_store %arg7[%c0_11, %c0_12], %12 {strides = array<i32>} : memref<512x128xf32, #tpu.memory_space<vmem>>, vector<512x128xf32>,
    } else {
    }
    %c0 = arith.constant 0 : index
    %c0_1 = arith.constant 0 : index
    %3 = vector.load %arg7[%c0, %c0_1] : memref<512x128xf32, #tpu.memory_space<vmem>>, vector<512x128xf32>
    %c0_2 = arith.constant 0 : index
    %c0_3 = arith.constant 0 : index
    %4 = vector.load %arg3[%c0_2, %c0_3] : memref<512x128xbf16, #tpu.memory_space<vmem>>, vector<512x128xbf16>
    %c0_4 = arith.constant 0 : index
    %c0_5 = arith.constant 0 : index
    %5 = vector.load %arg4[%c0_4, %c0_5] : memref<128x128xbf16, #tpu.memory_space<vmem>>, vector<128x128xbf16>
    %cst = arith.constant dense<0.000000e+00> : vector<512x128xf32>
    %6 = tpu.matmul %4, %5, %cst {dimension_numbers = #tpu.dot_dimension_numbers<[1], [0], [0], [1], [0, 0, 1, 1], [], []>} : vector<512x128xbf16>, vector<128x128xbf16>, vector<512x128xf32> -> vector<512x128xf32>
    %7 = arith.addf %3, %6 : vector<512x128xf32>
    %c0_6 = arith.constant 0 : index
    %c0_7 = arith.constant 0 : index
    %8 = vector.load %arg7[%c0_6, %c0_7] : memref<512x128xf32, #tpu.memory_space<vmem>>, vector<512x128xf32>
    tpu.vector_store %arg7[%c0_6, %c0_7], %7 {strides = array<i32>} : memref<512x128xf32, #tpu.memory_space<vmem>>, vector<512x128xf32>,
    %c0_i32_8 = arith.constant 0 : i32
    %9 = arith.cmpi eq, %arg2, %c0_i32_8 : i32
    %10 = arith.extui %9 : i1 to i32
    %c0_i32_9 = arith.constant 0 : i32
    %11 = arith.cmpi ne, %10, %c0_i32_9 : i32
    scf.if %11 {
      %c0_10 = arith.constant 0 : index
      %c0_11 = arith.constant 0 : index
      %12 = vector.load %arg7[%c0_10, %c0_11] : memref<512x128xf32, #tpu.memory_space<vmem>>, vector<512x128xf32>
      %c0_12 = arith.constant 0 : index
      %c0_13 = arith.constant 0 : index
      %13 = vector.load %arg5[%c0_12, %c0_13] : memref<1x128xf32, #tpu.memory_space<vmem>>, vector<1x128xf32>
      %14 = vector.broadcast %13 : vector<1x128xf32> to vector<512x128xf32>
      %15 = arith.addf %12, %14 : vector<512x128xf32>
      %cst_14 = arith.constant 0.000000e+00 : f32
      %16 = vector.broadcast %cst_14 : f32 to vector<512x128xf32>
      %17 = arith.maximumf %15, %16 : vector<512x128xf32>
      %18 = arith.truncf %17 : vector<512x128xf32> to vector<512x128xbf16>
      %c0_15 = arith.constant 0 : index
      %c0_16 = arith.constant 0 : index
      %19 = vector.load %arg6[%c0_15, %c0_16] : memref<512x128xbf16, #tpu.memory_space<vmem>>, vector<512x128xbf16>
      tpu.vector_store %arg6[%c0_15, %c0_16], %18 {strides = array<i32>} : memref<512x128xbf16, #tpu.memory_space<vmem>>, vector<512x128xbf16>,
    } else {
    }
    return
  }
  func.func @transform_0(%arg0: i32, %arg1: i32, %arg2: i32) -> (i32, i32) {
    %c0_i32 = arith.constant 0 : i32
    return %arg0, %arg2 : i32, i32
  }
  func.func @transform_1(%arg0: i32, %arg1: i32, %arg2: i32) -> (i32, i32) {
    %c0_i32 = arith.constant 0 : i32
    return %arg2, %arg1 : i32, i32
  }
  func.func @transform_2(%arg0: i32, %arg1: i32, %arg2: i32) -> (i32, i32) {
    %c0_i32 = arith.constant 0 : i32
    %c0_i32_0 = arith.constant 0 : i32
    return %c0_i32, %arg1 : i32, i32
  }
  func.func @transform_3(%arg0: i32, %arg1: i32, %arg2: i32) -> (i32, i32) {
    %c0_i32 = arith.constant 0 : i32
    return %arg0, %arg1 : i32, i32
  }
}

module attributes {stable_mosaic.version = 11 : i64} {
  func.func @_max4_kernel(%arg0: i32, %arg1: memref<16x512xbf16, #tpu.memory_space<vmem>>, %arg2: memref<16x512xbf16, #tpu.memory_space<vmem>>, %arg3: memref<16x512xbf16, #tpu.memory_space<vmem>>, %arg4: memref<16x512xbf16, #tpu.memory_space<vmem>>, %arg5: memref<16x512xbf16, #tpu.memory_space<vmem>>) attributes {dimension_semantics = [#tpu.dimension_semantics<parallel>], iteration_bounds = array<i64: 1>, scalar_prefetch = 0 : i64, scratch_operands = 0 : i64, tpu.core_type = #tpu.core_type<tc>, window_params = [{transform_indices = @transform_0, window_bounds = array<i64: 16, 512>}, {transform_indices = @transform_1, window_bounds = array<i64: 16, 512>}, {transform_indices = @transform_2, window_bounds = array<i64: 16, 512>}, {transform_indices = @transform_3, window_bounds = array<i64: 16, 512>}, {transform_indices = @transform_4, window_bounds = array<i64: 16, 512>}]} {
    %c0 = arith.constant 0 : index
    %c0_0 = arith.constant 0 : index
    %0 = vector.load %arg1[%c0, %c0_0] : memref<16x512xbf16, #tpu.memory_space<vmem>>, vector<16x512xbf16>
    %c0_1 = arith.constant 0 : index
    %c0_2 = arith.constant 0 : index
    %1 = vector.load %arg2[%c0_1, %c0_2] : memref<16x512xbf16, #tpu.memory_space<vmem>>, vector<16x512xbf16>
    %2 = arith.maximumf %0, %1 : vector<16x512xbf16>
    %c0_3 = arith.constant 0 : index
    %c0_4 = arith.constant 0 : index
    %3 = vector.load %arg3[%c0_3, %c0_4] : memref<16x512xbf16, #tpu.memory_space<vmem>>, vector<16x512xbf16>
    %c0_5 = arith.constant 0 : index
    %c0_6 = arith.constant 0 : index
    %4 = vector.load %arg4[%c0_5, %c0_6] : memref<16x512xbf16, #tpu.memory_space<vmem>>, vector<16x512xbf16>
    %5 = arith.maximumf %3, %4 : vector<16x512xbf16>
    %6 = arith.maximumf %2, %5 : vector<16x512xbf16>
    %c0_7 = arith.constant 0 : index
    %c0_8 = arith.constant 0 : index
    %7 = vector.load %arg5[%c0_7, %c0_8] : memref<16x512xbf16, #tpu.memory_space<vmem>>, vector<16x512xbf16>
    tpu.vector_store %arg5[%c0_7, %c0_8], %6 {strides = array<i32>} : memref<16x512xbf16, #tpu.memory_space<vmem>>, vector<16x512xbf16>,
    return
  }
  func.func @transform_0(%arg0: i32) -> (i32, i32) {
    %c0_i32 = arith.constant 0 : i32
    %c0_i32_0 = arith.constant 0 : i32
    return %arg0, %c0_i32 : i32, i32
  }
  func.func @transform_1(%arg0: i32) -> (i32, i32) {
    %c0_i32 = arith.constant 0 : i32
    %c0_i32_0 = arith.constant 0 : i32
    return %arg0, %c0_i32 : i32, i32
  }
  func.func @transform_2(%arg0: i32) -> (i32, i32) {
    %c0_i32 = arith.constant 0 : i32
    %c0_i32_0 = arith.constant 0 : i32
    return %arg0, %c0_i32 : i32, i32
  }
  func.func @transform_3(%arg0: i32) -> (i32, i32) {
    %c0_i32 = arith.constant 0 : i32
    %c0_i32_0 = arith.constant 0 : i32
    return %arg0, %c0_i32 : i32, i32
  }
  func.func @transform_4(%arg0: i32) -> (i32, i32) {
    %c0_i32 = arith.constant 0 : i32
    %c0_i32_0 = arith.constant 0 : i32
    return %arg0, %c0_i32 : i32, i32
  }
}

module attributes {stable_mosaic.version = 11 : i64} {
  func.func @kernel(%arg0: i32, %arg1: i32, %arg2: i32, %arg3: memref<128x128xbf16, #tpu.memory_space<vmem>>, %arg4: memref<128x128xbf16, #tpu.memory_space<vmem>>, %arg5: memref<1x128xf32, #tpu.memory_space<vmem>>, %arg6: memref<128x128xf32, #tpu.memory_space<vmem>>, %arg7: memref<1x1x128xf32, #tpu.memory_space<vmem>>, %arg8: memref<1x1x128xf32, #tpu.memory_space<vmem>>, %arg9: memref<128x128xf32, #tpu.memory_space<vmem>>) attributes {dimension_semantics = [#tpu.dimension_semantics<parallel>, #tpu.dimension_semantics<parallel>, #tpu.dimension_semantics<arbitrary>], iteration_bounds = array<i64: 1, 1, 1>, scalar_prefetch = 0 : i64, scratch_operands = 1 : i64, tpu.core_type = #tpu.core_type<tc>, window_params = [{transform_indices = @transform_0, window_bounds = array<i64: 128, 128>}, {transform_indices = @transform_1, window_bounds = array<i64: 128, 128>}, {transform_indices = @transform_2, window_bounds = array<i64: 1, 128>}, {transform_indices = @transform_3, window_bounds = array<i64: 128, 128>}, {transform_indices = @transform_4, window_bounds = array<i64: 1, 1, 128>}, {transform_indices = @transform_5, window_bounds = array<i64: 1, 1, 128>}]} {
    %c0_i32 = arith.constant 0 : i32
    %0 = arith.cmpi eq, %arg2, %c0_i32 : i32
    %1 = arith.extui %0 : i1 to i32
    %c0_i32_0 = arith.constant 0 : i32
    %2 = arith.cmpi ne, %1, %c0_i32_0 : i32
    scf.if %2 {
      %cst_10 = arith.constant 0.000000e+00 : f32
      %12 = vector.broadcast %cst_10 : f32 to vector<128x128xf32>
      %c0_11 = arith.constant 0 : index
      %c0_12 = arith.constant 0 : index
      %13 = vector.load %arg9[%c0_11, %c0_12] : memref<128x128xf32, #tpu.memory_space<vmem>>, vector<128x128xf32>
      tpu.vector_store %arg9[%c0_11, %c0_12], %12 {strides = array<i32>} : memref<128x128xf32, #tpu.memory_space<vmem>>, vector<128x128xf32>,
    } else {
    }
    %c0 = arith.constant 0 : index
    %c0_1 = arith.constant 0 : index
    %3 = vector.load %arg9[%c0, %c0_1] : memref<128x128xf32, #tpu.memory_space<vmem>>, vector<128x128xf32>
    %c0_2 = arith.constant 0 : index
    %c0_3 = arith.constant 0 : index
    %4 = vector.load %arg3[%c0_2, %c0_3] : memref<128x128xbf16, #tpu.memory_space<vmem>>, vector<128x128xbf16>
    %c0_4 = arith.constant 0 : index
    %c0_5 = arith.constant 0 : index
    %5 = vector.load %arg4[%c0_4, %c0_5] : memref<128x128xbf16, #tpu.memory_space<vmem>>, vector<128x128xbf16>
    %cst = arith.constant dense<0.000000e+00> : vector<128x128xf32>
    %6 = tpu.matmul %4, %5, %cst {dimension_numbers = #tpu.dot_dimension_numbers<[1], [0], [0], [1], [0, 0, 1, 1], [], []>} : vector<128x128xbf16>, vector<128x128xbf16>, vector<128x128xf32> -> vector<128x128xf32>
    %7 = arith.addf %3, %6 : vector<128x128xf32>
    %c0_6 = arith.constant 0 : index
    %c0_7 = arith.constant 0 : index
    %8 = vector.load %arg9[%c0_6, %c0_7] : memref<128x128xf32, #tpu.memory_space<vmem>>, vector<128x128xf32>
    tpu.vector_store %arg9[%c0_6, %c0_7], %7 {strides = array<i32>} : memref<128x128xf32, #tpu.memory_space<vmem>>, vector<128x128xf32>,
    %c0_i32_8 = arith.constant 0 : i32
    %9 = arith.cmpi eq, %arg2, %c0_i32_8 : i32
    %10 = arith.extui %9 : i1 to i32
    %c0_i32_9 = arith.constant 0 : i32
    %11 = arith.cmpi ne, %10, %c0_i32_9 : i32
    scf.if %11 {
      %c0_10 = arith.constant 0 : index
      %c0_11 = arith.constant 0 : index
      %12 = vector.load %arg9[%c0_10, %c0_11] : memref<128x128xf32, #tpu.memory_space<vmem>>, vector<128x128xf32>
      %c0_12 = arith.constant 0 : index
      %c0_13 = arith.constant 0 : index
      %13 = vector.load %arg5[%c0_12, %c0_13] : memref<1x128xf32, #tpu.memory_space<vmem>>, vector<1x128xf32>
      %14 = vector.broadcast %13 : vector<1x128xf32> to vector<128x128xf32>
      %15 = arith.addf %12, %14 : vector<128x128xf32>
      %c0_14 = arith.constant 0 : index
      %c0_15 = arith.constant 0 : index
      %16 = vector.load %arg6[%c0_14, %c0_15] : memref<128x128xf32, #tpu.memory_space<vmem>>, vector<128x128xf32>
      tpu.vector_store %arg6[%c0_14, %c0_15], %15 {strides = array<i32>} : memref<128x128xf32, #tpu.memory_space<vmem>>, vector<128x128xf32>,
      %cst_16 = arith.constant dense<0.000000e+00> : vector<128xf32>
      %17 = vector.multi_reduction <add>, %15, %cst_16 [0] : vector<128x128xf32> to vector<128xf32>
      %18 = vector.shape_cast %17 : vector<128xf32> to vector<1x128xf32>
      %19 = vector.shape_cast %18 : vector<1x128xf32> to vector<1x1x128xf32>
      %c0_17 = arith.constant 0 : index
      %c0_18 = arith.constant 0 : index
      %c0_19 = arith.constant 0 : index
      %20 = vector.load %arg7[%c0_17, %c0_18, %c0_19] : memref<1x1x128xf32, #tpu.memory_space<vmem>>, vector<1x1x128xf32>
      tpu.vector_store %arg7[%c0_17, %c0_18, %c0_19], %19 {strides = array<i32>} : memref<1x1x128xf32, #tpu.memory_space<vmem>>, vector<1x1x128xf32>,
      %21 = arith.mulf %15, %15 : vector<128x128xf32>
      %cst_20 = arith.constant dense<0.000000e+00> : vector<128xf32>
      %22 = vector.multi_reduction <add>, %21, %cst_20 [0] : vector<128x128xf32> to vector<128xf32>
      %23 = vector.shape_cast %22 : vector<128xf32> to vector<1x128xf32>
      %24 = vector.shape_cast %23 : vector<1x128xf32> to vector<1x1x128xf32>
      %c0_21 = arith.constant 0 : index
      %c0_22 = arith.constant 0 : index
      %c0_23 = arith.constant 0 : index
      %25 = vector.load %arg8[%c0_21, %c0_22, %c0_23] : memref<1x1x128xf32, #tpu.memory_space<vmem>>, vector<1x1x128xf32>
      tpu.vector_store %arg8[%c0_21, %c0_22, %c0_23], %24 {strides = array<i32>} : memref<1x1x128xf32, #tpu.memory_space<vmem>>, vector<1x1x128xf32>,
    } else {
    }
    return
  }
  func.func @transform_0(%arg0: i32, %arg1: i32, %arg2: i32) -> (i32, i32) {
    %c0_i32 = arith.constant 0 : i32
    return %arg0, %arg2 : i32, i32
  }
  func.func @transform_1(%arg0: i32, %arg1: i32, %arg2: i32) -> (i32, i32) {
    %c0_i32 = arith.constant 0 : i32
    return %arg2, %arg1 : i32, i32
  }
  func.func @transform_2(%arg0: i32, %arg1: i32, %arg2: i32) -> (i32, i32) {
    %c0_i32 = arith.constant 0 : i32
    %c0_i32_0 = arith.constant 0 : i32
    return %c0_i32, %arg1 : i32, i32
  }
  func.func @transform_3(%arg0: i32, %arg1: i32, %arg2: i32) -> (i32, i32) {
    %c0_i32 = arith.constant 0 : i32
    return %arg0, %arg1 : i32, i32
  }
  func.func @transform_4(%arg0: i32, %arg1: i32, %arg2: i32) -> (i32, i32, i32) {
    %c0_i32 = arith.constant 0 : i32
    %c0_i32_0 = arith.constant 0 : i32
    return %arg0, %c0_i32, %arg1 : i32, i32, i32
  }
  func.func @transform_5(%arg0: i32, %arg1: i32, %arg2: i32) -> (i32, i32, i32) {
    %c0_i32 = arith.constant 0 : i32
    %c0_i32_0 = arith.constant 0 : i32
    return %arg0, %c0_i32, %arg1 : i32, i32, i32
  }
}

module attributes {stable_mosaic.version = 11 : i64} {
  func.func @kernel(%arg0: i32, %arg1: i32, %arg2: i32, %arg3: memref<128x256xbf16, #tpu.memory_space<vmem>>, %arg4: memref<256x128xbf16, #tpu.memory_space<vmem>>, %arg5: memref<1x128xf32, #tpu.memory_space<vmem>>, %arg6: memref<128x128xbf16, #tpu.memory_space<vmem>>, %arg7: memref<128x128xf32, #tpu.memory_space<vmem>>) attributes {dimension_semantics = [#tpu.dimension_semantics<parallel>, #tpu.dimension_semantics<parallel>, #tpu.dimension_semantics<arbitrary>], iteration_bounds = array<i64: 1, 1, 1>, scalar_prefetch = 0 : i64, scratch_operands = 1 : i64, tpu.core_type = #tpu.core_type<tc>, window_params = [{transform_indices = @transform_0, window_bounds = array<i64: 128, 256>}, {transform_indices = @transform_1, window_bounds = array<i64: 256, 128>}, {transform_indices = @transform_2, window_bounds = array<i64: 1, 128>}, {transform_indices = @transform_3, window_bounds = array<i64: 128, 128>}]} {
    %c0_i32 = arith.constant 0 : i32
    %0 = arith.cmpi eq, %arg2, %c0_i32 : i32
    %1 = arith.extui %0 : i1 to i32
    %c0_i32_0 = arith.constant 0 : i32
    %2 = arith.cmpi ne, %1, %c0_i32_0 : i32
    scf.if %2 {
      %cst_10 = arith.constant 0.000000e+00 : f32
      %12 = vector.broadcast %cst_10 : f32 to vector<128x128xf32>
      %c0_11 = arith.constant 0 : index
      %c0_12 = arith.constant 0 : index
      %13 = vector.load %arg7[%c0_11, %c0_12] : memref<128x128xf32, #tpu.memory_space<vmem>>, vector<128x128xf32>
      tpu.vector_store %arg7[%c0_11, %c0_12], %12 {strides = array<i32>} : memref<128x128xf32, #tpu.memory_space<vmem>>, vector<128x128xf32>,
    } else {
    }
    %c0 = arith.constant 0 : index
    %c0_1 = arith.constant 0 : index
    %3 = vector.load %arg7[%c0, %c0_1] : memref<128x128xf32, #tpu.memory_space<vmem>>, vector<128x128xf32>
    %c0_2 = arith.constant 0 : index
    %c0_3 = arith.constant 0 : index
    %4 = vector.load %arg3[%c0_2, %c0_3] : memref<128x256xbf16, #tpu.memory_space<vmem>>, vector<128x256xbf16>
    %c0_4 = arith.constant 0 : index
    %c0_5 = arith.constant 0 : index
    %5 = vector.load %arg4[%c0_4, %c0_5] : memref<256x128xbf16, #tpu.memory_space<vmem>>, vector<256x128xbf16>
    %cst = arith.constant dense<0.000000e+00> : vector<128x128xf32>
    %6 = tpu.matmul %4, %5, %cst {dimension_numbers = #tpu.dot_dimension_numbers<[1], [0], [0], [1], [0, 0, 1, 1], [], []>} : vector<128x256xbf16>, vector<256x128xbf16>, vector<128x128xf32> -> vector<128x128xf32>
    %7 = arith.addf %3, %6 : vector<128x128xf32>
    %c0_6 = arith.constant 0 : index
    %c0_7 = arith.constant 0 : index
    %8 = vector.load %arg7[%c0_6, %c0_7] : memref<128x128xf32, #tpu.memory_space<vmem>>, vector<128x128xf32>
    tpu.vector_store %arg7[%c0_6, %c0_7], %7 {strides = array<i32>} : memref<128x128xf32, #tpu.memory_space<vmem>>, vector<128x128xf32>,
    %c0_i32_8 = arith.constant 0 : i32
    %9 = arith.cmpi eq, %arg2, %c0_i32_8 : i32
    %10 = arith.extui %9 : i1 to i32
    %c0_i32_9 = arith.constant 0 : i32
    %11 = arith.cmpi ne, %10, %c0_i32_9 : i32
    scf.if %11 {
      %c0_10 = arith.constant 0 : index
      %c0_11 = arith.constant 0 : index
      %12 = vector.load %arg7[%c0_10, %c0_11] : memref<128x128xf32, #tpu.memory_space<vmem>>, vector<128x128xf32>
      %c0_12 = arith.constant 0 : index
      %c0_13 = arith.constant 0 : index
      %13 = vector.load %arg5[%c0_12, %c0_13] : memref<1x128xf32, #tpu.memory_space<vmem>>, vector<1x128xf32>
      %14 = vector.broadcast %13 : vector<1x128xf32> to vector<128x128xf32>
      %15 = arith.addf %12, %14 : vector<128x128xf32>
      %cst_14 = arith.constant 0.000000e+00 : f32
      %16 = vector.broadcast %cst_14 : f32 to vector<128x128xf32>
      %17 = arith.maximumf %15, %16 : vector<128x128xf32>
      %18 = arith.truncf %17 : vector<128x128xf32> to vector<128x128xbf16>
      %c0_15 = arith.constant 0 : index
      %c0_16 = arith.constant 0 : index
      %19 = vector.load %arg6[%c0_15, %c0_16] : memref<128x128xbf16, #tpu.memory_space<vmem>>, vector<128x128xbf16>
      tpu.vector_store %arg6[%c0_15, %c0_16], %18 {strides = array<i32>} : memref<128x128xbf16, #tpu.memory_space<vmem>>, vector<128x128xbf16>,
    } else {
    }
    return
  }
  func.func @transform_0(%arg0: i32, %arg1: i32, %arg2: i32) -> (i32, i32) {
    %c0_i32 = arith.constant 0 : i32
    return %arg0, %arg2 : i32, i32
  }
  func.func @transform_1(%arg0: i32, %arg1: i32, %arg2: i32) -> (i32, i32) {
    %c0_i32 = arith.constant 0 : i32
    return %arg2, %arg1 : i32, i32
  }
  func.func @transform_2(%arg0: i32, %arg1: i32, %arg2: i32) -> (i32, i32) {
    %c0_i32 = arith.constant 0 : i32
    %c0_i32_0 = arith.constant 0 : i32
    return %c0_i32, %arg1 : i32, i32
  }
  func.func @transform_3(%arg0: i32, %arg1: i32, %arg2: i32) -> (i32, i32) {
    %c0_i32 = arith.constant 0 : i32
    return %arg0, %arg1 : i32, i32
  }
}

module attributes {stable_mosaic.version = 11 : i64} {
  func.func @kernel(%arg0: i32, %arg1: i32, %arg2: i32, %arg3: memref<32x256xbf16, #tpu.memory_space<vmem>>, %arg4: memref<256x128xbf16, #tpu.memory_space<vmem>>, %arg5: memref<1x128xf32, #tpu.memory_space<vmem>>, %arg6: memref<32x128xf32, #tpu.memory_space<vmem>>, %arg7: memref<1x1x128xf32, #tpu.memory_space<vmem>>, %arg8: memref<1x1x128xf32, #tpu.memory_space<vmem>>, %arg9: memref<32x128xf32, #tpu.memory_space<vmem>>) attributes {dimension_semantics = [#tpu.dimension_semantics<parallel>, #tpu.dimension_semantics<parallel>, #tpu.dimension_semantics<arbitrary>], iteration_bounds = array<i64: 1, 1, 1>, scalar_prefetch = 0 : i64, scratch_operands = 1 : i64, tpu.core_type = #tpu.core_type<tc>, window_params = [{transform_indices = @transform_0, window_bounds = array<i64: 32, 256>}, {transform_indices = @transform_1, window_bounds = array<i64: 256, 128>}, {transform_indices = @transform_2, window_bounds = array<i64: 1, 128>}, {transform_indices = @transform_3, window_bounds = array<i64: 32, 128>}, {transform_indices = @transform_4, window_bounds = array<i64: 1, 1, 128>}, {transform_indices = @transform_5, window_bounds = array<i64: 1, 1, 128>}]} {
    %c0_i32 = arith.constant 0 : i32
    %0 = arith.cmpi eq, %arg2, %c0_i32 : i32
    %1 = arith.extui %0 : i1 to i32
    %c0_i32_0 = arith.constant 0 : i32
    %2 = arith.cmpi ne, %1, %c0_i32_0 : i32
    scf.if %2 {
      %cst_10 = arith.constant 0.000000e+00 : f32
      %12 = vector.broadcast %cst_10 : f32 to vector<32x128xf32>
      %c0_11 = arith.constant 0 : index
      %c0_12 = arith.constant 0 : index
      %13 = vector.load %arg9[%c0_11, %c0_12] : memref<32x128xf32, #tpu.memory_space<vmem>>, vector<32x128xf32>
      tpu.vector_store %arg9[%c0_11, %c0_12], %12 {strides = array<i32>} : memref<32x128xf32, #tpu.memory_space<vmem>>, vector<32x128xf32>,
    } else {
    }
    %c0 = arith.constant 0 : index
    %c0_1 = arith.constant 0 : index
    %3 = vector.load %arg9[%c0, %c0_1] : memref<32x128xf32, #tpu.memory_space<vmem>>, vector<32x128xf32>
    %c0_2 = arith.constant 0 : index
    %c0_3 = arith.constant 0 : index
    %4 = vector.load %arg3[%c0_2, %c0_3] : memref<32x256xbf16, #tpu.memory_space<vmem>>, vector<32x256xbf16>
    %c0_4 = arith.constant 0 : index
    %c0_5 = arith.constant 0 : index
    %5 = vector.load %arg4[%c0_4, %c0_5] : memref<256x128xbf16, #tpu.memory_space<vmem>>, vector<256x128xbf16>
    %cst = arith.constant dense<0.000000e+00> : vector<32x128xf32>
    %6 = tpu.matmul %4, %5, %cst {dimension_numbers = #tpu.dot_dimension_numbers<[1], [0], [0], [1], [0, 0, 1, 1], [], []>} : vector<32x256xbf16>, vector<256x128xbf16>, vector<32x128xf32> -> vector<32x128xf32>
    %7 = arith.addf %3, %6 : vector<32x128xf32>
    %c0_6 = arith.constant 0 : index
    %c0_7 = arith.constant 0 : index
    %8 = vector.load %arg9[%c0_6, %c0_7] : memref<32x128xf32, #tpu.memory_space<vmem>>, vector<32x128xf32>
    tpu.vector_store %arg9[%c0_6, %c0_7], %7 {strides = array<i32>} : memref<32x128xf32, #tpu.memory_space<vmem>>, vector<32x128xf32>,
    %c0_i32_8 = arith.constant 0 : i32
    %9 = arith.cmpi eq, %arg2, %c0_i32_8 : i32
    %10 = arith.extui %9 : i1 to i32
    %c0_i32_9 = arith.constant 0 : i32
    %11 = arith.cmpi ne, %10, %c0_i32_9 : i32
    scf.if %11 {
      %c0_10 = arith.constant 0 : index
      %c0_11 = arith.constant 0 : index
      %12 = vector.load %arg9[%c0_10, %c0_11] : memref<32x128xf32, #tpu.memory_space<vmem>>, vector<32x128xf32>
      %c0_12 = arith.constant 0 : index
      %c0_13 = arith.constant 0 : index
      %13 = vector.load %arg5[%c0_12, %c0_13] : memref<1x128xf32, #tpu.memory_space<vmem>>, vector<1x128xf32>
      %14 = vector.broadcast %13 : vector<1x128xf32> to vector<32x128xf32>
      %15 = arith.addf %12, %14 : vector<32x128xf32>
      %c0_14 = arith.constant 0 : index
      %c0_15 = arith.constant 0 : index
      %16 = vector.load %arg6[%c0_14, %c0_15] : memref<32x128xf32, #tpu.memory_space<vmem>>, vector<32x128xf32>
      tpu.vector_store %arg6[%c0_14, %c0_15], %15 {strides = array<i32>} : memref<32x128xf32, #tpu.memory_space<vmem>>, vector<32x128xf32>,
      %cst_16 = arith.constant dense<0.000000e+00> : vector<128xf32>
      %17 = vector.multi_reduction <add>, %15, %cst_16 [0] : vector<32x128xf32> to vector<128xf32>
      %18 = vector.shape_cast %17 : vector<128xf32> to vector<1x128xf32>
      %19 = vector.shape_cast %18 : vector<1x128xf32> to vector<1x1x128xf32>
      %c0_17 = arith.constant 0 : index
      %c0_18 = arith.constant 0 : index
      %c0_19 = arith.constant 0 : index
      %20 = vector.load %arg7[%c0_17, %c0_18, %c0_19] : memref<1x1x128xf32, #tpu.memory_space<vmem>>, vector<1x1x128xf32>
      tpu.vector_store %arg7[%c0_17, %c0_18, %c0_19], %19 {strides = array<i32>} : memref<1x1x128xf32, #tpu.memory_space<vmem>>, vector<1x1x128xf32>,
      %21 = arith.mulf %15, %15 : vector<32x128xf32>
      %cst_20 = arith.constant dense<0.000000e+00> : vector<128xf32>
      %22 = vector.multi_reduction <add>, %21, %cst_20 [0] : vector<32x128xf32> to vector<128xf32>
      %23 = vector.shape_cast %22 : vector<128xf32> to vector<1x128xf32>
      %24 = vector.shape_cast %23 : vector<1x128xf32> to vector<1x1x128xf32>
      %c0_21 = arith.constant 0 : index
      %c0_22 = arith.constant 0 : index
      %c0_23 = arith.constant 0 : index
      %25 = vector.load %arg8[%c0_21, %c0_22, %c0_23] : memref<1x1x128xf32, #tpu.memory_space<vmem>>, vector<1x1x128xf32>
      tpu.vector_store %arg8[%c0_21, %c0_22, %c0_23], %24 {strides = array<i32>} : memref<1x1x128xf32, #tpu.memory_space<vmem>>, vector<1x1x128xf32>,
    } else {
    }
    return
  }
  func.func @transform_0(%arg0: i32, %arg1: i32, %arg2: i32) -> (i32, i32) {
    %c0_i32 = arith.constant 0 : i32
    return %arg0, %arg2 : i32, i32
  }
  func.func @transform_1(%arg0: i32, %arg1: i32, %arg2: i32) -> (i32, i32) {
    %c0_i32 = arith.constant 0 : i32
    return %arg2, %arg1 : i32, i32
  }
  func.func @transform_2(%arg0: i32, %arg1: i32, %arg2: i32) -> (i32, i32) {
    %c0_i32 = arith.constant 0 : i32
    %c0_i32_0 = arith.constant 0 : i32
    return %c0_i32, %arg1 : i32, i32
  }
  func.func @transform_3(%arg0: i32, %arg1: i32, %arg2: i32) -> (i32, i32) {
    %c0_i32 = arith.constant 0 : i32
    return %arg0, %arg1 : i32, i32
  }
  func.func @transform_4(%arg0: i32, %arg1: i32, %arg2: i32) -> (i32, i32, i32) {
    %c0_i32 = arith.constant 0 : i32
    %c0_i32_0 = arith.constant 0 : i32
    return %arg0, %c0_i32, %arg1 : i32, i32, i32
  }
  func.func @transform_5(%arg0: i32, %arg1: i32, %arg2: i32) -> (i32, i32, i32) {
    %c0_i32 = arith.constant 0 : i32
    %c0_i32_0 = arith.constant 0 : i32
    return %arg0, %c0_i32, %arg1 : i32, i32, i32
  }
}

module attributes {stable_mosaic.version = 11 : i64} {
  func.func @kernel(%arg0: i32, %arg1: i32, %arg2: i32, %arg3: memref<32x128xbf16, #tpu.memory_space<vmem>>, %arg4: memref<128x128xbf16, #tpu.memory_space<vmem>>, %arg5: memref<1x128xf32, #tpu.memory_space<vmem>>, %arg6: memref<32x128xbf16, #tpu.memory_space<vmem>>, %arg7: memref<32x128xf32, #tpu.memory_space<vmem>>) attributes {dimension_semantics = [#tpu.dimension_semantics<parallel>, #tpu.dimension_semantics<parallel>, #tpu.dimension_semantics<arbitrary>], iteration_bounds = array<i64: 1, 1, 3>, scalar_prefetch = 0 : i64, scratch_operands = 1 : i64, tpu.core_type = #tpu.core_type<tc>, window_params = [{transform_indices = @transform_0, window_bounds = array<i64: 32, 128>}, {transform_indices = @transform_1, window_bounds = array<i64: 128, 128>}, {transform_indices = @transform_2, window_bounds = array<i64: 1, 128>}, {transform_indices = @transform_3, window_bounds = array<i64: 32, 128>}]} {
    %c0_i32 = arith.constant 0 : i32
    %0 = arith.cmpi eq, %arg2, %c0_i32 : i32
    %1 = arith.extui %0 : i1 to i32
    %c0_i32_0 = arith.constant 0 : i32
    %2 = arith.cmpi ne, %1, %c0_i32_0 : i32
    scf.if %2 {
      %cst_9 = arith.constant 0.000000e+00 : f32
      %12 = vector.broadcast %cst_9 : f32 to vector<32x128xf32>
      %c0_10 = arith.constant 0 : index
      %c0_11 = arith.constant 0 : index
      %13 = vector.load %arg7[%c0_10, %c0_11] : memref<32x128xf32, #tpu.memory_space<vmem>>, vector<32x128xf32>
      tpu.vector_store %arg7[%c0_10, %c0_11], %12 {strides = array<i32>} : memref<32x128xf32, #tpu.memory_space<vmem>>, vector<32x128xf32>,
    } else {
    }
    %c0 = arith.constant 0 : index
    %c0_1 = arith.constant 0 : index
    %3 = vector.load %arg7[%c0, %c0_1] : memref<32x128xf32, #tpu.memory_space<vmem>>, vector<32x128xf32>
    %c0_2 = arith.constant 0 : index
    %c0_3 = arith.constant 0 : index
    %4 = vector.load %arg3[%c0_2, %c0_3] : memref<32x128xbf16, #tpu.memory_space<vmem>>, vector<32x128xbf16>
    %c0_4 = arith.constant 0 : index
    %c0_5 = arith.constant 0 : index
    %5 = vector.load %arg4[%c0_4, %c0_5] : memref<128x128xbf16, #tpu.memory_space<vmem>>, vector<128x128xbf16>
    %cst = arith.constant dense<0.000000e+00> : vector<32x128xf32>
    %6 = tpu.matmul %4, %5, %cst {dimension_numbers = #tpu.dot_dimension_numbers<[1], [0], [0], [1], [0, 0, 1, 1], [], []>} : vector<32x128xbf16>, vector<128x128xbf16>, vector<32x128xf32> -> vector<32x128xf32>
    %7 = arith.addf %3, %6 : vector<32x128xf32>
    %c0_6 = arith.constant 0 : index
    %c0_7 = arith.constant 0 : index
    %8 = vector.load %arg7[%c0_6, %c0_7] : memref<32x128xf32, #tpu.memory_space<vmem>>, vector<32x128xf32>
    tpu.vector_store %arg7[%c0_6, %c0_7], %7 {strides = array<i32>} : memref<32x128xf32, #tpu.memory_space<vmem>>, vector<32x128xf32>,
    %c2_i32 = arith.constant 2 : i32
    %9 = arith.cmpi eq, %arg2, %c2_i32 : i32
    %10 = arith.extui %9 : i1 to i32
    %c0_i32_8 = arith.constant 0 : i32
    %11 = arith.cmpi ne, %10, %c0_i32_8 : i32
    scf.if %11 {
      %c0_9 = arith.constant 0 : index
      %c0_10 = arith.constant 0 : index
      %12 = vector.load %arg7[%c0_9, %c0_10] : memref<32x128xf32, #tpu.memory_space<vmem>>, vector<32x128xf32>
      %c0_11 = arith.constant 0 : index
      %c0_12 = arith.constant 0 : index
      %13 = vector.load %arg5[%c0_11, %c0_12] : memref<1x128xf32, #tpu.memory_space<vmem>>, vector<1x128xf32>
      %14 = vector.broadcast %13 : vector<1x128xf32> to vector<32x128xf32>
      %15 = arith.addf %12, %14 : vector<32x128xf32>
      %cst_13 = arith.constant 0.000000e+00 : f32
      %16 = vector.broadcast %cst_13 : f32 to vector<32x128xf32>
      %17 = arith.maximumf %15, %16 : vector<32x128xf32>
      %18 = arith.truncf %17 : vector<32x128xf32> to vector<32x128xbf16>
      %c0_14 = arith.constant 0 : index
      %c0_15 = arith.constant 0 : index
      %19 = vector.load %arg6[%c0_14, %c0_15] : memref<32x128xbf16, #tpu.memory_space<vmem>>, vector<32x128xbf16>
      tpu.vector_store %arg6[%c0_14, %c0_15], %18 {strides = array<i32>} : memref<32x128xbf16, #tpu.memory_space<vmem>>, vector<32x128xbf16>,
    } else {
    }
    return
  }
  func.func @transform_0(%arg0: i32, %arg1: i32, %arg2: i32) -> (i32, i32) {
    %c0_i32 = arith.constant 0 : i32
    return %arg0, %arg2 : i32, i32
  }
  func.func @transform_1(%arg0: i32, %arg1: i32, %arg2: i32) -> (i32, i32) {
    %c0_i32 = arith.constant 0 : i32
    return %arg2, %arg1 : i32, i32
  }
  func.func @transform_2(%arg0: i32, %arg1: i32, %arg2: i32) -> (i32, i32) {
    %c0_i32 = arith.constant 0 : i32
    %c0_i32_0 = arith.constant 0 : i32
    return %c0_i32, %arg1 : i32, i32
  }
  func.func @transform_3(%arg0: i32, %arg1: i32, %arg2: i32) -> (i32, i32) {
    %c0_i32 = arith.constant 0 : i32
    return %arg0, %arg1 : i32, i32
  }
}

module attributes {stable_mosaic.version = 11 : i64} {
  func.func @_max4_kernel(%arg0: i32, %arg1: memref<16x256xbf16, #tpu.memory_space<vmem>>, %arg2: memref<16x256xbf16, #tpu.memory_space<vmem>>, %arg3: memref<16x256xbf16, #tpu.memory_space<vmem>>, %arg4: memref<16x256xbf16, #tpu.memory_space<vmem>>, %arg5: memref<16x256xbf16, #tpu.memory_space<vmem>>) attributes {dimension_semantics = [#tpu.dimension_semantics<parallel>], iteration_bounds = array<i64: 1>, scalar_prefetch = 0 : i64, scratch_operands = 0 : i64, tpu.core_type = #tpu.core_type<tc>, window_params = [{transform_indices = @transform_0, window_bounds = array<i64: 16, 256>}, {transform_indices = @transform_1, window_bounds = array<i64: 16, 256>}, {transform_indices = @transform_2, window_bounds = array<i64: 16, 256>}, {transform_indices = @transform_3, window_bounds = array<i64: 16, 256>}, {transform_indices = @transform_4, window_bounds = array<i64: 16, 256>}]} {
    %c0 = arith.constant 0 : index
    %c0_0 = arith.constant 0 : index
    %0 = vector.load %arg1[%c0, %c0_0] : memref<16x256xbf16, #tpu.memory_space<vmem>>, vector<16x256xbf16>
    %c0_1 = arith.constant 0 : index
    %c0_2 = arith.constant 0 : index
    %1 = vector.load %arg2[%c0_1, %c0_2] : memref<16x256xbf16, #tpu.memory_space<vmem>>, vector<16x256xbf16>
    %2 = arith.maximumf %0, %1 : vector<16x256xbf16>
    %c0_3 = arith.constant 0 : index
    %c0_4 = arith.constant 0 : index
    %3 = vector.load %arg3[%c0_3, %c0_4] : memref<16x256xbf16, #tpu.memory_space<vmem>>, vector<16x256xbf16>
    %c0_5 = arith.constant 0 : index
    %c0_6 = arith.constant 0 : index
    %4 = vector.load %arg4[%c0_5, %c0_6] : memref<16x256xbf16, #tpu.memory_space<vmem>>, vector<16x256xbf16>
    %5 = arith.maximumf %3, %4 : vector<16x256xbf16>
    %6 = arith.maximumf %2, %5 : vector<16x256xbf16>
    %c0_7 = arith.constant 0 : index
    %c0_8 = arith.constant 0 : index
    %7 = vector.load %arg5[%c0_7, %c0_8] : memref<16x256xbf16, #tpu.memory_space<vmem>>, vector<16x256xbf16>
    tpu.vector_store %arg5[%c0_7, %c0_8], %6 {strides = array<i32>} : memref<16x256xbf16, #tpu.memory_space<vmem>>, vector<16x256xbf16>,
    return
  }
  func.func @transform_0(%arg0: i32) -> (i32, i32) {
    %c0_i32 = arith.constant 0 : i32
    %c0_i32_0 = arith.constant 0 : i32
    return %arg0, %c0_i32 : i32, i32
  }
  func.func @transform_1(%arg0: i32) -> (i32, i32) {
    %c0_i32 = arith.constant 0 : i32
    %c0_i32_0 = arith.constant 0 : i32
    return %arg0, %c0_i32 : i32, i32
  }
  func.func @transform_2(%arg0: i32) -> (i32, i32) {
    %c0_i32 = arith.constant 0 : i32
    %c0_i32_0 = arith.constant 0 : i32
    return %arg0, %c0_i32 : i32, i32
  }
  func.func @transform_3(%arg0: i32) -> (i32, i32) {
    %c0_i32 = arith.constant 0 : i32
    %c0_i32_0 = arith.constant 0 : i32
    return %arg0, %c0_i32 : i32, i32
  }
  func.func @transform_4(%arg0: i32) -> (i32, i32) {
    %c0_i32 = arith.constant 0 : i32
    %c0_i32_0 = arith.constant 0 : i32
    return %arg0, %c0_i32 : i32, i32
  }
}

module attributes {stable_mosaic.version = 11 : i64} {
  func.func @kernel(%arg0: i32, %arg1: i32, %arg2: i32, %arg3: memref<16x128xbf16, #tpu.memory_space<vmem>>, %arg4: memref<128x128xbf16, #tpu.memory_space<vmem>>, %arg5: memref<1x128xf32, #tpu.memory_space<vmem>>, %arg6: memref<16x128xf32, #tpu.memory_space<vmem>>, %arg7: memref<1x1x128xf32, #tpu.memory_space<vmem>>, %arg8: memref<1x1x128xf32, #tpu.memory_space<vmem>>, %arg9: memref<16x128xf32, #tpu.memory_space<vmem>>) attributes {dimension_semantics = [#tpu.dimension_semantics<parallel>, #tpu.dimension_semantics<parallel>, #tpu.dimension_semantics<arbitrary>], iteration_bounds = array<i64: 1, 1, 3>, scalar_prefetch = 0 : i64, scratch_operands = 1 : i64, tpu.core_type = #tpu.core_type<tc>, window_params = [{transform_indices = @transform_0, window_bounds = array<i64: 16, 128>}, {transform_indices = @transform_1, window_bounds = array<i64: 128, 128>}, {transform_indices = @transform_2, window_bounds = array<i64: 1, 128>}, {transform_indices = @transform_3, window_bounds = array<i64: 16, 128>}, {transform_indices = @transform_4, window_bounds = array<i64: 1, 1, 128>}, {transform_indices = @transform_5, window_bounds = array<i64: 1, 1, 128>}]} {
    %c0_i32 = arith.constant 0 : i32
    %0 = arith.cmpi eq, %arg2, %c0_i32 : i32
    %1 = arith.extui %0 : i1 to i32
    %c0_i32_0 = arith.constant 0 : i32
    %2 = arith.cmpi ne, %1, %c0_i32_0 : i32
    scf.if %2 {
      %cst_9 = arith.constant 0.000000e+00 : f32
      %12 = vector.broadcast %cst_9 : f32 to vector<16x128xf32>
      %c0_10 = arith.constant 0 : index
      %c0_11 = arith.constant 0 : index
      %13 = vector.load %arg9[%c0_10, %c0_11] : memref<16x128xf32, #tpu.memory_space<vmem>>, vector<16x128xf32>
      tpu.vector_store %arg9[%c0_10, %c0_11], %12 {strides = array<i32>} : memref<16x128xf32, #tpu.memory_space<vmem>>, vector<16x128xf32>,
    } else {
    }
    %c0 = arith.constant 0 : index
    %c0_1 = arith.constant 0 : index
    %3 = vector.load %arg9[%c0, %c0_1] : memref<16x128xf32, #tpu.memory_space<vmem>>, vector<16x128xf32>
    %c0_2 = arith.constant 0 : index
    %c0_3 = arith.constant 0 : index
    %4 = vector.load %arg3[%c0_2, %c0_3] : memref<16x128xbf16, #tpu.memory_space<vmem>>, vector<16x128xbf16>
    %c0_4 = arith.constant 0 : index
    %c0_5 = arith.constant 0 : index
    %5 = vector.load %arg4[%c0_4, %c0_5] : memref<128x128xbf16, #tpu.memory_space<vmem>>, vector<128x128xbf16>
    %cst = arith.constant dense<0.000000e+00> : vector<16x128xf32>
    %6 = tpu.matmul %4, %5, %cst {dimension_numbers = #tpu.dot_dimension_numbers<[1], [0], [0], [1], [0, 0, 1, 1], [], []>} : vector<16x128xbf16>, vector<128x128xbf16>, vector<16x128xf32> -> vector<16x128xf32>
    %7 = arith.addf %3, %6 : vector<16x128xf32>
    %c0_6 = arith.constant 0 : index
    %c0_7 = arith.constant 0 : index
    %8 = vector.load %arg9[%c0_6, %c0_7] : memref<16x128xf32, #tpu.memory_space<vmem>>, vector<16x128xf32>
    tpu.vector_store %arg9[%c0_6, %c0_7], %7 {strides = array<i32>} : memref<16x128xf32, #tpu.memory_space<vmem>>, vector<16x128xf32>,
    %c2_i32 = arith.constant 2 : i32
    %9 = arith.cmpi eq, %arg2, %c2_i32 : i32
    %10 = arith.extui %9 : i1 to i32
    %c0_i32_8 = arith.constant 0 : i32
    %11 = arith.cmpi ne, %10, %c0_i32_8 : i32
    scf.if %11 {
      %c0_9 = arith.constant 0 : index
      %c0_10 = arith.constant 0 : index
      %12 = vector.load %arg9[%c0_9, %c0_10] : memref<16x128xf32, #tpu.memory_space<vmem>>, vector<16x128xf32>
      %c0_11 = arith.constant 0 : index
      %c0_12 = arith.constant 0 : index
      %13 = vector.load %arg5[%c0_11, %c0_12] : memref<1x128xf32, #tpu.memory_space<vmem>>, vector<1x128xf32>
      %14 = vector.broadcast %13 : vector<1x128xf32> to vector<16x128xf32>
      %15 = arith.addf %12, %14 : vector<16x128xf32>
      %c0_13 = arith.constant 0 : index
      %c0_14 = arith.constant 0 : index
      %16 = vector.load %arg6[%c0_13, %c0_14] : memref<16x128xf32, #tpu.memory_space<vmem>>, vector<16x128xf32>
      tpu.vector_store %arg6[%c0_13, %c0_14], %15 {strides = array<i32>} : memref<16x128xf32, #tpu.memory_space<vmem>>, vector<16x128xf32>,
      %cst_15 = arith.constant dense<0.000000e+00> : vector<128xf32>
      %17 = vector.multi_reduction <add>, %15, %cst_15 [0] : vector<16x128xf32> to vector<128xf32>
      %18 = vector.shape_cast %17 : vector<128xf32> to vector<1x128xf32>
      %19 = vector.shape_cast %18 : vector<1x128xf32> to vector<1x1x128xf32>
      %c0_16 = arith.constant 0 : index
      %c0_17 = arith.constant 0 : index
      %c0_18 = arith.constant 0 : index
      %20 = vector.load %arg7[%c0_16, %c0_17, %c0_18] : memref<1x1x128xf32, #tpu.memory_space<vmem>>, vector<1x1x128xf32>
      tpu.vector_store %arg7[%c0_16, %c0_17, %c0_18], %19 {strides = array<i32>} : memref<1x1x128xf32, #tpu.memory_space<vmem>>, vector<1x1x128xf32>,
      %21 = arith.mulf %15, %15 : vector<16x128xf32>
      %cst_19 = arith.constant dense<0.000000e+00> : vector<128xf32>
      %22 = vector.multi_reduction <add>, %21, %cst_19 [0] : vector<16x128xf32> to vector<128xf32>
      %23 = vector.shape_cast %22 : vector<128xf32> to vector<1x128xf32>
      %24 = vector.shape_cast %23 : vector<1x128xf32> to vector<1x1x128xf32>
      %c0_20 = arith.constant 0 : index
      %c0_21 = arith.constant 0 : index
      %c0_22 = arith.constant 0 : index
      %25 = vector.load %arg8[%c0_20, %c0_21, %c0_22] : memref<1x1x128xf32, #tpu.memory_space<vmem>>, vector<1x1x128xf32>
      tpu.vector_store %arg8[%c0_20, %c0_21, %c0_22], %24 {strides = array<i32>} : memref<1x1x128xf32, #tpu.memory_space<vmem>>, vector<1x1x128xf32>,
    } else {
    }
    return
  }
  func.func @transform_0(%arg0: i32, %arg1: i32, %arg2: i32) -> (i32, i32) {
    %c0_i32 = arith.constant 0 : i32
    return %arg0, %arg2 : i32, i32
  }
  func.func @transform_1(%arg0: i32, %arg1: i32, %arg2: i32) -> (i32, i32) {
    %c0_i32 = arith.constant 0 : i32
    return %arg2, %arg1 : i32, i32
  }
  func.func @transform_2(%arg0: i32, %arg1: i32, %arg2: i32) -> (i32, i32) {
    %c0_i32 = arith.constant 0 : i32
    %c0_i32_0 = arith.constant 0 : i32
    return %c0_i32, %arg1 : i32, i32
  }
  func.func @transform_3(%arg0: i32, %arg1: i32, %arg2: i32) -> (i32, i32) {
    %c0_i32 = arith.constant 0 : i32
    return %arg0, %arg1 : i32, i32
  }
  func.func @transform_4(%arg0: i32, %arg1: i32, %arg2: i32) -> (i32, i32, i32) {
    %c0_i32 = arith.constant 0 : i32
    %c0_i32_0 = arith.constant 0 : i32
    return %arg0, %c0_i32, %arg1 : i32, i32, i32
  }
  func.func @transform_5(%arg0: i32, %arg1: i32, %arg2: i32) -> (i32, i32, i32) {
    %c0_i32 = arith.constant 0 : i32
    %c0_i32_0 = arith.constant 0 : i32
    return %arg0, %c0_i32, %arg1 : i32, i32, i32
  }
}

module attributes {stable_mosaic.version = 11 : i64} {
  func.func @kernel(%arg0: i32, %arg1: i32, %arg2: i32, %arg3: memref<16x128xbf16, #tpu.memory_space<vmem>>, %arg4: memref<128x128xbf16, #tpu.memory_space<vmem>>, %arg5: memref<1x128xf32, #tpu.memory_space<vmem>>, %arg6: memref<16x128xbf16, #tpu.memory_space<vmem>>, %arg7: memref<16x128xf32, #tpu.memory_space<vmem>>) attributes {dimension_semantics = [#tpu.dimension_semantics<parallel>, #tpu.dimension_semantics<parallel>, #tpu.dimension_semantics<arbitrary>], iteration_bounds = array<i64: 1, 1, 5>, scalar_prefetch = 0 : i64, scratch_operands = 1 : i64, tpu.core_type = #tpu.core_type<tc>, window_params = [{transform_indices = @transform_0, window_bounds = array<i64: 16, 128>}, {transform_indices = @transform_1, window_bounds = array<i64: 128, 128>}, {transform_indices = @transform_2, window_bounds = array<i64: 1, 128>}, {transform_indices = @transform_3, window_bounds = array<i64: 16, 128>}]} {
    %c0_i32 = arith.constant 0 : i32
    %0 = arith.cmpi eq, %arg2, %c0_i32 : i32
    %1 = arith.extui %0 : i1 to i32
    %c0_i32_0 = arith.constant 0 : i32
    %2 = arith.cmpi ne, %1, %c0_i32_0 : i32
    scf.if %2 {
      %cst_9 = arith.constant 0.000000e+00 : f32
      %12 = vector.broadcast %cst_9 : f32 to vector<16x128xf32>
      %c0_10 = arith.constant 0 : index
      %c0_11 = arith.constant 0 : index
      %13 = vector.load %arg7[%c0_10, %c0_11] : memref<16x128xf32, #tpu.memory_space<vmem>>, vector<16x128xf32>
      tpu.vector_store %arg7[%c0_10, %c0_11], %12 {strides = array<i32>} : memref<16x128xf32, #tpu.memory_space<vmem>>, vector<16x128xf32>,
    } else {
    }
    %c0 = arith.constant 0 : index
    %c0_1 = arith.constant 0 : index
    %3 = vector.load %arg7[%c0, %c0_1] : memref<16x128xf32, #tpu.memory_space<vmem>>, vector<16x128xf32>
    %c0_2 = arith.constant 0 : index
    %c0_3 = arith.constant 0 : index
    %4 = vector.load %arg3[%c0_2, %c0_3] : memref<16x128xbf16, #tpu.memory_space<vmem>>, vector<16x128xbf16>
    %c0_4 = arith.constant 0 : index
    %c0_5 = arith.constant 0 : index
    %5 = vector.load %arg4[%c0_4, %c0_5] : memref<128x128xbf16, #tpu.memory_space<vmem>>, vector<128x128xbf16>
    %cst = arith.constant dense<0.000000e+00> : vector<16x128xf32>
    %6 = tpu.matmul %4, %5, %cst {dimension_numbers = #tpu.dot_dimension_numbers<[1], [0], [0], [1], [0, 0, 1, 1], [], []>} : vector<16x128xbf16>, vector<128x128xbf16>, vector<16x128xf32> -> vector<16x128xf32>
    %7 = arith.addf %3, %6 : vector<16x128xf32>
    %c0_6 = arith.constant 0 : index
    %c0_7 = arith.constant 0 : index
    %8 = vector.load %arg7[%c0_6, %c0_7] : memref<16x128xf32, #tpu.memory_space<vmem>>, vector<16x128xf32>
    tpu.vector_store %arg7[%c0_6, %c0_7], %7 {strides = array<i32>} : memref<16x128xf32, #tpu.memory_space<vmem>>, vector<16x128xf32>,
    %c4_i32 = arith.constant 4 : i32
    %9 = arith.cmpi eq, %arg2, %c4_i32 : i32
    %10 = arith.extui %9 : i1 to i32
    %c0_i32_8 = arith.constant 0 : i32
    %11 = arith.cmpi ne, %10, %c0_i32_8 : i32
    scf.if %11 {
      %c0_9 = arith.constant 0 : index
      %c0_10 = arith.constant 0 : index
      %12 = vector.load %arg7[%c0_9, %c0_10] : memref<16x128xf32, #tpu.memory_space<vmem>>, vector<16x128xf32>
      %c0_11 = arith.constant 0 : index
      %c0_12 = arith.constant 0 : index
      %13 = vector.load %arg5[%c0_11, %c0_12] : memref<1x128xf32, #tpu.memory_space<vmem>>, vector<1x128xf32>
      %14 = vector.broadcast %13 : vector<1x128xf32> to vector<16x128xf32>
      %15 = arith.addf %12, %14 : vector<16x128xf32>
      %cst_13 = arith.constant 0.000000e+00 : f32
      %16 = vector.broadcast %cst_13 : f32 to vector<16x128xf32>
      %17 = arith.maximumf %15, %16 : vector<16x128xf32>
      %18 = arith.truncf %17 : vector<16x128xf32> to vector<16x128xbf16>
      %c0_14 = arith.constant 0 : index
      %c0_15 = arith.constant 0 : index
      %19 = vector.load %arg6[%c0_14, %c0_15] : memref<16x128xbf16, #tpu.memory_space<vmem>>, vector<16x128xbf16>
      tpu.vector_store %arg6[%c0_14, %c0_15], %18 {strides = array<i32>} : memref<16x128xbf16, #tpu.memory_space<vmem>>, vector<16x128xbf16>,
    } else {
    }
    return
  }
  func.func @transform_0(%arg0: i32, %arg1: i32, %arg2: i32) -> (i32, i32) {
    %c0_i32 = arith.constant 0 : i32
    return %arg0, %arg2 : i32, i32
  }
  func.func @transform_1(%arg0: i32, %arg1: i32, %arg2: i32) -> (i32, i32) {
    %c0_i32 = arith.constant 0 : i32
    return %arg2, %arg1 : i32, i32
  }
  func.func @transform_2(%arg0: i32, %arg1: i32, %arg2: i32) -> (i32, i32) {
    %c0_i32 = arith.constant 0 : i32
    %c0_i32_0 = arith.constant 0 : i32
    return %c0_i32, %arg1 : i32, i32
  }
  func.func @transform_3(%arg0: i32, %arg1: i32, %arg2: i32) -> (i32, i32) {
    %c0_i32 = arith.constant 0 : i32
    return %arg0, %arg1 : i32, i32
  }
}

module attributes {stable_mosaic.version = 11 : i64} {
  func.func @_max4_kernel(%arg0: i32, %arg1: memref<16x128xbf16, #tpu.memory_space<vmem>>, %arg2: memref<16x128xbf16, #tpu.memory_space<vmem>>, %arg3: memref<16x128xbf16, #tpu.memory_space<vmem>>, %arg4: memref<16x128xbf16, #tpu.memory_space<vmem>>, %arg5: memref<16x128xbf16, #tpu.memory_space<vmem>>) attributes {dimension_semantics = [#tpu.dimension_semantics<parallel>], iteration_bounds = array<i64: 1>, scalar_prefetch = 0 : i64, scratch_operands = 0 : i64, tpu.core_type = #tpu.core_type<tc>, window_params = [{transform_indices = @transform_0, window_bounds = array<i64: 16, 128>}, {transform_indices = @transform_1, window_bounds = array<i64: 16, 128>}, {transform_indices = @transform_2, window_bounds = array<i64: 16, 128>}, {transform_indices = @transform_3, window_bounds = array<i64: 16, 128>}, {transform_indices = @transform_4, window_bounds = array<i64: 16, 128>}]} {
    %c0 = arith.constant 0 : index
    %c0_0 = arith.constant 0 : index
    %0 = vector.load %arg1[%c0, %c0_0] : memref<16x128xbf16, #tpu.memory_space<vmem>>, vector<16x128xbf16>
    %c0_1 = arith.constant 0 : index
    %c0_2 = arith.constant 0 : index
    %1 = vector.load %arg2[%c0_1, %c0_2] : memref<16x128xbf16, #tpu.memory_space<vmem>>, vector<16x128xbf16>
    %2 = arith.maximumf %0, %1 : vector<16x128xbf16>
    %c0_3 = arith.constant 0 : index
    %c0_4 = arith.constant 0 : index
    %3 = vector.load %arg3[%c0_3, %c0_4] : memref<16x128xbf16, #tpu.memory_space<vmem>>, vector<16x128xbf16>
    %c0_5 = arith.constant 0 : index
    %c0_6 = arith.constant 0 : index
    %4 = vector.load %arg4[%c0_5, %c0_6] : memref<16x128xbf16, #tpu.memory_space<vmem>>, vector<16x128xbf16>
    %5 = arith.maximumf %3, %4 : vector<16x128xbf16>
    %6 = arith.maximumf %2, %5 : vector<16x128xbf16>
    %c0_7 = arith.constant 0 : index
    %c0_8 = arith.constant 0 : index
    %7 = vector.load %arg5[%c0_7, %c0_8] : memref<16x128xbf16, #tpu.memory_space<vmem>>, vector<16x128xbf16>
    tpu.vector_store %arg5[%c0_7, %c0_8], %6 {strides = array<i32>} : memref<16x128xbf16, #tpu.memory_space<vmem>>, vector<16x128xbf16>,
    return
  }
  func.func @transform_0(%arg0: i32) -> (i32, i32) {
    %c0_i32 = arith.constant 0 : i32
    %c0_i32_0 = arith.constant 0 : i32
    return %arg0, %c0_i32 : i32, i32
  }
  func.func @transform_1(%arg0: i32) -> (i32, i32) {
    %c0_i32 = arith.constant 0 : i32
    %c0_i32_0 = arith.constant 0 : i32
    return %arg0, %c0_i32 : i32, i32
  }
  func.func @transform_2(%arg0: i32) -> (i32, i32) {
    %c0_i32 = arith.constant 0 : i32
    %c0_i32_0 = arith.constant 0 : i32
    return %arg0, %c0_i32 : i32, i32
  }
  func.func @transform_3(%arg0: i32) -> (i32, i32) {
    %c0_i32 = arith.constant 0 : i32
    %c0_i32_0 = arith.constant 0 : i32
    return %arg0, %c0_i32 : i32, i32
  }
  func.func @transform_4(%arg0: i32) -> (i32, i32) {
    %c0_i32 = arith.constant 0 : i32
    %c0_i32_0 = arith.constant 0 : i32
    return %arg0, %c0_i32 : i32, i32
  }
}

module attributes {stable_mosaic.version = 11 : i64} {
  func.func @kernel(%arg0: i32, %arg1: i32, %arg2: i32, %arg3: memref<16x128xbf16, #tpu.memory_space<vmem>>, %arg4: memref<128x128xbf16, #tpu.memory_space<vmem>>, %arg5: memref<1x128xf32, #tpu.memory_space<vmem>>, %arg6: memref<16x128xf32, #tpu.memory_space<vmem>>, %arg7: memref<1x1x128xf32, #tpu.memory_space<vmem>>, %arg8: memref<1x1x128xf32, #tpu.memory_space<vmem>>, %arg9: memref<16x128xf32, #tpu.memory_space<vmem>>) attributes {dimension_semantics = [#tpu.dimension_semantics<parallel>, #tpu.dimension_semantics<parallel>, #tpu.dimension_semantics<arbitrary>], iteration_bounds = array<i64: 1, 1, 5>, scalar_prefetch = 0 : i64, scratch_operands = 1 : i64, tpu.core_type = #tpu.core_type<tc>, window_params = [{transform_indices = @transform_0, window_bounds = array<i64: 16, 128>}, {transform_indices = @transform_1, window_bounds = array<i64: 128, 128>}, {transform_indices = @transform_2, window_bounds = array<i64: 1, 128>}, {transform_indices = @transform_3, window_bounds = array<i64: 16, 128>}, {transform_indices = @transform_4, window_bounds = array<i64: 1, 1, 128>}, {transform_indices = @transform_5, window_bounds = array<i64: 1, 1, 128>}]} {
    %c0_i32 = arith.constant 0 : i32
    %0 = arith.cmpi eq, %arg2, %c0_i32 : i32
    %1 = arith.extui %0 : i1 to i32
    %c0_i32_0 = arith.constant 0 : i32
    %2 = arith.cmpi ne, %1, %c0_i32_0 : i32
    scf.if %2 {
      %cst_9 = arith.constant 0.000000e+00 : f32
      %12 = vector.broadcast %cst_9 : f32 to vector<16x128xf32>
      %c0_10 = arith.constant 0 : index
      %c0_11 = arith.constant 0 : index
      %13 = vector.load %arg9[%c0_10, %c0_11] : memref<16x128xf32, #tpu.memory_space<vmem>>, vector<16x128xf32>
      tpu.vector_store %arg9[%c0_10, %c0_11], %12 {strides = array<i32>} : memref<16x128xf32, #tpu.memory_space<vmem>>, vector<16x128xf32>,
    } else {
    }
    %c0 = arith.constant 0 : index
    %c0_1 = arith.constant 0 : index
    %3 = vector.load %arg9[%c0, %c0_1] : memref<16x128xf32, #tpu.memory_space<vmem>>, vector<16x128xf32>
    %c0_2 = arith.constant 0 : index
    %c0_3 = arith.constant 0 : index
    %4 = vector.load %arg3[%c0_2, %c0_3] : memref<16x128xbf16, #tpu.memory_space<vmem>>, vector<16x128xbf16>
    %c0_4 = arith.constant 0 : index
    %c0_5 = arith.constant 0 : index
    %5 = vector.load %arg4[%c0_4, %c0_5] : memref<128x128xbf16, #tpu.memory_space<vmem>>, vector<128x128xbf16>
    %cst = arith.constant dense<0.000000e+00> : vector<16x128xf32>
    %6 = tpu.matmul %4, %5, %cst {dimension_numbers = #tpu.dot_dimension_numbers<[1], [0], [0], [1], [0, 0, 1, 1], [], []>} : vector<16x128xbf16>, vector<128x128xbf16>, vector<16x128xf32> -> vector<16x128xf32>
    %7 = arith.addf %3, %6 : vector<16x128xf32>
    %c0_6 = arith.constant 0 : index
    %c0_7 = arith.constant 0 : index
    %8 = vector.load %arg9[%c0_6, %c0_7] : memref<16x128xf32, #tpu.memory_space<vmem>>, vector<16x128xf32>
    tpu.vector_store %arg9[%c0_6, %c0_7], %7 {strides = array<i32>} : memref<16x128xf32, #tpu.memory_space<vmem>>, vector<16x128xf32>,
    %c4_i32 = arith.constant 4 : i32
    %9 = arith.cmpi eq, %arg2, %c4_i32 : i32
    %10 = arith.extui %9 : i1 to i32
    %c0_i32_8 = arith.constant 0 : i32
    %11 = arith.cmpi ne, %10, %c0_i32_8 : i32
    scf.if %11 {
      %c0_9 = arith.constant 0 : index
      %c0_10 = arith.constant 0 : index
      %12 = vector.load %arg9[%c0_9, %c0_10] : memref<16x128xf32, #tpu.memory_space<vmem>>, vector<16x128xf32>
      %c0_11 = arith.constant 0 : index
      %c0_12 = arith.constant 0 : index
      %13 = vector.load %arg5[%c0_11, %c0_12] : memref<1x128xf32, #tpu.memory_space<vmem>>, vector<1x128xf32>
      %14 = vector.broadcast %13 : vector<1x128xf32> to vector<16x128xf32>
      %15 = arith.addf %12, %14 : vector<16x128xf32>
      %c0_13 = arith.constant 0 : index
      %c0_14 = arith.constant 0 : index
      %16 = vector.load %arg6[%c0_13, %c0_14] : memref<16x128xf32, #tpu.memory_space<vmem>>, vector<16x128xf32>
      tpu.vector_store %arg6[%c0_13, %c0_14], %15 {strides = array<i32>} : memref<16x128xf32, #tpu.memory_space<vmem>>, vector<16x128xf32>,
      %cst_15 = arith.constant dense<0.000000e+00> : vector<128xf32>
      %17 = vector.multi_reduction <add>, %15, %cst_15 [0] : vector<16x128xf32> to vector<128xf32>
      %18 = vector.shape_cast %17 : vector<128xf32> to vector<1x128xf32>
      %19 = vector.shape_cast %18 : vector<1x128xf32> to vector<1x1x128xf32>
      %c0_16 = arith.constant 0 : index
      %c0_17 = arith.constant 0 : index
      %c0_18 = arith.constant 0 : index
      %20 = vector.load %arg7[%c0_16, %c0_17, %c0_18] : memref<1x1x128xf32, #tpu.memory_space<vmem>>, vector<1x1x128xf32>
      tpu.vector_store %arg7[%c0_16, %c0_17, %c0_18], %19 {strides = array<i32>} : memref<1x1x128xf32, #tpu.memory_space<vmem>>, vector<1x1x128xf32>,
      %21 = arith.mulf %15, %15 : vector<16x128xf32>
      %cst_19 = arith.constant dense<0.000000e+00> : vector<128xf32>
      %22 = vector.multi_reduction <add>, %21, %cst_19 [0] : vector<16x128xf32> to vector<128xf32>
      %23 = vector.shape_cast %22 : vector<128xf32> to vector<1x128xf32>
      %24 = vector.shape_cast %23 : vector<1x128xf32> to vector<1x1x128xf32>
      %c0_20 = arith.constant 0 : index
      %c0_21 = arith.constant 0 : index
      %c0_22 = arith.constant 0 : index
      %25 = vector.load %arg8[%c0_20, %c0_21, %c0_22] : memref<1x1x128xf32, #tpu.memory_space<vmem>>, vector<1x1x128xf32>
      tpu.vector_store %arg8[%c0_20, %c0_21, %c0_22], %24 {strides = array<i32>} : memref<1x1x128xf32, #tpu.memory_space<vmem>>, vector<1x1x128xf32>,
    } else {
    }
    return
  }
  func.func @transform_0(%arg0: i32, %arg1: i32, %arg2: i32) -> (i32, i32) {
    %c0_i32 = arith.constant 0 : i32
    return %arg0, %arg2 : i32, i32
  }
  func.func @transform_1(%arg0: i32, %arg1: i32, %arg2: i32) -> (i32, i32) {
    %c0_i32 = arith.constant 0 : i32
    return %arg2, %arg1 : i32, i32
  }
  func.func @transform_2(%arg0: i32, %arg1: i32, %arg2: i32) -> (i32, i32) {
    %c0_i32 = arith.constant 0 : i32
    %c0_i32_0 = arith.constant 0 : i32
    return %c0_i32, %arg1 : i32, i32
  }
  func.func @transform_3(%arg0: i32, %arg1: i32, %arg2: i32) -> (i32, i32) {
    %c0_i32 = arith.constant 0 : i32
    return %arg0, %arg1 : i32, i32
  }
  func.func @transform_4(%arg0: i32, %arg1: i32, %arg2: i32) -> (i32, i32, i32) {
    %c0_i32 = arith.constant 0 : i32
    %c0_i32_0 = arith.constant 0 : i32
    return %arg0, %c0_i32, %arg1 : i32, i32, i32
  }
  func.func @transform_5(%arg0: i32, %arg1: i32, %arg2: i32) -> (i32, i32, i32) {
    %c0_i32 = arith.constant 0 : i32
    %c0_i32_0 = arith.constant 0 : i32
    return %arg0, %c0_i32, %arg1 : i32, i32, i32
  }
}

module attributes {stable_mosaic.version = 11 : i64} {
  func.func @_ssr_kernel(%arg0: i32, %arg1: memref<16x256xf32, #tpu.memory_space<vmem>>, %arg2: memref<1x256xf32, #tpu.memory_space<vmem>>, %arg3: memref<1x256xf32, #tpu.memory_space<vmem>>, %arg4: memref<16x256xbf16, #tpu.memory_space<vmem>>) attributes {dimension_semantics = [#tpu.dimension_semantics<parallel>], iteration_bounds = array<i64: 1>, scalar_prefetch = 0 : i64, scratch_operands = 0 : i64, tpu.core_type = #tpu.core_type<tc>, window_params = [{transform_indices = @transform_0, window_bounds = array<i64: 16, 256>}, {pipeline_mode = #tpu.pipeline_mode<synchronous>, transform_indices = @transform_1, window_bounds = array<i64: 1, 256>}, {pipeline_mode = #tpu.pipeline_mode<synchronous>, transform_indices = @transform_2, window_bounds = array<i64: 1, 256>}, {transform_indices = @transform_3, window_bounds = array<i64: 16, 256>}]} {
    %c0 = arith.constant 0 : index
    %c0_0 = arith.constant 0 : index
    %0 = vector.load %arg1[%c0, %c0_0] : memref<16x256xf32, #tpu.memory_space<vmem>>, vector<16x256xf32>
    %c0_1 = arith.constant 0 : index
    %c0_2 = arith.constant 0 : index
    %1 = vector.load %arg2[%c0_1, %c0_2] : memref<1x256xf32, #tpu.memory_space<vmem>>, vector<1x256xf32>
    %2 = vector.broadcast %1 : vector<1x256xf32> to vector<16x256xf32>
    %3 = arith.mulf %0, %2 : vector<16x256xf32>
    %c0_3 = arith.constant 0 : index
    %c0_4 = arith.constant 0 : index
    %4 = vector.load %arg3[%c0_3, %c0_4] : memref<1x256xf32, #tpu.memory_space<vmem>>, vector<1x256xf32>
    %5 = vector.broadcast %4 : vector<1x256xf32> to vector<16x256xf32>
    %6 = arith.addf %3, %5 : vector<16x256xf32>
    %cst = arith.constant 0.000000e+00 : f32
    %7 = vector.broadcast %cst : f32 to vector<16x256xf32>
    %8 = arith.maximumf %6, %7 : vector<16x256xf32>
    %9 = arith.truncf %8 : vector<16x256xf32> to vector<16x256xbf16>
    %c0_5 = arith.constant 0 : index
    %c0_6 = arith.constant 0 : index
    %10 = vector.load %arg4[%c0_5, %c0_6] : memref<16x256xbf16, #tpu.memory_space<vmem>>, vector<16x256xbf16>
    tpu.vector_store %arg4[%c0_5, %c0_6], %9 {strides = array<i32>} : memref<16x256xbf16, #tpu.memory_space<vmem>>, vector<16x256xbf16>,
    return
  }
  func.func @transform_0(%arg0: i32) -> (i32, i32) {
    %c0_i32 = arith.constant 0 : i32
    %c0_i32_0 = arith.constant 0 : i32
    return %arg0, %c0_i32 : i32, i32
  }
  func.func @transform_1(%arg0: i32) -> (i32, i32) {
    %c0_i32 = arith.constant 0 : i32
    %c0_i32_0 = arith.constant 0 : i32
    %c0_i32_1 = arith.constant 0 : i32
    return %c0_i32, %c0_i32_0 : i32, i32
  }
  func.func @transform_2(%arg0: i32) -> (i32, i32) {
    %c0_i32 = arith.constant 0 : i32
    %c0_i32_0 = arith.constant 0 : i32
    %c0_i32_1 = arith.constant 0 : i32
    return %c0_i32, %c0_i32_0 : i32, i32
  }
  func.func @transform_3(%arg0: i32) -> (i32, i32) {
    %c0_i32 = arith.constant 0 : i32
    %c0_i32_0 = arith.constant 0 : i32
    return %arg0, %c0_i32 : i32, i32
  }
}

module attributes {stable_mosaic.version = 11 : i64} {
  func.func @kernel(%arg0: i32, %arg1: i32, %arg2: i32, %arg3: memref<16x128xbf16, #tpu.memory_space<vmem>>, %arg4: memref<128x128xbf16, #tpu.memory_space<vmem>>, %arg5: memref<1x128xf32, #tpu.memory_space<vmem>>, %arg6: memref<16x128xbf16, #tpu.memory_space<vmem>>, %arg7: memref<16x128xf32, #tpu.memory_space<vmem>>) attributes {dimension_semantics = [#tpu.dimension_semantics<parallel>, #tpu.dimension_semantics<parallel>, #tpu.dimension_semantics<arbitrary>], iteration_bounds = array<i64: 1, 1, 9>, scalar_prefetch = 0 : i64, scratch_operands = 1 : i64, tpu.core_type = #tpu.core_type<tc>, window_params = [{transform_indices = @transform_0, window_bounds = array<i64: 16, 128>}, {transform_indices = @transform_1, window_bounds = array<i64: 128, 128>}, {transform_indices = @transform_2, window_bounds = array<i64: 1, 128>}, {transform_indices = @transform_3, window_bounds = array<i64: 16, 128>}]} {
    %c0_i32 = arith.constant 0 : i32
    %0 = arith.cmpi eq, %arg2, %c0_i32 : i32
    %1 = arith.extui %0 : i1 to i32
    %c0_i32_0 = arith.constant 0 : i32
    %2 = arith.cmpi ne, %1, %c0_i32_0 : i32
    scf.if %2 {
      %cst_9 = arith.constant 0.000000e+00 : f32
      %12 = vector.broadcast %cst_9 : f32 to vector<16x128xf32>
      %c0_10 = arith.constant 0 : index
      %c0_11 = arith.constant 0 : index
      %13 = vector.load %arg7[%c0_10, %c0_11] : memref<16x128xf32, #tpu.memory_space<vmem>>, vector<16x128xf32>
      tpu.vector_store %arg7[%c0_10, %c0_11], %12 {strides = array<i32>} : memref<16x128xf32, #tpu.memory_space<vmem>>, vector<16x128xf32>,
    } else {
    }
    %c0 = arith.constant 0 : index
    %c0_1 = arith.constant 0 : index
    %3 = vector.load %arg7[%c0, %c0_1] : memref<16x128xf32, #tpu.memory_space<vmem>>, vector<16x128xf32>
    %c0_2 = arith.constant 0 : index
    %c0_3 = arith.constant 0 : index
    %4 = vector.load %arg3[%c0_2, %c0_3] : memref<16x128xbf16, #tpu.memory_space<vmem>>, vector<16x128xbf16>
    %c0_4 = arith.constant 0 : index
    %c0_5 = arith.constant 0 : index
    %5 = vector.load %arg4[%c0_4, %c0_5] : memref<128x128xbf16, #tpu.memory_space<vmem>>, vector<128x128xbf16>
    %cst = arith.constant dense<0.000000e+00> : vector<16x128xf32>
    %6 = tpu.matmul %4, %5, %cst {dimension_numbers = #tpu.dot_dimension_numbers<[1], [0], [0], [1], [0, 0, 1, 1], [], []>} : vector<16x128xbf16>, vector<128x128xbf16>, vector<16x128xf32> -> vector<16x128xf32>
    %7 = arith.addf %3, %6 : vector<16x128xf32>
    %c0_6 = arith.constant 0 : index
    %c0_7 = arith.constant 0 : index
    %8 = vector.load %arg7[%c0_6, %c0_7] : memref<16x128xf32, #tpu.memory_space<vmem>>, vector<16x128xf32>
    tpu.vector_store %arg7[%c0_6, %c0_7], %7 {strides = array<i32>} : memref<16x128xf32, #tpu.memory_space<vmem>>, vector<16x128xf32>,
    %c8_i32 = arith.constant 8 : i32
    %9 = arith.cmpi eq, %arg2, %c8_i32 : i32
    %10 = arith.extui %9 : i1 to i32
    %c0_i32_8 = arith.constant 0 : i32
    %11 = arith.cmpi ne, %10, %c0_i32_8 : i32
    scf.if %11 {
      %c0_9 = arith.constant 0 : index
      %c0_10 = arith.constant 0 : index
      %12 = vector.load %arg7[%c0_9, %c0_10] : memref<16x128xf32, #tpu.memory_space<vmem>>, vector<16x128xf32>
      %c0_11 = arith.constant 0 : index
      %c0_12 = arith.constant 0 : index
      %13 = vector.load %arg5[%c0_11, %c0_12] : memref<1x128xf32, #tpu.memory_space<vmem>>, vector<1x128xf32>
      %14 = vector.broadcast %13 : vector<1x128xf32> to vector<16x128xf32>
      %15 = arith.addf %12, %14 : vector<16x128xf32>
      %cst_13 = arith.constant 0.000000e+00 : f32
      %16 = vector.broadcast %cst_13 : f32 to vector<16x128xf32>
      %17 = arith.maximumf %15, %16 : vector<16x128xf32>
      %18 = arith.truncf %17 : vector<16x128xf32> to vector<16x128xbf16>
      %c0_14 = arith.constant 0 : index
      %c0_15 = arith.constant 0 : index
      %19 = vector.load %arg6[%c0_14, %c0_15] : memref<16x128xbf16, #tpu.memory_space<vmem>>, vector<16x128xbf16>
      tpu.vector_store %arg6[%c0_14, %c0_15], %18 {strides = array<i32>} : memref<16x128xbf16, #tpu.memory_space<vmem>>, vector<16x128xbf16>,
    } else {
    }
    return
  }
  func.func @transform_0(%arg0: i32, %arg1: i32, %arg2: i32) -> (i32, i32) {
    %c0_i32 = arith.constant 0 : i32
    return %arg0, %arg2 : i32, i32
  }
  func.func @transform_1(%arg0: i32, %arg1: i32, %arg2: i32) -> (i32, i32) {
    %c0_i32 = arith.constant 0 : i32
    return %arg2, %arg1 : i32, i32
  }
  func.func @transform_2(%arg0: i32, %arg1: i32, %arg2: i32) -> (i32, i32) {
    %c0_i32 = arith.constant 0 : i32
    %c0_i32_0 = arith.constant 0 : i32
    return %c0_i32, %arg1 : i32, i32
  }
  func.func @transform_3(%arg0: i32, %arg1: i32, %arg2: i32) -> (i32, i32) {
    %c0_i32 = arith.constant 0 : i32
    return %arg0, %arg1 : i32, i32
  }
}

module attributes {stable_mosaic.version = 11 : i64} {
  func.func @kernel(%arg0: i32, %arg1: i32, %arg2: i32, %arg3: memref<16x128xbf16, #tpu.memory_space<vmem>>, %arg4: memref<128x256xbf16, #tpu.memory_space<vmem>>, %arg5: memref<1x256xf32, #tpu.memory_space<vmem>>, %arg6: memref<16x256xbf16, #tpu.memory_space<vmem>>, %arg7: memref<16x256xf32, #tpu.memory_space<vmem>>) attributes {dimension_semantics = [#tpu.dimension_semantics<parallel>, #tpu.dimension_semantics<parallel>, #tpu.dimension_semantics<arbitrary>], iteration_bounds = array<i64: 1, 1, 1>, scalar_prefetch = 0 : i64, scratch_operands = 1 : i64, tpu.core_type = #tpu.core_type<tc>, window_params = [{transform_indices = @transform_0, window_bounds = array<i64: 16, 128>}, {transform_indices = @transform_1, window_bounds = array<i64: 128, 256>}, {transform_indices = @transform_2, window_bounds = array<i64: 1, 256>}, {transform_indices = @transform_3, window_bounds = array<i64: 16, 256>}]} {
    %c0_i32 = arith.constant 0 : i32
    %0 = arith.cmpi eq, %arg2, %c0_i32 : i32
    %1 = arith.extui %0 : i1 to i32
    %c0_i32_0 = arith.constant 0 : i32
    %2 = arith.cmpi ne, %1, %c0_i32_0 : i32
    scf.if %2 {
      %cst_10 = arith.constant 0.000000e+00 : f32
      %12 = vector.broadcast %cst_10 : f32 to vector<16x256xf32>
      %c0_11 = arith.constant 0 : index
      %c0_12 = arith.constant 0 : index
      %13 = vector.load %arg7[%c0_11, %c0_12] : memref<16x256xf32, #tpu.memory_space<vmem>>, vector<16x256xf32>
      tpu.vector_store %arg7[%c0_11, %c0_12], %12 {strides = array<i32>} : memref<16x256xf32, #tpu.memory_space<vmem>>, vector<16x256xf32>,
    } else {
    }
    %c0 = arith.constant 0 : index
    %c0_1 = arith.constant 0 : index
    %3 = vector.load %arg7[%c0, %c0_1] : memref<16x256xf32, #tpu.memory_space<vmem>>, vector<16x256xf32>
    %c0_2 = arith.constant 0 : index
    %c0_3 = arith.constant 0 : index
    %4 = vector.load %arg3[%c0_2, %c0_3] : memref<16x128xbf16, #tpu.memory_space<vmem>>, vector<16x128xbf16>
    %c0_4 = arith.constant 0 : index
    %c0_5 = arith.constant 0 : index
    %5 = vector.load %arg4[%c0_4, %c0_5] : memref<128x256xbf16, #tpu.memory_space<vmem>>, vector<128x256xbf16>
    %cst = arith.constant dense<0.000000e+00> : vector<16x256xf32>
    %6 = tpu.matmul %4, %5, %cst {dimension_numbers = #tpu.dot_dimension_numbers<[1], [0], [0], [1], [0, 0, 1, 1], [], []>} : vector<16x128xbf16>, vector<128x256xbf16>, vector<16x256xf32> -> vector<16x256xf32>
    %7 = arith.addf %3, %6 : vector<16x256xf32>
    %c0_6 = arith.constant 0 : index
    %c0_7 = arith.constant 0 : index
    %8 = vector.load %arg7[%c0_6, %c0_7] : memref<16x256xf32, #tpu.memory_space<vmem>>, vector<16x256xf32>
    tpu.vector_store %arg7[%c0_6, %c0_7], %7 {strides = array<i32>} : memref<16x256xf32, #tpu.memory_space<vmem>>, vector<16x256xf32>,
    %c0_i32_8 = arith.constant 0 : i32
    %9 = arith.cmpi eq, %arg2, %c0_i32_8 : i32
    %10 = arith.extui %9 : i1 to i32
    %c0_i32_9 = arith.constant 0 : i32
    %11 = arith.cmpi ne, %10, %c0_i32_9 : i32
    scf.if %11 {
      %c0_10 = arith.constant 0 : index
      %c0_11 = arith.constant 0 : index
      %12 = vector.load %arg7[%c0_10, %c0_11] : memref<16x256xf32, #tpu.memory_space<vmem>>, vector<16x256xf32>
      %c0_12 = arith.constant 0 : index
      %c0_13 = arith.constant 0 : index
      %13 = vector.load %arg5[%c0_12, %c0_13] : memref<1x256xf32, #tpu.memory_space<vmem>>, vector<1x256xf32>
      %14 = vector.broadcast %13 : vector<1x256xf32> to vector<16x256xf32>
      %15 = arith.addf %12, %14 : vector<16x256xf32>
      %16 = arith.truncf %15 : vector<16x256xf32> to vector<16x256xbf16>
      %c0_14 = arith.constant 0 : index
      %c0_15 = arith.constant 0 : index
      %17 = vector.load %arg6[%c0_14, %c0_15] : memref<16x256xbf16, #tpu.memory_space<vmem>>, vector<16x256xbf16>
      tpu.vector_store %arg6[%c0_14, %c0_15], %16 {strides = array<i32>} : memref<16x256xbf16, #tpu.memory_space<vmem>>, vector<16x256xbf16>,
    } else {
    }
    return
  }
  func.func @transform_0(%arg0: i32, %arg1: i32, %arg2: i32) -> (i32, i32) {
    %c0_i32 = arith.constant 0 : i32
    return %arg0, %arg2 : i32, i32
  }
  func.func @transform_1(%arg0: i32, %arg1: i32, %arg2: i32) -> (i32, i32) {
    %c0_i32 = arith.constant 0 : i32
    return %arg2, %arg1 : i32, i32
  }
  func.func @transform_2(%arg0: i32, %arg1: i32, %arg2: i32) -> (i32, i32) {
    %c0_i32 = arith.constant 0 : i32
    %c0_i32_0 = arith.constant 0 : i32
    return %c0_i32, %arg1 : i32, i32
  }
  func.func @transform_3(%arg0: i32, %arg1: i32, %arg2: i32) -> (i32, i32) {
    %c0_i32 = arith.constant 0 : i32
    return %arg0, %arg1 : i32, i32
  }
}

module attributes {stable_mosaic.version = 11 : i64} {
  func.func @kernel(%arg0: i32, %arg1: i32, %arg2: i32, %arg3: memref<16x128xbf16, #tpu.memory_space<vmem>>, %arg4: memref<128x128xbf16, #tpu.memory_space<vmem>>, %arg5: memref<1x128xf32, #tpu.memory_space<vmem>>, %arg6: memref<16x128xf32, #tpu.memory_space<vmem>>, %arg7: memref<1x1x128xf32, #tpu.memory_space<vmem>>, %arg8: memref<1x1x128xf32, #tpu.memory_space<vmem>>, %arg9: memref<16x128xf32, #tpu.memory_space<vmem>>) attributes {dimension_semantics = [#tpu.dimension_semantics<parallel>, #tpu.dimension_semantics<parallel>, #tpu.dimension_semantics<arbitrary>], iteration_bounds = array<i64: 1, 1, 9>, scalar_prefetch = 0 : i64, scratch_operands = 1 : i64, tpu.core_type = #tpu.core_type<tc>, window_params = [{transform_indices = @transform_0, window_bounds = array<i64: 16, 128>}, {transform_indices = @transform_1, window_bounds = array<i64: 128, 128>}, {transform_indices = @transform_2, window_bounds = array<i64: 1, 128>}, {transform_indices = @transform_3, window_bounds = array<i64: 16, 128>}, {transform_indices = @transform_4, window_bounds = array<i64: 1, 1, 128>}, {transform_indices = @transform_5, window_bounds = array<i64: 1, 1, 128>}]} {
    %c0_i32 = arith.constant 0 : i32
    %0 = arith.cmpi eq, %arg2, %c0_i32 : i32
    %1 = arith.extui %0 : i1 to i32
    %c0_i32_0 = arith.constant 0 : i32
    %2 = arith.cmpi ne, %1, %c0_i32_0 : i32
    scf.if %2 {
      %cst_9 = arith.constant 0.000000e+00 : f32
      %12 = vector.broadcast %cst_9 : f32 to vector<16x128xf32>
      %c0_10 = arith.constant 0 : index
      %c0_11 = arith.constant 0 : index
      %13 = vector.load %arg9[%c0_10, %c0_11] : memref<16x128xf32, #tpu.memory_space<vmem>>, vector<16x128xf32>
      tpu.vector_store %arg9[%c0_10, %c0_11], %12 {strides = array<i32>} : memref<16x128xf32, #tpu.memory_space<vmem>>, vector<16x128xf32>,
    } else {
    }
    %c0 = arith.constant 0 : index
    %c0_1 = arith.constant 0 : index
    %3 = vector.load %arg9[%c0, %c0_1] : memref<16x128xf32, #tpu.memory_space<vmem>>, vector<16x128xf32>
    %c0_2 = arith.constant 0 : index
    %c0_3 = arith.constant 0 : index
    %4 = vector.load %arg3[%c0_2, %c0_3] : memref<16x128xbf16, #tpu.memory_space<vmem>>, vector<16x128xbf16>
    %c0_4 = arith.constant 0 : index
    %c0_5 = arith.constant 0 : index
    %5 = vector.load %arg4[%c0_4, %c0_5] : memref<128x128xbf16, #tpu.memory_space<vmem>>, vector<128x128xbf16>
    %cst = arith.constant dense<0.000000e+00> : vector<16x128xf32>
    %6 = tpu.matmul %4, %5, %cst {dimension_numbers = #tpu.dot_dimension_numbers<[1], [0], [0], [1], [0, 0, 1, 1], [], []>} : vector<16x128xbf16>, vector<128x128xbf16>, vector<16x128xf32> -> vector<16x128xf32>
    %7 = arith.addf %3, %6 : vector<16x128xf32>
    %c0_6 = arith.constant 0 : index
    %c0_7 = arith.constant 0 : index
    %8 = vector.load %arg9[%c0_6, %c0_7] : memref<16x128xf32, #tpu.memory_space<vmem>>, vector<16x128xf32>
    tpu.vector_store %arg9[%c0_6, %c0_7], %7 {strides = array<i32>} : memref<16x128xf32, #tpu.memory_space<vmem>>, vector<16x128xf32>,
    %c8_i32 = arith.constant 8 : i32
    %9 = arith.cmpi eq, %arg2, %c8_i32 : i32
    %10 = arith.extui %9 : i1 to i32
    %c0_i32_8 = arith.constant 0 : i32
    %11 = arith.cmpi ne, %10, %c0_i32_8 : i32
    scf.if %11 {
      %c0_9 = arith.constant 0 : index
      %c0_10 = arith.constant 0 : index
      %12 = vector.load %arg9[%c0_9, %c0_10] : memref<16x128xf32, #tpu.memory_space<vmem>>, vector<16x128xf32>
      %c0_11 = arith.constant 0 : index
      %c0_12 = arith.constant 0 : index
      %13 = vector.load %arg5[%c0_11, %c0_12] : memref<1x128xf32, #tpu.memory_space<vmem>>, vector<1x128xf32>
      %14 = vector.broadcast %13 : vector<1x128xf32> to vector<16x128xf32>
      %15 = arith.addf %12, %14 : vector<16x128xf32>
      %c0_13 = arith.constant 0 : index
      %c0_14 = arith.constant 0 : index
      %16 = vector.load %arg6[%c0_13, %c0_14] : memref<16x128xf32, #tpu.memory_space<vmem>>, vector<16x128xf32>
      tpu.vector_store %arg6[%c0_13, %c0_14], %15 {strides = array<i32>} : memref<16x128xf32, #tpu.memory_space<vmem>>, vector<16x128xf32>,
      %cst_15 = arith.constant dense<0.000000e+00> : vector<128xf32>
      %17 = vector.multi_reduction <add>, %15, %cst_15 [0] : vector<16x128xf32> to vector<128xf32>
      %18 = vector.shape_cast %17 : vector<128xf32> to vector<1x128xf32>
      %19 = vector.shape_cast %18 : vector<1x128xf32> to vector<1x1x128xf32>
      %c0_16 = arith.constant 0 : index
      %c0_17 = arith.constant 0 : index
      %c0_18 = arith.constant 0 : index
      %20 = vector.load %arg7[%c0_16, %c0_17, %c0_18] : memref<1x1x128xf32, #tpu.memory_space<vmem>>, vector<1x1x128xf32>
      tpu.vector_store %arg7[%c0_16, %c0_17, %c0_18], %19 {strides = array<i32>} : memref<1x1x128xf32, #tpu.memory_space<vmem>>, vector<1x1x128xf32>,
      %21 = arith.mulf %15, %15 : vector<16x128xf32>
      %cst_19 = arith.constant dense<0.000000e+00> : vector<128xf32>
      %22 = vector.multi_reduction <add>, %21, %cst_19 [0] : vector<16x128xf32> to vector<128xf32>
      %23 = vector.shape_cast %22 : vector<128xf32> to vector<1x128xf32>
      %24 = vector.shape_cast %23 : vector<1x128xf32> to vector<1x1x128xf32>
      %c0_20 = arith.constant 0 : index
      %c0_21 = arith.constant 0 : index
      %c0_22 = arith.constant 0 : index
      %25 = vector.load %arg8[%c0_20, %c0_21, %c0_22] : memref<1x1x128xf32, #tpu.memory_space<vmem>>, vector<1x1x128xf32>
      tpu.vector_store %arg8[%c0_20, %c0_21, %c0_22], %24 {strides = array<i32>} : memref<1x1x128xf32, #tpu.memory_space<vmem>>, vector<1x1x128xf32>,
    } else {
    }
    return
  }
  func.func @transform_0(%arg0: i32, %arg1: i32, %arg2: i32) -> (i32, i32) {
    %c0_i32 = arith.constant 0 : i32
    return %arg0, %arg2 : i32, i32
  }
  func.func @transform_1(%arg0: i32, %arg1: i32, %arg2: i32) -> (i32, i32) {
    %c0_i32 = arith.constant 0 : i32
    return %arg2, %arg1 : i32, i32
  }
  func.func @transform_2(%arg0: i32, %arg1: i32, %arg2: i32) -> (i32, i32) {
    %c0_i32 = arith.constant 0 : i32
    %c0_i32_0 = arith.constant 0 : i32
    return %c0_i32, %arg1 : i32, i32
  }
  func.func @transform_3(%arg0: i32, %arg1: i32, %arg2: i32) -> (i32, i32) {
    %c0_i32 = arith.constant 0 : i32
    return %arg0, %arg1 : i32, i32
  }
  func.func @transform_4(%arg0: i32, %arg1: i32, %arg2: i32) -> (i32, i32, i32) {
    %c0_i32 = arith.constant 0 : i32
    %c0_i32_0 = arith.constant 0 : i32
    return %arg0, %c0_i32, %arg1 : i32, i32, i32
  }
  func.func @transform_5(%arg0: i32, %arg1: i32, %arg2: i32) -> (i32, i32, i32) {
    %c0_i32 = arith.constant 0 : i32
    %c0_i32_0 = arith.constant 0 : i32
    return %arg0, %c0_i32, %arg1 : i32, i32, i32
  }
}

module attributes {stable_mosaic.version = 11 : i64} {
  func.func @kernel(%arg0: i32, %arg1: i32, %arg2: i32, %arg3: memref<16x128xbf16, #tpu.memory_space<vmem>>, %arg4: memref<128x128xbf16, #tpu.memory_space<vmem>>, %arg5: memref<1x128xf32, #tpu.memory_space<vmem>>, %arg6: memref<16x128xbf16, #tpu.memory_space<vmem>>, %arg7: memref<16x128xf32, #tpu.memory_space<vmem>>) attributes {dimension_semantics = [#tpu.dimension_semantics<parallel>, #tpu.dimension_semantics<parallel>, #tpu.dimension_semantics<arbitrary>], iteration_bounds = array<i64: 1, 1, 1>, scalar_prefetch = 0 : i64, scratch_operands = 1 : i64, tpu.core_type = #tpu.core_type<tc>, window_params = [{transform_indices = @transform_0, window_bounds = array<i64: 16, 128>}, {transform_indices = @transform_1, window_bounds = array<i64: 128, 128>}, {transform_indices = @transform_2, window_bounds = array<i64: 1, 128>}, {transform_indices = @transform_3, window_bounds = array<i64: 16, 128>}]} {
    %c0_i32 = arith.constant 0 : i32
    %0 = arith.cmpi eq, %arg2, %c0_i32 : i32
    %1 = arith.extui %0 : i1 to i32
    %c0_i32_0 = arith.constant 0 : i32
    %2 = arith.cmpi ne, %1, %c0_i32_0 : i32
    scf.if %2 {
      %cst_10 = arith.constant 0.000000e+00 : f32
      %12 = vector.broadcast %cst_10 : f32 to vector<16x128xf32>
      %c0_11 = arith.constant 0 : index
      %c0_12 = arith.constant 0 : index
      %13 = vector.load %arg7[%c0_11, %c0_12] : memref<16x128xf32, #tpu.memory_space<vmem>>, vector<16x128xf32>
      tpu.vector_store %arg7[%c0_11, %c0_12], %12 {strides = array<i32>} : memref<16x128xf32, #tpu.memory_space<vmem>>, vector<16x128xf32>,
    } else {
    }
    %c0 = arith.constant 0 : index
    %c0_1 = arith.constant 0 : index
    %3 = vector.load %arg7[%c0, %c0_1] : memref<16x128xf32, #tpu.memory_space<vmem>>, vector<16x128xf32>
    %c0_2 = arith.constant 0 : index
    %c0_3 = arith.constant 0 : index
    %4 = vector.load %arg3[%c0_2, %c0_3] : memref<16x128xbf16, #tpu.memory_space<vmem>>, vector<16x128xbf16>
    %c0_4 = arith.constant 0 : index
    %c0_5 = arith.constant 0 : index
    %5 = vector.load %arg4[%c0_4, %c0_5] : memref<128x128xbf16, #tpu.memory_space<vmem>>, vector<128x128xbf16>
    %cst = arith.constant dense<0.000000e+00> : vector<16x128xf32>
    %6 = tpu.matmul %4, %5, %cst {dimension_numbers = #tpu.dot_dimension_numbers<[1], [0], [0], [1], [0, 0, 1, 1], [], []>} : vector<16x128xbf16>, vector<128x128xbf16>, vector<16x128xf32> -> vector<16x128xf32>
    %7 = arith.addf %3, %6 : vector<16x128xf32>
    %c0_6 = arith.constant 0 : index
    %c0_7 = arith.constant 0 : index
    %8 = vector.load %arg7[%c0_6, %c0_7] : memref<16x128xf32, #tpu.memory_space<vmem>>, vector<16x128xf32>
    tpu.vector_store %arg7[%c0_6, %c0_7], %7 {strides = array<i32>} : memref<16x128xf32, #tpu.memory_space<vmem>>, vector<16x128xf32>,
    %c0_i32_8 = arith.constant 0 : i32
    %9 = arith.cmpi eq, %arg2, %c0_i32_8 : i32
    %10 = arith.extui %9 : i1 to i32
    %c0_i32_9 = arith.constant 0 : i32
    %11 = arith.cmpi ne, %10, %c0_i32_9 : i32
    scf.if %11 {
      %c0_10 = arith.constant 0 : index
      %c0_11 = arith.constant 0 : index
      %12 = vector.load %arg7[%c0_10, %c0_11] : memref<16x128xf32, #tpu.memory_space<vmem>>, vector<16x128xf32>
      %c0_12 = arith.constant 0 : index
      %c0_13 = arith.constant 0 : index
      %13 = vector.load %arg5[%c0_12, %c0_13] : memref<1x128xf32, #tpu.memory_space<vmem>>, vector<1x128xf32>
      %14 = vector.broadcast %13 : vector<1x128xf32> to vector<16x128xf32>
      %15 = arith.addf %12, %14 : vector<16x128xf32>
      %16 = arith.truncf %15 : vector<16x128xf32> to vector<16x128xbf16>
      %c0_14 = arith.constant 0 : index
      %c0_15 = arith.constant 0 : index
      %17 = vector.load %arg6[%c0_14, %c0_15] : memref<16x128xbf16, #tpu.memory_space<vmem>>, vector<16x128xbf16>
      tpu.vector_store %arg6[%c0_14, %c0_15], %16 {strides = array<i32>} : memref<16x128xbf16, #tpu.memory_space<vmem>>, vector<16x128xbf16>,
    } else {
    }
    return
  }
  func.func @transform_0(%arg0: i32, %arg1: i32, %arg2: i32) -> (i32, i32) {
    %c0_i32 = arith.constant 0 : i32
    return %arg0, %arg2 : i32, i32
  }
  func.func @transform_1(%arg0: i32, %arg1: i32, %arg2: i32) -> (i32, i32) {
    %c0_i32 = arith.constant 0 : i32
    return %arg2, %arg1 : i32, i32
  }
  func.func @transform_2(%arg0: i32, %arg1: i32, %arg2: i32) -> (i32, i32) {
    %c0_i32 = arith.constant 0 : i32
    %c0_i32_0 = arith.constant 0 : i32
    return %c0_i32, %arg1 : i32, i32
  }
  func.func @transform_3(%arg0: i32, %arg1: i32, %arg2: i32) -> (i32, i32) {
    %c0_i32 = arith.constant 0 : i32
    return %arg0, %arg1 : i32, i32
  }
}

module attributes {stable_mosaic.version = 11 : i64} {
  func.func @kernel(%arg0: i32, %arg1: i32, %arg2: i32, %arg3: memref<32x128xbf16, #tpu.memory_space<vmem>>, %arg4: memref<128x128xbf16, #tpu.memory_space<vmem>>, %arg5: memref<1x128xf32, #tpu.memory_space<vmem>>, %arg6: memref<32x128xf32, #tpu.memory_space<vmem>>, %arg7: memref<1x1x128xf32, #tpu.memory_space<vmem>>, %arg8: memref<1x1x128xf32, #tpu.memory_space<vmem>>, %arg9: memref<32x128xf32, #tpu.memory_space<vmem>>) attributes {dimension_semantics = [#tpu.dimension_semantics<parallel>, #tpu.dimension_semantics<parallel>, #tpu.dimension_semantics<arbitrary>], iteration_bounds = array<i64: 1, 1, 5>, scalar_prefetch = 0 : i64, scratch_operands = 1 : i64, tpu.core_type = #tpu.core_type<tc>, window_params = [{transform_indices = @transform_0, window_bounds = array<i64: 32, 128>}, {transform_indices = @transform_1, window_bounds = array<i64: 128, 128>}, {transform_indices = @transform_2, window_bounds = array<i64: 1, 128>}, {transform_indices = @transform_3, window_bounds = array<i64: 32, 128>}, {transform_indices = @transform_4, window_bounds = array<i64: 1, 1, 128>}, {transform_indices = @transform_5, window_bounds = array<i64: 1, 1, 128>}]} {
    %c0_i32 = arith.constant 0 : i32
    %0 = arith.cmpi eq, %arg2, %c0_i32 : i32
    %1 = arith.extui %0 : i1 to i32
    %c0_i32_0 = arith.constant 0 : i32
    %2 = arith.cmpi ne, %1, %c0_i32_0 : i32
    scf.if %2 {
      %cst_9 = arith.constant 0.000000e+00 : f32
      %12 = vector.broadcast %cst_9 : f32 to vector<32x128xf32>
      %c0_10 = arith.constant 0 : index
      %c0_11 = arith.constant 0 : index
      %13 = vector.load %arg9[%c0_10, %c0_11] : memref<32x128xf32, #tpu.memory_space<vmem>>, vector<32x128xf32>
      tpu.vector_store %arg9[%c0_10, %c0_11], %12 {strides = array<i32>} : memref<32x128xf32, #tpu.memory_space<vmem>>, vector<32x128xf32>,
    } else {
    }
    %c0 = arith.constant 0 : index
    %c0_1 = arith.constant 0 : index
    %3 = vector.load %arg9[%c0, %c0_1] : memref<32x128xf32, #tpu.memory_space<vmem>>, vector<32x128xf32>
    %c0_2 = arith.constant 0 : index
    %c0_3 = arith.constant 0 : index
    %4 = vector.load %arg3[%c0_2, %c0_3] : memref<32x128xbf16, #tpu.memory_space<vmem>>, vector<32x128xbf16>
    %c0_4 = arith.constant 0 : index
    %c0_5 = arith.constant 0 : index
    %5 = vector.load %arg4[%c0_4, %c0_5] : memref<128x128xbf16, #tpu.memory_space<vmem>>, vector<128x128xbf16>
    %cst = arith.constant dense<0.000000e+00> : vector<32x128xf32>
    %6 = tpu.matmul %4, %5, %cst {dimension_numbers = #tpu.dot_dimension_numbers<[1], [0], [0], [1], [0, 0, 1, 1], [], []>} : vector<32x128xbf16>, vector<128x128xbf16>, vector<32x128xf32> -> vector<32x128xf32>
    %7 = arith.addf %3, %6 : vector<32x128xf32>
    %c0_6 = arith.constant 0 : index
    %c0_7 = arith.constant 0 : index
    %8 = vector.load %arg9[%c0_6, %c0_7] : memref<32x128xf32, #tpu.memory_space<vmem>>, vector<32x128xf32>
    tpu.vector_store %arg9[%c0_6, %c0_7], %7 {strides = array<i32>} : memref<32x128xf32, #tpu.memory_space<vmem>>, vector<32x128xf32>,
    %c4_i32 = arith.constant 4 : i32
    %9 = arith.cmpi eq, %arg2, %c4_i32 : i32
    %10 = arith.extui %9 : i1 to i32
    %c0_i32_8 = arith.constant 0 : i32
    %11 = arith.cmpi ne, %10, %c0_i32_8 : i32
    scf.if %11 {
      %c0_9 = arith.constant 0 : index
      %c0_10 = arith.constant 0 : index
      %12 = vector.load %arg9[%c0_9, %c0_10] : memref<32x128xf32, #tpu.memory_space<vmem>>, vector<32x128xf32>
      %c0_11 = arith.constant 0 : index
      %c0_12 = arith.constant 0 : index
      %13 = vector.load %arg5[%c0_11, %c0_12] : memref<1x128xf32, #tpu.memory_space<vmem>>, vector<1x128xf32>
      %14 = vector.broadcast %13 : vector<1x128xf32> to vector<32x128xf32>
      %15 = arith.addf %12, %14 : vector<32x128xf32>
      %c0_13 = arith.constant 0 : index
      %c0_14 = arith.constant 0 : index
      %16 = vector.load %arg6[%c0_13, %c0_14] : memref<32x128xf32, #tpu.memory_space<vmem>>, vector<32x128xf32>
      tpu.vector_store %arg6[%c0_13, %c0_14], %15 {strides = array<i32>} : memref<32x128xf32, #tpu.memory_space<vmem>>, vector<32x128xf32>,
      %cst_15 = arith.constant dense<0.000000e+00> : vector<128xf32>
      %17 = vector.multi_reduction <add>, %15, %cst_15 [0] : vector<32x128xf32> to vector<128xf32>
      %18 = vector.shape_cast %17 : vector<128xf32> to vector<1x128xf32>
      %19 = vector.shape_cast %18 : vector<1x128xf32> to vector<1x1x128xf32>
      %c0_16 = arith.constant 0 : index
      %c0_17 = arith.constant 0 : index
      %c0_18 = arith.constant 0 : index
      %20 = vector.load %arg7[%c0_16, %c0_17, %c0_18] : memref<1x1x128xf32, #tpu.memory_space<vmem>>, vector<1x1x128xf32>
      tpu.vector_store %arg7[%c0_16, %c0_17, %c0_18], %19 {strides = array<i32>} : memref<1x1x128xf32, #tpu.memory_space<vmem>>, vector<1x1x128xf32>,
      %21 = arith.mulf %15, %15 : vector<32x128xf32>
      %cst_19 = arith.constant dense<0.000000e+00> : vector<128xf32>
      %22 = vector.multi_reduction <add>, %21, %cst_19 [0] : vector<32x128xf32> to vector<128xf32>
      %23 = vector.shape_cast %22 : vector<128xf32> to vector<1x128xf32>
      %24 = vector.shape_cast %23 : vector<1x128xf32> to vector<1x1x128xf32>
      %c0_20 = arith.constant 0 : index
      %c0_21 = arith.constant 0 : index
      %c0_22 = arith.constant 0 : index
      %25 = vector.load %arg8[%c0_20, %c0_21, %c0_22] : memref<1x1x128xf32, #tpu.memory_space<vmem>>, vector<1x1x128xf32>
      tpu.vector_store %arg8[%c0_20, %c0_21, %c0_22], %24 {strides = array<i32>} : memref<1x1x128xf32, #tpu.memory_space<vmem>>, vector<1x1x128xf32>,
    } else {
    }
    return
  }
  func.func @transform_0(%arg0: i32, %arg1: i32, %arg2: i32) -> (i32, i32) {
    %c0_i32 = arith.constant 0 : i32
    return %arg0, %arg2 : i32, i32
  }
  func.func @transform_1(%arg0: i32, %arg1: i32, %arg2: i32) -> (i32, i32) {
    %c0_i32 = arith.constant 0 : i32
    return %arg2, %arg1 : i32, i32
  }
  func.func @transform_2(%arg0: i32, %arg1: i32, %arg2: i32) -> (i32, i32) {
    %c0_i32 = arith.constant 0 : i32
    %c0_i32_0 = arith.constant 0 : i32
    return %c0_i32, %arg1 : i32, i32
  }
  func.func @transform_3(%arg0: i32, %arg1: i32, %arg2: i32) -> (i32, i32) {
    %c0_i32 = arith.constant 0 : i32
    return %arg0, %arg1 : i32, i32
  }
  func.func @transform_4(%arg0: i32, %arg1: i32, %arg2: i32) -> (i32, i32, i32) {
    %c0_i32 = arith.constant 0 : i32
    %c0_i32_0 = arith.constant 0 : i32
    return %arg0, %c0_i32, %arg1 : i32, i32, i32
  }
  func.func @transform_5(%arg0: i32, %arg1: i32, %arg2: i32) -> (i32, i32, i32) {
    %c0_i32 = arith.constant 0 : i32
    %c0_i32_0 = arith.constant 0 : i32
    return %arg0, %c0_i32, %arg1 : i32, i32, i32
  }
}

module attributes {stable_mosaic.version = 11 : i64} {
  func.func @kernel(%arg0: i32, %arg1: i32, %arg2: i32, %arg3: memref<32x128xbf16, #tpu.memory_space<vmem>>, %arg4: memref<128x128xbf16, #tpu.memory_space<vmem>>, %arg5: memref<1x128xf32, #tpu.memory_space<vmem>>, %arg6: memref<32x128xbf16, #tpu.memory_space<vmem>>, %arg7: memref<32x128xf32, #tpu.memory_space<vmem>>) attributes {dimension_semantics = [#tpu.dimension_semantics<parallel>, #tpu.dimension_semantics<parallel>, #tpu.dimension_semantics<arbitrary>], iteration_bounds = array<i64: 1, 1, 1>, scalar_prefetch = 0 : i64, scratch_operands = 1 : i64, tpu.core_type = #tpu.core_type<tc>, window_params = [{transform_indices = @transform_0, window_bounds = array<i64: 32, 128>}, {transform_indices = @transform_1, window_bounds = array<i64: 128, 128>}, {transform_indices = @transform_2, window_bounds = array<i64: 1, 128>}, {transform_indices = @transform_3, window_bounds = array<i64: 32, 128>}]} {
    %c0_i32 = arith.constant 0 : i32
    %0 = arith.cmpi eq, %arg2, %c0_i32 : i32
    %1 = arith.extui %0 : i1 to i32
    %c0_i32_0 = arith.constant 0 : i32
    %2 = arith.cmpi ne, %1, %c0_i32_0 : i32
    scf.if %2 {
      %cst_10 = arith.constant 0.000000e+00 : f32
      %12 = vector.broadcast %cst_10 : f32 to vector<32x128xf32>
      %c0_11 = arith.constant 0 : index
      %c0_12 = arith.constant 0 : index
      %13 = vector.load %arg7[%c0_11, %c0_12] : memref<32x128xf32, #tpu.memory_space<vmem>>, vector<32x128xf32>
      tpu.vector_store %arg7[%c0_11, %c0_12], %12 {strides = array<i32>} : memref<32x128xf32, #tpu.memory_space<vmem>>, vector<32x128xf32>,
    } else {
    }
    %c0 = arith.constant 0 : index
    %c0_1 = arith.constant 0 : index
    %3 = vector.load %arg7[%c0, %c0_1] : memref<32x128xf32, #tpu.memory_space<vmem>>, vector<32x128xf32>
    %c0_2 = arith.constant 0 : index
    %c0_3 = arith.constant 0 : index
    %4 = vector.load %arg3[%c0_2, %c0_3] : memref<32x128xbf16, #tpu.memory_space<vmem>>, vector<32x128xbf16>
    %c0_4 = arith.constant 0 : index
    %c0_5 = arith.constant 0 : index
    %5 = vector.load %arg4[%c0_4, %c0_5] : memref<128x128xbf16, #tpu.memory_space<vmem>>, vector<128x128xbf16>
    %cst = arith.constant dense<0.000000e+00> : vector<32x128xf32>
    %6 = tpu.matmul %4, %5, %cst {dimension_numbers = #tpu.dot_dimension_numbers<[1], [0], [0], [1], [0, 0, 1, 1], [], []>} : vector<32x128xbf16>, vector<128x128xbf16>, vector<32x128xf32> -> vector<32x128xf32>
    %7 = arith.addf %3, %6 : vector<32x128xf32>
    %c0_6 = arith.constant 0 : index
    %c0_7 = arith.constant 0 : index
    %8 = vector.load %arg7[%c0_6, %c0_7] : memref<32x128xf32, #tpu.memory_space<vmem>>, vector<32x128xf32>
    tpu.vector_store %arg7[%c0_6, %c0_7], %7 {strides = array<i32>} : memref<32x128xf32, #tpu.memory_space<vmem>>, vector<32x128xf32>,
    %c0_i32_8 = arith.constant 0 : i32
    %9 = arith.cmpi eq, %arg2, %c0_i32_8 : i32
    %10 = arith.extui %9 : i1 to i32
    %c0_i32_9 = arith.constant 0 : i32
    %11 = arith.cmpi ne, %10, %c0_i32_9 : i32
    scf.if %11 {
      %c0_10 = arith.constant 0 : index
      %c0_11 = arith.constant 0 : index
      %12 = vector.load %arg7[%c0_10, %c0_11] : memref<32x128xf32, #tpu.memory_space<vmem>>, vector<32x128xf32>
      %c0_12 = arith.constant 0 : index
      %c0_13 = arith.constant 0 : index
      %13 = vector.load %arg5[%c0_12, %c0_13] : memref<1x128xf32, #tpu.memory_space<vmem>>, vector<1x128xf32>
      %14 = vector.broadcast %13 : vector<1x128xf32> to vector<32x128xf32>
      %15 = arith.addf %12, %14 : vector<32x128xf32>
      %16 = arith.truncf %15 : vector<32x128xf32> to vector<32x128xbf16>
      %c0_14 = arith.constant 0 : index
      %c0_15 = arith.constant 0 : index
      %17 = vector.load %arg6[%c0_14, %c0_15] : memref<32x128xbf16, #tpu.memory_space<vmem>>, vector<32x128xbf16>
      tpu.vector_store %arg6[%c0_14, %c0_15], %16 {strides = array<i32>} : memref<32x128xbf16, #tpu.memory_space<vmem>>, vector<32x128xbf16>,
    } else {
    }
    return
  }
  func.func @transform_0(%arg0: i32, %arg1: i32, %arg2: i32) -> (i32, i32) {
    %c0_i32 = arith.constant 0 : i32
    return %arg0, %arg2 : i32, i32
  }
  func.func @transform_1(%arg0: i32, %arg1: i32, %arg2: i32) -> (i32, i32) {
    %c0_i32 = arith.constant 0 : i32
    return %arg2, %arg1 : i32, i32
  }
  func.func @transform_2(%arg0: i32, %arg1: i32, %arg2: i32) -> (i32, i32) {
    %c0_i32 = arith.constant 0 : i32
    %c0_i32_0 = arith.constant 0 : i32
    return %c0_i32, %arg1 : i32, i32
  }
  func.func @transform_3(%arg0: i32, %arg1: i32, %arg2: i32) -> (i32, i32) {
    %c0_i32 = arith.constant 0 : i32
    return %arg0, %arg1 : i32, i32
  }
}

module attributes {stable_mosaic.version = 11 : i64} {
  func.func @kernel(%arg0: i32, %arg1: i32, %arg2: i32, %arg3: memref<128x128xbf16, #tpu.memory_space<vmem>>, %arg4: memref<128x128xbf16, #tpu.memory_space<vmem>>, %arg5: memref<1x128xf32, #tpu.memory_space<vmem>>, %arg6: memref<128x128xf32, #tpu.memory_space<vmem>>, %arg7: memref<1x1x128xf32, #tpu.memory_space<vmem>>, %arg8: memref<1x1x128xf32, #tpu.memory_space<vmem>>, %arg9: memref<128x128xf32, #tpu.memory_space<vmem>>) attributes {dimension_semantics = [#tpu.dimension_semantics<parallel>, #tpu.dimension_semantics<parallel>, #tpu.dimension_semantics<arbitrary>], iteration_bounds = array<i64: 1, 1, 3>, scalar_prefetch = 0 : i64, scratch_operands = 1 : i64, tpu.core_type = #tpu.core_type<tc>, window_params = [{transform_indices = @transform_0, window_bounds = array<i64: 128, 128>}, {transform_indices = @transform_1, window_bounds = array<i64: 128, 128>}, {transform_indices = @transform_2, window_bounds = array<i64: 1, 128>}, {transform_indices = @transform_3, window_bounds = array<i64: 128, 128>}, {transform_indices = @transform_4, window_bounds = array<i64: 1, 1, 128>}, {transform_indices = @transform_5, window_bounds = array<i64: 1, 1, 128>}]} {
    %c0_i32 = arith.constant 0 : i32
    %0 = arith.cmpi eq, %arg2, %c0_i32 : i32
    %1 = arith.extui %0 : i1 to i32
    %c0_i32_0 = arith.constant 0 : i32
    %2 = arith.cmpi ne, %1, %c0_i32_0 : i32
    scf.if %2 {
      %cst_9 = arith.constant 0.000000e+00 : f32
      %12 = vector.broadcast %cst_9 : f32 to vector<128x128xf32>
      %c0_10 = arith.constant 0 : index
      %c0_11 = arith.constant 0 : index
      %13 = vector.load %arg9[%c0_10, %c0_11] : memref<128x128xf32, #tpu.memory_space<vmem>>, vector<128x128xf32>
      tpu.vector_store %arg9[%c0_10, %c0_11], %12 {strides = array<i32>} : memref<128x128xf32, #tpu.memory_space<vmem>>, vector<128x128xf32>,
    } else {
    }
    %c0 = arith.constant 0 : index
    %c0_1 = arith.constant 0 : index
    %3 = vector.load %arg9[%c0, %c0_1] : memref<128x128xf32, #tpu.memory_space<vmem>>, vector<128x128xf32>
    %c0_2 = arith.constant 0 : index
    %c0_3 = arith.constant 0 : index
    %4 = vector.load %arg3[%c0_2, %c0_3] : memref<128x128xbf16, #tpu.memory_space<vmem>>, vector<128x128xbf16>
    %c0_4 = arith.constant 0 : index
    %c0_5 = arith.constant 0 : index
    %5 = vector.load %arg4[%c0_4, %c0_5] : memref<128x128xbf16, #tpu.memory_space<vmem>>, vector<128x128xbf16>
    %cst = arith.constant dense<0.000000e+00> : vector<128x128xf32>
    %6 = tpu.matmul %4, %5, %cst {dimension_numbers = #tpu.dot_dimension_numbers<[1], [0], [0], [1], [0, 0, 1, 1], [], []>} : vector<128x128xbf16>, vector<128x128xbf16>, vector<128x128xf32> -> vector<128x128xf32>
    %7 = arith.addf %3, %6 : vector<128x128xf32>
    %c0_6 = arith.constant 0 : index
    %c0_7 = arith.constant 0 : index
    %8 = vector.load %arg9[%c0_6, %c0_7] : memref<128x128xf32, #tpu.memory_space<vmem>>, vector<128x128xf32>
    tpu.vector_store %arg9[%c0_6, %c0_7], %7 {strides = array<i32>} : memref<128x128xf32, #tpu.memory_space<vmem>>, vector<128x128xf32>,
    %c2_i32 = arith.constant 2 : i32
    %9 = arith.cmpi eq, %arg2, %c2_i32 : i32
    %10 = arith.extui %9 : i1 to i32
    %c0_i32_8 = arith.constant 0 : i32
    %11 = arith.cmpi ne, %10, %c0_i32_8 : i32
    scf.if %11 {
      %c0_9 = arith.constant 0 : index
      %c0_10 = arith.constant 0 : index
      %12 = vector.load %arg9[%c0_9, %c0_10] : memref<128x128xf32, #tpu.memory_space<vmem>>, vector<128x128xf32>
      %c0_11 = arith.constant 0 : index
      %c0_12 = arith.constant 0 : index
      %13 = vector.load %arg5[%c0_11, %c0_12] : memref<1x128xf32, #tpu.memory_space<vmem>>, vector<1x128xf32>
      %14 = vector.broadcast %13 : vector<1x128xf32> to vector<128x128xf32>
      %15 = arith.addf %12, %14 : vector<128x128xf32>
      %c0_13 = arith.constant 0 : index
      %c0_14 = arith.constant 0 : index
      %16 = vector.load %arg6[%c0_13, %c0_14] : memref<128x128xf32, #tpu.memory_space<vmem>>, vector<128x128xf32>
      tpu.vector_store %arg6[%c0_13, %c0_14], %15 {strides = array<i32>} : memref<128x128xf32, #tpu.memory_space<vmem>>, vector<128x128xf32>,
      %cst_15 = arith.constant dense<0.000000e+00> : vector<128xf32>
      %17 = vector.multi_reduction <add>, %15, %cst_15 [0] : vector<128x128xf32> to vector<128xf32>
      %18 = vector.shape_cast %17 : vector<128xf32> to vector<1x128xf32>
      %19 = vector.shape_cast %18 : vector<1x128xf32> to vector<1x1x128xf32>
      %c0_16 = arith.constant 0 : index
      %c0_17 = arith.constant 0 : index
      %c0_18 = arith.constant 0 : index
      %20 = vector.load %arg7[%c0_16, %c0_17, %c0_18] : memref<1x1x128xf32, #tpu.memory_space<vmem>>, vector<1x1x128xf32>
      tpu.vector_store %arg7[%c0_16, %c0_17, %c0_18], %19 {strides = array<i32>} : memref<1x1x128xf32, #tpu.memory_space<vmem>>, vector<1x1x128xf32>,
      %21 = arith.mulf %15, %15 : vector<128x128xf32>
      %cst_19 = arith.constant dense<0.000000e+00> : vector<128xf32>
      %22 = vector.multi_reduction <add>, %21, %cst_19 [0] : vector<128x128xf32> to vector<128xf32>
      %23 = vector.shape_cast %22 : vector<128xf32> to vector<1x128xf32>
      %24 = vector.shape_cast %23 : vector<1x128xf32> to vector<1x1x128xf32>
      %c0_20 = arith.constant 0 : index
      %c0_21 = arith.constant 0 : index
      %c0_22 = arith.constant 0 : index
      %25 = vector.load %arg8[%c0_20, %c0_21, %c0_22] : memref<1x1x128xf32, #tpu.memory_space<vmem>>, vector<1x1x128xf32>
      tpu.vector_store %arg8[%c0_20, %c0_21, %c0_22], %24 {strides = array<i32>} : memref<1x1x128xf32, #tpu.memory_space<vmem>>, vector<1x1x128xf32>,
    } else {
    }
    return
  }
  func.func @transform_0(%arg0: i32, %arg1: i32, %arg2: i32) -> (i32, i32) {
    %c0_i32 = arith.constant 0 : i32
    return %arg0, %arg2 : i32, i32
  }
  func.func @transform_1(%arg0: i32, %arg1: i32, %arg2: i32) -> (i32, i32) {
    %c0_i32 = arith.constant 0 : i32
    return %arg2, %arg1 : i32, i32
  }
  func.func @transform_2(%arg0: i32, %arg1: i32, %arg2: i32) -> (i32, i32) {
    %c0_i32 = arith.constant 0 : i32
    %c0_i32_0 = arith.constant 0 : i32
    return %c0_i32, %arg1 : i32, i32
  }
  func.func @transform_3(%arg0: i32, %arg1: i32, %arg2: i32) -> (i32, i32) {
    %c0_i32 = arith.constant 0 : i32
    return %arg0, %arg1 : i32, i32
  }
  func.func @transform_4(%arg0: i32, %arg1: i32, %arg2: i32) -> (i32, i32, i32) {
    %c0_i32 = arith.constant 0 : i32
    %c0_i32_0 = arith.constant 0 : i32
    return %arg0, %c0_i32, %arg1 : i32, i32, i32
  }
  func.func @transform_5(%arg0: i32, %arg1: i32, %arg2: i32) -> (i32, i32, i32) {
    %c0_i32 = arith.constant 0 : i32
    %c0_i32_0 = arith.constant 0 : i32
    return %arg0, %c0_i32, %arg1 : i32, i32, i32
  }
}

module attributes {stable_mosaic.version = 11 : i64} {
  func.func @kernel(%arg0: i32, %arg1: i32, %arg2: i32, %arg3: memref<128x128xbf16, #tpu.memory_space<vmem>>, %arg4: memref<128x128xbf16, #tpu.memory_space<vmem>>, %arg5: memref<1x128xf32, #tpu.memory_space<vmem>>, %arg6: memref<128x128xbf16, #tpu.memory_space<vmem>>, %arg7: memref<128x128xf32, #tpu.memory_space<vmem>>) attributes {dimension_semantics = [#tpu.dimension_semantics<parallel>, #tpu.dimension_semantics<parallel>, #tpu.dimension_semantics<arbitrary>], iteration_bounds = array<i64: 1, 1, 1>, scalar_prefetch = 0 : i64, scratch_operands = 1 : i64, tpu.core_type = #tpu.core_type<tc>, window_params = [{transform_indices = @transform_0, window_bounds = array<i64: 128, 128>}, {transform_indices = @transform_1, window_bounds = array<i64: 128, 128>}, {transform_indices = @transform_2, window_bounds = array<i64: 1, 128>}, {transform_indices = @transform_3, window_bounds = array<i64: 128, 128>}]} {
    %c0_i32 = arith.constant 0 : i32
    %0 = arith.cmpi eq, %arg2, %c0_i32 : i32
    %1 = arith.extui %0 : i1 to i32
    %c0_i32_0 = arith.constant 0 : i32
    %2 = arith.cmpi ne, %1, %c0_i32_0 : i32
    scf.if %2 {
      %cst_10 = arith.constant 0.000000e+00 : f32
      %12 = vector.broadcast %cst_10 : f32 to vector<128x128xf32>
      %c0_11 = arith.constant 0 : index
      %c0_12 = arith.constant 0 : index
      %13 = vector.load %arg7[%c0_11, %c0_12] : memref<128x128xf32, #tpu.memory_space<vmem>>, vector<128x128xf32>
      tpu.vector_store %arg7[%c0_11, %c0_12], %12 {strides = array<i32>} : memref<128x128xf32, #tpu.memory_space<vmem>>, vector<128x128xf32>,
    } else {
    }
    %c0 = arith.constant 0 : index
    %c0_1 = arith.constant 0 : index
    %3 = vector.load %arg7[%c0, %c0_1] : memref<128x128xf32, #tpu.memory_space<vmem>>, vector<128x128xf32>
    %c0_2 = arith.constant 0 : index
    %c0_3 = arith.constant 0 : index
    %4 = vector.load %arg3[%c0_2, %c0_3] : memref<128x128xbf16, #tpu.memory_space<vmem>>, vector<128x128xbf16>
    %c0_4 = arith.constant 0 : index
    %c0_5 = arith.constant 0 : index
    %5 = vector.load %arg4[%c0_4, %c0_5] : memref<128x128xbf16, #tpu.memory_space<vmem>>, vector<128x128xbf16>
    %cst = arith.constant dense<0.000000e+00> : vector<128x128xf32>
    %6 = tpu.matmul %4, %5, %cst {dimension_numbers = #tpu.dot_dimension_numbers<[1], [0], [0], [1], [0, 0, 1, 1], [], []>} : vector<128x128xbf16>, vector<128x128xbf16>, vector<128x128xf32> -> vector<128x128xf32>
    %7 = arith.addf %3, %6 : vector<128x128xf32>
    %c0_6 = arith.constant 0 : index
    %c0_7 = arith.constant 0 : index
    %8 = vector.load %arg7[%c0_6, %c0_7] : memref<128x128xf32, #tpu.memory_space<vmem>>, vector<128x128xf32>
    tpu.vector_store %arg7[%c0_6, %c0_7], %7 {strides = array<i32>} : memref<128x128xf32, #tpu.memory_space<vmem>>, vector<128x128xf32>,
    %c0_i32_8 = arith.constant 0 : i32
    %9 = arith.cmpi eq, %arg2, %c0_i32_8 : i32
    %10 = arith.extui %9 : i1 to i32
    %c0_i32_9 = arith.constant 0 : i32
    %11 = arith.cmpi ne, %10, %c0_i32_9 : i32
    scf.if %11 {
      %c0_10 = arith.constant 0 : index
      %c0_11 = arith.constant 0 : index
      %12 = vector.load %arg7[%c0_10, %c0_11] : memref<128x128xf32, #tpu.memory_space<vmem>>, vector<128x128xf32>
      %c0_12 = arith.constant 0 : index
      %c0_13 = arith.constant 0 : index
      %13 = vector.load %arg5[%c0_12, %c0_13] : memref<1x128xf32, #tpu.memory_space<vmem>>, vector<1x128xf32>
      %14 = vector.broadcast %13 : vector<1x128xf32> to vector<128x128xf32>
      %15 = arith.addf %12, %14 : vector<128x128xf32>
      %16 = arith.truncf %15 : vector<128x128xf32> to vector<128x128xbf16>
      %c0_14 = arith.constant 0 : index
      %c0_15 = arith.constant 0 : index
      %17 = vector.load %arg6[%c0_14, %c0_15] : memref<128x128xbf16, #tpu.memory_space<vmem>>, vector<128x128xbf16>
      tpu.vector_store %arg6[%c0_14, %c0_15], %16 {strides = array<i32>} : memref<128x128xbf16, #tpu.memory_space<vmem>>, vector<128x128xbf16>,
    } else {
    }
    return
  }
  func.func @transform_0(%arg0: i32, %arg1: i32, %arg2: i32) -> (i32, i32) {
    %c0_i32 = arith.constant 0 : i32
    return %arg0, %arg2 : i32, i32
  }
  func.func @transform_1(%arg0: i32, %arg1: i32, %arg2: i32) -> (i32, i32) {
    %c0_i32 = arith.constant 0 : i32
    return %arg2, %arg1 : i32, i32
  }
  func.func @transform_2(%arg0: i32, %arg1: i32, %arg2: i32) -> (i32, i32) {
    %c0_i32 = arith.constant 0 : i32
    %c0_i32_0 = arith.constant 0 : i32
    return %c0_i32, %arg1 : i32, i32
  }
  func.func @transform_3(%arg0: i32, %arg1: i32, %arg2: i32) -> (i32, i32) {
    %c0_i32 = arith.constant 0 : i32
    return %arg0, %arg1 : i32, i32
  }
}

module attributes {stable_mosaic.version = 11 : i64} {
  func.func @kernel(%arg0: i32, %arg1: i32, %arg2: i32, %arg3: memref<512x256xbf16, #tpu.memory_space<vmem>>, %arg4: memref<256x128xbf16, #tpu.memory_space<vmem>>, %arg5: memref<1x128xf32, #tpu.memory_space<vmem>>, %arg6: memref<512x128xf32, #tpu.memory_space<vmem>>, %arg7: memref<1x1x128xf32, #tpu.memory_space<vmem>>, %arg8: memref<1x1x128xf32, #tpu.memory_space<vmem>>, %arg9: memref<512x128xf32, #tpu.memory_space<vmem>>) attributes {dimension_semantics = [#tpu.dimension_semantics<parallel>, #tpu.dimension_semantics<parallel>, #tpu.dimension_semantics<arbitrary>], iteration_bounds = array<i64: 1, 1, 1>, scalar_prefetch = 0 : i64, scratch_operands = 1 : i64, tpu.core_type = #tpu.core_type<tc>, window_params = [{transform_indices = @transform_0, window_bounds = array<i64: 512, 256>}, {transform_indices = @transform_1, window_bounds = array<i64: 256, 128>}, {transform_indices = @transform_2, window_bounds = array<i64: 1, 128>}, {transform_indices = @transform_3, window_bounds = array<i64: 512, 128>}, {transform_indices = @transform_4, window_bounds = array<i64: 1, 1, 128>}, {transform_indices = @transform_5, window_bounds = array<i64: 1, 1, 128>}]} {
    %c0_i32 = arith.constant 0 : i32
    %0 = arith.cmpi eq, %arg2, %c0_i32 : i32
    %1 = arith.extui %0 : i1 to i32
    %c0_i32_0 = arith.constant 0 : i32
    %2 = arith.cmpi ne, %1, %c0_i32_0 : i32
    scf.if %2 {
      %cst_10 = arith.constant 0.000000e+00 : f32
      %12 = vector.broadcast %cst_10 : f32 to vector<512x128xf32>
      %c0_11 = arith.constant 0 : index
      %c0_12 = arith.constant 0 : index
      %13 = vector.load %arg9[%c0_11, %c0_12] : memref<512x128xf32, #tpu.memory_space<vmem>>, vector<512x128xf32>
      tpu.vector_store %arg9[%c0_11, %c0_12], %12 {strides = array<i32>} : memref<512x128xf32, #tpu.memory_space<vmem>>, vector<512x128xf32>,
    } else {
    }
    %c0 = arith.constant 0 : index
    %c0_1 = arith.constant 0 : index
    %3 = vector.load %arg9[%c0, %c0_1] : memref<512x128xf32, #tpu.memory_space<vmem>>, vector<512x128xf32>
    %c0_2 = arith.constant 0 : index
    %c0_3 = arith.constant 0 : index
    %4 = vector.load %arg3[%c0_2, %c0_3] : memref<512x256xbf16, #tpu.memory_space<vmem>>, vector<512x256xbf16>
    %c0_4 = arith.constant 0 : index
    %c0_5 = arith.constant 0 : index
    %5 = vector.load %arg4[%c0_4, %c0_5] : memref<256x128xbf16, #tpu.memory_space<vmem>>, vector<256x128xbf16>
    %cst = arith.constant dense<0.000000e+00> : vector<512x128xf32>
    %6 = tpu.matmul %4, %5, %cst {dimension_numbers = #tpu.dot_dimension_numbers<[1], [0], [0], [1], [0, 0, 1, 1], [], []>} : vector<512x256xbf16>, vector<256x128xbf16>, vector<512x128xf32> -> vector<512x128xf32>
    %7 = arith.addf %3, %6 : vector<512x128xf32>
    %c0_6 = arith.constant 0 : index
    %c0_7 = arith.constant 0 : index
    %8 = vector.load %arg9[%c0_6, %c0_7] : memref<512x128xf32, #tpu.memory_space<vmem>>, vector<512x128xf32>
    tpu.vector_store %arg9[%c0_6, %c0_7], %7 {strides = array<i32>} : memref<512x128xf32, #tpu.memory_space<vmem>>, vector<512x128xf32>,
    %c0_i32_8 = arith.constant 0 : i32
    %9 = arith.cmpi eq, %arg2, %c0_i32_8 : i32
    %10 = arith.extui %9 : i1 to i32
    %c0_i32_9 = arith.constant 0 : i32
    %11 = arith.cmpi ne, %10, %c0_i32_9 : i32
    scf.if %11 {
      %c0_10 = arith.constant 0 : index
      %c0_11 = arith.constant 0 : index
      %12 = vector.load %arg9[%c0_10, %c0_11] : memref<512x128xf32, #tpu.memory_space<vmem>>, vector<512x128xf32>
      %c0_12 = arith.constant 0 : index
      %c0_13 = arith.constant 0 : index
      %13 = vector.load %arg5[%c0_12, %c0_13] : memref<1x128xf32, #tpu.memory_space<vmem>>, vector<1x128xf32>
      %14 = vector.broadcast %13 : vector<1x128xf32> to vector<512x128xf32>
      %15 = arith.addf %12, %14 : vector<512x128xf32>
      %c0_14 = arith.constant 0 : index
      %c0_15 = arith.constant 0 : index
      %16 = vector.load %arg6[%c0_14, %c0_15] : memref<512x128xf32, #tpu.memory_space<vmem>>, vector<512x128xf32>
      tpu.vector_store %arg6[%c0_14, %c0_15], %15 {strides = array<i32>} : memref<512x128xf32, #tpu.memory_space<vmem>>, vector<512x128xf32>,
      %cst_16 = arith.constant dense<0.000000e+00> : vector<128xf32>
      %17 = vector.multi_reduction <add>, %15, %cst_16 [0] : vector<512x128xf32> to vector<128xf32>
      %18 = vector.shape_cast %17 : vector<128xf32> to vector<1x128xf32>
      %19 = vector.shape_cast %18 : vector<1x128xf32> to vector<1x1x128xf32>
      %c0_17 = arith.constant 0 : index
      %c0_18 = arith.constant 0 : index
      %c0_19 = arith.constant 0 : index
      %20 = vector.load %arg7[%c0_17, %c0_18, %c0_19] : memref<1x1x128xf32, #tpu.memory_space<vmem>>, vector<1x1x128xf32>
      tpu.vector_store %arg7[%c0_17, %c0_18, %c0_19], %19 {strides = array<i32>} : memref<1x1x128xf32, #tpu.memory_space<vmem>>, vector<1x1x128xf32>,
      %21 = arith.mulf %15, %15 : vector<512x128xf32>
      %cst_20 = arith.constant dense<0.000000e+00> : vector<128xf32>
      %22 = vector.multi_reduction <add>, %21, %cst_20 [0] : vector<512x128xf32> to vector<128xf32>
      %23 = vector.shape_cast %22 : vector<128xf32> to vector<1x128xf32>
      %24 = vector.shape_cast %23 : vector<1x128xf32> to vector<1x1x128xf32>
      %c0_21 = arith.constant 0 : index
      %c0_22 = arith.constant 0 : index
      %c0_23 = arith.constant 0 : index
      %25 = vector.load %arg8[%c0_21, %c0_22, %c0_23] : memref<1x1x128xf32, #tpu.memory_space<vmem>>, vector<1x1x128xf32>
      tpu.vector_store %arg8[%c0_21, %c0_22, %c0_23], %24 {strides = array<i32>} : memref<1x1x128xf32, #tpu.memory_space<vmem>>, vector<1x1x128xf32>,
    } else {
    }
    return
  }
  func.func @transform_0(%arg0: i32, %arg1: i32, %arg2: i32) -> (i32, i32) {
    %c0_i32 = arith.constant 0 : i32
    return %arg0, %arg2 : i32, i32
  }
  func.func @transform_1(%arg0: i32, %arg1: i32, %arg2: i32) -> (i32, i32) {
    %c0_i32 = arith.constant 0 : i32
    return %arg2, %arg1 : i32, i32
  }
  func.func @transform_2(%arg0: i32, %arg1: i32, %arg2: i32) -> (i32, i32) {
    %c0_i32 = arith.constant 0 : i32
    %c0_i32_0 = arith.constant 0 : i32
    return %c0_i32, %arg1 : i32, i32
  }
  func.func @transform_3(%arg0: i32, %arg1: i32, %arg2: i32) -> (i32, i32) {
    %c0_i32 = arith.constant 0 : i32
    return %arg0, %arg1 : i32, i32
  }
  func.func @transform_4(%arg0: i32, %arg1: i32, %arg2: i32) -> (i32, i32, i32) {
    %c0_i32 = arith.constant 0 : i32
    %c0_i32_0 = arith.constant 0 : i32
    return %arg0, %c0_i32, %arg1 : i32, i32, i32
  }
  func.func @transform_5(%arg0: i32, %arg1: i32, %arg2: i32) -> (i32, i32, i32) {
    %c0_i32 = arith.constant 0 : i32
    %c0_i32_0 = arith.constant 0 : i32
    return %arg0, %c0_i32, %arg1 : i32, i32, i32
  }
}

module attributes {stable_mosaic.version = 11 : i64} {
  func.func @kernel(%arg0: i32, %arg1: i32, %arg2: i32, %arg3: memref<512x128xbf16, #tpu.memory_space<vmem>>, %arg4: memref<128x128xbf16, #tpu.memory_space<vmem>>, %arg5: memref<1x128xf32, #tpu.memory_space<vmem>>, %arg6: memref<512x128xf32, #tpu.memory_space<vmem>>, %arg7: memref<512x128xf32, #tpu.memory_space<vmem>>) attributes {dimension_semantics = [#tpu.dimension_semantics<parallel>, #tpu.dimension_semantics<parallel>, #tpu.dimension_semantics<arbitrary>], iteration_bounds = array<i64: 1, 1, 1>, scalar_prefetch = 0 : i64, scratch_operands = 1 : i64, tpu.core_type = #tpu.core_type<tc>, window_params = [{transform_indices = @transform_0, window_bounds = array<i64: 512, 128>}, {transform_indices = @transform_1, window_bounds = array<i64: 128, 128>}, {transform_indices = @transform_2, window_bounds = array<i64: 1, 128>}, {transform_indices = @transform_3, window_bounds = array<i64: 512, 128>}]} {
    %c0_i32 = arith.constant 0 : i32
    %0 = arith.cmpi eq, %arg2, %c0_i32 : i32
    %1 = arith.extui %0 : i1 to i32
    %c0_i32_0 = arith.constant 0 : i32
    %2 = arith.cmpi ne, %1, %c0_i32_0 : i32
    scf.if %2 {
      %cst_10 = arith.constant 0.000000e+00 : f32
      %12 = vector.broadcast %cst_10 : f32 to vector<512x128xf32>
      %c0_11 = arith.constant 0 : index
      %c0_12 = arith.constant 0 : index
      %13 = vector.load %arg7[%c0_11, %c0_12] : memref<512x128xf32, #tpu.memory_space<vmem>>, vector<512x128xf32>
      tpu.vector_store %arg7[%c0_11, %c0_12], %12 {strides = array<i32>} : memref<512x128xf32, #tpu.memory_space<vmem>>, vector<512x128xf32>,
    } else {
    }
    %c0 = arith.constant 0 : index
    %c0_1 = arith.constant 0 : index
    %3 = vector.load %arg7[%c0, %c0_1] : memref<512x128xf32, #tpu.memory_space<vmem>>, vector<512x128xf32>
    %c0_2 = arith.constant 0 : index
    %c0_3 = arith.constant 0 : index
    %4 = vector.load %arg3[%c0_2, %c0_3] : memref<512x128xbf16, #tpu.memory_space<vmem>>, vector<512x128xbf16>
    %c0_4 = arith.constant 0 : index
    %c0_5 = arith.constant 0 : index
    %5 = vector.load %arg4[%c0_4, %c0_5] : memref<128x128xbf16, #tpu.memory_space<vmem>>, vector<128x128xbf16>
    %cst = arith.constant dense<0.000000e+00> : vector<512x128xf32>
    %6 = tpu.matmul %4, %5, %cst {dimension_numbers = #tpu.dot_dimension_numbers<[1], [0], [0], [1], [0, 0, 1, 1], [], []>} : vector<512x128xbf16>, vector<128x128xbf16>, vector<512x128xf32> -> vector<512x128xf32>
    %7 = arith.addf %3, %6 : vector<512x128xf32>
    %c0_6 = arith.constant 0 : index
    %c0_7 = arith.constant 0 : index
    %8 = vector.load %arg7[%c0_6, %c0_7] : memref<512x128xf32, #tpu.memory_space<vmem>>, vector<512x128xf32>
    tpu.vector_store %arg7[%c0_6, %c0_7], %7 {strides = array<i32>} : memref<512x128xf32, #tpu.memory_space<vmem>>, vector<512x128xf32>,
    %c0_i32_8 = arith.constant 0 : i32
    %9 = arith.cmpi eq, %arg2, %c0_i32_8 : i32
    %10 = arith.extui %9 : i1 to i32
    %c0_i32_9 = arith.constant 0 : i32
    %11 = arith.cmpi ne, %10, %c0_i32_9 : i32
    scf.if %11 {
      %c0_10 = arith.constant 0 : index
      %c0_11 = arith.constant 0 : index
      %12 = vector.load %arg7[%c0_10, %c0_11] : memref<512x128xf32, #tpu.memory_space<vmem>>, vector<512x128xf32>
      %c0_12 = arith.constant 0 : index
      %c0_13 = arith.constant 0 : index
      %13 = vector.load %arg5[%c0_12, %c0_13] : memref<1x128xf32, #tpu.memory_space<vmem>>, vector<1x128xf32>
      %14 = vector.broadcast %13 : vector<1x128xf32> to vector<512x128xf32>
      %15 = arith.addf %12, %14 : vector<512x128xf32>
      %c0_14 = arith.constant 0 : index
      %c0_15 = arith.constant 0 : index
      %16 = vector.load %arg6[%c0_14, %c0_15] : memref<512x128xf32, #tpu.memory_space<vmem>>, vector<512x128xf32>
      tpu.vector_store %arg6[%c0_14, %c0_15], %15 {strides = array<i32>} : memref<512x128xf32, #tpu.memory_space<vmem>>, vector<512x128xf32>,
    } else {
    }
    return
  }
  func.func @transform_0(%arg0: i32, %arg1: i32, %arg2: i32) -> (i32, i32) {
    %c0_i32 = arith.constant 0 : i32
    return %arg0, %arg2 : i32, i32
  }
  func.func @transform_1(%arg0: i32, %arg1: i32, %arg2: i32) -> (i32, i32) {
    %c0_i32 = arith.constant 0 : i32
    return %arg2, %arg1 : i32, i32
  }
  func.func @transform_2(%arg0: i32, %arg1: i32, %arg2: i32) -> (i32, i32) {
    %c0_i32 = arith.constant 0 : i32
    %c0_i32_0 = arith.constant 0 : i32
    return %c0_i32, %arg1 : i32, i32
  }
  func.func @transform_3(%arg0: i32, %arg1: i32, %arg2: i32) -> (i32, i32) {
    %c0_i32 = arith.constant 0 : i32
    return %arg0, %arg1 : i32, i32
  }
}

</mosaic_0001>

<bundles_post_ra>
// kernel: tile.113
= control target key start
LH: loop header
LB: loop body
LE: loop exit
PB: predicated region body
PF: predicated region fallthrough
CT: control target
= control target key end

     0   :  { %s64_s0 = inlined_call_operand.vmem [shape: f32[8], index: 0, kind: input, shape index: {}]   ;;  %s65_s1 = inlined_call_operand.vmem [shape: f32[64,8], index: 1, kind: output, shape index: {}]  }
   0x1   :  { %v4_v0 = vld [vmem:[%s64_s0] ss:$0 sm:$0xff] }
   0x2   :  { %5 = vst [vmem:[%s65_s1] sm:$0xff] %v4_v0  ;;  %20 = vst [vmem:[%s65_s1 + $0x8] sm:$0xff] %v4_v0 }
   0x3   :  { %21 = vst [vmem:[%s65_s1 + $0x10] sm:$0xff] %v4_v0  ;;  %22 = vst [vmem:[%s65_s1 + $0x18] sm:$0xff] %v4_v0 }
   0x4   :  { %23 = vst [vmem:[%s65_s1 + $0x20] sm:$0xff] %v4_v0  ;;  %24 = vst [vmem:[%s65_s1 + $0x28] sm:$0xff] %v4_v0 }
   0x5   :  { %25 = vst [vmem:[%s65_s1 + $0x30] sm:$0xff] %v4_v0  ;;  %26 = vst [vmem:[%s65_s1 + $0x38] sm:$0xff] %v4_v0 }

// kernel: tile.114
= control target key start
LH: loop header
LB: loop body
LE: loop exit
PB: predicated region body
PF: predicated region fallthrough
CT: control target
= control target key end

     0   :  { %vm6_vm0 = vcmask 1043458   ;;  %s11_s6 = smov 3  ;;  %s14_s7 = smov 12  ;;  %vm8_vm1 = vcmask 64512   ;;  %vm20_vm2 = vcmask 1048512   ;;  %vm32_vm3 = vcmask 982912   ;;  %s412_s0 = inlined_call_operand.vmem [shape: f32[64,8], index: 0, kind: input, shape index: {}]   ;;  %s413_s1 = inlined_call_operand.vmem [shape: f32[1,512], index: 1, kind: output, shape index: {}]  }
   0x1   :  { %v215_v0 = vld [vmem:[%s412_s0 + $0xf] ss:$16 sm:%s11_s6]   ;;  %s35_s12 = smov 3  ;;  %s38_s15 = smov 12  ;;  %vm44_vm4 = vcmask 917312   ;;  %vm56_vm5 = vcmask 851712  }
   0x2   :  { %v216_v1 = vld [vmem:[%s412_s0 + $0xf] ss:$16 sm:%s14_s7]   ;;  %v219_v3 = vld [vmem:[%s412_s0 + $0xd] ss:$16 sm:%s35_s12]   ;;  %s263_s16 = smov 120   ;;  %s23_s19 = smov 3 }
   0x3   :  { %v17_v2 = vsel %vm6_vm0, %v216_v1, %v215_v0  ;;  %v220_v4 = vld [vmem:[%s412_s0 + $0xd] ss:$16 sm:%s38_s15]   ;;  %s26_s20 = smov 12  ;;  %v217_v6 = vld [vmem:[%s412_s0 + $0xe] ss:$16 sm:%s23_s19]   ;;  %s47_s25 = smov 3 }
   0x4   :  { %18 = vrot.lane.b32.xlu0 %v17_v2, %s263_s16  ;;  %v41_v5 = vsel %vm6_vm0, %v220_v4, %v219_v3  ;;  %v218_v7 = vld [vmem:[%s412_s0 + $0xe] ss:$16 sm:%s26_s20]   ;;  %s264_s26 = smov 104   ;;  %s50_s29 = smov 12  ;;  %vm68_vm6 = vcmask 786112   ;;  %vm80_vm7 = vcmask 720512  }
   0x5   :  { %42 = vrot.lane.b32.xlu1 %v41_v5, %s264_s26  ;;  %v29_v8 = vsel %vm6_vm0, %v218_v7, %v217_v6  ;;  %v221_v9 = vld [vmem:[%s412_s0 + $0xc] ss:$16 sm:%s47_s25]   ;;  %s59_s3 = smov 3  ;;  %s62_s4 = smov 12  ;;  %vm92_vm8 = vcmask 654912   ;;  %vm104_vm9 = vcmask 589312  }
   0x6   :  { %v222_v10 = vld [vmem:[%s412_s0 + $0xc] ss:$16 sm:%s50_s29]   ;;  %s265_s5 = smov 112   ;;  %v223_v12 = vld [vmem:[%s412_s0 + $0xb] ss:$16 sm:%s59_s3]   ;;  %s71_s8 = smov 3 }
   0x7   :  { %v53_v11 = vsel %vm6_vm0, %v222_v10, %v221_v9  ;;  %v224_v13 = vld [vmem:[%s412_s0 + $0xb] ss:$16 sm:%s62_s4]   ;;  %v225_v14 = vld [vmem:[%s412_s0 + $0xa] ss:$16 sm:%s71_s8]   ;;  %s74_s13 = smov 12  ;;  %s266_s14 = smov 96  }
   0x8   :  { %30 = vrot.lane.b32.xlu0 %v29_v8, %s265_s5  ;;  %v65_v15 = vsel %vm6_vm0, %v224_v13, %v223_v12  ;;  %v226_v16 = vld [vmem:[%s412_s0 + $0xa] ss:$16 sm:%s74_s13]   ;;  %s83_s17 = smov 3  ;;  %s86_s18 = smov 12  ;;  %vm116_vm10 = vcmask 523712   ;;  %vm128_vm11 = vcmask 458112  }
   0x9   :  { %54 = vrot.lane.b32.xlu1 %v53_v11, %s266_s14  ;;  %v77_v17 = vsel %vm6_vm0, %v226_v16, %v225_v14  ;;  %v227_v18 = vld [vmem:[%s412_s0 + $0x9] ss:$16 sm:%s83_s17]   ;;  %s95_s23 = smov 3  ;;  %s267_s24 = smov 88   ;;  %vm140_vm12 = vcmask 392512   ;;  %vm152_vm13 = vcmask 326912  }
   0xa   :  { %v228_v19 = vld [vmem:[%s412_s0 + $0x9] ss:$16 sm:%s86_s18]   ;;  %v229_v20 = vld [vmem:[%s412_s0 + $0x8] ss:$16 sm:%s95_s23]   ;;  %s98_s27 = smov 12  ;;  %s107_s30 = smov 3 }
   0xb   :  { %v89_v21 = vsel %vm6_vm0, %v228_v19, %v227_v18  ;;  %v230_v22 = vld [vmem:[%s412_s0 + $0x8] ss:$16 sm:%s98_s27]   ;;  %s110_s2 = smov 12  ;;  %s268_s3 = smov 80   ;;  %v231_v23 = vld [vmem:[%s412_s0 + $0x7] ss:$16 sm:%s107_s30]  }
   0xc   :  { %66 = vrot.lane.b32.xlu0 %v65_v15, %s267_s24  ;;  %s119_s6 = smov 3  ;;  %v101_v24 = vsel %vm6_vm0, %v230_v22, %v229_v20  ;;  %v232_v25 = vld [vmem:[%s412_s0 + $0x7] ss:$16 sm:%s110_s2]   ;;  %s122_s11 = smov 12  ;;  %vm164_vm14 = vcmask 261312   ;;  %vm176_vm15 = vcmask 195712  }
   0xd   :  { %78 = vrot.lane.b32.xlu1 %v77_v17, %s268_s3  ;;  %v233_v26 = vld [vmem:[%s412_s0 + $0x6] ss:$16 sm:%s119_s6]   ;;  %s269_s12 = smov 72   ;;  %s131_s15 = smov 3  ;;  %v113_v28 = vsel %vm6_vm0, %v232_v25, %v231_v23 }
   0xe   :  { %v234_v27 = vld [vmem:[%s412_s0 + $0x6] ss:$16 sm:%s122_s11]   ;;  %s134_s16 = smov 12  ;;  %v235_v29 = vld [vmem:[%s412_s0 + $0x5] ss:$16 sm:%s131_s15]   ;;  %s143_s19 = smov 3 }
   0xf   :  { %s270_s20 = smov 64   ;;  %v236_v30 = vld [vmem:[%s412_s0 + $0x5] ss:$16 sm:%s134_s16]   ;;  %s146_s23 = smov 12  ;;  %v125_v31 = vsel %vm6_vm0, %v234_v27, %v233_v26  ;;  %v237_v32 = vld [vmem:[%s412_s0 + $0x4] ss:$16 sm:%s143_s19]  }
  0x10   :  { %90 = vrot.lane.b32.xlu0 %v89_v21, %s269_s12  ;;  %s155_s26 = smov 3  ;;  %s158_s27 = smov 12  ;;  %v238_v33 = vld [vmem:[%s412_s0 + $0x4] ss:$16 sm:%s146_s23]   ;;  %v137_v34 = vsel %vm6_vm0, %v236_v30, %v235_v29 }
  0x11   :  { %102 = vrot.lane.b32.xlu1 %v101_v24, %s270_s20  ;;  %s271_s28 = smov 56   ;;  %s167_s2 = smov 3  ;;  %v239_v35 = vld [vmem:[%s412_s0 + $0x3] ss:$16 sm:%s155_s26]   ;;  %v149_v37 = vsel %vm6_vm0, %v238_v33, %v237_v32 }
  0x12   :  { %s170_s5 = smov 12  ;;  %s272_s6 = smov 48   ;;  %v240_v36 = vld [vmem:[%s412_s0 + $0x3] ss:$16 sm:%s158_s27]   ;;  %v241_v38 = vld [vmem:[%s412_s0 + $0x2] ss:$16 sm:%s167_s2]  }
  0x13   :  { %s179_s9 = smov 3  ;;  %v242_v39 = vld [vmem:[%s412_s0 + $0x2] ss:$16 sm:%s170_s5]   ;;  %s182_s14 = smov 12  ;;  %v161_v41 = vsel %vm6_vm0, %v240_v36, %v239_v35 }
  0x14   :  { %114 = vrot.lane.b32.xlu0 %v113_v28, %s271_s28  ;;  %s2_s15 = smov 3  ;;  %s273_s16 = smov 40   ;;  %v243_v42 = vld [vmem:[%s412_s0 + $0x1] ss:$16 sm:%s179_s9]   ;;  %v173_v46 = vsel %vm6_vm0, %v242_v39, %v241_v38 }
  0x15   :  { %126 = vrot.lane.b32.xlu1 %v125_v31, %s272_s6  ;;  %v3_v40 = vld [vmem:[%s412_s0] ss:$16 sm:%s2_s15]   ;;  %s4_s19 = smov 12  ;;  %s274_s24 = smov 32  }
  0x16   :  { %v5_v43 = vld [vmem:[%s412_s0] ss:$16 sm:%s4_s19]   ;;  %v244_v44 = vld [vmem:[%s412_s0 + $0x1] ss:$16 sm:%s182_s14]   ;;  %s275_s0 = smov 24   ;;  %s276_s27 = smov 16  }
  0x17   :  { %v7_v45 = vsel %vm6_vm0, %v5_v43, %v3_v40  ;;  %v185_v47 = vsel %vm6_vm0, %v244_v44, %v243_v42  ;;  %s277_s28 = smov 8   ;;  %vm188_vm0 = vcmask 130112  }
  0x18   :  { %138 = vrot.lane.b32.xlu0 %v137_v34, %s273_s16  ;;  %9 = vst.msk [vmem:[#allocation0] ss:$8 sm:$0xf] %vm8_vm1, %v7_v45  }
  0x19   :  { %150 = vrot.lane.b32.xlu1 %v149_v37, %s274_s24 }
  0x1c   :  { %162 = vrot.lane.b32.xlu0 %v161_v41, %s275_s0 }
  0x1d   :  { %174 = vrot.lane.b32.xlu1 %v173_v46, %s276_s27 }
  0x20   :  { %186 = vrot.lane.b32.xlu0 %v185_v47, %s277_s28 }
  0x76   :  { %v19_v48 = vpop.permute.xlu0 %18  }
  0x77   :  { %21 = vst.msk [vmem:[#allocation0] ss:$8 sm:$0xf] %vm20_vm2, %v19_v48   ;;  %v43_v49 = vpop.permute.xlu1 %42  }
  0x7a   :  { %v31_v50 = vpop.permute.xlu0 %30  }
  0x7b   :  { %33 = vst.msk [vmem:[#allocation0] ss:$8 sm:$0xf] %vm32_vm3, %v31_v50   ;;  %v55_v51 = vpop.permute.xlu1 %54  }
  0x7c   :  { %45 = vst.msk [vmem:[#allocation0] ss:$8 sm:$0xf] %vm44_vm4, %v43_v49  }
  0x7d   :  { %57 = vst.msk [vmem:[#allocation0] ss:$8 sm:$0xf] %vm56_vm5, %v55_v51  }
  0x7e   :  { %v67_v52 = vpop.permute.xlu0 %66  }
  0x7f   :  { %69 = vst.msk [vmem:[#allocation0] ss:$8 sm:$0xf] %vm68_vm6, %v67_v52   ;;  %v79_v53 = vpop.permute.xlu1 %78  }
  0x80   :  { %81 = vst.msk [vmem:[#allocation0] ss:$8 sm:$0xf] %vm80_vm7, %v79_v53  }
  0x82   :  { %v91_v54 = vpop.permute.xlu0 %90  }
  0x83   :  { %93 = vst.msk [vmem:[#allocation0] ss:$8 sm:$0xf] %vm92_vm8, %v91_v54   ;;  %v103_v55 = vpop.permute.xlu1 %102  }
  0x84   :  { %105 = vst.msk [vmem:[#allocation0] ss:$8 sm:$0xf] %vm104_vm9, %v103_v55  }
  0x86   :  { %v115_v56 = vpop.permute.xlu0 %114  }
  0x87   :  { %117 = vst.msk [vmem:[#allocation0] ss:$8 sm:$0xf] %vm116_vm10, %v115_v56   ;;  %v127_v57 = vpop.permute.xlu1 %126  }
  0x88   :  { %129 = vst.msk [vmem:[#allocation0] ss:$8 sm:$0xf] %vm128_vm11, %v127_v57  }
  0x8a   :  { %v139_v58 = vpop.permute.xlu0 %138  }
  0x8b   :  { %141 = vst.msk [vmem:[#allocation0] ss:$8 sm:$0xf] %vm140_vm12, %v139_v58   ;;  %v151_v59 = vpop.permute.xlu1 %150  }
  0x8c   :  { %153 = vst.msk [vmem:[#allocation0] ss:$8 sm:$0xf] %vm152_vm13, %v151_v59  }
  0x8e   :  { %v163_v60 = vpop.permute.xlu0 %162  }
  0x8f   :  { %165 = vst.msk [vmem:[#allocation0] ss:$8 sm:$0xf] %vm164_vm14, %v163_v60   ;;  %v175_v61 = vpop.permute.xlu1 %174  }
  0x90   :  { %177 = vst.msk [vmem:[#allocation0] ss:$8 sm:$0xf] %vm176_vm15, %v175_v61  }
  0x92   :  { %v187_v62 = vpop.permute.xlu0 %186  }
  0x93   :  { %189 = vst.msk [vmem:[#allocation0] ss:$8 sm:$0xf] %vm188_vm0, %v187_v62  }
  0x9a   :  { %v193_v63 = vld [vmem:[#allocation0] sm:$0x1]  ;;  %v197_v0 = vld [vmem:[#allocation0 + $0x8] sm:$0x1]  ;;  %v202_v1 = vld [vmem:[#allocation0 + $0x10] sm:$0x1] }
  0x9b   :  { %195 = vst [vmem:[%s413_s1] sm:$0x1] %v193_v63  ;;  %245 = vst [vmem:[%s413_s1 + $0x1] sm:$0x1] %v197_v0  ;;  %v208_v2 = vld [vmem:[#allocation0 + $0x18] sm:$0x1] }
  0x9c   :  { %246 = vst [vmem:[%s413_s1 + $0x2] sm:$0x1] %v202_v1  ;;  %247 = vst [vmem:[%s413_s1 + $0x3] sm:$0x1] %v208_v2 }

// kernel: unet_forward.37
= control target key start
LH: loop header
LB: loop body
LE: loop exit
PB: predicated region body
PF: predicated region fallthrough
CT: control target
= control target key end

     0   :  { %v24_v0 = vlaneseq  ;;  %s192_s1 = inlined_call_operand.vmem [shape: f32[1,512], index: 1, kind: input, shape index: {}]   ;;  %s193_s2 = inlined_call_operand.vmem [shape: f32[1,512], index: 2, kind: input, shape index: {}]   ;;  %s194_s0 = inlined_call_operand.vmem [shape: f32[16,512], index: 0, kind: input, shape index: {}]   ;;  %s195_s3 = inlined_call_operand.vmem [shape: bf16[16,512], index: 3, kind: output, shape index: {}]  }
   0x1   :  { %v22_v2 = vld [vmem:[%s192_s1] sm:$0xf]  ;;  %v15_v5 = vld [vmem:[%s194_s0 + $0x8] sm:$0xff]  ;;  %v16_v10 = vld [vmem:[%s194_s0 + $0x10] sm:$0xff] }
   0x2   :  { %v25_v1 = vshrl.u32 %v24_v0, 7  ;;  %v52_v3 = vld [vmem:[%s193_s2] sm:$0xf]  ;;  %v19_v12 = vld [vmem:[%s194_s0 + $0x28] sm:$0xff]  ;;  %v17_v17 = vld [vmem:[%s194_s0 + $0x18] sm:$0xff] }
   0x3   :  { %v14_v4 = vld [vmem:[%s194_s0] sm:$0xff]  ;;  %v20_v18 = vld [vmem:[%s194_s0 + $0x30] sm:$0xff]  ;;  %v21_v19 = vld [vmem:[%s194_s0 + $0x38] sm:$0xff] }
   0x4   :  { %v26_v6 = vsub.s32 0, %v25_v1  ;;  %v30_v7 = vsub.s32 1, %v25_v1  ;;  %v34_v8 = vsub.s32 2, %v25_v1  ;;  %v38_v9 = vsub.s32 3, %v25_v1  ;;  %v18_v11 = vld [vmem:[%s194_s0 + $0x20] sm:$0xff] }
   0x6   :  { %v27_v13 = vrot.slane %v22_v2, %v26_v6  ;;  %v31_v14 = vrot.slane %v22_v2, %v30_v7  ;;  %v57_v15 = vrot.slane %v52_v3, %v26_v6  ;;  %v61_v16 = vrot.slane %v52_v3, %v30_v7 }
   0x7   :  { %v35_v20 = vrot.slane %v22_v2, %v34_v8  ;;  %v39_v21 = vrot.slane %v22_v2, %v38_v9  ;;  %v65_v22 = vrot.slane %v52_v3, %v34_v8  ;;  %v69_v23 = vrot.slane %v52_v3, %v38_v9 }
   0x8   :  { %v44_v24 = vmul.f32 %v27_v13, %v14_v4  ;;  %v45_v25 = vmul.f32 %v31_v14, %v15_v5  ;;  %v48_v26 = vmul.f32 %v27_v13, %v18_v11  ;;  %v49_v27 = vmul.f32 %v31_v14, %v19_v12 }
   0x9   :  { %v46_v28 = vmul.f32 %v35_v20, %v16_v10  ;;  %v47_v29 = vmul.f32 %v39_v21, %v17_v17  ;;  %v50_v30 = vmul.f32 %v35_v20, %v20_v18  ;;  %v51_v31 = vmul.f32 %v39_v21, %v21_v19 }
   0xa   :  { %v74_v32 = vadd.f32 %v57_v15, %v44_v24  ;;  %v75_v33 = vadd.f32 %v61_v16, %v45_v25  ;;  %v78_v34 = vadd.f32 %v57_v15, %v48_v26  ;;  %v79_v35 = vadd.f32 %v61_v16, %v49_v27 }
   0xb   :  { %v76_v36 = vadd.f32 %v65_v22, %v46_v28  ;;  %v77_v37 = vadd.f32 %v69_v23, %v47_v29  ;;  %v80_v38 = vadd.f32 %v65_v22, %v50_v30  ;;  %v81_v39 = vadd.f32 %v69_v23, %v51_v31 }
   0xc   :  { %v82_v40 = vmax.f32 %v74_v32, 0.0  ;;  %v83_v41 = vmax.f32 %v75_v33, 0.0  ;;  %v86_v42 = vmax.f32 %v78_v34, 0.0  ;;  %v87_v43 = vmax.f32 %v79_v35, 0.0 }
   0xd   :  { %v84_v44 = vmax.f32 %v76_v36, 0.0  ;;  %v85_v45 = vmax.f32 %v77_v37, 0.0  ;;  %v88_v46 = vmax.f32 %v80_v38, 0.0  ;;  %v89_v47 = vmax.f32 %v81_v39, 0.0 }
   0xe   :  { %v126_v48 = vpack.c.bf16 %v83_v41, %v82_v40  ;;  %v128_v49 = vpack.c.bf16 %v87_v43, %v86_v42 }
   0xf   :  { %v127_v50 = vpack.c.bf16 %v85_v45, %v84_v44  ;;  %v129_v51 = vpack.c.bf16 %v89_v47, %v88_v46 }
  0x10   :  { %114 = vst [vmem:[%s195_s3] sm:$0xff] %v126_v48  ;;  %116 = vst [vmem:[%s195_s3 + $0x10] sm:$0xff] %v128_v49 }
  0x11   :  { %115 = vst [vmem:[%s195_s3 + $0x8] sm:$0xff] %v127_v50  ;;  %117 = vst [vmem:[%s195_s3 + $0x18] sm:$0xff] %v129_v51 }

// kernel: unet_forward.36
= control target key start
LH: loop header
LB: loop body
LE: loop exit
PB: predicated region body
PF: predicated region fallthrough
CT: control target
= control target key end

     0   :  { %s2131_s1 = inlined_call_operand.vmem [shape: bf16[128,128], index: 1, kind: input, shape index: {}]   ;;  %s2132_s0 = inlined_call_operand.vmem [shape: bf16[512,128], index: 0, kind: input, shape index: {}]   ;;  %s2133_s2 = inlined_call_operand.vmem [shape: f32[1,128], index: 2, kind: input, shape index: {}]   ;;  %s2134_s3 = inlined_call_operand.vmem [shape: f32[512,128], index: 3, kind: output, shape index: {0}]   ;;  %s2135_s4 = inlined_call_operand.vmem [shape: f32[1,1,128], index: 4, kind: output, shape index: {1}]   ;;  %s2136_s5 = inlined_call_operand.vmem [shape: f32[1,1,128], index: 5, kind: output, shape index: {2}]  }
   0x1   :  { %v1482_v0 = vld [vmem:[%s2131_s1] sm:$0xff]   ;;  %v1483_v1 = vld [vmem:[%s2131_s1 + $0x8] sm:$0xff]   ;;  %v1484_v2 = vld [vmem:[%s2131_s1 + $0x10] sm:$0xff]  }
   0x2   :  { %1386 = vmatprep.subr.bf16.mxu0 %v1482_v0  ;;  %1466 = vmatprep.subr.bf16.mxu1 %v1482_v0  ;;  %v1485_v3 = vld [vmem:[%s2131_s1 + $0x18] sm:$0xff]   ;;  %v1490_v4 = vld [vmem:[%s2132_s0] sm:$0xff]   ;;  %v1487_v6 = vld [vmem:[%s2131_s1 + $0x28] sm:$0xff]  }
   0x3   :  { %1387 = vmatpush3.bf16.msra.mxu0 %v1482_v0  ;;  %1474 = vmatpush3.bf16.msra.mxu1 %v1482_v0  ;;  %v1486_v5 = vld [vmem:[%s2131_s1 + $0x20] sm:$0xff]   ;;  %v1488_v7 = vld [vmem:[%s2131_s1 + $0x30] sm:$0xff]   ;;  %v1489_v8 = vld [vmem:[%s2131_s1 + $0x38] sm:$0xff]  }
   0x4   :  { %1388 = vmatprep.subr.bf16.mxu0 %v1483_v1  ;;  %1467 = vmatprep.subr.bf16.mxu1 %v1483_v1  ;;  %v1506_v9 = vld [vmem:[%s2132_s0 + $0x80] sm:$0xff]   ;;  %v1491_v10 = vld [vmem:[%s2132_s0 + $0x8] sm:$0xff]   ;;  %v1492_v11 = vld [vmem:[%s2132_s0 + $0x10] sm:$0xff]  }
   0x5   :  { %1402 = vmatprep.mubr.bf16.mxu0 %v1490_v4  ;;  %1434 = vmatprep.mubr.bf16.mxu1 %v1506_v9  ;;  %v1507_v12 = vld [vmem:[%s2132_s0 + $0x88] sm:$0xff]   ;;  %v1508_v13 = vld [vmem:[%s2132_s0 + $0x90] sm:$0xff]   ;;  %v1493_v14 = vld [vmem:[%s2132_s0 + $0x18] sm:$0xff]  }
   0x6   :  { %v1494_v15 = vld [vmem:[%s2132_s0 + $0x20] sm:$0xff]   ;;  %v1509_v16 = vld [vmem:[%s2132_s0 + $0x98] sm:$0xff]   ;;  %v1495_v18 = vld [vmem:[%s2132_s0 + $0x28] sm:$0xff]  }
   0x7   :  { %1389 = vmatpush3.bf16.msra.mxu0 %v1483_v1  ;;  %1475 = vmatpush3.bf16.msra.mxu1 %v1483_v1  ;;  %v1510_v17 = vld [vmem:[%s2132_s0 + $0xa0] sm:$0xff]   ;;  %v1511_v19 = vld [vmem:[%s2132_s0 + $0xa8] sm:$0xff]   ;;  %v1496_v20 = vld [vmem:[%s2132_s0 + $0x30] sm:$0xff]  }
   0x8   :  { %1390 = vmatprep.subr.bf16.mxu0 %v1484_v2  ;;  %1468 = vmatprep.subr.bf16.mxu1 %v1484_v2  ;;  %v1512_v21 = vld [vmem:[%s2132_s0 + $0xb0] sm:$0xff]   ;;  %v1497_v22 = vld [vmem:[%s2132_s0 + $0x38] sm:$0xff]   ;;  %v1498_v24 = vld [vmem:[%s2132_s0 + $0x40] sm:$0xff]  }
   0x9   :  { %v1513_v23 = vld [vmem:[%s2132_s0 + $0xb8] sm:$0xff]   ;;  %v1514_v25 = vld [vmem:[%s2132_s0 + $0xc0] sm:$0xff]   ;;  %v1499_v26 = vld [vmem:[%s2132_s0 + $0x48] sm:$0xff]  }
   0xa   :  { %v1515_v27 = vld [vmem:[%s2132_s0 + $0xc8] sm:$0xff]   ;;  %v1500_v28 = vld [vmem:[%s2132_s0 + $0x50] sm:$0xff]   ;;  %v1501_v30 = vld [vmem:[%s2132_s0 + $0x58] sm:$0xff]  }
   0xb   :  { %1391 = vmatpush3.bf16.msra.mxu0 %v1484_v2  ;;  %1476 = vmatpush3.bf16.msra.mxu1 %v1484_v2  ;;  %v1516_v29 = vld [vmem:[%s2132_s0 + $0xd0] sm:$0xff]   ;;  %v1517_v31 = vld [vmem:[%s2132_s0 + $0xd8] sm:$0xff]   ;;  %v1502_v32 = vld [vmem:[%s2132_s0 + $0x60] sm:$0xff]  }
   0xc   :  { %1392 = vmatprep.subr.bf16.mxu0 %v1485_v3  ;;  %1469 = vmatprep.subr.bf16.mxu1 %v1485_v3  ;;  %v1518_v33 = vld [vmem:[%s2132_s0 + $0xe0] sm:$0xff]   ;;  %v1503_v34 = vld [vmem:[%s2132_s0 + $0x68] sm:$0xff]   ;;  %v1504_v36 = vld [vmem:[%s2132_s0 + $0x70] sm:$0xff]  }
   0xd   :  { %v1519_v35 = vld [vmem:[%s2132_s0 + $0xe8] sm:$0xff]   ;;  %v1520_v37 = vld [vmem:[%s2132_s0 + $0xf0] sm:$0xff]   ;;  %v1505_v38 = vld [vmem:[%s2132_s0 + $0x78] sm:$0xff]  }
   0xe   :  { %v1521_v39 = vld [vmem:[%s2132_s0 + $0xf8] sm:$0xff]   ;;  %v1675_v40 = vld [vmem:[%s2133_s2] ss:$0 sm:$0xff] }
   0xf   :  { %1393 = vmatpush3.bf16.msra.mxu0 %v1485_v3  ;;  %1477 = vmatpush3.bf16.msra.mxu1 %v1485_v3 }
  0x10   :  { %1394 = vmatprep.subr.bf16.mxu0 %v1486_v5  ;;  %1470 = vmatprep.subr.bf16.mxu1 %v1486_v5 }
  0x13   :  { %1395 = vmatpush3.bf16.msra.mxu0 %v1486_v5  ;;  %1478 = vmatpush3.bf16.msra.mxu1 %v1486_v5 }
  0x14   :  { %1396 = vmatprep.subr.bf16.mxu0 %v1487_v6  ;;  %1471 = vmatprep.subr.bf16.mxu1 %v1487_v6 }
  0x17   :  { %1397 = vmatpush3.bf16.msra.mxu0 %v1487_v6  ;;  %1479 = vmatpush3.bf16.msra.mxu1 %v1487_v6 }
  0x18   :  { %1398 = vmatprep.subr.bf16.mxu0 %v1488_v7  ;;  %1472 = vmatprep.subr.bf16.mxu1 %v1488_v7 }
  0x1b   :  { %1399 = vmatpush3.bf16.msra.mxu0 %v1488_v7  ;;  %1480 = vmatpush3.bf16.msra.mxu1 %v1488_v7 }
  0x1c   :  { %1400 = vmatprep.subr.bf16.mxu0 %v1489_v8  ;;  %1473 = vmatprep.subr.bf16.mxu1 %v1489_v8 }
  0x1f   :  { %1401 = vmatpush3.bf16.msra.mxu0 %v1489_v8  ;;  %1481 = vmatpush3.bf16.msra.mxu1 %v1489_v8 }
  0x22   :  { %1403 = vmatmul.mubr.bf16.vlgmr.msra.gmra.mrb[0].mxu0 %v1491_v10  ;;  %1435 = vmatmul.mubr.bf16.vlgmr.msra.gmra.mrb[0].mxu1 %v1507_v12 }
  0x23   :  { %1406 = vmatprep.mubr.bf16.mxu0 %v1492_v11  ;;  %1438 = vmatprep.mubr.bf16.mxu1 %v1508_v13 }
  0x2a   :  { %1407 = vmatmul.mubr.bf16.gmra.mrb[4].mxu0 %v1493_v14  ;;  %1439 = vmatmul.mubr.bf16.gmra.mrb[4].mxu1 %v1509_v16 }
  0x2b   :  { %1410 = vmatprep.mubr.bf16.mxu0 %v1494_v15  ;;  %1442 = vmatprep.mubr.bf16.mxu1 %v1510_v17 }
  0x32   :  { %1411 = vmatmul.mubr.bf16.gmra.mrb[8].mxu0 %v1495_v18  ;;  %1443 = vmatmul.mubr.bf16.gmra.mrb[8].mxu1 %v1511_v19 }
  0x33   :  { %1414 = vmatprep.mubr.bf16.mxu0 %v1496_v20  ;;  %1446 = vmatprep.mubr.bf16.mxu1 %v1512_v21 }
  0x3a   :  { %1415 = vmatmul.mubr.bf16.gmra.mrb[12].mxu0 %v1497_v22  ;;  %1447 = vmatmul.mubr.bf16.gmra.mrb[12].mxu1 %v1513_v23 }
  0x3b   :  { %1418 = vmatprep.mubr.bf16.mxu0 %v1498_v24  ;;  %1450 = vmatprep.mubr.bf16.mxu1 %v1514_v25 }
  0x42   :  { %1419 = vmatmul.mubr.bf16.gmra.mrb[16].mxu0 %v1499_v26  ;;  %1451 = vmatmul.mubr.bf16.gmra.mrb[16].mxu1 %v1515_v27 }
  0x43   :  { %1422 = vmatprep.mubr.bf16.mxu0 %v1500_v28  ;;  %1454 = vmatprep.mubr.bf16.mxu1 %v1516_v29 }
  0x4a   :  { %1423 = vmatmul.mubr.bf16.gmra.mrb[20].mxu0 %v1501_v30  ;;  %1455 = vmatmul.mubr.bf16.gmra.mrb[20].mxu1 %v1517_v31 }
  0x4b   :  { %1426 = vmatprep.mubr.bf16.mxu0 %v1502_v32  ;;  %1458 = vmatprep.mubr.bf16.mxu1 %v1518_v33 }
  0x52   :  { %1427 = vmatmul.mubr.bf16.gmra.mrb[24].mxu0 %v1503_v34  ;;  %1459 = vmatmul.mubr.bf16.gmra.mrb[24].mxu1 %v1519_v35 }
  0x53   :  { %1430 = vmatprep.mubr.bf16.mxu0 %v1504_v36  ;;  %1462 = vmatprep.mubr.bf16.mxu1 %v1520_v37 }
  0x5a   :  { %1431 = vmatmul.mubr.bf16.gmra.mrb[28].mxu0 %v1505_v38  ;;  %1463 = vmatmul.mubr.bf16.gmra.mrb[28].mxu1 %v1521_v39 }
  0xf5   :  { %v1404_v41 = vpop.f32.mrb[0].mxu0  ;;  %v1436_v42 = vpop.f32.mrb[0].mxu1 }
  0xf6   :  { %v963_v43 = vadd.f32 %v1404_v41, %v1675_v40  ;;  %v504_v44 = vpop.f32.mrb[1].mxu0  ;;  %v1679_v45 = vadd.f32 %v1436_v42, %v1675_v40  ;;  %v632_v46 = vpop.f32.mrb[1].mxu1 }
  0xf7   :  { %v961_v47 = vadd.f32 %v1675_v40, %v504_v44  ;;  %v1405_v48 = vpop.f32.mrb[2].mxu0  ;;  %v1683_v49 = vadd.f32 %v1675_v40, %v632_v46  ;;  %v1437_v50 = vpop.f32.mrb[2].mxu1 }
  0xf8   :  { %1027 = vst [vmem:[%s2134_s3 + $0x10] sm:$0xff] %v963_v43  ;;  %v964_v51 = vadd.f32 %v1405_v48, %v1675_v40  ;;  %v507_v52 = vpop.f32.mrb[3].mxu0  ;;  %1059 = vst [vmem:[%s2134_s3 + $0x110] sm:$0xff] %v1679_v45  ;;  %v1694_v53 = vadd.f32 %v1437_v50, %v1675_v40  ;;  %v635_v54 = vpop.f32.mrb[3].mxu1  ;;  %v1161_v60 = vmul.f32 %v963_v43, %v963_v43 }
  0xf9   :  { %1025 = vst [vmem:[%s2134_s3] sm:$0xff] %v961_v47  ;;  %v962_v55 = vadd.f32 %v1675_v40, %v507_v52  ;;  %1057 = vst [vmem:[%s2134_s3 + $0x100] sm:$0xff] %v1683_v49  ;;  %v1705_v56 = vadd.f32 %v1675_v40, %v635_v54  ;;  %v1159_v57 = vmul.f32 %v961_v47, %v961_v47 }
  0xfa   :  { %1028 = vst [vmem:[%s2134_s3 + $0x18] sm:$0xff] %v964_v51  ;;  %1060 = vst [vmem:[%s2134_s3 + $0x118] sm:$0xff] %v1694_v53  ;;  %v1162_v1 = vmul.f32 %v964_v51, %v964_v51 }
  0xfb   :  { %1026 = vst [vmem:[%s2134_s3 + $0x8] sm:$0xff] %v962_v55  ;;  %v1089_v58 = vadd.f32 %v962_v55, %v961_v47  ;;  %v1160_v59 = vmul.f32 %v962_v55, %v962_v55  ;;  %1058 = vst [vmem:[%s2134_s3 + $0x108] sm:$0xff] %v1705_v56 }
  0xfd   :  { %v1090_v61 = vadd.f32 %v1089_v58, %v963_v43  ;;  %v1223_v62 = vadd.f32 %v1160_v59, %v1159_v57  ;;  %v1408_v63 = vpop.f32.mrb[4].mxu0  ;;  %v1440_v0 = vpop.f32.mrb[4].mxu1 }
  0xfe   :  { %v967_v2 = vadd.f32 %v1408_v63, %v1675_v40  ;;  %v520_v3 = vpop.f32.mrb[5].mxu0  ;;  %v1723_v4 = vadd.f32 %v1440_v0, %v1675_v40  ;;  %v648_v5 = vpop.f32.mrb[5].mxu1 }
  0xff   :  { %v1224_v6 = vadd.f32 %v1223_v62, %v1161_v60  ;;  %v965_v7 = vadd.f32 %v1675_v40, %v520_v3  ;;  %v1091_v8 = vadd.f32 %v1090_v61, %v964_v51  ;;  %v1409_v9 = vpop.f32.mrb[6].mxu0  ;;  %v1727_v10 = vadd.f32 %v1675_v40, %v648_v5  ;;  %v1441_v11 = vpop.f32.mrb[6].mxu1 }
 0x100   :  { %1031 = vst [vmem:[%s2134_s3 + $0x30] sm:$0xff] %v967_v2  ;;  %v968_v12 = vadd.f32 %v1409_v9, %v1675_v40  ;;  %v523_v13 = vpop.f32.mrb[7].mxu0  ;;  %1063 = vst [vmem:[%s2134_s3 + $0x130] sm:$0xff] %v1723_v4  ;;  %v1738_v14 = vadd.f32 %v1441_v11, %v1675_v40  ;;  %v651_v15 = vpop.f32.mrb[7].mxu1  ;;  %v1165_v24 = vmul.f32 %v967_v2, %v967_v2 }
 0x101   :  { %1029 = vst [vmem:[%s2134_s3 + $0x20] sm:$0xff] %v965_v7  ;;  %v1092_v16 = vadd.f32 %v1091_v8, %v965_v7  ;;  %v1163_v17 = vmul.f32 %v965_v7, %v965_v7  ;;  %v1225_v18 = vadd.f32 %v1224_v6, %v1162_v1  ;;  %v966_v19 = vadd.f32 %v1675_v40, %v523_v13 }
 0x102   :  { %1061 = vst [vmem:[%s2134_s3 + $0x120] sm:$0xff] %v1727_v10  ;;  %1032 = vst [vmem:[%s2134_s3 + $0x38] sm:$0xff] %v968_v12  ;;  %v1756_v20 = vadd.f32 %v1675_v40, %v651_v15  ;;  %v1166_v29 = vmul.f32 %v968_v12, %v968_v12 }
 0x103   :  { %1064 = vst [vmem:[%s2134_s3 + $0x138] sm:$0xff] %v1738_v14  ;;  %v1226_v21 = vadd.f32 %v1225_v18, %v1163_v17  ;;  %1030 = vst [vmem:[%s2134_s3 + $0x28] sm:$0xff] %v966_v19  ;;  %v1093_v22 = vadd.f32 %v1092_v16, %v966_v19  ;;  %v1164_v23 = vmul.f32 %v966_v19, %v966_v19 }
 0x104   :  { %1062 = vst [vmem:[%s2134_s3 + $0x128] sm:$0xff] %v1756_v20 }
 0x105   :  { %v1094_v25 = vadd.f32 %v1093_v22, %v967_v2  ;;  %v1227_v26 = vadd.f32 %v1226_v21, %v1164_v23  ;;  %v1412_v27 = vpop.f32.mrb[8].mxu0  ;;  %v1444_v28 = vpop.f32.mrb[8].mxu1 }
 0x106   :  { %v971_v30 = vadd.f32 %v1412_v27, %v1675_v40  ;;  %v536_v31 = vpop.f32.mrb[9].mxu0  ;;  %v1767_v32 = vadd.f32 %v1444_v28, %v1675_v40  ;;  %v664_v33 = vpop.f32.mrb[9].mxu1 }
 0x107   :  { %v1228_v34 = vadd.f32 %v1227_v26, %v1165_v24  ;;  %v969_v35 = vadd.f32 %v1675_v40, %v536_v31  ;;  %v1095_v36 = vadd.f32 %v1094_v25, %v968_v12  ;;  %v1413_v37 = vpop.f32.mrb[10].mxu0  ;;  %v1771_v38 = vadd.f32 %v1675_v40, %v664_v33  ;;  %v1445_v39 = vpop.f32.mrb[10].mxu1 }
 0x108   :  { %1035 = vst [vmem:[%s2134_s3 + $0x50] sm:$0xff] %v971_v30  ;;  %v972_v41 = vadd.f32 %v1413_v37, %v1675_v40  ;;  %v539_v42 = vpop.f32.mrb[11].mxu0  ;;  %1067 = vst [vmem:[%s2134_s3 + $0x150] sm:$0xff] %v1767_v32  ;;  %v1782_v43 = vadd.f32 %v1445_v39, %v1675_v40  ;;  %v667_v44 = vpop.f32.mrb[11].mxu1  ;;  %v1169_v57 = vmul.f32 %v971_v30, %v971_v30 }
 0x109   :  { %1033 = vst [vmem:[%s2134_s3 + $0x40] sm:$0xff] %v969_v35  ;;  %v1096_v46 = vadd.f32 %v1095_v36, %v969_v35  ;;  %v1167_v47 = vmul.f32 %v969_v35, %v969_v35  ;;  %v1229_v48 = vadd.f32 %v1228_v34, %v1166_v29  ;;  %v970_v50 = vadd.f32 %v1675_v40, %v539_v42 }
 0x10a   :  { %1065 = vst [vmem:[%s2134_s3 + $0x140] sm:$0xff] %v1771_v38  ;;  %1036 = vst [vmem:[%s2134_s3 + $0x58] sm:$0xff] %v972_v41  ;;  %v1800_v51 = vadd.f32 %v1675_v40, %v667_v44  ;;  %v1170_v62 = vmul.f32 %v972_v41, %v972_v41 }
 0x10b   :  { %1068 = vst [vmem:[%s2134_s3 + $0x158] sm:$0xff] %v1782_v43  ;;  %v1230_v52 = vadd.f32 %v1229_v48, %v1167_v47  ;;  %1034 = vst [vmem:[%s2134_s3 + $0x48] sm:$0xff] %v970_v50  ;;  %v1097_v54 = vadd.f32 %v1096_v46, %v970_v50  ;;  %v1168_v55 = vmul.f32 %v970_v50, %v970_v50 }
 0x10c   :  { %1066 = vst [vmem:[%s2134_s3 + $0x148] sm:$0xff] %v1800_v51 }
 0x10d   :  { %v1098_v58 = vadd.f32 %v1097_v54, %v971_v30  ;;  %v1231_v59 = vadd.f32 %v1230_v52, %v1168_v55  ;;  %v1416_v60 = vpop.f32.mrb[12].mxu0  ;;  %v1448_v61 = vpop.f32.mrb[12].mxu1 }
 0x10e   :  { %v975_v63 = vadd.f32 %v1416_v60, %v1675_v40  ;;  %v552_v0 = vpop.f32.mrb[13].mxu0  ;;  %v1811_v1 = vadd.f32 %v1448_v61, %v1675_v40  ;;  %v680_v2 = vpop.f32.mrb[13].mxu1 }
 0x10f   :  { %v1232_v3 = vadd.f32 %v1231_v59, %v1169_v57  ;;  %v973_v5 = vadd.f32 %v1675_v40, %v552_v0  ;;  %v1099_v6 = vadd.f32 %v1098_v58, %v972_v41  ;;  %v1417_v7 = vpop.f32.mrb[14].mxu0  ;;  %v1815_v8 = vadd.f32 %v1675_v40, %v680_v2  ;;  %v1449_v9 = vpop.f32.mrb[14].mxu1 }
 0x110   :  { %1039 = vst [vmem:[%s2134_s3 + $0x70] sm:$0xff] %v975_v63  ;;  %v976_v11 = vadd.f32 %v1417_v7, %v1675_v40  ;;  %v555_v12 = vpop.f32.mrb[15].mxu0  ;;  %1071 = vst [vmem:[%s2134_s3 + $0x170] sm:$0xff] %v1811_v1  ;;  %v1826_v13 = vadd.f32 %v1449_v9, %v1675_v40  ;;  %v683_v15 = vpop.f32.mrb[15].mxu1  ;;  %v1173_v25 = vmul.f32 %v975_v63, %v975_v63 }
 0x111   :  { %1037 = vst [vmem:[%s2134_s3 + $0x60] sm:$0xff] %v973_v5  ;;  %v1100_v16 = vadd.f32 %v1099_v6, %v973_v5  ;;  %v1171_v17 = vmul.f32 %v973_v5, %v973_v5  ;;  %v1233_v18 = vadd.f32 %v1232_v3, %v1170_v62  ;;  %v974_v19 = vadd.f32 %v1675_v40, %v555_v12 }
 0x112   :  { %1069 = vst [vmem:[%s2134_s3 + $0x160] sm:$0xff] %v1815_v8  ;;  %1040 = vst [vmem:[%s2134_s3 + $0x78] sm:$0xff] %v976_v11  ;;  %v1844_v21 = vadd.f32 %v1675_v40, %v683_v15  ;;  %v1174_v30 = vmul.f32 %v976_v11, %v976_v11 }
 0x113   :  { %1072 = vst [vmem:[%s2134_s3 + $0x178] sm:$0xff] %v1826_v13  ;;  %v1234_v22 = vadd.f32 %v1233_v18, %v1171_v17  ;;  %1038 = vst [vmem:[%s2134_s3 + $0x68] sm:$0xff] %v974_v19  ;;  %v1101_v23 = vadd.f32 %v1100_v16, %v974_v19  ;;  %v1172_v24 = vmul.f32 %v974_v19, %v974_v19 }
 0x114   :  { %1070 = vst [vmem:[%s2134_s3 + $0x168] sm:$0xff] %v1844_v21 }
 0x115   :  { %v1102_v26 = vadd.f32 %v1101_v23, %v975_v63  ;;  %v1235_v27 = vadd.f32 %v1234_v22, %v1172_v24  ;;  %v1420_v28 = vpop.f32.mrb[16].mxu0  ;;  %v1452_v29 = vpop.f32.mrb[16].mxu1 }
 0x116   :  { %v979_v31 = vadd.f32 %v1420_v28, %v1675_v40  ;;  %v568_v33 = vpop.f32.mrb[17].mxu0  ;;  %v1855_v34 = vadd.f32 %v1452_v29, %v1675_v40  ;;  %v696_v35 = vpop.f32.mrb[17].mxu1 }
 0x117   :  { %v1236_v36 = vadd.f32 %v1235_v27, %v1173_v25  ;;  %v977_v37 = vadd.f32 %v1675_v40, %v568_v33  ;;  %v1103_v39 = vadd.f32 %v1102_v26, %v976_v11  ;;  %v1421_v41 = vpop.f32.mrb[18].mxu0  ;;  %v1859_v42 = vadd.f32 %v1675_v40, %v696_v35  ;;  %v1453_v44 = vpop.f32.mrb[18].mxu1 }
 0x118   :  { %1043 = vst [vmem:[%s2134_s3 + $0x90] sm:$0xff] %v979_v31  ;;  %v980_v46 = vadd.f32 %v1421_v41, %v1675_v40  ;;  %v571_v47 = vpop.f32.mrb[19].mxu0  ;;  %1075 = vst [vmem:[%s2134_s3 + $0x190] sm:$0xff] %v1855_v34  ;;  %v1870_v48 = vadd.f32 %v1453_v44, %v1675_v40  ;;  %v699_v50 = vpop.f32.mrb[19].mxu1  ;;  %v1177_v62 = vmul.f32 %v979_v31, %v979_v31 }
 0x119   :  { %1041 = vst [vmem:[%s2134_s3 + $0x80] sm:$0xff] %v977_v37  ;;  %v1104_v52 = vadd.f32 %v1103_v39, %v977_v37  ;;  %v1175_v54 = vmul.f32 %v977_v37, %v977_v37  ;;  %v1237_v55 = vadd.f32 %v1236_v36, %v1174_v30  ;;  %v978_v57 = vadd.f32 %v1675_v40, %v571_v47 }
 0x11a   :  { %1073 = vst [vmem:[%s2134_s3 + $0x180] sm:$0xff] %v1859_v42  ;;  %1044 = vst [vmem:[%s2134_s3 + $0x98] sm:$0xff] %v980_v46  ;;  %v1888_v58 = vadd.f32 %v1675_v40, %v699_v50  ;;  %v1178_v5 = vmul.f32 %v980_v46, %v980_v46 }
 0x11b   :  { %1076 = vst [vmem:[%s2134_s3 + $0x198] sm:$0xff] %v1870_v48  ;;  %v1238_v59 = vadd.f32 %v1237_v55, %v1175_v54  ;;  %1042 = vst [vmem:[%s2134_s3 + $0x88] sm:$0xff] %v978_v57  ;;  %v1105_v60 = vadd.f32 %v1104_v52, %v978_v57  ;;  %v1176_v61 = vmul.f32 %v978_v57, %v978_v57 }
 0x11c   :  { %1074 = vst [vmem:[%s2134_s3 + $0x188] sm:$0xff] %v1888_v58 }
 0x11d   :  { %v1106_v63 = vadd.f32 %v1105_v60, %v979_v31  ;;  %v1239_v0 = vadd.f32 %v1238_v59, %v1176_v61  ;;  %v1424_v2 = vpop.f32.mrb[20].mxu0  ;;  %v1456_v3 = vpop.f32.mrb[20].mxu1 }
 0x11e   :  { %v983_v6 = vadd.f32 %v1424_v2, %v1675_v40  ;;  %v584_v7 = vpop.f32.mrb[21].mxu0  ;;  %v1899_v9 = vadd.f32 %v1456_v3, %v1675_v40  ;;  %v712_v11 = vpop.f32.mrb[21].mxu1 }
 0x11f   :  { %v1240_v12 = vadd.f32 %v1239_v0, %v1177_v62  ;;  %v981_v15 = vadd.f32 %v1675_v40, %v584_v7  ;;  %v1107_v16 = vadd.f32 %v1106_v63, %v980_v46  ;;  %v1425_v17 = vpop.f32.mrb[22].mxu0  ;;  %v1903_v18 = vadd.f32 %v1675_v40, %v712_v11  ;;  %v1457_v19 = vpop.f32.mrb[22].mxu1 }
 0x120   :  { %1047 = vst [vmem:[%s2134_s3 + $0xb0] sm:$0xff] %v983_v6  ;;  %v984_v22 = vadd.f32 %v1425_v17, %v1675_v40  ;;  %v587_v23 = vpop.f32.mrb[23].mxu0  ;;  %1079 = vst [vmem:[%s2134_s3 + $0x1b0] sm:$0xff] %v1899_v9  ;;  %v1914_v24 = vadd.f32 %v1457_v19, %v1675_v40  ;;  %v715_v25 = vpop.f32.mrb[23].mxu1  ;;  %v1181_v36 = vmul.f32 %v983_v6, %v983_v6 }
 0x121   :  { %1045 = vst [vmem:[%s2134_s3 + $0xa0] sm:$0xff] %v981_v15  ;;  %v1108_v26 = vadd.f32 %v1107_v16, %v981_v15  ;;  %v1179_v27 = vmul.f32 %v981_v15, %v981_v15  ;;  %v1241_v28 = vadd.f32 %v1240_v12, %v1178_v5  ;;  %v982_v29 = vadd.f32 %v1675_v40, %v587_v23 }
 0x122   :  { %1077 = vst [vmem:[%s2134_s3 + $0x1a0] sm:$0xff] %v1903_v18  ;;  %1048 = vst [vmem:[%s2134_s3 + $0xb8] sm:$0xff] %v984_v22  ;;  %v1932_v30 = vadd.f32 %v1675_v40, %v715_v25  ;;  %v1182_v46 = vmul.f32 %v984_v22, %v984_v22 }
 0x123   :  { %1080 = vst [vmem:[%s2134_s3 + $0x1b8] sm:$0xff] %v1914_v24  ;;  %v1242_v31 = vadd.f32 %v1241_v28, %v1179_v27  ;;  %1046 = vst [vmem:[%s2134_s3 + $0xa8] sm:$0xff] %v982_v29  ;;  %v1109_v33 = vadd.f32 %v1108_v26, %v982_v29  ;;  %v1180_v35 = vmul.f32 %v982_v29, %v982_v29 }
 0x124   :  { %1078 = vst [vmem:[%s2134_s3 + $0x1a8] sm:$0xff] %v1932_v30 }
 0x125   :  { %v1110_v37 = vadd.f32 %v1109_v33, %v983_v6  ;;  %v1243_v39 = vadd.f32 %v1242_v31, %v1180_v35  ;;  %v1428_v41 = vpop.f32.mrb[24].mxu0  ;;  %v1460_v44 = vpop.f32.mrb[24].mxu1 }
 0x126   :  { %v987_v47 = vadd.f32 %v1428_v41, %v1675_v40  ;;  %v600_v50 = vpop.f32.mrb[25].mxu0  ;;  %v1943_v52 = vadd.f32 %v1460_v44, %v1675_v40  ;;  %v728_v54 = vpop.f32.mrb[25].mxu1 }
 0x127   :  { %v1244_v55 = vadd.f32 %v1243_v39, %v1181_v36  ;;  %v985_v57 = vadd.f32 %v1675_v40, %v600_v50  ;;  %v1111_v59 = vadd.f32 %v1110_v37, %v984_v22  ;;  %v1429_v60 = vpop.f32.mrb[26].mxu0  ;;  %v1947_v61 = vadd.f32 %v1675_v40, %v728_v54  ;;  %v1461_v62 = vpop.f32.mrb[26].mxu1 }
 0x128   :  { %1051 = vst [vmem:[%s2134_s3 + $0xd0] sm:$0xff] %v987_v47  ;;  %v988_v63 = vadd.f32 %v1429_v60, %v1675_v40  ;;  %v603_v0 = vpop.f32.mrb[27].mxu0  ;;  %1083 = vst [vmem:[%s2134_s3 + $0x1d0] sm:$0xff] %v1943_v52  ;;  %v1958_v2 = vadd.f32 %v1461_v62, %v1675_v40  ;;  %v731_v3 = vpop.f32.mrb[27].mxu1  ;;  %v1185_v19 = vmul.f32 %v987_v47, %v987_v47 }
 0x129   :  { %1049 = vst [vmem:[%s2134_s3 + $0xc0] sm:$0xff] %v985_v57  ;;  %v1112_v5 = vadd.f32 %v1111_v59, %v985_v57  ;;  %v1183_v6 = vmul.f32 %v985_v57, %v985_v57  ;;  %v1245_v7 = vadd.f32 %v1244_v55, %v1182_v46  ;;  %v986_v11 = vadd.f32 %v1675_v40, %v603_v0 }
 0x12a   :  { %1081 = vst [vmem:[%s2134_s3 + $0x1c0] sm:$0xff] %v1947_v61  ;;  %1052 = vst [vmem:[%s2134_s3 + $0xd8] sm:$0xff] %v988_v63  ;;  %v1976_v12 = vadd.f32 %v1675_v40, %v731_v3  ;;  %v1186_v27 = vmul.f32 %v988_v63, %v988_v63 }
 0x12b   :  { %1084 = vst [vmem:[%s2134_s3 + $0x1d8] sm:$0xff] %v1958_v2  ;;  %v1246_v15 = vadd.f32 %v1245_v7, %v1183_v6  ;;  %1050 = vst [vmem:[%s2134_s3 + $0xc8] sm:$0xff] %v986_v11  ;;  %v1113_v16 = vadd.f32 %v1112_v5, %v986_v11  ;;  %v1184_v17 = vmul.f32 %v986_v11, %v986_v11 }
 0x12c   :  { %1082 = vst [vmem:[%s2134_s3 + $0x1c8] sm:$0xff] %v1976_v12 }
 0x12d   :  { %v1114_v22 = vadd.f32 %v1113_v16, %v987_v47  ;;  %v1247_v23 = vadd.f32 %v1246_v15, %v1184_v17  ;;  %v1432_v25 = vpop.f32.mrb[28].mxu0  ;;  %v1464_v26 = vpop.f32.mrb[28].mxu1 }
 0x12e   :  { %v991_v28 = vadd.f32 %v1432_v25, %v1675_v40  ;;  %v616_v29 = vpop.f32.mrb[29].mxu0  ;;  %v1987_v31 = vadd.f32 %v1464_v26, %v1675_v40  ;;  %v744_v33 = vpop.f32.mrb[29].mxu1  ;;  %v1192_v25 = vmul.f32 %v1705_v56, %v1705_v56  ;;  %v1193_v26 = vmul.f32 %v1679_v45, %v1679_v45 }
 0x12f   :  { %v1248_v35 = vadd.f32 %v1247_v23, %v1185_v19  ;;  %v989_v36 = vadd.f32 %v1675_v40, %v616_v29  ;;  %v1115_v37 = vadd.f32 %v1114_v22, %v988_v63  ;;  %v1433_v39 = vpop.f32.mrb[30].mxu0  ;;  %v1991_v41 = vadd.f32 %v1675_v40, %v744_v33  ;;  %v1465_v44 = vpop.f32.mrb[30].mxu1 }
 0x130   :  { %1055 = vst [vmem:[%s2134_s3 + $0xf0] sm:$0xff] %v991_v28  ;;  %v992_v46 = vadd.f32 %v1433_v39, %v1675_v40  ;;  %v619_v47 = vpop.f32.mrb[31].mxu0  ;;  %1087 = vst [vmem:[%s2134_s3 + $0x1f0] sm:$0xff] %v1987_v31  ;;  %v2002_v50 = vadd.f32 %v1465_v44, %v1675_v40  ;;  %v747_v54 = vpop.f32.mrb[31].mxu1  ;;  %v1189_v5 = vmul.f32 %v991_v28, %v991_v28 }
 0x131   :  { %1053 = vst [vmem:[%s2134_s3 + $0xe0] sm:$0xff] %v989_v36  ;;  %v1116_v55 = vadd.f32 %v1115_v37, %v989_v36  ;;  %v1187_v57 = vmul.f32 %v989_v36, %v989_v36  ;;  %v1249_v59 = vadd.f32 %v1248_v35, %v1186_v27  ;;  %v990_v60 = vadd.f32 %v1675_v40, %v619_v47 }
 0x132   :  { %1085 = vst [vmem:[%s2134_s3 + $0x1e0] sm:$0xff] %v1991_v41  ;;  %1056 = vst [vmem:[%s2134_s3 + $0xf8] sm:$0xff] %v992_v46  ;;  %v2020_v62 = vadd.f32 %v1675_v40, %v747_v54  ;;  %v1190_v11 = vmul.f32 %v992_v46, %v992_v46  ;;  %v1191_v40 = vmul.f32 %v1683_v49, %v1683_v49 }
 0x133   :  { %1088 = vst [vmem:[%s2134_s3 + $0x1f8] sm:$0xff] %v2002_v50  ;;  %v1250_v63 = vadd.f32 %v1249_v59, %v1187_v57  ;;  %1054 = vst [vmem:[%s2134_s3 + $0xe8] sm:$0xff] %v990_v60  ;;  %v1117_v0 = vadd.f32 %v1116_v55, %v990_v60  ;;  %v1188_v3 = vmul.f32 %v990_v60, %v990_v60 }
 0x134   :  { %1086 = vst [vmem:[%s2134_s3 + $0x1e8] sm:$0xff] %v2020_v62  ;;  %v1194_v29 = vmul.f32 %v1694_v53, %v1694_v53  ;;  %v1196_v44 = vmul.f32 %v1756_v20, %v1756_v20 }
 0x135   :  { %v1118_v6 = vadd.f32 %v1117_v0, %v991_v28  ;;  %v1251_v7 = vadd.f32 %v1250_v63, %v1188_v3  ;;  %v1200_v63 = vmul.f32 %v1800_v51, %v1800_v51 }
 0x137   :  { %v1252_v15 = vadd.f32 %v1251_v7, %v1189_v5  ;;  %v1119_v16 = vadd.f32 %v1118_v6, %v992_v46 }
 0x139   :  { %v1120_v17 = vadd.f32 %v1119_v16, %v1683_v49  ;;  %v1253_v19 = vadd.f32 %v1252_v15, %v1190_v11  ;;  %v1195_v49 = vmul.f32 %v1727_v10, %v1727_v10  ;;  %v1204_v16 = vmul.f32 %v1844_v21, %v1844_v21 }
 0x13b   :  { %v1254_v22 = vadd.f32 %v1253_v19, %v1191_v40  ;;  %v1121_v23 = vadd.f32 %v1120_v17, %v1705_v56 }
 0x13d   :  { %v1122_v27 = vadd.f32 %v1121_v23, %v1679_v45  ;;  %v1255_v28 = vadd.f32 %v1254_v22, %v1192_v25  ;;  %v1197_v45 = vmul.f32 %v1723_v4, %v1723_v4 }
 0x13f   :  { %v1256_v33 = vadd.f32 %v1255_v28, %v1193_v26  ;;  %v1123_v35 = vadd.f32 %v1122_v27, %v1694_v53  ;;  %v1198_v53 = vmul.f32 %v1738_v14, %v1738_v14  ;;  %v1208_v27 = vmul.f32 %v1888_v58, %v1888_v58 }
 0x141   :  { %v1124_v36 = vadd.f32 %v1123_v35, %v1727_v10  ;;  %v1257_v37 = vadd.f32 %v1256_v33, %v1194_v29  ;;  %v1199_v10 = vmul.f32 %v1771_v38, %v1771_v38 }
 0x143   :  { %v1258_v39 = vadd.f32 %v1257_v37, %v1195_v49  ;;  %v1125_v56 = vadd.f32 %v1124_v36, %v1756_v20 }
 0x145   :  { %v1126_v46 = vadd.f32 %v1125_v56, %v1723_v4  ;;  %v1259_v47 = vadd.f32 %v1258_v39, %v1196_v44  ;;  %v1201_v4 = vmul.f32 %v1767_v32, %v1767_v32  ;;  %v1212_v39 = vmul.f32 %v1932_v30, %v1932_v30 }
 0x147   :  { %v1260_v54 = vadd.f32 %v1259_v47, %v1197_v45  ;;  %v1127_v55 = vadd.f32 %v1126_v46, %v1738_v14  ;;  %v1202_v14 = vmul.f32 %v1782_v43, %v1782_v43 }
 0x149   :  { %v1128_v57 = vadd.f32 %v1127_v55, %v1771_v38  ;;  %v1261_v59 = vadd.f32 %v1260_v54, %v1198_v53  ;;  %v1203_v38 = vmul.f32 %v1815_v8, %v1815_v8  ;;  %v1216_v55 = vmul.f32 %v1976_v12, %v1976_v12 }
 0x14b   :  { %v1262_v60 = vadd.f32 %v1261_v59, %v1199_v10  ;;  %v1129_v20 = vadd.f32 %v1128_v57, %v1800_v51 }
 0x14d   :  { %v1130_v0 = vadd.f32 %v1129_v20, %v1767_v32  ;;  %v1263_v3 = vadd.f32 %v1262_v60, %v1200_v63  ;;  %v1205_v32 = vmul.f32 %v1811_v1, %v1811_v1 }
 0x14f   :  { %v1264_v5 = vadd.f32 %v1263_v3, %v1201_v4  ;;  %v1131_v6 = vadd.f32 %v1130_v0, %v1782_v43  ;;  %v1206_v43 = vmul.f32 %v1826_v13, %v1826_v13  ;;  %v1220_v0 = vmul.f32 %v2020_v62, %v2020_v62 }
 0x151   :  { %v1132_v7 = vadd.f32 %v1131_v6, %v1815_v8  ;;  %v1265_v11 = vadd.f32 %v1264_v5, %v1202_v14  ;;  %v1207_v8 = vmul.f32 %v1859_v42, %v1859_v42 }
 0x153   :  { %v1266_v15 = vadd.f32 %v1265_v11, %v1203_v38  ;;  %v1133_v51 = vadd.f32 %v1132_v7, %v1844_v21 }
 0x155   :  { %v1134_v40 = vadd.f32 %v1133_v51, %v1811_v1  ;;  %v1267_v17 = vadd.f32 %v1266_v15, %v1204_v16  ;;  %v1209_v1 = vmul.f32 %v1855_v34, %v1855_v34 }
 0x157   :  { %v1268_v19 = vadd.f32 %v1267_v17, %v1205_v32  ;;  %v1135_v22 = vadd.f32 %v1134_v40, %v1826_v13  ;;  %v1210_v13 = vmul.f32 %v1870_v48, %v1870_v48 }
 0x159   :  { %v1136_v23 = vadd.f32 %v1135_v22, %v1859_v42  ;;  %v1269_v25 = vadd.f32 %v1268_v19, %v1206_v43  ;;  %v1211_v42 = vmul.f32 %v1903_v18, %v1903_v18 }
 0x15b   :  { %v1270_v26 = vadd.f32 %v1269_v25, %v1207_v8  ;;  %v1137_v21 = vadd.f32 %v1136_v23, %v1888_v58 }
 0x15d   :  { %v1138_v28 = vadd.f32 %v1137_v21, %v1855_v34  ;;  %v1271_v29 = vadd.f32 %v1270_v26, %v1208_v27  ;;  %v1213_v34 = vmul.f32 %v1899_v9, %v1899_v9 }
 0x15f   :  { %v1272_v33 = vadd.f32 %v1271_v29, %v1209_v1  ;;  %v1139_v35 = vadd.f32 %v1138_v28, %v1870_v48  ;;  %v1214_v48 = vmul.f32 %v1914_v24, %v1914_v24 }
 0x161   :  { %v1140_v49 = vadd.f32 %v1139_v35, %v1903_v18  ;;  %v1273_v36 = vadd.f32 %v1272_v33, %v1210_v13  ;;  %v1215_v18 = vmul.f32 %v1947_v61, %v1947_v61 }
 0x163   :  { %v1274_v37 = vadd.f32 %v1273_v36, %v1211_v42  ;;  %v1141_v58 = vadd.f32 %v1140_v49, %v1932_v30 }
 0x165   :  { %v1142_v56 = vadd.f32 %v1141_v58, %v1899_v9  ;;  %v1275_v44 = vadd.f32 %v1274_v37, %v1212_v39  ;;  %v1217_v9 = vmul.f32 %v1943_v52, %v1943_v52 }
 0x167   :  { %v1276_v45 = vadd.f32 %v1275_v44, %v1213_v34  ;;  %v1143_v46 = vadd.f32 %v1142_v56, %v1914_v24  ;;  %v1218_v24 = vmul.f32 %v1958_v2, %v1958_v2 }
 0x169   :  { %v1144_v47 = vadd.f32 %v1143_v46, %v1947_v61  ;;  %v1277_v53 = vadd.f32 %v1276_v45, %v1214_v48  ;;  %v1219_v61 = vmul.f32 %v1991_v41, %v1991_v41 }
 0x16b   :  { %v1278_v54 = vadd.f32 %v1277_v53, %v1215_v18  ;;  %v1145_v30 = vadd.f32 %v1144_v47, %v1976_v12 }
 0x16d   :  { %v1146_v10 = vadd.f32 %v1145_v30, %v1943_v52  ;;  %v1279_v57 = vadd.f32 %v1278_v54, %v1216_v55  ;;  %v1221_v52 = vmul.f32 %v1987_v31, %v1987_v31 }
 0x16f   :  { %v1280_v59 = vadd.f32 %v1279_v57, %v1217_v9  ;;  %v1147_v60 = vadd.f32 %v1146_v10, %v1958_v2  ;;  %v1222_v2 = vmul.f32 %v2002_v50, %v2002_v50 }
 0x171   :  { %v1148_v20 = vadd.f32 %v1147_v60, %v1991_v41  ;;  %v1281_v63 = vadd.f32 %v1280_v59, %v1218_v24 }
 0x173   :  { %v1282_v4 = vadd.f32 %v1281_v63, %v1219_v61  ;;  %v1149_v12 = vadd.f32 %v1148_v20, %v2020_v62 }
 0x175   :  { %v1150_v3 = vadd.f32 %v1149_v12, %v1987_v31  ;;  %v1283_v14 = vadd.f32 %v1282_v4, %v1220_v0 }
 0x177   :  { %v1151_v5 = vadd.f32 %v1150_v3, %v2002_v50  ;;  %v1284_v6 = vadd.f32 %v1283_v14, %v1221_v52 }
 0x179   :  { %v1152_v41 = vrot.slane %v1151_v5, 4  ;;  %v1285_v38 = vadd.f32 %v1284_v6, %v1222_v2 }
 0x17b   :  { %v1153_v7 = vadd.f32 %v1152_v41, %v1151_v5  ;;  %v1286_v11 = vrot.slane %v1285_v38, 4 }
 0x17d   :  { %v1154_v15 = vrot.slane %v1153_v7, 2  ;;  %v1287_v51 = vadd.f32 %v1286_v11, %v1285_v38 }
 0x17f   :  { %v1155_v16 = vadd.f32 %v1154_v15, %v1153_v7  ;;  %v1288_v62 = vrot.slane %v1287_v51, 2 }
 0x181   :  { %v1156_v32 = vrot.slane %v1155_v16, 1  ;;  %v1289_v40 = vadd.f32 %v1288_v62, %v1287_v51 }
 0x183   :  { %v1157_v17 = vadd.f32 %v1156_v32, %v1155_v16  ;;  %v1290_v43 = vrot.slane %v1289_v40, 1 }
 0x185   :  { %1158 = vst [vmem:[%s2135_s4] sm:$0x1] %v1157_v17  ;;  %v1291_v31 = vadd.f32 %v1290_v43, %v1289_v40 }
 0x187   :  { %1292 = vst [vmem:[%s2136_s5] sm:$0x1] %v1291_v31 }

// kernel: unet_forward.39
= control target key start
LH: loop header
LB: loop body
LE: loop exit
PB: predicated region body
PF: predicated region fallthrough
CT: control target
= control target key end

     0   :  { %s138_s0 = inlined_call_operand.vmem [shape: bf16[16,512], index: 0, kind: input, shape index: {}]   ;;  %s139_s1 = inlined_call_operand.vmem [shape: bf16[16,512], index: 1, kind: input, shape index: {}]   ;;  %s140_s2 = inlined_call_operand.vmem [shape: bf16[16,512], index: 2, kind: input, shape index: {}]   ;;  %s141_s3 = inlined_call_operand.vmem [shape: bf16[16,512], index: 3, kind: input, shape index: {}]   ;;  %s142_s4 = inlined_call_operand.vmem [shape: bf16[16,512], index: 4, kind: output, shape index: {}]  }
   0x1   :  { %v17_v0 = vld [vmem:[%s138_s0] sm:$0xff]  ;;  %v18_v5 = vld [vmem:[%s138_s0 + $0x8] sm:$0xff]  ;;  %v19_v11 = vld [vmem:[%s138_s0 + $0x10] sm:$0xff] }
   0x2   :  { %v21_v1 = vld [vmem:[%s139_s1] sm:$0xff]  ;;  %v22_v6 = vld [vmem:[%s139_s1 + $0x8] sm:$0xff]  ;;  %v23_v13 = vld [vmem:[%s139_s1 + $0x10] sm:$0xff] }
   0x3   :  { %v29_v2 = vld [vmem:[%s140_s2] sm:$0xff]  ;;  %v25_v3 = vmax.bf16 %v21_v1, %v17_v0  ;;  %v26_v8 = vmax.bf16 %v22_v6, %v18_v5  ;;  %v30_v9 = vld [vmem:[%s140_s2 + $0x8] sm:$0xff]  ;;  %v31_v14 = vld [vmem:[%s140_s2 + $0x10] sm:$0xff]  ;;  %v27_v17 = vmax.bf16 %v23_v13, %v19_v11 }
   0x4   :  { %v33_v4 = vld [vmem:[%s141_s3] sm:$0xff]  ;;  %v34_v10 = vld [vmem:[%s141_s3 + $0x8] sm:$0xff]  ;;  %v35_v15 = vld [vmem:[%s141_s3 + $0x10] sm:$0xff] }
   0x5   :  { %v37_v7 = vmax.bf16 %v33_v4, %v29_v2  ;;  %v38_v12 = vmax.bf16 %v34_v10, %v30_v9  ;;  %v39_v18 = vmax.bf16 %v35_v15, %v31_v14  ;;  %v20_v19 = vld [vmem:[%s138_s0 + $0x18] sm:$0xff] }
   0x6   :  { %v24_v20 = vld [vmem:[%s139_s1 + $0x18] sm:$0xff] }
   0x7   :  { %v41_v16 = vmax.bf16 %v37_v7, %v25_v3  ;;  %v32_v21 = vld [vmem:[%s140_s2 + $0x18] sm:$0xff]  ;;  %v42_v22 = vmax.bf16 %v38_v12, %v26_v8  ;;  %v28_v23 = vmax.bf16 %v24_v20, %v20_v19  ;;  %v43_v25 = vmax.bf16 %v39_v18, %v27_v17 }
   0x8   :  { %v36_v24 = vld [vmem:[%s141_s3 + $0x18] sm:$0xff] }
   0x9   :  { %45 = vst [vmem:[%s142_s4] sm:$0xff] %v41_v16  ;;  %v40_v26 = vmax.bf16 %v36_v24, %v32_v21  ;;  %46 = vst [vmem:[%s142_s4 + $0x8] sm:$0xff] %v42_v22 }
   0xa   :  { %47 = vst [vmem:[%s142_s4 + $0x10] sm:$0xff] %v43_v25 }
   0xb   :  { %v44_v27 = vmax.bf16 %v40_v26, %v28_v23 }
   0xd   :  { %48 = vst [vmem:[%s142_s4 + $0x18] sm:$0xff] %v44_v27 }

// kernel: unet_forward.38
= control target key start
LH: loop header
LB: loop body
LE: loop exit
PB: predicated region body
PF: predicated region fallthrough
CT: control target
= control target key end

     0   :  { %s2251_s1 = inlined_call_operand.vmem [shape: bf16[128,128], index: 1, kind: input, shape index: {}]   ;;  %s2252_s0 = inlined_call_operand.vmem [shape: bf16[512,128], index: 0, kind: input, shape index: {}]   ;;  %s2253_s2 = inlined_call_operand.vmem [shape: f32[1,128], index: 2, kind: input, shape index: {}]   ;;  %s2254_s3 = inlined_call_operand.vmem [shape: bf16[512,128], index: 3, kind: output, shape index: {}]  }
   0x1   :  { %v1906_v0 = vld [vmem:[%s2251_s1] sm:$0xff]   ;;  %v1907_v1 = vld [vmem:[%s2251_s1 + $0x8] sm:$0xff]   ;;  %v1908_v2 = vld [vmem:[%s2251_s1 + $0x10] sm:$0xff]  }
   0x2   :  { %1810 = vmatprep.subr.bf16.mxu0 %v1906_v0  ;;  %1890 = vmatprep.subr.bf16.mxu1 %v1906_v0  ;;  %v1909_v3 = vld [vmem:[%s2251_s1 + $0x18] sm:$0xff]   ;;  %v1914_v4 = vld [vmem:[%s2252_s0] sm:$0xff]   ;;  %v1911_v7 = vld [vmem:[%s2251_s1 + $0x28] sm:$0xff]  }
   0x3   :  { %1811 = vmatpush3.bf16.msra.mxu0 %v1906_v0  ;;  %1898 = vmatpush3.bf16.msra.mxu1 %v1906_v0  ;;  %v1915_v5 = vld [vmem:[%s2252_s0 + $0x80] sm:$0xff]   ;;  %v1912_v8 = vld [vmem:[%s2251_s1 + $0x30] sm:$0xff]   ;;  %v1913_v9 = vld [vmem:[%s2251_s1 + $0x38] sm:$0xff]  }
   0x4   :  { %1812 = vmatprep.subr.bf16.mxu0 %v1907_v1  ;;  %1891 = vmatprep.subr.bf16.mxu1 %v1907_v1  ;;  %v1910_v6 = vld [vmem:[%s2251_s1 + $0x20] sm:$0xff]   ;;  %v1916_v10 = vld [vmem:[%s2252_s0 + $0x8] sm:$0xff]   ;;  %v1918_v12 = vld [vmem:[%s2252_s0 + $0x10] sm:$0xff]  }
   0x5   :  { %1826 = vmatprep.mubr.bf16.mxu0 %v1914_v4  ;;  %1858 = vmatprep.mubr.bf16.mxu1 %v1915_v5  ;;  %v1917_v11 = vld [vmem:[%s2252_s0 + $0x88] sm:$0xff]   ;;  %v1919_v13 = vld [vmem:[%s2252_s0 + $0x90] sm:$0xff]   ;;  %v1920_v14 = vld [vmem:[%s2252_s0 + $0x18] sm:$0xff]  }
   0x6   :  { %v1921_v15 = vld [vmem:[%s2252_s0 + $0x98] sm:$0xff]   ;;  %v1922_v16 = vld [vmem:[%s2252_s0 + $0x20] sm:$0xff]   ;;  %v1924_v18 = vld [vmem:[%s2252_s0 + $0x28] sm:$0xff]  }
   0x7   :  { %1813 = vmatpush3.bf16.msra.mxu0 %v1907_v1  ;;  %1899 = vmatpush3.bf16.msra.mxu1 %v1907_v1  ;;  %v1923_v17 = vld [vmem:[%s2252_s0 + $0xa0] sm:$0xff]   ;;  %v1925_v19 = vld [vmem:[%s2252_s0 + $0xa8] sm:$0xff]   ;;  %v1926_v20 = vld [vmem:[%s2252_s0 + $0x30] sm:$0xff]  }
   0x8   :  { %1814 = vmatprep.subr.bf16.mxu0 %v1908_v2  ;;  %1892 = vmatprep.subr.bf16.mxu1 %v1908_v2  ;;  %v1927_v21 = vld [vmem:[%s2252_s0 + $0xb0] sm:$0xff]   ;;  %v1928_v22 = vld [vmem:[%s2252_s0 + $0x38] sm:$0xff]   ;;  %v1930_v24 = vld [vmem:[%s2252_s0 + $0x40] sm:$0xff]  }
   0x9   :  { %v1929_v23 = vld [vmem:[%s2252_s0 + $0xb8] sm:$0xff]   ;;  %v1931_v25 = vld [vmem:[%s2252_s0 + $0xc0] sm:$0xff]   ;;  %v1932_v26 = vld [vmem:[%s2252_s0 + $0x48] sm:$0xff]  }
   0xa   :  { %v1933_v27 = vld [vmem:[%s2252_s0 + $0xc8] sm:$0xff]   ;;  %v1934_v28 = vld [vmem:[%s2252_s0 + $0x50] sm:$0xff]   ;;  %v1936_v30 = vld [vmem:[%s2252_s0 + $0x58] sm:$0xff]  }
   0xb   :  { %1815 = vmatpush3.bf16.msra.mxu0 %v1908_v2  ;;  %1900 = vmatpush3.bf16.msra.mxu1 %v1908_v2  ;;  %v1935_v29 = vld [vmem:[%s2252_s0 + $0xd0] sm:$0xff]   ;;  %v1937_v31 = vld [vmem:[%s2252_s0 + $0xd8] sm:$0xff]   ;;  %v1938_v32 = vld [vmem:[%s2252_s0 + $0x60] sm:$0xff]  }
   0xc   :  { %1816 = vmatprep.subr.bf16.mxu0 %v1909_v3  ;;  %1893 = vmatprep.subr.bf16.mxu1 %v1909_v3  ;;  %v1939_v33 = vld [vmem:[%s2252_s0 + $0xe0] sm:$0xff]   ;;  %v1940_v34 = vld [vmem:[%s2252_s0 + $0x68] sm:$0xff]   ;;  %v1942_v36 = vld [vmem:[%s2252_s0 + $0x70] sm:$0xff]  }
   0xd   :  { %v1941_v35 = vld [vmem:[%s2252_s0 + $0xe8] sm:$0xff]   ;;  %v1943_v37 = vld [vmem:[%s2252_s0 + $0xf0] sm:$0xff]   ;;  %v1944_v38 = vld [vmem:[%s2252_s0 + $0x78] sm:$0xff]  }
   0xe   :  { %v1945_v39 = vld [vmem:[%s2252_s0 + $0xf8] sm:$0xff]   ;;  %v2089_v40 = vld [vmem:[%s2253_s2] ss:$0 sm:$0xff] }
   0xf   :  { %1817 = vmatpush3.bf16.msra.mxu0 %v1909_v3  ;;  %1901 = vmatpush3.bf16.msra.mxu1 %v1909_v3 }
  0x10   :  { %1818 = vmatprep.subr.bf16.mxu0 %v1910_v6  ;;  %1894 = vmatprep.subr.bf16.mxu1 %v1910_v6 }
  0x13   :  { %1819 = vmatpush3.bf16.msra.mxu0 %v1910_v6  ;;  %1902 = vmatpush3.bf16.msra.mxu1 %v1910_v6 }
  0x14   :  { %1820 = vmatprep.subr.bf16.mxu0 %v1911_v7  ;;  %1895 = vmatprep.subr.bf16.mxu1 %v1911_v7 }
  0x17   :  { %1821 = vmatpush3.bf16.msra.mxu0 %v1911_v7  ;;  %1903 = vmatpush3.bf16.msra.mxu1 %v1911_v7 }
  0x18   :  { %1822 = vmatprep.subr.bf16.mxu0 %v1912_v8  ;;  %1896 = vmatprep.subr.bf16.mxu1 %v1912_v8 }
  0x1b   :  { %1823 = vmatpush3.bf16.msra.mxu0 %v1912_v8  ;;  %1904 = vmatpush3.bf16.msra.mxu1 %v1912_v8 }
  0x1c   :  { %1824 = vmatprep.subr.bf16.mxu0 %v1913_v9  ;;  %1897 = vmatprep.subr.bf16.mxu1 %v1913_v9 }
  0x1f   :  { %1825 = vmatpush3.bf16.msra.mxu0 %v1913_v9  ;;  %1905 = vmatpush3.bf16.msra.mxu1 %v1913_v9 }
  0x22   :  { %1827 = vmatmul.mubr.bf16.vlgmr.msra.gmra.mrb[0].mxu0 %v1916_v10  ;;  %1859 = vmatmul.mubr.bf16.vlgmr.msra.gmra.mrb[0].mxu1 %v1917_v11 }
  0x23   :  { %1830 = vmatprep.mubr.bf16.mxu0 %v1918_v12  ;;  %1862 = vmatprep.mubr.bf16.mxu1 %v1919_v13 }
  0x2a   :  { %1831 = vmatmul.mubr.bf16.gmra.mrb[4].mxu0 %v1920_v14  ;;  %1863 = vmatmul.mubr.bf16.gmra.mrb[4].mxu1 %v1921_v15 }
  0x2b   :  { %1834 = vmatprep.mubr.bf16.mxu0 %v1922_v16  ;;  %1866 = vmatprep.mubr.bf16.mxu1 %v1923_v17 }
  0x32   :  { %1835 = vmatmul.mubr.bf16.gmra.mrb[8].mxu0 %v1924_v18  ;;  %1867 = vmatmul.mubr.bf16.gmra.mrb[8].mxu1 %v1925_v19 }
  0x33   :  { %1838 = vmatprep.mubr.bf16.mxu0 %v1926_v20  ;;  %1870 = vmatprep.mubr.bf16.mxu1 %v1927_v21 }
  0x3a   :  { %1839 = vmatmul.mubr.bf16.gmra.mrb[12].mxu0 %v1928_v22  ;;  %1871 = vmatmul.mubr.bf16.gmra.mrb[12].mxu1 %v1929_v23 }
  0x3b   :  { %1842 = vmatprep.mubr.bf16.mxu0 %v1930_v24  ;;  %1874 = vmatprep.mubr.bf16.mxu1 %v1931_v25 }
  0x42   :  { %1843 = vmatmul.mubr.bf16.gmra.mrb[16].mxu0 %v1932_v26  ;;  %1875 = vmatmul.mubr.bf16.gmra.mrb[16].mxu1 %v1933_v27 }
  0x43   :  { %1846 = vmatprep.mubr.bf16.mxu0 %v1934_v28  ;;  %1878 = vmatprep.mubr.bf16.mxu1 %v1935_v29 }
  0x4a   :  { %1847 = vmatmul.mubr.bf16.gmra.mrb[20].mxu0 %v1936_v30  ;;  %1879 = vmatmul.mubr.bf16.gmra.mrb[20].mxu1 %v1937_v31 }
  0x4b   :  { %1850 = vmatprep.mubr.bf16.mxu0 %v1938_v32  ;;  %1882 = vmatprep.mubr.bf16.mxu1 %v1939_v33 }
  0x52   :  { %1851 = vmatmul.mubr.bf16.gmra.mrb[24].mxu0 %v1940_v34  ;;  %1883 = vmatmul.mubr.bf16.gmra.mrb[24].mxu1 %v1941_v35 }
  0x53   :  { %1854 = vmatprep.mubr.bf16.mxu0 %v1942_v36  ;;  %1886 = vmatprep.mubr.bf16.mxu1 %v1943_v37 }
  0x5a   :  { %1855 = vmatmul.mubr.bf16.gmra.mrb[28].mxu0 %v1944_v38  ;;  %1887 = vmatmul.mubr.bf16.gmra.mrb[28].mxu1 %v1945_v39 }
  0xf5   :  { %v1828_v41 = vpop.f32.mrb[0].mxu0  ;;  %v1860_v42 = vpop.f32.mrb[0].mxu1 }
  0xf6   :  { %v960_v43 = vadd.f32 %v1828_v41, %v2089_v40  ;;  %v992_v44 = vadd.f32 %v1860_v42, %v2089_v40  ;;  %v501_v45 = vpop.f32.mrb[1].mxu0  ;;  %v629_v46 = vpop.f32.mrb[1].mxu1 }
  0xf7   :  { %v958_v47 = vadd.f32 %v2089_v40, %v501_v45  ;;  %v990_v48 = vadd.f32 %v2089_v40, %v629_v46  ;;  %v1829_v49 = vpop.f32.mrb[2].mxu0  ;;  %v1861_v50 = vpop.f32.mrb[2].mxu1 }
  0xf8   :  { %v961_v51 = vadd.f32 %v1829_v49, %v2089_v40  ;;  %v993_v52 = vadd.f32 %v1861_v50, %v2089_v40  ;;  %v504_v53 = vpop.f32.mrb[3].mxu0  ;;  %v632_v54 = vpop.f32.mrb[3].mxu1  ;;  %v1024_v57 = vmax.f32 %v960_v43, 0.0  ;;  %v1056_v58 = vmax.f32 %v992_v44, 0.0 }
  0xf9   :  { %v959_v55 = vadd.f32 %v2089_v40, %v504_v53  ;;  %v991_v56 = vadd.f32 %v2089_v40, %v632_v54  ;;  %v1022_v61 = vmax.f32 %v958_v47, 0.0  ;;  %v1054_v62 = vmax.f32 %v990_v48, 0.0 }
  0xfa   :  { %v1025_v59 = vmax.f32 %v961_v51, 0.0  ;;  %v1057_v60 = vmax.f32 %v993_v52, 0.0 }
  0xfb   :  { %v1023_v63 = vmax.f32 %v959_v55, 0.0  ;;  %v1055_v0 = vmax.f32 %v991_v56, 0.0 }
  0xfc   :  { %v1587_v1 = vpack.c.bf16 %v1025_v59, %v1024_v57  ;;  %v1667_v2 = vpack.c.bf16 %v1057_v60, %v1056_v58 }
  0xfd   :  { %v1582_v3 = vpack.c.bf16 %v1023_v63, %v1022_v61  ;;  %v1662_v4 = vpack.c.bf16 %v1055_v0, %v1054_v62  ;;  %v1832_v5 = vpop.f32.mrb[4].mxu0  ;;  %v1864_v6 = vpop.f32.mrb[4].mxu1 }
  0xfe   :  { %1739 = vst [vmem:[%s2254_s3 + $0x8] sm:$0xff] %v1587_v1   ;;  %1755 = vst [vmem:[%s2254_s3 + $0x88] sm:$0xff] %v1667_v2   ;;  %v964_v7 = vadd.f32 %v1832_v5, %v2089_v40  ;;  %v996_v8 = vadd.f32 %v1864_v6, %v2089_v40  ;;  %v517_v9 = vpop.f32.mrb[5].mxu0  ;;  %v645_v10 = vpop.f32.mrb[5].mxu1 }
  0xff   :  { %1583 = vst [vmem:[%s2254_s3] sm:$0xff] %v1582_v3   ;;  %1754 = vst [vmem:[%s2254_s3 + $0x80] sm:$0xff] %v1662_v4   ;;  %v962_v11 = vadd.f32 %v2089_v40, %v517_v9  ;;  %v994_v12 = vadd.f32 %v2089_v40, %v645_v10  ;;  %v1833_v13 = vpop.f32.mrb[6].mxu0  ;;  %v1865_v14 = vpop.f32.mrb[6].mxu1 }
 0x100   :  { %v965_v15 = vadd.f32 %v1833_v13, %v2089_v40  ;;  %v997_v16 = vadd.f32 %v1865_v14, %v2089_v40  ;;  %v520_v17 = vpop.f32.mrb[7].mxu0  ;;  %v648_v18 = vpop.f32.mrb[7].mxu1  ;;  %v1028_v21 = vmax.f32 %v964_v7, 0.0  ;;  %v1060_v22 = vmax.f32 %v996_v8, 0.0 }
 0x101   :  { %v963_v19 = vadd.f32 %v2089_v40, %v520_v17  ;;  %v995_v20 = vadd.f32 %v2089_v40, %v648_v18  ;;  %v1026_v25 = vmax.f32 %v962_v11, 0.0  ;;  %v1058_v26 = vmax.f32 %v994_v12, 0.0 }
 0x102   :  { %v1029_v23 = vmax.f32 %v965_v15, 0.0  ;;  %v1061_v24 = vmax.f32 %v997_v16, 0.0 }
 0x103   :  { %v1027_v27 = vmax.f32 %v963_v19, 0.0  ;;  %v1059_v28 = vmax.f32 %v995_v20, 0.0 }
 0x104   :  { %v1597_v29 = vpack.c.bf16 %v1029_v23, %v1028_v21  ;;  %v1677_v30 = vpack.c.bf16 %v1061_v24, %v1060_v22 }
 0x105   :  { %v1592_v31 = vpack.c.bf16 %v1027_v27, %v1026_v25  ;;  %v1672_v32 = vpack.c.bf16 %v1059_v28, %v1058_v26  ;;  %v1836_v33 = vpop.f32.mrb[8].mxu0  ;;  %v1868_v34 = vpop.f32.mrb[8].mxu1 }
 0x106   :  { %1741 = vst [vmem:[%s2254_s3 + $0x18] sm:$0xff] %v1597_v29   ;;  %1757 = vst [vmem:[%s2254_s3 + $0x98] sm:$0xff] %v1677_v30   ;;  %v968_v35 = vadd.f32 %v1836_v33, %v2089_v40  ;;  %v1000_v36 = vadd.f32 %v1868_v34, %v2089_v40  ;;  %v533_v37 = vpop.f32.mrb[9].mxu0  ;;  %v661_v38 = vpop.f32.mrb[9].mxu1 }
 0x107   :  { %1740 = vst [vmem:[%s2254_s3 + $0x10] sm:$0xff] %v1592_v31   ;;  %1756 = vst [vmem:[%s2254_s3 + $0x90] sm:$0xff] %v1672_v32   ;;  %v966_v39 = vadd.f32 %v2089_v40, %v533_v37  ;;  %v998_v41 = vadd.f32 %v2089_v40, %v661_v38  ;;  %v1837_v42 = vpop.f32.mrb[10].mxu0  ;;  %v1869_v43 = vpop.f32.mrb[10].mxu1 }
 0x108   :  { %v969_v44 = vadd.f32 %v1837_v42, %v2089_v40  ;;  %v1001_v45 = vadd.f32 %v1869_v43, %v2089_v40  ;;  %v536_v46 = vpop.f32.mrb[11].mxu0  ;;  %v664_v47 = vpop.f32.mrb[11].mxu1  ;;  %v1032_v50 = vmax.f32 %v968_v35, 0.0  ;;  %v1064_v51 = vmax.f32 %v1000_v36, 0.0 }
 0x109   :  { %v967_v48 = vadd.f32 %v2089_v40, %v536_v46  ;;  %v999_v49 = vadd.f32 %v2089_v40, %v664_v47  ;;  %v1030_v54 = vmax.f32 %v966_v39, 0.0  ;;  %v1062_v55 = vmax.f32 %v998_v41, 0.0 }
 0x10a   :  { %v1033_v52 = vmax.f32 %v969_v44, 0.0  ;;  %v1065_v53 = vmax.f32 %v1001_v45, 0.0 }
 0x10b   :  { %v1031_v56 = vmax.f32 %v967_v48, 0.0  ;;  %v1063_v57 = vmax.f32 %v999_v49, 0.0 }
 0x10c   :  { %v1607_v58 = vpack.c.bf16 %v1033_v52, %v1032_v50  ;;  %v1687_v59 = vpack.c.bf16 %v1065_v53, %v1064_v51 }
 0x10d   :  { %v1602_v60 = vpack.c.bf16 %v1031_v56, %v1030_v54  ;;  %v1682_v61 = vpack.c.bf16 %v1063_v57, %v1062_v55  ;;  %v1840_v62 = vpop.f32.mrb[12].mxu0  ;;  %v1872_v63 = vpop.f32.mrb[12].mxu1 }
 0x10e   :  { %1743 = vst [vmem:[%s2254_s3 + $0x28] sm:$0xff] %v1607_v58   ;;  %1759 = vst [vmem:[%s2254_s3 + $0xa8] sm:$0xff] %v1687_v59   ;;  %v972_v0 = vadd.f32 %v1840_v62, %v2089_v40  ;;  %v1004_v1 = vadd.f32 %v1872_v63, %v2089_v40  ;;  %v549_v2 = vpop.f32.mrb[13].mxu0  ;;  %v677_v3 = vpop.f32.mrb[13].mxu1 }
 0x10f   :  { %1742 = vst [vmem:[%s2254_s3 + $0x20] sm:$0xff] %v1602_v60   ;;  %1758 = vst [vmem:[%s2254_s3 + $0xa0] sm:$0xff] %v1682_v61   ;;  %v970_v4 = vadd.f32 %v2089_v40, %v549_v2  ;;  %v1002_v5 = vadd.f32 %v2089_v40, %v677_v3  ;;  %v1841_v6 = vpop.f32.mrb[14].mxu0  ;;  %v1873_v7 = vpop.f32.mrb[14].mxu1 }
 0x110   :  { %v973_v8 = vadd.f32 %v1841_v6, %v2089_v40  ;;  %v1005_v9 = vadd.f32 %v1873_v7, %v2089_v40  ;;  %v552_v10 = vpop.f32.mrb[15].mxu0  ;;  %v680_v11 = vpop.f32.mrb[15].mxu1  ;;  %v1036_v14 = vmax.f32 %v972_v0, 0.0  ;;  %v1068_v15 = vmax.f32 %v1004_v1, 0.0 }
 0x111   :  { %v971_v12 = vadd.f32 %v2089_v40, %v552_v10  ;;  %v1003_v13 = vadd.f32 %v2089_v40, %v680_v11  ;;  %v1034_v18 = vmax.f32 %v970_v4, 0.0  ;;  %v1066_v19 = vmax.f32 %v1002_v5, 0.0 }
 0x112   :  { %v1037_v16 = vmax.f32 %v973_v8, 0.0  ;;  %v1069_v17 = vmax.f32 %v1005_v9, 0.0 }
 0x113   :  { %v1035_v20 = vmax.f32 %v971_v12, 0.0  ;;  %v1067_v21 = vmax.f32 %v1003_v13, 0.0 }
 0x114   :  { %v1617_v22 = vpack.c.bf16 %v1037_v16, %v1036_v14  ;;  %v1697_v23 = vpack.c.bf16 %v1069_v17, %v1068_v15 }
 0x115   :  { %v1612_v24 = vpack.c.bf16 %v1035_v20, %v1034_v18  ;;  %v1692_v25 = vpack.c.bf16 %v1067_v21, %v1066_v19  ;;  %v1844_v26 = vpop.f32.mrb[16].mxu0  ;;  %v1876_v27 = vpop.f32.mrb[16].mxu1 }
 0x116   :  { %1745 = vst [vmem:[%s2254_s3 + $0x38] sm:$0xff] %v1617_v22   ;;  %1761 = vst [vmem:[%s2254_s3 + $0xb8] sm:$0xff] %v1697_v23   ;;  %v976_v28 = vadd.f32 %v1844_v26, %v2089_v40  ;;  %v1008_v29 = vadd.f32 %v1876_v27, %v2089_v40  ;;  %v565_v30 = vpop.f32.mrb[17].mxu0  ;;  %v693_v31 = vpop.f32.mrb[17].mxu1 }
 0x117   :  { %1744 = vst [vmem:[%s2254_s3 + $0x30] sm:$0xff] %v1612_v24   ;;  %1760 = vst [vmem:[%s2254_s3 + $0xb0] sm:$0xff] %v1692_v25   ;;  %v974_v32 = vadd.f32 %v2089_v40, %v565_v30  ;;  %v1006_v33 = vadd.f32 %v2089_v40, %v693_v31  ;;  %v1845_v34 = vpop.f32.mrb[18].mxu0  ;;  %v1877_v35 = vpop.f32.mrb[18].mxu1 }
 0x118   :  { %v977_v36 = vadd.f32 %v1845_v34, %v2089_v40  ;;  %v1009_v37 = vadd.f32 %v1877_v35, %v2089_v40  ;;  %v568_v38 = vpop.f32.mrb[19].mxu0  ;;  %v696_v39 = vpop.f32.mrb[19].mxu1  ;;  %v1040_v43 = vmax.f32 %v976_v28, 0.0  ;;  %v1072_v44 = vmax.f32 %v1008_v29, 0.0 }
 0x119   :  { %v975_v41 = vadd.f32 %v2089_v40, %v568_v38  ;;  %v1007_v42 = vadd.f32 %v2089_v40, %v696_v39  ;;  %v1038_v47 = vmax.f32 %v974_v32, 0.0  ;;  %v1070_v48 = vmax.f32 %v1006_v33, 0.0 }
 0x11a   :  { %v1041_v45 = vmax.f32 %v977_v36, 0.0  ;;  %v1073_v46 = vmax.f32 %v1009_v37, 0.0 }
 0x11b   :  { %v1039_v49 = vmax.f32 %v975_v41, 0.0  ;;  %v1071_v50 = vmax.f32 %v1007_v42, 0.0 }
 0x11c   :  { %v1627_v51 = vpack.c.bf16 %v1041_v45, %v1040_v43  ;;  %v1707_v52 = vpack.c.bf16 %v1073_v46, %v1072_v44 }
 0x11d   :  { %v1622_v53 = vpack.c.bf16 %v1039_v49, %v1038_v47  ;;  %v1702_v54 = vpack.c.bf16 %v1071_v50, %v1070_v48  ;;  %v1848_v55 = vpop.f32.mrb[20].mxu0  ;;  %v1880_v56 = vpop.f32.mrb[20].mxu1 }
 0x11e   :  { %1747 = vst [vmem:[%s2254_s3 + $0x48] sm:$0xff] %v1627_v51   ;;  %1763 = vst [vmem:[%s2254_s3 + $0xc8] sm:$0xff] %v1707_v52   ;;  %v980_v57 = vadd.f32 %v1848_v55, %v2089_v40  ;;  %v1012_v58 = vadd.f32 %v1880_v56, %v2089_v40  ;;  %v581_v59 = vpop.f32.mrb[21].mxu0  ;;  %v709_v60 = vpop.f32.mrb[21].mxu1 }
 0x11f   :  { %1746 = vst [vmem:[%s2254_s3 + $0x40] sm:$0xff] %v1622_v53   ;;  %1762 = vst [vmem:[%s2254_s3 + $0xc0] sm:$0xff] %v1702_v54   ;;  %v978_v61 = vadd.f32 %v2089_v40, %v581_v59  ;;  %v1010_v62 = vadd.f32 %v2089_v40, %v709_v60  ;;  %v1849_v63 = vpop.f32.mrb[22].mxu0  ;;  %v1881_v0 = vpop.f32.mrb[22].mxu1 }
 0x120   :  { %v981_v1 = vadd.f32 %v1849_v63, %v2089_v40  ;;  %v1013_v2 = vadd.f32 %v1881_v0, %v2089_v40  ;;  %v584_v3 = vpop.f32.mrb[23].mxu0  ;;  %v712_v4 = vpop.f32.mrb[23].mxu1  ;;  %v1044_v7 = vmax.f32 %v980_v57, 0.0  ;;  %v1076_v8 = vmax.f32 %v1012_v58, 0.0 }
 0x121   :  { %v979_v5 = vadd.f32 %v2089_v40, %v584_v3  ;;  %v1011_v6 = vadd.f32 %v2089_v40, %v712_v4  ;;  %v1042_v11 = vmax.f32 %v978_v61, 0.0  ;;  %v1074_v12 = vmax.f32 %v1010_v62, 0.0 }
 0x122   :  { %v1045_v9 = vmax.f32 %v981_v1, 0.0  ;;  %v1077_v10 = vmax.f32 %v1013_v2, 0.0 }
 0x123   :  { %v1043_v13 = vmax.f32 %v979_v5, 0.0  ;;  %v1075_v14 = vmax.f32 %v1011_v6, 0.0 }
 0x124   :  { %v1637_v15 = vpack.c.bf16 %v1045_v9, %v1044_v7  ;;  %v1717_v16 = vpack.c.bf16 %v1077_v10, %v1076_v8 }
 0x125   :  { %v1632_v17 = vpack.c.bf16 %v1043_v13, %v1042_v11  ;;  %v1712_v18 = vpack.c.bf16 %v1075_v14, %v1074_v12  ;;  %v1852_v19 = vpop.f32.mrb[24].mxu0  ;;  %v1884_v20 = vpop.f32.mrb[24].mxu1 }
 0x126   :  { %1749 = vst [vmem:[%s2254_s3 + $0x58] sm:$0xff] %v1637_v15   ;;  %1765 = vst [vmem:[%s2254_s3 + $0xd8] sm:$0xff] %v1717_v16   ;;  %v984_v21 = vadd.f32 %v1852_v19, %v2089_v40  ;;  %v1016_v22 = vadd.f32 %v1884_v20, %v2089_v40  ;;  %v597_v23 = vpop.f32.mrb[25].mxu0  ;;  %v725_v24 = vpop.f32.mrb[25].mxu1 }
 0x127   :  { %1748 = vst [vmem:[%s2254_s3 + $0x50] sm:$0xff] %v1632_v17   ;;  %1764 = vst [vmem:[%s2254_s3 + $0xd0] sm:$0xff] %v1712_v18   ;;  %v982_v25 = vadd.f32 %v2089_v40, %v597_v23  ;;  %v1014_v26 = vadd.f32 %v2089_v40, %v725_v24  ;;  %v1853_v27 = vpop.f32.mrb[26].mxu0  ;;  %v1885_v28 = vpop.f32.mrb[26].mxu1 }
 0x128   :  { %v985_v29 = vadd.f32 %v1853_v27, %v2089_v40  ;;  %v1017_v30 = vadd.f32 %v1885_v28, %v2089_v40  ;;  %v600_v31 = vpop.f32.mrb[27].mxu0  ;;  %v728_v32 = vpop.f32.mrb[27].mxu1  ;;  %v1048_v35 = vmax.f32 %v984_v21, 0.0  ;;  %v1080_v36 = vmax.f32 %v1016_v22, 0.0 }
 0x129   :  { %v983_v33 = vadd.f32 %v2089_v40, %v600_v31  ;;  %v1015_v34 = vadd.f32 %v2089_v40, %v728_v32  ;;  %v1046_v39 = vmax.f32 %v982_v25, 0.0  ;;  %v1078_v41 = vmax.f32 %v1014_v26, 0.0 }
 0x12a   :  { %v1049_v37 = vmax.f32 %v985_v29, 0.0  ;;  %v1081_v38 = vmax.f32 %v1017_v30, 0.0 }
 0x12b   :  { %v1047_v42 = vmax.f32 %v983_v33, 0.0  ;;  %v1079_v43 = vmax.f32 %v1015_v34, 0.0 }
 0x12c   :  { %v1647_v44 = vpack.c.bf16 %v1049_v37, %v1048_v35  ;;  %v1727_v45 = vpack.c.bf16 %v1081_v38, %v1080_v36 }
 0x12d   :  { %v1642_v46 = vpack.c.bf16 %v1047_v42, %v1046_v39  ;;  %v1722_v47 = vpack.c.bf16 %v1079_v43, %v1078_v41  ;;  %v1856_v48 = vpop.f32.mrb[28].mxu0  ;;  %v1888_v49 = vpop.f32.mrb[28].mxu1 }
 0x12e   :  { %1751 = vst [vmem:[%s2254_s3 + $0x68] sm:$0xff] %v1647_v44   ;;  %1767 = vst [vmem:[%s2254_s3 + $0xe8] sm:$0xff] %v1727_v45   ;;  %v988_v50 = vadd.f32 %v1856_v48, %v2089_v40  ;;  %v1020_v51 = vadd.f32 %v1888_v49, %v2089_v40  ;;  %v613_v52 = vpop.f32.mrb[29].mxu0  ;;  %v741_v53 = vpop.f32.mrb[29].mxu1 }
 0x12f   :  { %1750 = vst [vmem:[%s2254_s3 + $0x60] sm:$0xff] %v1642_v46   ;;  %1766 = vst [vmem:[%s2254_s3 + $0xe0] sm:$0xff] %v1722_v47   ;;  %v986_v54 = vadd.f32 %v2089_v40, %v613_v52  ;;  %v1018_v55 = vadd.f32 %v2089_v40, %v741_v53  ;;  %v1857_v56 = vpop.f32.mrb[30].mxu0  ;;  %v1889_v57 = vpop.f32.mrb[30].mxu1 }
 0x130   :  { %v989_v58 = vadd.f32 %v1857_v56, %v2089_v40  ;;  %v1021_v59 = vadd.f32 %v1889_v57, %v2089_v40  ;;  %v616_v60 = vpop.f32.mrb[31].mxu0  ;;  %v744_v61 = vpop.f32.mrb[31].mxu1  ;;  %v1052_v0 = vmax.f32 %v988_v50, 0.0  ;;  %v1084_v1 = vmax.f32 %v1020_v51, 0.0 }
 0x131   :  { %v987_v62 = vadd.f32 %v2089_v40, %v616_v60  ;;  %v1019_v63 = vadd.f32 %v2089_v40, %v744_v61  ;;  %v1050_v4 = vmax.f32 %v986_v54, 0.0  ;;  %v1082_v5 = vmax.f32 %v1018_v55, 0.0 }
 0x132   :  { %v1053_v2 = vmax.f32 %v989_v58, 0.0  ;;  %v1085_v3 = vmax.f32 %v1021_v59, 0.0 }
 0x133   :  { %v1051_v6 = vmax.f32 %v987_v62, 0.0  ;;  %v1083_v7 = vmax.f32 %v1019_v63, 0.0 }
 0x134   :  { %v1657_v8 = vpack.c.bf16 %v1053_v2, %v1052_v0  ;;  %v1737_v9 = vpack.c.bf16 %v1085_v3, %v1084_v1 }
 0x135   :  { %v1652_v10 = vpack.c.bf16 %v1051_v6, %v1050_v4  ;;  %v1732_v11 = vpack.c.bf16 %v1083_v7, %v1082_v5 }
 0x136   :  { %1753 = vst [vmem:[%s2254_s3 + $0x78] sm:$0xff] %v1657_v8   ;;  %1769 = vst [vmem:[%s2254_s3 + $0xf8] sm:$0xff] %v1737_v9  }
 0x137   :  { %1752 = vst [vmem:[%s2254_s3 + $0x70] sm:$0xff] %v1652_v10   ;;  %1768 = vst [vmem:[%s2254_s3 + $0xf0] sm:$0xff] %v1732_v11  }

// kernel: tile.123
= control target key start
LH: loop header
LB: loop body
LE: loop exit
PB: predicated region body
PF: predicated region fallthrough
CT: control target
= control target key end

     0   :  { %s40_s0 = inlined_call_operand.vmem [shape: f32[16], index: 0, kind: input, shape index: {}]   ;;  %s41_s1 = inlined_call_operand.vmem [shape: f32[32,16], index: 1, kind: output, shape index: {}]  }
   0x1   :  { %v4_v0 = vld [vmem:[%s40_s0] ss:$0 sm:$0xff] }
   0x2   :  { %5 = vst [vmem:[%s41_s1] sm:$0xff] %v4_v0  ;;  %12 = vst [vmem:[%s41_s1 + $0x8] sm:$0xff] %v4_v0 }
   0x3   :  { %13 = vst [vmem:[%s41_s1 + $0x10] sm:$0xff] %v4_v0  ;;  %14 = vst [vmem:[%s41_s1 + $0x18] sm:$0xff] %v4_v0 }

// kernel: tile.124
= control target key start
LH: loop header
LB: loop body
LE: loop exit
PB: predicated region body
PF: predicated region fallthrough
CT: control target
= control target key end

     0   :  { %s89_s8 = smov 112   ;;  %s90_s11 = smov 80   ;;  %vm3_vm0 = vcmask 130048   ;;  %vm9_vm1 = vcmask 1048448   ;;  %vm15_vm2 = vcmask 917248   ;;  %vm21_vm3 = vcmask 786048   ;;  %s142_s0 = inlined_call_operand.vmem [shape: f32[32,16], index: 0, kind: input, shape index: {}]   ;;  %s143_s1 = inlined_call_operand.vmem [shape: f32[1,512], index: 1, kind: output, shape index: {}]  }
   0x1   :  { %v72_v0 = vld [vmem:[%s142_s0 + $0x7] ss:$8 sm:$0xf]   ;;  %v74_v1 = vld [vmem:[%s142_s0 + $0x5] ss:$8 sm:$0xf]  }
   0x2   :  { %7 = vrot.lane.b32.xlu0 %v72_v0, %s89_s8  ;;  %19 = vrot.lane.b32.xlu1 %v74_v1, %s90_s11  ;;  %v73_v2 = vld [vmem:[%s142_s0 + $0x6] ss:$8 sm:$0xf]   ;;  %v75_v3 = vld [vmem:[%s142_s0 + $0x4] ss:$8 sm:$0xf]  }
   0x3   :  { %s91_s16 = smov 96   ;;  %v2_v4 = vld [vmem:[%s142_s0] ss:$8 sm:$0xf]   ;;  %s92_s19 = smov 64   ;;  %vm27_vm4 = vcmask 654848  }
   0x4   :  { %v76_v5 = vld [vmem:[%s142_s0 + $0x3] ss:$8 sm:$0xf]   ;;  %4 = vst.msk [vmem:[#allocation0] ss:$8 sm:$0xf] %vm3_vm0, %v2_v4  }
   0x5   :  { %v77_v6 = vld [vmem:[%s142_s0 + $0x2] ss:$8 sm:$0xf]   ;;  %s93_s24 = smov 48   ;;  %s94_s25 = smov 32   ;;  %vm33_vm5 = vcmask 523648  }
   0x6   :  { %13 = vrot.lane.b32.xlu0 %v73_v2, %s91_s16  ;;  %25 = vrot.lane.b32.xlu1 %v75_v3, %s92_s19  ;;  %v78_v7 = vld [vmem:[%s142_s0 + $0x1] ss:$8 sm:$0xf]   ;;  %s95_s0 = smov 16   ;;  %vm39_vm6 = vcmask 392448   ;;  %vm45_vm7 = vcmask 261248  }
   0xa   :  { %31 = vrot.lane.b32.xlu0 %v76_v5, %s93_s24  ;;  %37 = vrot.lane.b32.xlu1 %v77_v6, %s94_s25 }
   0xe   :  { %43 = vrot.lane.b32.xlu0 %v78_v7, %s95_s0 }
  0x74   :  { %v8_v8 = vpop.permute.xlu0 %7   ;;  %v20_v9 = vpop.permute.xlu1 %19  }
  0x75   :  { %10 = vst.msk [vmem:[#allocation0] ss:$8 sm:$0xf] %vm9_vm1, %v8_v8  }
  0x78   :  { %v14_v10 = vpop.permute.xlu0 %13   ;;  %v26_v11 = vpop.permute.xlu1 %25  }
  0x79   :  { %16 = vst.msk [vmem:[#allocation0] ss:$8 sm:$0xf] %vm15_vm2, %v14_v10  }
  0x7a   :  { %22 = vst.msk [vmem:[#allocation0] ss:$8 sm:$0xf] %vm21_vm3, %v20_v9  }
  0x7b   :  { %28 = vst.msk [vmem:[#allocation0] ss:$8 sm:$0xf] %vm27_vm4, %v26_v11  }
  0x7c   :  { %v32_v12 = vpop.permute.xlu0 %31   ;;  %v38_v13 = vpop.permute.xlu1 %37  }
  0x7d   :  { %34 = vst.msk [vmem:[#allocation0] ss:$8 sm:$0xf] %vm33_vm5, %v32_v12  }
  0x7e   :  { %40 = vst.msk [vmem:[#allocation0] ss:$8 sm:$0xf] %vm39_vm6, %v38_v13  }
  0x80   :  { %v44_v14 = vpop.permute.xlu0 %43  }
  0x81   :  { %46 = vst.msk [vmem:[#allocation0] ss:$8 sm:$0xf] %vm45_vm7, %v44_v14  }
  0x88   :  { %v50_v15 = vld [vmem:[#allocation0] sm:$0x1]  ;;  %v54_v16 = vld [vmem:[#allocation0 + $0x8] sm:$0x1]  ;;  %v59_v17 = vld [vmem:[#allocation0 + $0x10] sm:$0x1] }
  0x89   :  { %52 = vst [vmem:[%s143_s1] sm:$0x1] %v50_v15  ;;  %79 = vst [vmem:[%s143_s1 + $0x1] sm:$0x1] %v54_v16  ;;  %v65_v18 = vld [vmem:[#allocation0 + $0x18] sm:$0x1] }
  0x8a   :  { %80 = vst [vmem:[%s143_s1 + $0x2] sm:$0x1] %v59_v17  ;;  %81 = vst [vmem:[%s143_s1 + $0x3] sm:$0x1] %v65_v18 }

// kernel: unet_forward.40
= control target key start
LH: loop header
LB: loop body
LE: loop exit
PB: predicated region body
PF: predicated region fallthrough
CT: control target
= control target key end

     0   :  { %s685_s1 = inlined_call_operand.vmem [shape: bf16[128,128], index: 1, kind: input, shape index: {}]   ;;  %s686_s0 = inlined_call_operand.vmem [shape: bf16[128,128], index: 0, kind: input, shape index: {}]   ;;  %s687_s2 = inlined_call_operand.vmem [shape: f32[1,128], index: 2, kind: input, shape index: {}]   ;;  %s688_s3 = inlined_call_operand.vmem [shape: f32[128,128], index: 3, kind: output, shape index: {0}]   ;;  %s689_s4 = inlined_call_operand.vmem [shape: f32[1,1,128], index: 4, kind: output, shape index: {1}]   ;;  %s690_s5 = inlined_call_operand.vmem [shape: f32[1,1,128], index: 5, kind: output, shape index: {2}]  }
   0x1   :  { %v522_v0 = vld [vmem:[%s685_s1] sm:$0xff]   ;;  %v523_v1 = vld [vmem:[%s685_s1 + $0x8] sm:$0xff]   ;;  %v524_v2 = vld [vmem:[%s685_s1 + $0x10] sm:$0xff]  }
   0x2   :  { %474 = vmatprep.subr.bf16.mxu0 %v522_v0  ;;  %506 = vmatprep.subr.bf16.mxu1 %v522_v0  ;;  %v525_v3 = vld [vmem:[%s685_s1 + $0x18] sm:$0xff]   ;;  %v530_v4 = vld [vmem:[%s686_s0] sm:$0xff]   ;;  %v527_v7 = vld [vmem:[%s685_s1 + $0x28] sm:$0xff]  }
   0x3   :  { %475 = vmatpush3.bf16.msra.mxu0 %v522_v0  ;;  %514 = vmatpush3.bf16.msra.mxu1 %v522_v0  ;;  %v526_v5 = vld [vmem:[%s685_s1 + $0x20] sm:$0xff]   ;;  %v528_v8 = vld [vmem:[%s685_s1 + $0x30] sm:$0xff]   ;;  %v529_v9 = vld [vmem:[%s685_s1 + $0x38] sm:$0xff]  }
   0x4   :  { %476 = vmatprep.subr.bf16.mxu0 %v523_v1  ;;  %507 = vmatprep.subr.bf16.mxu1 %v523_v1  ;;  %v534_v6 = vld [vmem:[%s686_s0 + $0x20] sm:$0xff]   ;;  %v531_v10 = vld [vmem:[%s686_s0 + $0x8] sm:$0xff]   ;;  %v532_v12 = vld [vmem:[%s686_s0 + $0x10] sm:$0xff]  }
   0x5   :  { %490 = vmatprep.mubr.bf16.mxu0 %v530_v4  ;;  %498 = vmatprep.mubr.bf16.mxu1 %v534_v6  ;;  %v535_v11 = vld [vmem:[%s686_s0 + $0x28] sm:$0xff]   ;;  %v536_v13 = vld [vmem:[%s686_s0 + $0x30] sm:$0xff]   ;;  %v533_v14 = vld [vmem:[%s686_s0 + $0x18] sm:$0xff]  }
   0x6   :  { %v537_v15 = vld [vmem:[%s686_s0 + $0x38] sm:$0xff]   ;;  %v457_v16 = vld [vmem:[%s687_s2] ss:$0 sm:$0xff] }
   0x7   :  { %477 = vmatpush3.bf16.msra.mxu0 %v523_v1  ;;  %515 = vmatpush3.bf16.msra.mxu1 %v523_v1 }
   0x8   :  { %478 = vmatprep.subr.bf16.mxu0 %v524_v2  ;;  %508 = vmatprep.subr.bf16.mxu1 %v524_v2 }
   0xb   :  { %479 = vmatpush3.bf16.msra.mxu0 %v524_v2  ;;  %516 = vmatpush3.bf16.msra.mxu1 %v524_v2 }
   0xc   :  { %480 = vmatprep.subr.bf16.mxu0 %v525_v3  ;;  %509 = vmatprep.subr.bf16.mxu1 %v525_v3 }
   0xf   :  { %481 = vmatpush3.bf16.msra.mxu0 %v525_v3  ;;  %517 = vmatpush3.bf16.msra.mxu1 %v525_v3 }
  0x10   :  { %482 = vmatprep.subr.bf16.mxu0 %v526_v5  ;;  %510 = vmatprep.subr.bf16.mxu1 %v526_v5 }
  0x13   :  { %483 = vmatpush3.bf16.msra.mxu0 %v526_v5  ;;  %518 = vmatpush3.bf16.msra.mxu1 %v526_v5 }
  0x14   :  { %484 = vmatprep.subr.bf16.mxu0 %v527_v7  ;;  %511 = vmatprep.subr.bf16.mxu1 %v527_v7 }
  0x17   :  { %485 = vmatpush3.bf16.msra.mxu0 %v527_v7  ;;  %519 = vmatpush3.bf16.msra.mxu1 %v527_v7 }
  0x18   :  { %486 = vmatprep.subr.bf16.mxu0 %v528_v8  ;;  %512 = vmatprep.subr.bf16.mxu1 %v528_v8 }
  0x1b   :  { %487 = vmatpush3.bf16.msra.mxu0 %v528_v8  ;;  %520 = vmatpush3.bf16.msra.mxu1 %v528_v8 }
  0x1c   :  { %488 = vmatprep.subr.bf16.mxu0 %v529_v9  ;;  %513 = vmatprep.subr.bf16.mxu1 %v529_v9 }
  0x1f   :  { %489 = vmatpush3.bf16.msra.mxu0 %v529_v9  ;;  %521 = vmatpush3.bf16.msra.mxu1 %v529_v9 }
  0x22   :  { %491 = vmatmul.mubr.bf16.vlgmr.msra.gmra.mrb[0].mxu0 %v531_v10  ;;  %499 = vmatmul.mubr.bf16.vlgmr.msra.gmra.mrb[0].mxu1 %v535_v11 }
  0x23   :  { %494 = vmatprep.mubr.bf16.mxu0 %v532_v12  ;;  %502 = vmatprep.mubr.bf16.mxu1 %v536_v13 }
  0x2a   :  { %495 = vmatmul.mubr.bf16.gmra.mrb[4].mxu0 %v533_v14  ;;  %503 = vmatmul.mubr.bf16.gmra.mrb[4].mxu1 %v537_v15 }
  0xf5   :  { %v492_v17 = vpop.f32.mrb[0].mxu0  ;;  %v500_v18 = vpop.f32.mrb[0].mxu1 }
  0xf6   :  { %v339_v19 = vadd.f32 %v492_v17, %v457_v16  ;;  %v216_v20 = vpop.f32.mrb[1].mxu0  ;;  %v619_v21 = vadd.f32 %v500_v18, %v457_v16  ;;  %v248_v22 = vpop.f32.mrb[1].mxu1 }
  0xf7   :  { %v337_v23 = vadd.f32 %v457_v16, %v216_v20  ;;  %v493_v24 = vpop.f32.mrb[2].mxu0  ;;  %v345_v25 = vadd.f32 %v457_v16, %v248_v22  ;;  %v501_v26 = vpop.f32.mrb[2].mxu1 }
  0xf8   :  { %355 = vst [vmem:[%s688_s3 + $0x10] sm:$0xff] %v339_v19  ;;  %v340_v27 = vadd.f32 %v493_v24, %v457_v16  ;;  %v219_v28 = vpop.f32.mrb[3].mxu0  ;;  %363 = vst [vmem:[%s688_s3 + $0x50] sm:$0xff] %v619_v21  ;;  %v628_v29 = vadd.f32 %v501_v26, %v457_v16  ;;  %v251_v30 = vpop.f32.mrb[3].mxu1  ;;  %v393_v36 = vmul.f32 %v339_v19, %v339_v19 }
  0xf9   :  { %353 = vst [vmem:[%s688_s3] sm:$0xff] %v337_v23  ;;  %v338_v31 = vadd.f32 %v457_v16, %v219_v28  ;;  %361 = vst [vmem:[%s688_s3 + $0x40] sm:$0xff] %v345_v25  ;;  %v346_v32 = vadd.f32 %v457_v16, %v251_v30  ;;  %v391_v33 = vmul.f32 %v337_v23, %v337_v23 }
  0xfa   :  { %356 = vst [vmem:[%s688_s3 + $0x18] sm:$0xff] %v340_v27  ;;  %364 = vst [vmem:[%s688_s3 + $0x58] sm:$0xff] %v628_v29  ;;  %v394_v41 = vmul.f32 %v340_v27, %v340_v27  ;;  %v399_v6 = vmul.f32 %v345_v25, %v345_v25  ;;  %v401_v12 = vmul.f32 %v619_v21, %v619_v21 }
  0xfb   :  { %354 = vst [vmem:[%s688_s3 + $0x8] sm:$0xff] %v338_v31  ;;  %v369_v34 = vadd.f32 %v338_v31, %v337_v23  ;;  %v392_v35 = vmul.f32 %v338_v31, %v338_v31  ;;  %362 = vst [vmem:[%s688_s3 + $0x48] sm:$0xff] %v346_v32  ;;  %v400_v11 = vmul.f32 %v346_v32, %v346_v32 }
  0xfc   :  { %v402_v15 = vmul.f32 %v628_v29, %v628_v29 }
  0xfd   :  { %v370_v37 = vadd.f32 %v369_v34, %v339_v19  ;;  %v407_v38 = vadd.f32 %v392_v35, %v391_v33  ;;  %v496_v39 = vpop.f32.mrb[4].mxu0  ;;  %v504_v40 = vpop.f32.mrb[4].mxu1 }
  0xfe   :  { %v343_v42 = vadd.f32 %v496_v39, %v457_v16  ;;  %v232_v43 = vpop.f32.mrb[5].mxu0  ;;  %v351_v44 = vadd.f32 %v504_v40, %v457_v16  ;;  %v264_v45 = vpop.f32.mrb[5].mxu1 }
  0xff   :  { %v408_v46 = vadd.f32 %v407_v38, %v393_v36  ;;  %v341_v47 = vadd.f32 %v457_v16, %v232_v43  ;;  %v371_v48 = vadd.f32 %v370_v37, %v340_v27  ;;  %v497_v49 = vpop.f32.mrb[6].mxu0  ;;  %v349_v50 = vadd.f32 %v457_v16, %v264_v45  ;;  %v505_v51 = vpop.f32.mrb[6].mxu1 }
 0x100   :  { %359 = vst [vmem:[%s688_s3 + $0x30] sm:$0xff] %v343_v42  ;;  %v344_v52 = vadd.f32 %v497_v49, %v457_v16  ;;  %v235_v53 = vpop.f32.mrb[7].mxu0  ;;  %367 = vst [vmem:[%s688_s3 + $0x70] sm:$0xff] %v351_v44  ;;  %v352_v54 = vadd.f32 %v505_v51, %v457_v16  ;;  %v267_v55 = vpop.f32.mrb[7].mxu1  ;;  %v397_v0 = vmul.f32 %v343_v42, %v343_v42 }
 0x101   :  { %357 = vst [vmem:[%s688_s3 + $0x20] sm:$0xff] %v341_v47  ;;  %v372_v56 = vadd.f32 %v371_v48, %v341_v47  ;;  %v395_v57 = vmul.f32 %v341_v47, %v341_v47  ;;  %v409_v58 = vadd.f32 %v408_v46, %v394_v41  ;;  %v342_v59 = vadd.f32 %v457_v16, %v235_v53 }
 0x102   :  { %365 = vst [vmem:[%s688_s3 + $0x60] sm:$0xff] %v349_v50  ;;  %360 = vst [vmem:[%s688_s3 + $0x38] sm:$0xff] %v344_v52  ;;  %v350_v60 = vadd.f32 %v457_v16, %v267_v55  ;;  %v398_v3 = vmul.f32 %v344_v52, %v344_v52  ;;  %v403_v18 = vmul.f32 %v349_v50, %v349_v50 }
 0x103   :  { %368 = vst [vmem:[%s688_s3 + $0x78] sm:$0xff] %v352_v54  ;;  %v410_v61 = vadd.f32 %v409_v58, %v395_v57  ;;  %358 = vst [vmem:[%s688_s3 + $0x28] sm:$0xff] %v342_v59  ;;  %v373_v62 = vadd.f32 %v372_v56, %v342_v59  ;;  %v396_v63 = vmul.f32 %v342_v59, %v342_v59 }
 0x104   :  { %366 = vst [vmem:[%s688_s3 + $0x68] sm:$0xff] %v350_v60  ;;  %v404_v24 = vmul.f32 %v350_v60, %v350_v60  ;;  %v406_v28 = vmul.f32 %v352_v54, %v352_v54 }
 0x105   :  { %v374_v1 = vadd.f32 %v373_v62, %v343_v42  ;;  %v411_v2 = vadd.f32 %v410_v61, %v396_v63 }
 0x107   :  { %v412_v4 = vadd.f32 %v411_v2, %v397_v0  ;;  %v375_v5 = vadd.f32 %v374_v1, %v344_v52 }
 0x109   :  { %v376_v7 = vadd.f32 %v375_v5, %v345_v25  ;;  %v413_v8 = vadd.f32 %v412_v4, %v398_v3  ;;  %v405_v25 = vmul.f32 %v351_v44, %v351_v44 }
 0x10b   :  { %v414_v9 = vadd.f32 %v413_v8, %v399_v6  ;;  %v377_v10 = vadd.f32 %v376_v7, %v346_v32 }
 0x10d   :  { %v378_v13 = vadd.f32 %v377_v10, %v619_v21  ;;  %v415_v14 = vadd.f32 %v414_v9, %v400_v11 }
 0x10f   :  { %v416_v16 = vadd.f32 %v415_v14, %v401_v12  ;;  %v379_v17 = vadd.f32 %v378_v13, %v628_v29 }
 0x111   :  { %v380_v19 = vadd.f32 %v379_v17, %v349_v50  ;;  %v417_v20 = vadd.f32 %v416_v16, %v402_v15 }
 0x113   :  { %v418_v22 = vadd.f32 %v417_v20, %v403_v18  ;;  %v381_v23 = vadd.f32 %v380_v19, %v350_v60 }
 0x115   :  { %v382_v26 = vadd.f32 %v381_v23, %v351_v44  ;;  %v419_v27 = vadd.f32 %v418_v22, %v404_v24 }
 0x117   :  { %v383_v30 = vadd.f32 %v382_v26, %v352_v54  ;;  %v420_v31 = vadd.f32 %v419_v27, %v405_v25 }
 0x119   :  { %v384_v21 = vrot.slane %v383_v30, 4  ;;  %v421_v32 = vadd.f32 %v420_v31, %v406_v28 }
 0x11b   :  { %v385_v33 = vadd.f32 %v384_v21, %v383_v30  ;;  %v422_v34 = vrot.slane %v421_v32, 4 }
 0x11d   :  { %v386_v35 = vrot.slane %v385_v33, 2  ;;  %v423_v36 = vadd.f32 %v422_v34, %v421_v32 }
 0x11f   :  { %v387_v37 = vadd.f32 %v386_v35, %v385_v33  ;;  %v424_v29 = vrot.slane %v423_v36, 2 }
 0x121   :  { %v388_v38 = vrot.slane %v387_v37, 1  ;;  %v425_v39 = vadd.f32 %v424_v29, %v423_v36 }
 0x123   :  { %v389_v40 = vadd.f32 %v388_v38, %v387_v37  ;;  %v426_v41 = vrot.slane %v425_v39, 1 }
 0x125   :  { %390 = vst [vmem:[%s689_s4] sm:$0x1] %v389_v40  ;;  %v427_v42 = vadd.f32 %v426_v41, %v425_v39 }
 0x127   :  { %428 = vst [vmem:[%s690_s5] sm:$0x1] %v427_v42 }

// kernel: unet_forward.42
= control target key start
LH: loop header
LB: loop body
LE: loop exit
PB: predicated region body
PF: predicated region fallthrough
CT: control target
= control target key end

     0   :  { %s939_s1 = inlined_call_operand.vmem [shape: bf16[256,128], index: 1, kind: input, shape index: {}]   ;;  %s940_s0 = inlined_call_operand.vmem [shape: bf16[128,256], index: 0, kind: input, shape index: {}]   ;;  %s941_s2 = inlined_call_operand.vmem [shape: f32[1,128], index: 2, kind: input, shape index: {}]   ;;  %s942_s3 = inlined_call_operand.vmem [shape: bf16[128,128], index: 3, kind: output, shape index: {}]  }
   0x1   :  { %v738_v0 = vld [vmem:[%s939_s1 + $0x40] sm:$0xff]   ;;  %v740_v2 = vld [vmem:[%s939_s1 + $0x48] sm:$0xff]   ;;  %v742_v4 = vld [vmem:[%s939_s1 + $0x50] sm:$0xff]  }
   0x2   :  { %v739_v1 = vld [vmem:[%s939_s1] sm:$0xff]   ;;  %658 = vmatprep.subr.bf16.mxu0 %v738_v0  ;;  %722 = vmatprep.subr.bf16.mxu1 %v738_v0  ;;  %v741_v3 = vld [vmem:[%s939_s1 + $0x8] sm:$0xff]   ;;  %v743_v5 = vld [vmem:[%s939_s1 + $0x10] sm:$0xff]  }
   0x3   :  { %659 = vmatpush3.bf16.msra.mxu0 %v739_v1  ;;  %730 = vmatpush3.bf16.msra.mxu1 %v739_v1  ;;  %v744_v6 = vld [vmem:[%s939_s1 + $0x58] sm:$0xff]   ;;  %v746_v8 = vld [vmem:[%s939_s1 + $0x60] sm:$0xff]   ;;  %v748_v10 = vld [vmem:[%s939_s1 + $0x68] sm:$0xff]  }
   0x4   :  { %660 = vmatprep.subr.bf16.mxu0 %v740_v2  ;;  %723 = vmatprep.subr.bf16.mxu1 %v740_v2  ;;  %v745_v7 = vld [vmem:[%s939_s1 + $0x18] sm:$0xff]   ;;  %v747_v9 = vld [vmem:[%s939_s1 + $0x20] sm:$0xff]   ;;  %v749_v13 = vld [vmem:[%s939_s1 + $0x28] sm:$0xff]  }
   0x5   :  { %v756_v11 = vld [vmem:[%s940_s0 + $0x4] ss:$8 sps:$4 sm:$0xff]   ;;  %v750_v14 = vld [vmem:[%s939_s1 + $0x70] sm:$0xff]   ;;  %v752_v16 = vld [vmem:[%s939_s1 + $0x78] sm:$0xff]  }
   0x6   :  { %v759_v12 = vld [vmem:[%s940_s0 + $0x44] ss:$8 sps:$4 sm:$0xff]   ;;  %307 = vmatprep.mubr.bf16.mxu0 %v756_v11  ;;  %v751_v15 = vld [vmem:[%s939_s1 + $0x30] sm:$0xff]   ;;  %v753_v17 = vld [vmem:[%s939_s1 + $0x38] sm:$0xff]  }
   0x7   :  { %661 = vmatpush3.bf16.msra.mxu0 %v741_v3  ;;  %731 = vmatpush3.bf16.msra.mxu1 %v741_v3  ;;  %v754_v18 = vld [vmem:[%s940_s0] ss:$8 sps:$4 sm:$0xff]   ;;  %v760_v20 = vld [vmem:[%s940_s0 + $0x14] ss:$8 sps:$4 sm:$0xff]   ;;  %v764_v22 = vld [vmem:[%s940_s0 + $0x10] ss:$8 sps:$4 sm:$0xff]  }
   0x8   :  { %662 = vmatprep.subr.bf16.mxu0 %v742_v4  ;;  %724 = vmatprep.subr.bf16.mxu1 %v742_v4  ;;  %v757_v19 = vld [vmem:[%s940_s0 + $0x40] ss:$8 sps:$4 sm:$0xff]   ;;  %v762_v21 = vld [vmem:[%s940_s0 + $0x54] ss:$8 sps:$4 sm:$0xff]   ;;  %v765_v23 = vld [vmem:[%s940_s0 + $0x50] ss:$8 sps:$4 sm:$0xff]  }
   0x9   :  { %339 = vmatprep.mubr.bf16.mxu1 %v759_v12  ;;  %v766_v24 = vld [vmem:[%s940_s0 + $0x24] ss:$8 sps:$4 sm:$0xff]   ;;  %v770_v26 = vld [vmem:[%s940_s0 + $0x20] ss:$8 sps:$4 sm:$0xff]   ;;  %v772_v28 = vld [vmem:[%s940_s0 + $0x34] ss:$8 sps:$4 sm:$0xff]  }
   0xa   :  { %v768_v25 = vld [vmem:[%s940_s0 + $0x64] ss:$8 sps:$4 sm:$0xff]   ;;  %v771_v27 = vld [vmem:[%s940_s0 + $0x60] ss:$8 sps:$4 sm:$0xff]   ;;  %v774_v29 = vld [vmem:[%s940_s0 + $0x74] ss:$8 sps:$4 sm:$0xff]  }
   0xb   :  { %663 = vmatpush3.bf16.msra.mxu0 %v743_v5  ;;  %732 = vmatpush3.bf16.msra.mxu1 %v743_v5  ;;  %v776_v30 = vld [vmem:[%s940_s0 + $0x30] ss:$8 sps:$4 sm:$0xff]   ;;  %v897_v35 = vld [vmem:[%s941_s2] ss:$0 sm:$0xff] }
   0xc   :  { %664 = vmatprep.subr.bf16.mxu0 %v744_v6  ;;  %725 = vmatprep.subr.bf16.mxu1 %v744_v6  ;;  %v777_v31 = vld [vmem:[%s940_s0 + $0x70] ss:$8 sps:$4 sm:$0xff]  }
   0xf   :  { %665 = vmatpush3.bf16.msra.mxu0 %v745_v7  ;;  %733 = vmatpush3.bf16.msra.mxu1 %v745_v7 }
  0x10   :  { %666 = vmatprep.subr.bf16.mxu0 %v746_v8  ;;  %726 = vmatprep.subr.bf16.mxu1 %v746_v8 }
  0x13   :  { %667 = vmatpush3.bf16.msra.mxu0 %v747_v9  ;;  %734 = vmatpush3.bf16.msra.mxu1 %v747_v9 }
  0x14   :  { %668 = vmatprep.subr.bf16.mxu0 %v748_v10  ;;  %727 = vmatprep.subr.bf16.mxu1 %v748_v10 }
  0x17   :  { %669 = vmatpush3.bf16.msra.mxu0 %v749_v13  ;;  %735 = vmatpush3.bf16.msra.mxu1 %v749_v13 }
  0x18   :  { %670 = vmatprep.subr.bf16.mxu0 %v750_v14  ;;  %728 = vmatprep.subr.bf16.mxu1 %v750_v14 }
  0x1b   :  { %671 = vmatpush3.bf16.msra.mxu0 %v751_v15  ;;  %736 = vmatpush3.bf16.msra.mxu1 %v751_v15 }
  0x1c   :  { %672 = vmatprep.subr.bf16.mxu0 %v752_v16  ;;  %729 = vmatprep.subr.bf16.mxu1 %v752_v16 }
  0x1f   :  { %673 = vmatpush3.bf16.msra.mxu0 %v753_v17  ;;  %737 = vmatpush3.bf16.msra.mxu1 %v753_v17 }
  0x22   :  { %308 = vmatmul.mubr.bf16.vlgmr.msra.gmra.mrb[0].mxu0 %v754_v18  ;;  %340 = vmatmul.mubr.bf16.vlgmr.msra.gmra.mrb[0].mxu1 %v757_v19 }
  0x23   :  { %315 = vmatprep.mubr.bf16.mxu0 %v760_v20  ;;  %347 = vmatprep.mubr.bf16.mxu1 %v762_v21 }
  0x2a   :  { %316 = vmatmul.mubr.bf16.gmra.mrb[4].mxu0 %v764_v22  ;;  %348 = vmatmul.mubr.bf16.gmra.mrb[4].mxu1 %v765_v23 }
  0x2b   :  { %323 = vmatprep.mubr.bf16.mxu0 %v766_v24  ;;  %355 = vmatprep.mubr.bf16.mxu1 %v768_v25 }
  0x32   :  { %324 = vmatmul.mubr.bf16.gmra.mrb[8].mxu0 %v770_v26  ;;  %356 = vmatmul.mubr.bf16.gmra.mrb[8].mxu1 %v771_v27 }
  0x33   :  { %331 = vmatprep.mubr.bf16.mxu0 %v772_v28  ;;  %363 = vmatprep.mubr.bf16.mxu1 %v774_v29 }
  0x3a   :  { %332 = vmatmul.mubr.bf16.gmra.mrb[12].mxu0 %v776_v30  ;;  %364 = vmatmul.mubr.bf16.gmra.mrb[12].mxu1 %v777_v31 }
  0xf5   :  { %v674_v32 = vpop.f32.mrb[0].mxu0  ;;  %v698_v33 = vpop.f32.mrb[0].mxu1 }
  0xf6   :  { %v675_v34 = vpop.f32.mrb[1].mxu0  ;;  %v699_v36 = vpop.f32.mrb[1].mxu1 }
  0xf7   :  { %v676_v37 = vadd.f32 %v675_v34, %v674_v32  ;;  %v700_v38 = vadd.f32 %v699_v36, %v698_v33  ;;  %v677_v39 = vpop.f32.mrb[2].mxu0  ;;  %v701_v40 = vpop.f32.mrb[2].mxu1 }
  0xf8   :  { %v678_v41 = vpop.f32.mrb[3].mxu0  ;;  %v702_v42 = vpop.f32.mrb[3].mxu1 }
  0xf9   :  { %v430_v43 = vadd.f32 %v676_v37, %v897_v35  ;;  %v438_v44 = vadd.f32 %v700_v38, %v897_v35  ;;  %v679_v45 = vadd.f32 %v678_v41, %v677_v39  ;;  %v703_v46 = vadd.f32 %v702_v42, %v701_v40 }
  0xfb   :  { %v431_v47 = vadd.f32 %v679_v45, %v897_v35  ;;  %v439_v48 = vadd.f32 %v703_v46, %v897_v35  ;;  %v446_v49 = vmax.f32 %v430_v43, 0.0  ;;  %v454_v50 = vmax.f32 %v438_v44, 0.0 }
  0xfd   :  { %v447_v51 = vmax.f32 %v431_v47, 0.0  ;;  %v455_v52 = vmax.f32 %v439_v48, 0.0  ;;  %v680_v53 = vpop.f32.mrb[4].mxu0  ;;  %v704_v54 = vpop.f32.mrb[4].mxu1 }
  0xfe   :  { %v681_v55 = vpop.f32.mrb[5].mxu0  ;;  %v705_v56 = vpop.f32.mrb[5].mxu1 }
  0xff   :  { %v614_v57 = vpack.c.bf16 %v447_v51, %v446_v49  ;;  %v634_v58 = vpack.c.bf16 %v455_v52, %v454_v50  ;;  %v682_v59 = vadd.f32 %v681_v55, %v680_v53  ;;  %v706_v60 = vadd.f32 %v705_v56, %v704_v54  ;;  %v683_v61 = vpop.f32.mrb[6].mxu0  ;;  %v707_v62 = vpop.f32.mrb[6].mxu1 }
 0x100   :  { %v684_v63 = vpop.f32.mrb[7].mxu0  ;;  %v708_v0 = vpop.f32.mrb[7].mxu1 }
 0x101   :  { %615 = vst [vmem:[%s942_s3] sm:$0xff] %v614_v57   ;;  %654 = vst [vmem:[%s942_s3 + $0x20] sm:$0xff] %v634_v58   ;;  %v432_v1 = vadd.f32 %v682_v59, %v897_v35  ;;  %v440_v2 = vadd.f32 %v706_v60, %v897_v35  ;;  %v685_v3 = vadd.f32 %v684_v63, %v683_v61 }
 0x102   :  { %v709_v4 = vadd.f32 %v708_v0, %v707_v62 }
 0x103   :  { %v433_v5 = vadd.f32 %v685_v3, %v897_v35  ;;  %v448_v7 = vmax.f32 %v432_v1, 0.0  ;;  %v456_v8 = vmax.f32 %v440_v2, 0.0 }
 0x104   :  { %v441_v6 = vadd.f32 %v709_v4, %v897_v35 }
 0x105   :  { %v449_v9 = vmax.f32 %v433_v5, 0.0  ;;  %v686_v11 = vpop.f32.mrb[8].mxu0  ;;  %v710_v12 = vpop.f32.mrb[8].mxu1 }
 0x106   :  { %v457_v10 = vmax.f32 %v441_v6, 0.0  ;;  %v687_v13 = vpop.f32.mrb[9].mxu0  ;;  %v711_v14 = vpop.f32.mrb[9].mxu1 }
 0x107   :  { %v619_v15 = vpack.c.bf16 %v449_v9, %v448_v7  ;;  %v688_v17 = vadd.f32 %v687_v13, %v686_v11  ;;  %v712_v18 = vadd.f32 %v711_v14, %v710_v12  ;;  %v689_v19 = vpop.f32.mrb[10].mxu0  ;;  %v713_v20 = vpop.f32.mrb[10].mxu1 }
 0x108   :  { %v639_v16 = vpack.c.bf16 %v457_v10, %v456_v8  ;;  %v690_v21 = vpop.f32.mrb[11].mxu0  ;;  %v714_v22 = vpop.f32.mrb[11].mxu1 }
 0x109   :  { %651 = vst [vmem:[%s942_s3 + $0x8] sm:$0xff] %v619_v15   ;;  %v434_v23 = vadd.f32 %v688_v17, %v897_v35  ;;  %v442_v24 = vadd.f32 %v712_v18, %v897_v35  ;;  %v691_v25 = vadd.f32 %v690_v21, %v689_v19  ;;  %v715_v26 = vadd.f32 %v714_v22, %v713_v20 }
 0x10a   :  { %655 = vst [vmem:[%s942_s3 + $0x28] sm:$0xff] %v639_v16  }
 0x10b   :  { %v435_v27 = vadd.f32 %v691_v25, %v897_v35  ;;  %v443_v28 = vadd.f32 %v715_v26, %v897_v35  ;;  %v450_v29 = vmax.f32 %v434_v23, 0.0  ;;  %v458_v30 = vmax.f32 %v442_v24, 0.0 }
 0x10d   :  { %v451_v31 = vmax.f32 %v435_v27, 0.0  ;;  %v459_v32 = vmax.f32 %v443_v28, 0.0  ;;  %v692_v33 = vpop.f32.mrb[12].mxu0  ;;  %v716_v34 = vpop.f32.mrb[12].mxu1 }
 0x10e   :  { %v693_v36 = vpop.f32.mrb[13].mxu0  ;;  %v717_v37 = vpop.f32.mrb[13].mxu1 }
 0x10f   :  { %v624_v38 = vpack.c.bf16 %v451_v31, %v450_v29  ;;  %v644_v39 = vpack.c.bf16 %v459_v32, %v458_v30  ;;  %v694_v40 = vadd.f32 %v693_v36, %v692_v33  ;;  %v718_v41 = vadd.f32 %v717_v37, %v716_v34  ;;  %v695_v42 = vpop.f32.mrb[14].mxu0  ;;  %v719_v43 = vpop.f32.mrb[14].mxu1 }
 0x110   :  { %v696_v44 = vpop.f32.mrb[15].mxu0  ;;  %v720_v45 = vpop.f32.mrb[15].mxu1 }
 0x111   :  { %652 = vst [vmem:[%s942_s3 + $0x10] sm:$0xff] %v624_v38   ;;  %656 = vst [vmem:[%s942_s3 + $0x30] sm:$0xff] %v644_v39   ;;  %v436_v46 = vadd.f32 %v694_v40, %v897_v35  ;;  %v444_v47 = vadd.f32 %v718_v41, %v897_v35  ;;  %v697_v48 = vadd.f32 %v696_v44, %v695_v42 }
 0x112   :  { %v721_v49 = vadd.f32 %v720_v45, %v719_v43 }
 0x113   :  { %v437_v50 = vadd.f32 %v697_v48, %v897_v35  ;;  %v452_v52 = vmax.f32 %v436_v46, 0.0  ;;  %v460_v53 = vmax.f32 %v444_v47, 0.0 }
 0x114   :  { %v445_v51 = vadd.f32 %v721_v49, %v897_v35 }
 0x115   :  { %v453_v54 = vmax.f32 %v437_v50, 0.0 }
 0x116   :  { %v461_v55 = vmax.f32 %v445_v51, 0.0 }
 0x117   :  { %v629_v56 = vpack.c.bf16 %v453_v54, %v452_v52 }
 0x118   :  { %v649_v57 = vpack.c.bf16 %v461_v55, %v460_v53 }
 0x119   :  { %653 = vst [vmem:[%s942_s3 + $0x18] sm:$0xff] %v629_v56  }
 0x11a   :  { %657 = vst [vmem:[%s942_s3 + $0x38] sm:$0xff] %v649_v57  }

// kernel: tile.133
= control target key start
LH: loop header
LB: loop body
LE: loop exit
PB: predicated region body
PF: predicated region fallthrough
CT: control target
= control target key end

     0   :  { %s28_s0 = inlined_call_operand.vmem [shape: f32[32], index: 0, kind: input, shape index: {}]   ;;  %s29_s1 = inlined_call_operand.vmem [shape: f32[16,32], index: 1, kind: output, shape index: {}]  }
   0x1   :  { %v4_v0 = vld [vmem:[%s28_s0] ss:$0 sm:$0xff] }
   0x2   :  { %5 = vst [vmem:[%s29_s1] sm:$0xff] %v4_v0  ;;  %8 = vst [vmem:[%s29_s1 + $0x8] sm:$0xff] %v4_v0 }

// kernel: tile.134
= control target key start
LH: loop header
LB: loop body
LE: loop exit
PB: predicated region body
PF: predicated region fallthrough
CT: control target
= control target key end

     0   :  { %s57_s8 = smov 96   ;;  %vm3_vm0 = vcmask 261120   ;;  %s59_s15 = smov 64   ;;  %vm9_vm1 = vcmask 1048320   ;;  %vm15_vm2 = vcmask 785920   ;;  %vm21_vm3 = vcmask 523520   ;;  %s94_s0 = inlined_call_operand.vmem [shape: f32[16,32], index: 0, kind: input, shape index: {}]   ;;  %s95_s1 = inlined_call_operand.vmem [shape: f32[1,512], index: 1, kind: output, shape index: {}]  }
   0x1   :  { %v48_v0 = vld [vmem:[%s94_s0 + $0x3] ss:$4 sm:$0xf]   ;;  %v49_v1 = vld [vmem:[%s94_s0 + $0x2] ss:$4 sm:$0xf]  }
   0x2   :  { %7 = vrot.lane.b32.xlu0 %v48_v0, %s57_s8  ;;  %v50_v2 = vld [vmem:[%s94_s0 + $0x1] ss:$4 sm:$0xf]   ;;  %v2_v3 = vld [vmem:[%s94_s0] ss:$4 sm:$0xf]  }
   0x3   :  { %s58_s0 = smov 32   ;;  %4 = vst.msk [vmem:[#allocation0] ss:$8 sm:$0xf] %vm3_vm0, %v2_v3  }
   0x4   :  { %19 = vrot.lane.b32.xlu1 %v50_v2, %s58_s0 }
   0x6   :  { %13 = vrot.lane.b32.xlu0 %v49_v1, %s59_s15 }
  0x74   :  { %v8_v4 = vpop.permute.xlu0 %7  }
  0x75   :  { %10 = vst.msk [vmem:[#allocation0] ss:$8 sm:$0xf] %vm9_vm1, %v8_v4  }
  0x76   :  { %v20_v5 = vpop.permute.xlu1 %19  }
  0x78   :  { %v14_v6 = vpop.permute.xlu0 %13  }
  0x79   :  { %16 = vst.msk [vmem:[#allocation0] ss:$8 sm:$0xf] %vm15_vm2, %v14_v6  }
  0x7a   :  { %22 = vst.msk [vmem:[#allocation0] ss:$8 sm:$0xf] %vm21_vm3, %v20_v5  }
  0x81   :  { %v26_v7 = vld [vmem:[#allocation0] sm:$0x1]  ;;  %v30_v8 = vld [vmem:[#allocation0 + $0x8] sm:$0x1]  ;;  %v35_v9 = vld [vmem:[#allocation0 + $0x10] sm:$0x1] }
  0x82   :  { %28 = vst [vmem:[%s95_s1] sm:$0x1] %v26_v7  ;;  %51 = vst [vmem:[%s95_s1 + $0x1] sm:$0x1] %v30_v8  ;;  %v41_v10 = vld [vmem:[#allocation0 + $0x18] sm:$0x1] }
  0x83   :  { %52 = vst [vmem:[%s95_s1 + $0x2] sm:$0x1] %v35_v9  ;;  %53 = vst [vmem:[%s95_s1 + $0x3] sm:$0x1] %v41_v10 }

// kernel: unet_forward.44
= control target key start
LH: loop header
LB: loop body
LE: loop exit
PB: predicated region body
PF: predicated region fallthrough
CT: control target
= control target key end

     0   :  { %s495_s1 = inlined_call_operand.vmem [shape: bf16[256,128], index: 1, kind: input, shape index: {}]   ;;  %s496_s0 = inlined_call_operand.vmem [shape: bf16[32,256], index: 0, kind: input, shape index: {}]   ;;  %s497_s2 = inlined_call_operand.vmem [shape: f32[1,128], index: 2, kind: input, shape index: {}]   ;;  %s498_s3 = inlined_call_operand.vmem [shape: f32[32,128], index: 3, kind: output, shape index: {0}]   ;;  %s499_s4 = inlined_call_operand.vmem [shape: f32[1,1,128], index: 4, kind: output, shape index: {1}]   ;;  %s500_s5 = inlined_call_operand.vmem [shape: f32[1,1,128], index: 5, kind: output, shape index: {2}]  }
   0x1   :  { %v362_v0 = vld [vmem:[%s495_s1 + $0x40] sm:$0xff]   ;;  %v364_v2 = vld [vmem:[%s495_s1 + $0x48] sm:$0xff]   ;;  %v366_v4 = vld [vmem:[%s495_s1 + $0x50] sm:$0xff]  }
   0x2   :  { %v363_v1 = vld [vmem:[%s495_s1] sm:$0xff]   ;;  %318 = vmatprep.subr.bf16.mxu0 %v362_v0  ;;  %346 = vmatprep.subr.bf16.mxu1 %v362_v0  ;;  %v365_v3 = vld [vmem:[%s495_s1 + $0x8] sm:$0xff]   ;;  %v367_v5 = vld [vmem:[%s495_s1 + $0x10] sm:$0xff]  }
   0x3   :  { %319 = vmatpush3.bf16.msra.mxu0 %v363_v1  ;;  %354 = vmatpush3.bf16.msra.mxu1 %v363_v1  ;;  %v368_v6 = vld [vmem:[%s495_s1 + $0x58] sm:$0xff]   ;;  %v370_v8 = vld [vmem:[%s495_s1 + $0x60] sm:$0xff]   ;;  %v372_v10 = vld [vmem:[%s495_s1 + $0x68] sm:$0xff]  }
   0x4   :  { %320 = vmatprep.subr.bf16.mxu0 %v364_v2  ;;  %347 = vmatprep.subr.bf16.mxu1 %v364_v2  ;;  %v369_v7 = vld [vmem:[%s495_s1 + $0x18] sm:$0xff]   ;;  %v371_v9 = vld [vmem:[%s495_s1 + $0x20] sm:$0xff]   ;;  %v373_v13 = vld [vmem:[%s495_s1 + $0x28] sm:$0xff]  }
   0x5   :  { %v380_v11 = vld [vmem:[%s496_s0 + $0x4] ss:$8 sps:$4 sm:$0xff]   ;;  %v383_v12 = vld [vmem:[%s496_s0 + $0x14] ss:$8 sps:$4 sm:$0xff]   ;;  %v378_v18 = vld [vmem:[%s496_s0] ss:$8 sps:$4 sm:$0xff]  }
   0x6   :  { %v374_v14 = vld [vmem:[%s495_s1 + $0x70] sm:$0xff]   ;;  %214 = vmatprep.mubr.bf16.mxu0 %v380_v11  ;;  %222 = vmatprep.mubr.bf16.mxu1 %v383_v12  ;;  %v376_v16 = vld [vmem:[%s495_s1 + $0x78] sm:$0xff]   ;;  %v317_v23 = vld [vmem:[%s497_s2] ss:$0 sm:$0xff] }
   0x7   :  { %321 = vmatpush3.bf16.msra.mxu0 %v365_v3  ;;  %355 = vmatpush3.bf16.msra.mxu1 %v365_v3  ;;  %v375_v15 = vld [vmem:[%s495_s1 + $0x30] sm:$0xff]   ;;  %v377_v17 = vld [vmem:[%s495_s1 + $0x38] sm:$0xff]  }
   0x8   :  { %322 = vmatprep.subr.bf16.mxu0 %v366_v4  ;;  %348 = vmatprep.subr.bf16.mxu1 %v366_v4  ;;  %v381_v19 = vld [vmem:[%s496_s0 + $0x10] ss:$8 sps:$4 sm:$0xff]  }
   0xb   :  { %323 = vmatpush3.bf16.msra.mxu0 %v367_v5  ;;  %356 = vmatpush3.bf16.msra.mxu1 %v367_v5 }
   0xc   :  { %324 = vmatprep.subr.bf16.mxu0 %v368_v6  ;;  %349 = vmatprep.subr.bf16.mxu1 %v368_v6 }
   0xf   :  { %325 = vmatpush3.bf16.msra.mxu0 %v369_v7  ;;  %357 = vmatpush3.bf16.msra.mxu1 %v369_v7 }
  0x10   :  { %326 = vmatprep.subr.bf16.mxu0 %v370_v8  ;;  %350 = vmatprep.subr.bf16.mxu1 %v370_v8 }
  0x13   :  { %327 = vmatpush3.bf16.msra.mxu0 %v371_v9  ;;  %358 = vmatpush3.bf16.msra.mxu1 %v371_v9 }
  0x14   :  { %328 = vmatprep.subr.bf16.mxu0 %v372_v10  ;;  %351 = vmatprep.subr.bf16.mxu1 %v372_v10 }
  0x17   :  { %329 = vmatpush3.bf16.msra.mxu0 %v373_v13  ;;  %359 = vmatpush3.bf16.msra.mxu1 %v373_v13 }
  0x18   :  { %330 = vmatprep.subr.bf16.mxu0 %v374_v14  ;;  %352 = vmatprep.subr.bf16.mxu1 %v374_v14 }
  0x1b   :  { %331 = vmatpush3.bf16.msra.mxu0 %v375_v15  ;;  %360 = vmatpush3.bf16.msra.mxu1 %v375_v15 }
  0x1c   :  { %332 = vmatprep.subr.bf16.mxu0 %v376_v16  ;;  %353 = vmatprep.subr.bf16.mxu1 %v376_v16 }
  0x1f   :  { %333 = vmatpush3.bf16.msra.mxu0 %v377_v17  ;;  %361 = vmatpush3.bf16.msra.mxu1 %v377_v17 }
  0x22   :  { %215 = vmatmul.mubr.bf16.vlgmr.msra.gmra.mrb[0].mxu0 %v378_v18  ;;  %223 = vmatmul.mubr.bf16.vlgmr.msra.gmra.mrb[0].mxu1 %v381_v19 }
  0xf5   :  { %v334_v20 = vpop.f32.mrb[0].mxu0  ;;  %v340_v21 = vpop.f32.mrb[0].mxu1 }
  0xf6   :  { %v335_v22 = vpop.f32.mrb[1].mxu0  ;;  %v341_v24 = vpop.f32.mrb[1].mxu1 }
  0xf7   :  { %v336_v25 = vadd.f32 %v335_v22, %v334_v20  ;;  %v337_v26 = vpop.f32.mrb[2].mxu0  ;;  %v342_v27 = vadd.f32 %v341_v24, %v340_v21  ;;  %v343_v28 = vpop.f32.mrb[2].mxu1 }
  0xf8   :  { %v338_v29 = vpop.f32.mrb[3].mxu0  ;;  %v344_v30 = vpop.f32.mrb[3].mxu1 }
  0xf9   :  { %v253_v31 = vadd.f32 %v336_v25, %v317_v23  ;;  %v255_v32 = vadd.f32 %v342_v27, %v317_v23  ;;  %v339_v33 = vadd.f32 %v338_v29, %v337_v26  ;;  %v345_v34 = vadd.f32 %v344_v30, %v343_v28 }
  0xfb   :  { %257 = vst [vmem:[%s498_s3] sm:$0xff] %v253_v31  ;;  %259 = vst [vmem:[%s498_s3 + $0x10] sm:$0xff] %v255_v32  ;;  %v254_v35 = vadd.f32 %v339_v33, %v317_v23  ;;  %v256_v36 = vadd.f32 %v345_v34, %v317_v23  ;;  %v271_v37 = vmul.f32 %v253_v31, %v253_v31 }
  0xfc   :  { %v273_v38 = vmul.f32 %v255_v32, %v255_v32 }
  0xfd   :  { %258 = vst [vmem:[%s498_s3 + $0x8] sm:$0xff] %v254_v35  ;;  %v261_v39 = vadd.f32 %v254_v35, %v253_v31  ;;  %v272_v40 = vmul.f32 %v254_v35, %v254_v35  ;;  %260 = vst [vmem:[%s498_s3 + $0x18] sm:$0xff] %v256_v36  ;;  %v274_v44 = vmul.f32 %v256_v36, %v256_v36 }
  0xff   :  { %v275_v41 = vadd.f32 %v272_v40, %v271_v37  ;;  %v262_v42 = vadd.f32 %v261_v39, %v255_v32 }
 0x101   :  { %v263_v43 = vadd.f32 %v262_v42, %v256_v36  ;;  %v276_v45 = vadd.f32 %v275_v41, %v273_v38 }
 0x103   :  { %v264_v46 = vrot.slane %v263_v43, 4  ;;  %v277_v47 = vadd.f32 %v276_v45, %v274_v44 }
 0x105   :  { %v265_v48 = vadd.f32 %v264_v46, %v263_v43  ;;  %v278_v49 = vrot.slane %v277_v47, 4 }
 0x107   :  { %v266_v50 = vrot.slane %v265_v48, 2  ;;  %v279_v51 = vadd.f32 %v278_v49, %v277_v47 }
 0x109   :  { %v267_v52 = vadd.f32 %v266_v50, %v265_v48  ;;  %v280_v53 = vrot.slane %v279_v51, 2 }
 0x10b   :  { %v268_v54 = vrot.slane %v267_v52, 1  ;;  %v281_v55 = vadd.f32 %v280_v53, %v279_v51 }
 0x10d   :  { %v269_v56 = vadd.f32 %v268_v54, %v267_v52  ;;  %v282_v57 = vrot.slane %v281_v55, 1 }
 0x10f   :  { %270 = vst [vmem:[%s499_s4] sm:$0x1] %v269_v56  ;;  %v283_v58 = vadd.f32 %v282_v57, %v281_v55 }
 0x111   :  { %284 = vst [vmem:[%s500_s5] sm:$0x1] %v283_v58 }

// kernel: unet_forward.46
= control target key start
LH: loop header
LB: loop body
LE: loop exit
PB: predicated region body
PF: predicated region fallthrough
CT: control target
= control target key end

     0   :  { %s796_s12 = smov 0   ;;  %s798_s13 = smov 0   ;;  %s889_s0 = inlined_call_operand.vmem [shape: bf16[32,384], index: 0, kind: input, shape index: {}]   ;;  %s890_s1 = inlined_call_operand.vmem [shape: bf16[384,128], index: 1, kind: input, shape index: {}]   ;;  %s891_s2 = inlined_call_operand.vmem [shape: f32[1,128], index: 2, kind: input, shape index: {}]   ;;  %s892_s3 = inlined_call_operand.vmem [shape: bf16[32,128], index: 3, kind: output, shape index: {}]  }
   0x1   :  { %s800_s14 = smov 0   ;;  %s802_s15 = smov 0  }
   0x2   :  { %s804_s16 = smov 0  }
   0x3 LB: > { %s25_s17 = sadd.s32 1, %s769_s15  ;;  %p48_p1 = scmp.ne.s32.totalorder %s761_s13, %s757_s12  ;;  %s773_s16 = sphi %s804_s16, %s13_s16   ;;  %s769_s15 = sphi %s802_s15, %s896_s15   ;;  %s765_s14 = sphi %s800_s14, %s895_s14   ;;  %s761_s13 = sphi %s798_s13, %s894_s13   ;;  %s757_s12 = sphi %s796_s12, %s893_s12  }
   0x4   : > { %p26_p0 = scmp.ge.s32.totalorder %s25_s17, 3  ;;  %p49_p2 = scmp.eq.s32.totalorder %s773_s16, 0 }
   0x5   : > { %s41_s19 = sadd.s32 1, %s761_s13  ;;  %p611_p5 = scmp.ge.s32.totalorder %s773_s16, 3 }
   0x6   : > { %s898_s17 = smov (%p26_p0, %s25_s17), 0  ;;  %p50_p3 = por %p49_p2, %p48_p1 }
   0x7   : > { %s37_s18 = ssub.s32 %s769_s15, %s898_s17  ;;  %162 = sbr.rel (%p611_p5) target bundleno = 21 (0x15), region = 20 }
   0x8   : > { %p39_p4 = scmp.eq.s32.totalorder %s37_s18, 0 }
   0xa   : > { %s831_s20 = scalar_select %p39_p4, %s761_s13, %s41_s19  }
   0xe   : > { %165 = sbr.rel (!%p50_p3) target bundleno = 21 (0x15), region = 24  ;;  %s167_s21 = sand.u32 (%p50_p3), 1, %s761_s13  }
   0xf   : > { %s613_s22 = sshll.u32 (%p50_p3), %s769_s15, 2  ;;  %s612_s23 = sshll.u32 (%p50_p3), %s167_s21, 4 }
  0x10   : > { %s174_s26 = scalar_lea.vmem (%p50_p3), %s889_s0, %s613_s22  ;;  %s169_s27 = scalar_lea.vmem (%p50_p3), [#allocation3], %s612_s23 }
  0x11   : > { %v190_v0 = vld [vmem:[%s174_s26] sm:$0xf] (%p50_p3)  ;;  %v192_v1 = vld [vmem:[%s174_s26 + $0xc] sm:$0xf] (%p50_p3)  ;;  %v194_v2 = vld [vmem:[%s174_s26 + $0x18] sm:$0xf] (%p50_p3) }
  0x12   : > { %191 = vst [vmem:[%s169_s27] sm:$0xf] (%p50_p3), %v190_v0  ;;  %193 = vst [vmem:[%s169_s27 + $0x4] sm:$0xf] (%p50_p3), %v192_v1  ;;  %v196_v3 = vld [vmem:[%s174_s26 + $0x24] sm:$0xf] (%p50_p3) }
  0x13   : > { %195 = vst [vmem:[%s169_s27 + $0x8] sm:$0xf] (%p50_p3), %v194_v2  ;;  %197 = vst [vmem:[%s169_s27 + $0xc] sm:$0xf] (%p50_p3), %v196_v3 }
  0x15 PF: > { %p614_p6 = scmp.ge.s32.totalorder %s773_s16, 1  ;;  %p239_p7 = scmp.lt.s32.totalorder %s773_s16, 4 }
  0x17   : > { %p240_p8 = pnand %p614_p6, %p239_p7 }
  0x18   : > { %s246_s28 = sand.u32 (!%p240_p8), 1, %s757_s12   ;;  %s616_s29 = sshll.u32 (!%p240_p8), %s765_s14, 4 }
  0x19   : > { %243 = sbr.rel (%p240_p8) target bundleno = 304 (0x130), region = 69  ;;  %s843_s30 = sshll.u32 (!%p240_p8), %s246_s28, 4 }
  0x1a   : > { %p285_p9 = scmp.lt.s32.totalorder (!%p240_p8), %s616_s29, 47  ;;  %s248_s8 = scalar_lea.vmem (!%p240_p8), [#allocation3], %s843_s30 }
  0x1b   : > { %p618_p10 = scmp.ne.s32.totalorder (!%p240_p8), %s765_s14, 0 }
  0x20   : > { %s900_s29 = smov (!%p285_p9, %s616_s29), 47  ;;  %309 = sbr.rel (%p618_p10) target bundleno = 39 (0x27), region = 77 }
  0x21   : > { %s617_s4 = sshll.u32 %s900_s29, 2  ;;  %v775_v4 = vmov (!%p618_p10), 0.0  }
  0x22   : > { %s848_s7 = scalar_lea.vmem %s890_s1, %s617_s4  ;;  %310 = vst [vmem:[#allocation2] sm:$0xff] (!%p618_p10), %v775_v4  ;;  %311 = vst [vmem:[#allocation2 + $0x8] sm:$0xff] (!%p618_p10), %v775_v4 }
  0x23   : > { %312 = vst [vmem:[#allocation2 + $0x10] sm:$0xff] (!%p618_p10), %v775_v4  ;;  %313 = vst [vmem:[#allocation2 + $0x18] sm:$0xff] (!%p618_p10), %v775_v4 }
  0x27 PF: > { %v725_v5 = vld [vmem:[%s848_s7] sm:$0xff]   ;;  %v726_v6 = vld [vmem:[%s848_s7 + $0x8] sm:$0xff]   ;;  %v727_v7 = vld [vmem:[%s848_s7 + $0x10] sm:$0xff]   ;;  %p629_p11 = scmp.ne.s32.totalorder %s765_s14, 2 }
  0x28   : > { %664 = vmatprep.subr.bf16.mxu0 %v725_v5  ;;  %v728_v8 = vld [vmem:[%s848_s7 + $0x18] sm:$0xff]   ;;  %v733_v9 = vld [vmem:[%s248_s8] sm:$0xff]   ;;  %v730_v11 = vld [vmem:[%s848_s7 + $0x28] sm:$0xff]  }
  0x29   : > { %665 = vmatpush3.bf16.msra.mxu0 %v725_v5  ;;  %680 = vmatprep.mubr.bf16.mxu0 %v733_v9  ;;  %v729_v10 = vld [vmem:[%s848_s7 + $0x20] sm:$0xff]   ;;  %v731_v12 = vld [vmem:[%s848_s7 + $0x30] sm:$0xff]   ;;  %v732_v13 = vld [vmem:[%s848_s7 + $0x38] sm:$0xff]  }
  0x2a   : > { %666 = vmatprep.subr.bf16.mxu0 %v726_v6  ;;  %v734_v14 = vld [vmem:[%s248_s8 + $0x8] sm:$0xff]   ;;  %v316_v15 = vld [vmem:[#allocation2 + $0x10] sm:$0xff]  ;;  %v314_v16 = vld [vmem:[#allocation2] sm:$0xff] }
  0x2b   : > { %v317_v18 = vld [vmem:[#allocation2 + $0x18] sm:$0xff]  ;;  %v315_v21 = vld [vmem:[#allocation2 + $0x8] sm:$0xff]  ;;  %v630_v29 = vld [vmem:[%s891_s2] ss:$0 sm:$0xff] (!%p629_p11) }
  0x2d   : > { %667 = vmatpush3.bf16.msra.mxu0 %v726_v6 }
  0x2e   : > { %668 = vmatprep.subr.bf16.mxu0 %v727_v7 }
  0x31   : > { %669 = vmatpush3.bf16.msra.mxu0 %v727_v7 }
  0x32   : > { %670 = vmatprep.subr.bf16.mxu0 %v728_v8 }
  0x35   : > { %671 = vmatpush3.bf16.msra.mxu0 %v728_v8 }
  0x36   : > { %672 = vmatprep.subr.bf16.mxu0 %v729_v10 }
  0x39   : > { %673 = vmatpush3.bf16.msra.mxu0 %v729_v10 }
  0x3a   : > { %674 = vmatprep.subr.bf16.mxu0 %v730_v11 }
  0x3d   : > { %675 = vmatpush3.bf16.msra.mxu0 %v730_v11 }
  0x3e   : > { %676 = vmatprep.subr.bf16.mxu0 %v731_v12 }
  0x41   : > { %677 = vmatpush3.bf16.msra.mxu0 %v731_v12 }
  0x42   : > { %678 = vmatprep.subr.bf16.mxu0 %v732_v13 }
  0x45   : > { %679 = vmatpush3.bf16.msra.mxu0 %v732_v13 }
  0x48   : > { %681 = vmatmul.mubr.bf16.vlgmr.msra.gmra.mrb[0].mxu0 %v734_v14 }
 0x11b   : > { %v682_v17 = vpop.f32.mrb[0].mxu0  ;;  %458 = sbr.rel (%p629_p11) target bundleno = 304 (0x130), region = 81 }
 0x11c   : > { %v449_v19 = vadd.f32 %v682_v17, %v316_v15  ;;  %v432_v20 = vpop.f32.mrb[1].mxu0 }
 0x11d   : > { %v447_v22 = vadd.f32 %v432_v20, %v314_v16  ;;  %v683_v23 = vpop.f32.mrb[2].mxu0 }
 0x11e   : > { %453 = vst [vmem:[#allocation2 + $0x10] sm:$0xff] %v449_v19  ;;  %v450_v24 = vadd.f32 %v683_v23, %v317_v18  ;;  %v435_v25 = vpop.f32.mrb[3].mxu0 }
 0x11f   : > { %451 = vst [vmem:[#allocation2] sm:$0xff] %v447_v22  ;;  %v448_v26 = vadd.f32 %v435_v25, %v315_v21 }
 0x120   : > { %454 = vst [vmem:[#allocation2 + $0x18] sm:$0xff] %v450_v24 }
 0x121   : > { %452 = vst [vmem:[#allocation2 + $0x8] sm:$0xff] %v448_v26 }
 0x125   : > { %v461_v32 = vld [vmem:[#allocation2 + $0x10] sm:$0xff] }
 0x126   : > { %v459_v27 = vld [vmem:[#allocation2] sm:$0xff]  ;;  %v472_v34 = vadd.f32 %v630_v29, %v461_v32 }
 0x127   : > { %v470_v30 = vadd.f32 %v630_v29, %v459_v27  ;;  %v462_v33 = vld [vmem:[#allocation2 + $0x18] sm:$0xff] }
 0x128   : > { %v460_v28 = vld [vmem:[#allocation2 + $0x8] sm:$0xff]  ;;  %v473_v35 = vadd.f32 %v630_v29, %v462_v33  ;;  %v476_v38 = vmax.f32 %v472_v34, 0.0 }
 0x129   : > { %v471_v31 = vadd.f32 %v630_v29, %v460_v28  ;;  %v474_v36 = vmax.f32 %v470_v30, 0.0 }
 0x12a   : > { %v477_v39 = vmax.f32 %v473_v35, 0.0 }
 0x12b   : > { %v475_v37 = vmax.f32 %v471_v31, 0.0 }
 0x12c   : > { %v651_v41 = vpack.c.bf16 %v477_v39, %v476_v38 }
 0x12d   : > { %v646_v40 = vpack.c.bf16 %v475_v37, %v474_v36 }
 0x12e   : > { %653 = vst [vmem:[%s892_s3 + $0x8] sm:$0xff] %v651_v41  }
 0x12f   : > { %647 = vst [vmem:[%s892_s3] sm:$0xff] %v646_v40  }
 0x130 PF: > { %s13_s16 = sadd.s32 1, %s773_s16   ;;  %s893_s12 = smov %s761_s13 }
 0x131   : > { %p10_p12 = scmp.ge.s32.totalorder %s13_s16, 5   ;;  %s894_s13 = smov %s831_s20 }
 0x132   : > { %s895_s14 = smov %s769_s15  ;;  %s896_s15 = smov %s898_s17 }
 0x133   :  { %12 = sbr.rel (!%p10_p12) target bundleno = 3 (0x3), region = 122 }

// kernel: unet_forward.47
= control target key start
LH: loop header
LB: loop body
LE: loop exit
PB: predicated region body
PF: predicated region fallthrough
CT: control target
= control target key end

     0   :  { %s92_s0 = inlined_call_operand.vmem [shape: bf16[16,256], index: 0, kind: input, shape index: {}]   ;;  %s93_s1 = inlined_call_operand.vmem [shape: bf16[16,256], index: 1, kind: input, shape index: {}]   ;;  %s94_s2 = inlined_call_operand.vmem [shape: bf16[16,256], index: 2, kind: input, shape index: {}]   ;;  %s95_s3 = inlined_call_operand.vmem [shape: bf16[16,256], index: 3, kind: input, shape index: {}]   ;;  %s96_s4 = inlined_call_operand.vmem [shape: bf16[16,256], index: 4, kind: output, shape index: {}]  }
   0x1   :  { %v17_v0 = vld [vmem:[%s92_s0] sm:$0xff]  ;;  %v18_v5 = vld [vmem:[%s92_s0 + $0x8] sm:$0xff] }
   0x2   :  { %v19_v1 = vld [vmem:[%s93_s1] sm:$0xff]  ;;  %v20_v6 = vld [vmem:[%s93_s1 + $0x8] sm:$0xff] }
   0x3   :  { %v23_v2 = vld [vmem:[%s94_s2] sm:$0xff]  ;;  %v21_v3 = vmax.bf16 %v19_v1, %v17_v0  ;;  %v22_v8 = vmax.bf16 %v20_v6, %v18_v5  ;;  %v24_v9 = vld [vmem:[%s94_s2 + $0x8] sm:$0xff] }
   0x4   :  { %v25_v4 = vld [vmem:[%s95_s3] sm:$0xff]  ;;  %v26_v10 = vld [vmem:[%s95_s3 + $0x8] sm:$0xff] }
   0x5   :  { %v27_v7 = vmax.bf16 %v25_v4, %v23_v2  ;;  %v28_v11 = vmax.bf16 %v26_v10, %v24_v9 }
   0x7   :  { %v29_v12 = vmax.bf16 %v27_v7, %v21_v3  ;;  %v30_v13 = vmax.bf16 %v28_v11, %v22_v8 }
   0x9   :  { %31 = vst [vmem:[%s96_s4] sm:$0xff] %v29_v12  ;;  %32 = vst [vmem:[%s96_s4 + $0x8] sm:$0xff] %v30_v13 }

// kernel: tile.143
= control target key start
LH: loop header
LB: loop body
LE: loop exit
PB: predicated region body
PF: predicated region fallthrough
CT: control target
= control target key end

     0   :  { %s22_s0 = inlined_call_operand.vmem [shape: f32[64], index: 0, kind: input, shape index: {}]   ;;  %s23_s1 = inlined_call_operand.vmem [shape: f32[8,64], index: 1, kind: output, shape index: {}]  }
   0x1   :  { %v4_v0 = vld [vmem:[%s22_s0] ss:$0 sm:$0xff] }
   0x2   :  { %5 = vst [vmem:[%s23_s1] sm:$0xff] %v4_v0 }

// kernel: tile.144
= control target key start
LH: loop header
LB: loop body
LE: loop exit
PB: predicated region body
PF: predicated region fallthrough
CT: control target
= control target key end

     0   :  { %vm3_vm0 = vcmask 523264   ;;  %s41_s8 = smov 64   ;;  %vm9_vm1 = vcmask 1048064   ;;  %s70_s0 = inlined_call_operand.vmem [shape: f32[8,64], index: 0, kind: input, shape index: {}]   ;;  %s71_s1 = inlined_call_operand.vmem [shape: f32[1,512], index: 1, kind: output, shape index: {}]  }
   0x1   :  { %v36_v0 = vld [vmem:[%s70_s0 + $0x1] ss:$2 sm:$0xf]   ;;  %v2_v1 = vld [vmem:[%s70_s0] ss:$2 sm:$0xf]  }
   0x2   :  { %7 = vrot.lane.b32.xlu0 %v36_v0, %s41_s8  ;;  %4 = vst.msk [vmem:[#allocation0] ss:$8 sm:$0xf] %vm3_vm0, %v2_v1  }
  0x74   :  { %v8_v2 = vpop.permute.xlu0 %7  }
  0x75   :  { %10 = vst.msk [vmem:[#allocation0] ss:$8 sm:$0xf] %vm9_vm1, %v8_v2  }
  0x7c   :  { %v14_v3 = vld [vmem:[#allocation0] sm:$0x1]  ;;  %v18_v4 = vld [vmem:[#allocation0 + $0x8] sm:$0x1]  ;;  %v23_v5 = vld [vmem:[#allocation0 + $0x10] sm:$0x1] }
  0x7d   :  { %16 = vst [vmem:[%s71_s1] sm:$0x1] %v14_v3  ;;  %37 = vst [vmem:[%s71_s1 + $0x1] sm:$0x1] %v18_v4  ;;  %v29_v6 = vld [vmem:[#allocation0 + $0x18] sm:$0x1] }
  0x7e   :  { %38 = vst [vmem:[%s71_s1 + $0x2] sm:$0x1] %v23_v5  ;;  %39 = vst [vmem:[%s71_s1 + $0x3] sm:$0x1] %v29_v6 }

// kernel: unet_forward.48
= control target key start
LH: loop header
LB: loop body
LE: loop exit
PB: predicated region body
PF: predicated region fallthrough
CT: control target
= control target key end

     0   :  { %s901_s18 = smov 0   ;;  %s903_s19 = smov 0   ;;  %s998_s0 = inlined_call_operand.vmem [shape: bf16[16,384], index: 0, kind: input, shape index: {}]   ;;  %s999_s1 = inlined_call_operand.vmem [shape: bf16[384,128], index: 1, kind: input, shape index: {}]   ;;  %s1000_s2 = inlined_call_operand.vmem [shape: f32[1,128], index: 2, kind: input, shape index: {}]   ;;  %s1001_s3 = inlined_call_operand.vmem [shape: f32[16,128], index: 3, kind: output, shape index: {0}]   ;;  %s1002_s4 = inlined_call_operand.vmem [shape: f32[1,1,128], index: 4, kind: output, shape index: {1}]   ;;  %s1003_s5 = inlined_call_operand.vmem [shape: f32[1,1,128], index: 5, kind: output, shape index: {2}]  }
   0x1   :  { %s905_s20 = smov 0   ;;  %s907_s21 = smov 0  }
   0x2   :  { %s909_s22 = smov 0  }
   0x3 LB: > { %s28_s23 = sadd.s32 1, %s862_s21  ;;  %p51_p1 = scmp.ne.s32.totalorder %s854_s19, %s850_s18  ;;  %s866_s22 = sphi %s909_s22, %s16_s22   ;;  %s862_s21 = sphi %s907_s21, %s1007_s21   ;;  %s858_s20 = sphi %s905_s20, %s1006_s20   ;;  %s854_s19 = sphi %s903_s19, %s1005_s19   ;;  %s850_s18 = sphi %s901_s18, %s1004_s18  }
   0x4   : > { %p29_p0 = scmp.ge.s32.totalorder %s28_s23, 3  ;;  %p52_p2 = scmp.eq.s32.totalorder %s866_s22, 0 }
   0x5   : > { %s44_s25 = sadd.s32 1, %s854_s19  ;;  %p722_p5 = scmp.ge.s32.totalorder %s866_s22, 3 }
   0x6   : > { %s1009_s23 = smov (%p29_p0, %s28_s23), 0  ;;  %p53_p3 = por %p52_p2, %p51_p1 }
   0x7   : > { %s40_s24 = ssub.s32 %s862_s21, %s1009_s23  ;;  %221 = sbr.rel (%p722_p5) target bundleno = 21 (0x15), region = 20 }
   0x8   : > { %p42_p4 = scmp.eq.s32.totalorder %s40_s24, 0 }
   0xa   : > { %s936_s26 = scalar_select %p42_p4, %s854_s19, %s44_s25  }
   0xe   : > { %224 = sbr.rel (!%p53_p3) target bundleno = 21 (0x15), region = 24  ;;  %s226_s27 = sand.u32 (%p53_p3), 1, %s854_s19  }
   0xf   : > { %s724_s28 = sshll.u32 (%p53_p3), %s862_s21, 2  ;;  %s723_s29 = sshll.u32 (%p53_p3), %s226_s27, 3 }
  0x10   : > { %s233_s7 = scalar_lea.vmem (%p53_p3), %s998_s0, %s724_s28  ;;  %s228_s8 = scalar_lea.vmem (%p53_p3), [#allocation3], %s723_s29 }
  0x11   : > { %v249_v0 = vld [vmem:[%s233_s7] sm:$0xf] (%p53_p3)  ;;  %v251_v1 = vld [vmem:[%s233_s7 + $0xc] sm:$0xf] (%p53_p3) }
  0x12   : > { %250 = vst [vmem:[%s228_s8] sm:$0xf] (%p53_p3), %v249_v0  ;;  %252 = vst [vmem:[%s228_s8 + $0x4] sm:$0xf] (%p53_p3), %v251_v1 }
  0x15 PF: > { %p725_p6 = scmp.ge.s32.totalorder %s866_s22, 1  ;;  %p290_p7 = scmp.lt.s32.totalorder %s866_s22, 4 }
  0x17   : > { %p291_p8 = pnand %p725_p6, %p290_p7 }
  0x18   : > { %s297_s9 = sand.u32 (!%p291_p8), 1, %s850_s18   ;;  %s727_s10 = sshll.u32 (!%p291_p8), %s858_s20, 4 }
  0x19   : > { %294 = sbr.rel (%p291_p8) target bundleno = 315 (0x13b), region = 69  ;;  %s948_s11 = sshll.u32 (!%p291_p8), %s297_s9, 3 }
  0x1a   : > { %p352_p9 = scmp.lt.s32.totalorder (!%p291_p8), %s727_s10, 47  ;;  %s299_s16 = scalar_lea.vmem (!%p291_p8), [#allocation3], %s948_s11 }
  0x1b   : > { %p729_p10 = scmp.ne.s32.totalorder (!%p291_p8), %s858_s20, 0 }
  0x20   : > { %s1011_s10 = smov (!%p352_p9, %s727_s10), 47  ;;  %388 = sbr.rel (%p729_p10) target bundleno = 39 (0x27), region = 77 }
  0x21   : > { %s728_s12 = sshll.u32 %s1011_s10, 2  ;;  %v868_v2 = vmov (!%p729_p10), 0.0  }
  0x22   : > { %s953_s15 = scalar_lea.vmem %s999_s1, %s728_s12  ;;  %389 = vst [vmem:[#allocation2] sm:$0xff] (!%p729_p10), %v868_v2  ;;  %390 = vst [vmem:[#allocation2 + $0x8] sm:$0xff] (!%p729_p10), %v868_v2 }
  0x27 PF: > { %v819_v3 = vld [vmem:[%s953_s15] sm:$0xff]   ;;  %v869_v4 = vmov 0.0   ;;  %v820_v5 = vld [vmem:[%s953_s15 + $0x8] sm:$0xff]   ;;  %vm870_vm0 = vmmov 0   ;;  %v821_v6 = vld [vmem:[%s953_s15 + $0x10] sm:$0xff]   ;;  %p739_p11 = scmp.ne.s32.totalorder %s858_s20, 2 }
  0x28   : > { %756 = vmatprep.subr.bf16.mxu0 %v869_v4  ;;  %772 = vmatprep.mubr.msk.bf16.mxu0 %vm870_vm0, %v869_v4  ;;  %v822_v7 = vld [vmem:[%s953_s15 + $0x18] sm:$0xff]   ;;  %v823_v8 = vld [vmem:[%s953_s15 + $0x20] sm:$0xff]   ;;  %v824_v9 = vld [vmem:[%s953_s15 + $0x28] sm:$0xff]  }
  0x29   : > { %757 = vmatpush3.bf16.msra.mxu0 %v819_v3  ;;  %v825_v10 = vld [vmem:[%s953_s15 + $0x30] sm:$0xff]   ;;  %v826_v11 = vld [vmem:[%s953_s15 + $0x38] sm:$0xff]   ;;  %v391_v13 = vld [vmem:[#allocation2] sm:$0xff] }
  0x2a   : > { %758 = vmatprep.subr.bf16.mxu0 %v869_v4  ;;  %v827_v12 = vld [vmem:[%s299_s16] sm:$0xff]   ;;  %v392_v15 = vld [vmem:[#allocation2 + $0x8] sm:$0xff]  ;;  %v740_v22 = vld [vmem:[%s1000_s2] ss:$0 sm:$0xff] (!%p739_p11) }
  0x2d   : > { %759 = vmatpush3.bf16.msra.mxu0 %v820_v5 }
  0x2e   : > { %760 = vmatprep.subr.bf16.mxu0 %v869_v4 }
  0x31   : > { %761 = vmatpush3.bf16.msra.mxu0 %v821_v6 }
  0x32   : > { %762 = vmatprep.subr.bf16.mxu0 %v869_v4 }
  0x35   : > { %763 = vmatpush3.bf16.msra.mxu0 %v822_v7 }
  0x36   : > { %764 = vmatprep.subr.bf16.mxu0 %v869_v4 }
  0x39   : > { %765 = vmatpush3.bf16.msra.mxu0 %v823_v8 }
  0x3a   : > { %766 = vmatprep.subr.bf16.mxu0 %v869_v4 }
  0x3d   : > { %767 = vmatpush3.bf16.msra.mxu0 %v824_v9 }
  0x3e   : > { %768 = vmatprep.subr.bf16.mxu0 %v869_v4 }
  0x41   : > { %769 = vmatpush3.bf16.msra.mxu0 %v825_v10 }
  0x42   : > { %770 = vmatprep.subr.bf16.mxu0 %v869_v4 }
  0x45   : > { %771 = vmatpush3.bf16.msra.mxu0 %v826_v11 }
  0x48   : > { %773 = vmatmul.mubr.bf16.vlgmr.msra.gmra.mrb[0].mxu0 %v827_v12 }
 0x11a   : > { %513 = sbr.rel (%p739_p11) target bundleno = 315 (0x13b), region = 81 }
 0x11b   : > { %v499_v14 = vpop.f32.mrb[0].mxu0 }
 0x11c   : > { %v506_v16 = vadd.f32 %v499_v14, %v391_v13  ;;  %v774_v17 = vpop.f32.mrb[1].mxu0 }
 0x11d   : > { %v502_v18 = vpop.f32.mrb[2].mxu0 }
 0x11e   : > { %508 = vst [vmem:[#allocation2] sm:$0xff] %v506_v16  ;;  %v507_v19 = vadd.f32 %v502_v18, %v392_v15  ;;  %v775_v20 = vpop.f32.mrb[3].mxu0 }
 0x120   : > { %509 = vst [vmem:[#allocation2 + $0x8] sm:$0xff] %v507_v19 }
 0x125   : > { %v514_v21 = vld [vmem:[#allocation2] sm:$0xff] }
 0x126   : > { %v523_v24 = vadd.f32 %v740_v22, %v514_v21 }
 0x127   : > { %v515_v23 = vld [vmem:[#allocation2 + $0x8] sm:$0xff] }
 0x128   : > { %v524_v25 = vadd.f32 %v740_v22, %v515_v23  ;;  %525 = vst [vmem:[%s1001_s3] sm:$0xff] %v523_v24  ;;  %v535_v27 = vmul.f32 %v523_v24, %v523_v24 }
 0x12a   : > { %526 = vst [vmem:[%s1001_s3 + $0x8] sm:$0xff] %v524_v25  ;;  %v527_v26 = vadd.f32 %v524_v25, %v523_v24  ;;  %v536_v28 = vmul.f32 %v524_v25, %v524_v25 }
 0x12c   : > { %v528_v29 = vrot.slane %v527_v26, 4  ;;  %v537_v30 = vadd.f32 %v536_v28, %v535_v27 }
 0x12e   : > { %v529_v31 = vadd.f32 %v528_v29, %v527_v26  ;;  %v538_v32 = vrot.slane %v537_v30, 4 }
 0x130   : > { %v530_v33 = vrot.slane %v529_v31, 2  ;;  %v539_v34 = vadd.f32 %v538_v32, %v537_v30 }
 0x132   : > { %v531_v35 = vadd.f32 %v530_v33, %v529_v31  ;;  %v540_v36 = vrot.slane %v539_v34, 2 }
 0x134   : > { %v532_v37 = vrot.slane %v531_v35, 1  ;;  %v541_v38 = vadd.f32 %v540_v36, %v539_v34 }
 0x136   : > { %v533_v39 = vadd.f32 %v532_v37, %v531_v35  ;;  %v542_v40 = vrot.slane %v541_v38, 1 }
 0x138   : > { %534 = vst [vmem:[%s1002_s4] sm:$0x1] %v533_v39  ;;  %v543_v41 = vadd.f32 %v542_v40, %v541_v38 }
 0x13a   : > { %544 = vst [vmem:[%s1003_s5] sm:$0x1] %v543_v41 }
 0x13b PF: > { %s16_s22 = sadd.s32 1, %s866_s22   ;;  %s1004_s18 = smov %s854_s19 }
 0x13c   : > { %p13_p12 = scmp.ge.s32.totalorder %s16_s22, 5   ;;  %s1005_s19 = smov %s936_s26 }
 0x13d   : > { %s1006_s20 = smov %s862_s21  ;;  %s1007_s21 = smov %s1009_s23 }
 0x13e   :  { %15 = sbr.rel (!%p13_p12) target bundleno = 3 (0x3), region = 146 }

// kernel: unet_forward.50
= control target key start
LH: loop header
LB: loop body
LE: loop exit
PB: predicated region body
PF: predicated region fallthrough
CT: control target
= control target key end

     0   :  { %s739_s12 = smov 0   ;;  %s741_s13 = smov 0   ;;  %s827_s0 = inlined_call_operand.vmem [shape: bf16[16,640], index: 0, kind: input, shape index: {}]   ;;  %s828_s1 = inlined_call_operand.vmem [shape: bf16[640,128], index: 1, kind: input, shape index: {}]   ;;  %s829_s2 = inlined_call_operand.vmem [shape: f32[1,128], index: 2, kind: input, shape index: {}]   ;;  %s830_s3 = inlined_call_operand.vmem [shape: bf16[16,128], index: 3, kind: output, shape index: {}]  }
   0x1   :  { %s743_s14 = smov 0   ;;  %s745_s15 = smov 0  }
   0x2   :  { %s747_s16 = smov 0  }
   0x3 LB: > { %s25_s17 = sadd.s32 1, %s710_s15  ;;  %p48_p1 = scmp.ne.s32.totalorder %s702_s13, %s698_s12  ;;  %s714_s16 = sphi %s747_s16, %s13_s16   ;;  %s710_s15 = sphi %s745_s15, %s834_s15   ;;  %s706_s14 = sphi %s743_s14, %s833_s14   ;;  %s702_s13 = sphi %s741_s13, %s832_s13   ;;  %s698_s12 = sphi %s739_s12, %s831_s12  }
   0x4   : > { %p26_p0 = scmp.ge.s32.totalorder %s25_s17, 5  ;;  %p49_p2 = scmp.eq.s32.totalorder %s714_s16, 0 }
   0x5   : > { %s41_s19 = sadd.s32 1, %s702_s13  ;;  %p563_p5 = scmp.ge.s32.totalorder %s714_s16, 5 }
   0x6   : > { %s836_s17 = smov (%p26_p0, %s25_s17), 0  ;;  %p50_p3 = por %p49_p2, %p48_p1 }
   0x7   : > { %s37_s18 = ssub.s32 %s710_s15, %s836_s17  ;;  %162 = sbr.rel (%p563_p5) target bundleno = 21 (0x15), region = 20 }
   0x8   : > { %p39_p4 = scmp.eq.s32.totalorder %s37_s18, 0 }
   0xa   : > { %s774_s20 = scalar_select %p39_p4, %s702_s13, %s41_s19  }
   0xe   : > { %165 = sbr.rel (!%p50_p3) target bundleno = 21 (0x15), region = 24  ;;  %s167_s21 = sand.u32 (%p50_p3), 1, %s702_s13  }
   0xf   : > { %s565_s22 = sshll.u32 (%p50_p3), %s710_s15, 2  ;;  %s564_s23 = sshll.u32 (%p50_p3), %s167_s21, 3 }
  0x10   : > { %s174_s26 = scalar_lea.vmem (%p50_p3), %s827_s0, %s565_s22  ;;  %s169_s27 = scalar_lea.vmem (%p50_p3), [#allocation3], %s564_s23 }
  0x11   : > { %v190_v0 = vld [vmem:[%s174_s26] sm:$0xf] (%p50_p3)  ;;  %v192_v1 = vld [vmem:[%s174_s26 + $0x14] sm:$0xf] (%p50_p3) }
  0x12   : > { %191 = vst [vmem:[%s169_s27] sm:$0xf] (%p50_p3), %v190_v0  ;;  %193 = vst [vmem:[%s169_s27 + $0x4] sm:$0xf] (%p50_p3), %v192_v1 }
  0x15 PF: > { %p566_p6 = scmp.ge.s32.totalorder %s714_s16, 1  ;;  %p231_p7 = scmp.lt.s32.totalorder %s714_s16, 6 }
  0x17   : > { %p232_p8 = pnand %p566_p6, %p231_p7 }
  0x18   : > { %s238_s28 = sand.u32 (!%p232_p8), 1, %s698_s12   ;;  %s568_s29 = sshll.u32 (!%p232_p8), %s706_s14, 4 }
  0x19   : > { %235 = sbr.rel (%p232_p8) target bundleno = 303 (0x12f), region = 69  ;;  %s786_s30 = sshll.u32 (!%p232_p8), %s238_s28, 3 }
  0x1a   : > { %p277_p9 = scmp.lt.s32.totalorder (!%p232_p8), %s568_s29, 79  ;;  %s240_s8 = scalar_lea.vmem (!%p232_p8), [#allocation3], %s786_s30 }
  0x1b   : > { %p570_p10 = scmp.ne.s32.totalorder (!%p232_p8), %s706_s14, 0 }
  0x20   : > { %s838_s29 = smov (!%p277_p9, %s568_s29), 79  ;;  %301 = sbr.rel (%p570_p10) target bundleno = 39 (0x27), region = 77 }
  0x21   : > { %s569_s4 = sshll.u32 %s838_s29, 2  ;;  %v716_v2 = vmov (!%p570_p10), 0.0  }
  0x22   : > { %s791_s7 = scalar_lea.vmem %s828_s1, %s569_s4  ;;  %302 = vst [vmem:[#allocation2] sm:$0xff] (!%p570_p10), %v716_v2  ;;  %303 = vst [vmem:[#allocation2 + $0x8] sm:$0xff] (!%p570_p10), %v716_v2 }
  0x27 PF: > { %v667_v3 = vld [vmem:[%s791_s7] sm:$0xff]   ;;  %v717_v4 = vmov 0.0   ;;  %v668_v5 = vld [vmem:[%s791_s7 + $0x8] sm:$0xff]   ;;  %vm718_vm0 = vmmov 0   ;;  %v669_v6 = vld [vmem:[%s791_s7 + $0x10] sm:$0xff]   ;;  %p580_p11 = scmp.ne.s32.totalorder %s706_s14, 4 }
  0x28   : > { %604 = vmatprep.subr.bf16.mxu0 %v717_v4  ;;  %620 = vmatprep.mubr.msk.bf16.mxu0 %vm718_vm0, %v717_v4  ;;  %v670_v7 = vld [vmem:[%s791_s7 + $0x18] sm:$0xff]   ;;  %v671_v8 = vld [vmem:[%s791_s7 + $0x20] sm:$0xff]   ;;  %v672_v9 = vld [vmem:[%s791_s7 + $0x28] sm:$0xff]  }
  0x29   : > { %605 = vmatpush3.bf16.msra.mxu0 %v667_v3  ;;  %v673_v10 = vld [vmem:[%s791_s7 + $0x30] sm:$0xff]   ;;  %v674_v11 = vld [vmem:[%s791_s7 + $0x38] sm:$0xff]   ;;  %v304_v13 = vld [vmem:[#allocation2] sm:$0xff] }
  0x2a   : > { %606 = vmatprep.subr.bf16.mxu0 %v717_v4  ;;  %v675_v12 = vld [vmem:[%s240_s8] sm:$0xff]   ;;  %v305_v15 = vld [vmem:[#allocation2 + $0x8] sm:$0xff]  ;;  %v581_v23 = vld [vmem:[%s829_s2] ss:$0 sm:$0xff] (!%p580_p11) }
  0x2d   : > { %607 = vmatpush3.bf16.msra.mxu0 %v668_v5 }
  0x2e   : > { %608 = vmatprep.subr.bf16.mxu0 %v717_v4 }
  0x31   : > { %609 = vmatpush3.bf16.msra.mxu0 %v669_v6 }
  0x32   : > { %610 = vmatprep.subr.bf16.mxu0 %v717_v4 }
  0x35   : > { %611 = vmatpush3.bf16.msra.mxu0 %v670_v7 }
  0x36   : > { %612 = vmatprep.subr.bf16.mxu0 %v717_v4 }
  0x39   : > { %613 = vmatpush3.bf16.msra.mxu0 %v671_v8 }
  0x3a   : > { %614 = vmatprep.subr.bf16.mxu0 %v717_v4 }
  0x3d   : > { %615 = vmatpush3.bf16.msra.mxu0 %v672_v9 }
  0x3e   : > { %616 = vmatprep.subr.bf16.mxu0 %v717_v4 }
  0x41   : > { %617 = vmatpush3.bf16.msra.mxu0 %v673_v10 }
  0x42   : > { %618 = vmatprep.subr.bf16.mxu0 %v717_v4 }
  0x45   : > { %619 = vmatpush3.bf16.msra.mxu0 %v674_v11 }
  0x48   : > { %621 = vmatmul.mubr.bf16.vlgmr.msra.gmra.mrb[0].mxu0 %v675_v12 }
 0x11a   : > { %426 = sbr.rel (%p580_p11) target bundleno = 303 (0x12f), region = 81 }
 0x11b   : > { %v412_v14 = vpop.f32.mrb[0].mxu0 }
 0x11c   : > { %v419_v16 = vadd.f32 %v412_v14, %v304_v13  ;;  %v622_v17 = vpop.f32.mrb[1].mxu0 }
 0x11d   : > { %v415_v18 = vpop.f32.mrb[2].mxu0 }
 0x11e   : > { %421 = vst [vmem:[#allocation2] sm:$0xff] %v419_v16  ;;  %v420_v19 = vadd.f32 %v415_v18, %v305_v15  ;;  %v623_v20 = vpop.f32.mrb[3].mxu0 }
 0x120   : > { %422 = vst [vmem:[#allocation2 + $0x8] sm:$0xff] %v420_v19 }
 0x125   : > { %v427_v21 = vld [vmem:[#allocation2] sm:$0xff] }
 0x126   : > { %v436_v24 = vadd.f32 %v581_v23, %v427_v21 }
 0x127   : > { %v428_v22 = vld [vmem:[#allocation2 + $0x8] sm:$0xff] }
 0x128   : > { %v437_v25 = vadd.f32 %v581_v23, %v428_v22  ;;  %v438_v26 = vmax.f32 %v436_v24, 0.0 }
 0x12a   : > { %v439_v27 = vmax.f32 %v437_v25, 0.0 }
 0x12c   : > { %v593_v28 = vpack.c.bf16 %v439_v27, %v438_v26 }
 0x12e   : > { %594 = vst [vmem:[%s830_s3] sm:$0xff] %v593_v28  }
 0x12f PF: > { %s13_s16 = sadd.s32 1, %s714_s16   ;;  %s831_s12 = smov %s702_s13 }
 0x130   : > { %p10_p12 = scmp.ge.s32.totalorder %s13_s16, 7   ;;  %s832_s13 = smov %s774_s20 }
 0x131   : > { %s833_s14 = smov %s710_s15  ;;  %s834_s15 = smov %s836_s17 }
 0x132   :  { %12 = sbr.rel (!%p10_p12) target bundleno = 3 (0x3), region = 122 }

// kernel: tile.153
= control target key start
LH: loop header
LB: loop body
LE: loop exit
PB: predicated region body
PF: predicated region fallthrough
CT: control target
= control target key end

     0   :  { %s22_s0 = inlined_call_operand.vmem [shape: f32[128], index: 0, kind: input, shape index: {}]   ;;  %s23_s1 = inlined_call_operand.vmem [shape: f32[2,128], index: 1, kind: output, shape index: {}]  }
   0x1   :  { %v4_v0 = vld [vmem:[%s22_s0] ss:$0 sm:$0xff] }
   0x2   :  { %5 = vst [vmem:[%s23_s1] sm:$0x3] %v4_v0 }

// kernel: unet_forward.51
= control target key start
LH: loop header
LB: loop body
LE: loop exit
PB: predicated region body
PF: predicated region fallthrough
CT: control target
= control target key end

     0   :  { %s95_s0 = inlined_call_operand.vmem [shape: bf16[16,128], index: 0, kind: input, shape index: {}]   ;;  %s96_s1 = inlined_call_operand.vmem [shape: bf16[16,128], index: 1, kind: input, shape index: {}]   ;;  %s97_s2 = inlined_call_operand.vmem [shape: bf16[16,128], index: 2, kind: input, shape index: {}]   ;;  %s98_s3 = inlined_call_operand.vmem [shape: bf16[16,128], index: 3, kind: input, shape index: {}]   ;;  %s99_s4 = inlined_call_operand.vmem [shape: bf16[16,128], index: 4, kind: output, shape index: {}]  }
   0x1   :  { %v17_v0 = vld [vmem:[%s95_s0] sm:$0xf]  ;;  %v18_v1 = vld [vmem:[%s95_s0 + $0x4] sm:$0xf] }
   0x2   :  { %v19_v2 = vld [vmem:[%s96_s1] sm:$0xf]  ;;  %v20_v3 = vld [vmem:[%s96_s1 + $0x4] sm:$0xf] }
   0x3   :  { %v21_v4 = vmax.bf16 %v19_v2, %v17_v0  ;;  %v23_v5 = vld [vmem:[%s97_s2] sm:$0xf]  ;;  %v24_v6 = vld [vmem:[%s97_s2 + $0x4] sm:$0xf]  ;;  %v22_v7 = vmax.bf16 %v20_v3, %v18_v1 }
   0x4   :  { %v25_v8 = vld [vmem:[%s98_s3] sm:$0xf]  ;;  %v26_v9 = vld [vmem:[%s98_s3 + $0x4] sm:$0xf] }
   0x5   :  { %v27_v10 = vmax.bf16 %v25_v8, %v23_v5  ;;  %v28_v11 = vmax.bf16 %v26_v9, %v24_v6 }
   0x7   :  { %v29_v12 = vmax.bf16 %v27_v10, %v21_v4  ;;  %v30_v13 = vmax.bf16 %v28_v11, %v22_v7 }
   0x9   :  { %v42_v14 = vcombine.low %v29_v12, %v30_v13 }
   0xb   :  { %41 = vst [vmem:[%s99_s4] sm:$0xff] %v42_v14  }

// kernel: unet_forward.53
= control target key start
LH: loop header
LB: loop body
LE: loop exit
PB: predicated region body
PF: predicated region fallthrough
CT: control target
= control target key end

     0   :  { %v20_v0 = vlaneseq  ;;  %s120_s1 = inlined_call_operand.vmem [shape: f32[1,256], index: 1, kind: input, shape index: {}]   ;;  %s121_s2 = inlined_call_operand.vmem [shape: f32[1,256], index: 2, kind: input, shape index: {}]   ;;  %s122_s0 = inlined_call_operand.vmem [shape: f32[16,256], index: 0, kind: input, shape index: {}]   ;;  %s123_s3 = inlined_call_operand.vmem [shape: bf16[16,256], index: 3, kind: output, shape index: {}]  }
   0x1   :  { %v18_v2 = vld [vmem:[%s120_s1] sm:$0x3]  ;;  %v15_v7 = vld [vmem:[%s122_s0 + $0x8] sm:$0xff]  ;;  %v16_v8 = vld [vmem:[%s122_s0 + $0x10] sm:$0xff] }
   0x2   :  { %v21_v1 = vshrl.u32 %v20_v0, 7  ;;  %v34_v3 = vld [vmem:[%s121_s2] sm:$0x3]  ;;  %v17_v9 = vld [vmem:[%s122_s0 + $0x18] sm:$0xff] }
   0x3   :  { %v14_v4 = vld [vmem:[%s122_s0] sm:$0xff] }
   0x4   :  { %v22_v5 = vsub.s32 0, %v21_v1  ;;  %v26_v6 = vsub.s32 1, %v21_v1 }
   0x6   :  { %v23_v10 = vrot.slane %v18_v2, %v22_v5  ;;  %v27_v11 = vrot.slane %v18_v2, %v26_v6  ;;  %v39_v12 = vrot.slane %v34_v3, %v22_v5  ;;  %v43_v13 = vrot.slane %v34_v3, %v26_v6 }
   0x8   :  { %v30_v14 = vmul.f32 %v23_v10, %v14_v4  ;;  %v31_v15 = vmul.f32 %v27_v11, %v15_v7  ;;  %v32_v16 = vmul.f32 %v23_v10, %v16_v8  ;;  %v33_v17 = vmul.f32 %v27_v11, %v17_v9 }
   0xa   :  { %v46_v18 = vadd.f32 %v39_v12, %v30_v14  ;;  %v47_v19 = vadd.f32 %v43_v13, %v31_v15  ;;  %v48_v20 = vadd.f32 %v39_v12, %v32_v16  ;;  %v49_v21 = vadd.f32 %v43_v13, %v33_v17 }
   0xc   :  { %v50_v22 = vmax.f32 %v46_v18, 0.0  ;;  %v51_v23 = vmax.f32 %v47_v19, 0.0  ;;  %v52_v24 = vmax.f32 %v48_v20, 0.0  ;;  %v53_v25 = vmax.f32 %v49_v21, 0.0 }
   0xe   :  { %v74_v26 = vpack.c.bf16 %v51_v23, %v50_v22  ;;  %v75_v27 = vpack.c.bf16 %v53_v25, %v52_v24 }
  0x10   :  { %66 = vst [vmem:[%s123_s3] sm:$0xff] %v74_v26  ;;  %67 = vst [vmem:[%s123_s3 + $0x8] sm:$0xff] %v75_v27 }

// kernel: unet_forward.52
= control target key start
LH: loop header
LB: loop body
LE: loop exit
PB: predicated region body
PF: predicated region fallthrough
CT: control target
= control target key end

     0   :  { %s901_s18 = smov 0   ;;  %s903_s19 = smov 0   ;;  %s998_s0 = inlined_call_operand.vmem [shape: bf16[16,640], index: 0, kind: input, shape index: {}]   ;;  %s999_s1 = inlined_call_operand.vmem [shape: bf16[640,128], index: 1, kind: input, shape index: {}]   ;;  %s1000_s2 = inlined_call_operand.vmem [shape: f32[1,128], index: 2, kind: input, shape index: {}]   ;;  %s1001_s3 = inlined_call_operand.vmem [shape: f32[16,128], index: 3, kind: output, shape index: {0}]   ;;  %s1002_s4 = inlined_call_operand.vmem [shape: f32[1,1,128], index: 4, kind: output, shape index: {1}]   ;;  %s1003_s5 = inlined_call_operand.vmem [shape: f32[1,1,128], index: 5, kind: output, shape index: {2}]  }
   0x1   :  { %s905_s20 = smov 0   ;;  %s907_s21 = smov 0  }
   0x2   :  { %s909_s22 = smov 0  }
   0x3 LB: > { %s28_s23 = sadd.s32 1, %s862_s21  ;;  %p51_p1 = scmp.ne.s32.totalorder %s854_s19, %s850_s18  ;;  %s866_s22 = sphi %s909_s22, %s16_s22   ;;  %s862_s21 = sphi %s907_s21, %s1007_s21   ;;  %s858_s20 = sphi %s905_s20, %s1006_s20   ;;  %s854_s19 = sphi %s903_s19, %s1005_s19   ;;  %s850_s18 = sphi %s901_s18, %s1004_s18  }
   0x4   : > { %p29_p0 = scmp.ge.s32.totalorder %s28_s23, 5  ;;  %p52_p2 = scmp.eq.s32.totalorder %s866_s22, 0 }
   0x5   : > { %s44_s25 = sadd.s32 1, %s854_s19  ;;  %p722_p5 = scmp.ge.s32.totalorder %s866_s22, 5 }
   0x6   : > { %s1009_s23 = smov (%p29_p0, %s28_s23), 0  ;;  %p53_p3 = por %p52_p2, %p51_p1 }
   0x7   : > { %s40_s24 = ssub.s32 %s862_s21, %s1009_s23  ;;  %221 = sbr.rel (%p722_p5) target bundleno = 21 (0x15), region = 20 }
   0x8   : > { %p42_p4 = scmp.eq.s32.totalorder %s40_s24, 0 }
   0xa   : > { %s936_s26 = scalar_select %p42_p4, %s854_s19, %s44_s25  }
   0xe   : > { %224 = sbr.rel (!%p53_p3) target bundleno = 21 (0x15), region = 24  ;;  %s226_s27 = sand.u32 (%p53_p3), 1, %s854_s19  }
   0xf   : > { %s724_s28 = sshll.u32 (%p53_p3), %s862_s21, 2  ;;  %s723_s29 = sshll.u32 (%p53_p3), %s226_s27, 3 }
  0x10   : > { %s233_s7 = scalar_lea.vmem (%p53_p3), %s998_s0, %s724_s28  ;;  %s228_s8 = scalar_lea.vmem (%p53_p3), [#allocation3], %s723_s29 }
  0x11   : > { %v249_v0 = vld [vmem:[%s233_s7] sm:$0xf] (%p53_p3)  ;;  %v251_v1 = vld [vmem:[%s233_s7 + $0x14] sm:$0xf] (%p53_p3) }
  0x12   : > { %250 = vst [vmem:[%s228_s8] sm:$0xf] (%p53_p3), %v249_v0  ;;  %252 = vst [vmem:[%s228_s8 + $0x4] sm:$0xf] (%p53_p3), %v251_v1 }
  0x15 PF: > { %p725_p6 = scmp.ge.s32.totalorder %s866_s22, 1  ;;  %p290_p7 = scmp.lt.s32.totalorder %s866_s22, 6 }
  0x17   : > { %p291_p8 = pnand %p725_p6, %p290_p7 }
  0x18   : > { %s297_s9 = sand.u32 (!%p291_p8), 1, %s850_s18   ;;  %s727_s10 = sshll.u32 (!%p291_p8), %s858_s20, 4 }
  0x19   : > { %294 = sbr.rel (%p291_p8) target bundleno = 315 (0x13b), region = 69  ;;  %s948_s11 = sshll.u32 (!%p291_p8), %s297_s9, 3 }
  0x1a   : > { %p352_p9 = scmp.lt.s32.totalorder (!%p291_p8), %s727_s10, 79  ;;  %s299_s16 = scalar_lea.vmem (!%p291_p8), [#allocation3], %s948_s11 }
  0x1b   : > { %p729_p10 = scmp.ne.s32.totalorder (!%p291_p8), %s858_s20, 0 }
  0x20   : > { %s1011_s10 = smov (!%p352_p9, %s727_s10), 79  ;;  %388 = sbr.rel (%p729_p10) target bundleno = 39 (0x27), region = 77 }
  0x21   : > { %s728_s12 = sshll.u32 %s1011_s10, 2  ;;  %v868_v2 = vmov (!%p729_p10), 0.0  }
  0x22   : > { %s953_s15 = scalar_lea.vmem %s999_s1, %s728_s12  ;;  %389 = vst [vmem:[#allocation2] sm:$0xff] (!%p729_p10), %v868_v2  ;;  %390 = vst [vmem:[#allocation2 + $0x8] sm:$0xff] (!%p729_p10), %v868_v2 }
  0x27 PF: > { %v819_v3 = vld [vmem:[%s953_s15] sm:$0xff]   ;;  %v869_v4 = vmov 0.0   ;;  %v820_v5 = vld [vmem:[%s953_s15 + $0x8] sm:$0xff]   ;;  %vm870_vm0 = vmmov 0   ;;  %v821_v6 = vld [vmem:[%s953_s15 + $0x10] sm:$0xff]   ;;  %p739_p11 = scmp.ne.s32.totalorder %s858_s20, 4 }
  0x28   : > { %756 = vmatprep.subr.bf16.mxu0 %v869_v4  ;;  %772 = vmatprep.mubr.msk.bf16.mxu0 %vm870_vm0, %v869_v4  ;;  %v822_v7 = vld [vmem:[%s953_s15 + $0x18] sm:$0xff]   ;;  %v823_v8 = vld [vmem:[%s953_s15 + $0x20] sm:$0xff]   ;;  %v824_v9 = vld [vmem:[%s953_s15 + $0x28] sm:$0xff]  }
  0x29   : > { %757 = vmatpush3.bf16.msra.mxu0 %v819_v3  ;;  %v825_v10 = vld [vmem:[%s953_s15 + $0x30] sm:$0xff]   ;;  %v826_v11 = vld [vmem:[%s953_s15 + $0x38] sm:$0xff]   ;;  %v391_v13 = vld [vmem:[#allocation2] sm:$0xff] }
  0x2a   : > { %758 = vmatprep.subr.bf16.mxu0 %v869_v4  ;;  %v827_v12 = vld [vmem:[%s299_s16] sm:$0xff]   ;;  %v392_v15 = vld [vmem:[#allocation2 + $0x8] sm:$0xff]  ;;  %v740_v22 = vld [vmem:[%s1000_s2] ss:$0 sm:$0xff] (!%p739_p11) }
  0x2d   : > { %759 = vmatpush3.bf16.msra.mxu0 %v820_v5 }
  0x2e   : > { %760 = vmatprep.subr.bf16.mxu0 %v869_v4 }
  0x31   : > { %761 = vmatpush3.bf16.msra.mxu0 %v821_v6 }
  0x32   : > { %762 = vmatprep.subr.bf16.mxu0 %v869_v4 }
  0x35   : > { %763 = vmatpush3.bf16.msra.mxu0 %v822_v7 }
  0x36   : > { %764 = vmatprep.subr.bf16.mxu0 %v869_v4 }
  0x39   : > { %765 = vmatpush3.bf16.msra.mxu0 %v823_v8 }
  0x3a   : > { %766 = vmatprep.subr.bf16.mxu0 %v869_v4 }
  0x3d   : > { %767 = vmatpush3.bf16.msra.mxu0 %v824_v9 }
  0x3e   : > { %768 = vmatprep.subr.bf16.mxu0 %v869_v4 }
  0x41   : > { %769 = vmatpush3.bf16.msra.mxu0 %v825_v10 }
  0x42   : > { %770 = vmatprep.subr.bf16.mxu0 %v869_v4 }
  0x45   : > { %771 = vmatpush3.bf16.msra.mxu0 %v826_v11 }
  0x48   : > { %773 = vmatmul.mubr.bf16.vlgmr.msra.gmra.mrb[0].mxu0 %v827_v12 }
 0x11a   : > { %513 = sbr.rel (%p739_p11) target bundleno = 315 (0x13b), region = 81 }
 0x11b   : > { %v499_v14 = vpop.f32.mrb[0].mxu0 }
 0x11c   : > { %v506_v16 = vadd.f32 %v499_v14, %v391_v13  ;;  %v774_v17 = vpop.f32.mrb[1].mxu0 }
 0x11d   : > { %v502_v18 = vpop.f32.mrb[2].mxu0 }
 0x11e   : > { %508 = vst [vmem:[#allocation2] sm:$0xff] %v506_v16  ;;  %v507_v19 = vadd.f32 %v502_v18, %v392_v15  ;;  %v775_v20 = vpop.f32.mrb[3].mxu0 }
 0x120   : > { %509 = vst [vmem:[#allocation2 + $0x8] sm:$0xff] %v507_v19 }
 0x125   : > { %v514_v21 = vld [vmem:[#allocation2] sm:$0xff] }
 0x126   : > { %v523_v24 = vadd.f32 %v740_v22, %v514_v21 }
 0x127   : > { %v515_v23 = vld [vmem:[#allocation2 + $0x8] sm:$0xff] }
 0x128   : > { %v524_v25 = vadd.f32 %v740_v22, %v515_v23  ;;  %525 = vst [vmem:[%s1001_s3] sm:$0xff] %v523_v24  ;;  %v535_v27 = vmul.f32 %v523_v24, %v523_v24 }
 0x12a   : > { %526 = vst [vmem:[%s1001_s3 + $0x8] sm:$0xff] %v524_v25  ;;  %v527_v26 = vadd.f32 %v524_v25, %v523_v24  ;;  %v536_v28 = vmul.f32 %v524_v25, %v524_v25 }
 0x12c   : > { %v528_v29 = vrot.slane %v527_v26, 4  ;;  %v537_v30 = vadd.f32 %v536_v28, %v535_v27 }
 0x12e   : > { %v529_v31 = vadd.f32 %v528_v29, %v527_v26  ;;  %v538_v32 = vrot.slane %v537_v30, 4 }
 0x130   : > { %v530_v33 = vrot.slane %v529_v31, 2  ;;  %v539_v34 = vadd.f32 %v538_v32, %v537_v30 }
 0x132   : > { %v531_v35 = vadd.f32 %v530_v33, %v529_v31  ;;  %v540_v36 = vrot.slane %v539_v34, 2 }
 0x134   : > { %v532_v37 = vrot.slane %v531_v35, 1  ;;  %v541_v38 = vadd.f32 %v540_v36, %v539_v34 }
 0x136   : > { %v533_v39 = vadd.f32 %v532_v37, %v531_v35  ;;  %v542_v40 = vrot.slane %v541_v38, 1 }
 0x138   : > { %534 = vst [vmem:[%s1002_s4] sm:$0x1] %v533_v39  ;;  %v543_v41 = vadd.f32 %v542_v40, %v541_v38 }
 0x13a   : > { %544 = vst [vmem:[%s1003_s5] sm:$0x1] %v543_v41 }
 0x13b PF: > { %s16_s22 = sadd.s32 1, %s866_s22   ;;  %s1004_s18 = smov %s854_s19 }
 0x13c   : > { %p13_p12 = scmp.ge.s32.totalorder %s16_s22, 7   ;;  %s1005_s19 = smov %s936_s26 }
 0x13d   : > { %s1006_s20 = smov %s862_s21  ;;  %s1007_s21 = smov %s1009_s23 }
 0x13e   :  { %15 = sbr.rel (!%p13_p12) target bundleno = 3 (0x3), region = 146 }

// kernel: tile.163
= control target key start
LH: loop header
LB: loop body
LE: loop exit
PB: predicated region body
PF: predicated region fallthrough
CT: control target
= control target key end

     0   :  { %s22_s0 = inlined_call_operand.vmem [shape: f32[64], index: 0, kind: input, shape index: {}]   ;;  %s23_s1 = inlined_call_operand.vmem [shape: f32[4,64], index: 1, kind: output, shape index: {}]  }
   0x1   :  { %v4_v0 = vld [vmem:[%s22_s0] ss:$0 sm:$0xff] }
   0x2   :  { %5 = vst [vmem:[%s23_s1] sm:$0xf] %v4_v0 }

// kernel: tile.164
= control target key start
LH: loop header
LB: loop body
LE: loop exit
PB: predicated region body
PF: predicated region fallthrough
CT: control target
= control target key end

     0   :  { %s6_s8 = smov 3  ;;  %vm8_vm0 = vcmask 523264   ;;  %s30_s9 = smov 64   ;;  %vm15_vm1 = vcmask 1048064   ;;  %s50_s0 = inlined_call_operand.vmem [shape: f32[4,64], index: 0, kind: input, shape index: {}]   ;;  %s51_s1 = inlined_call_operand.vmem [shape: f32[1,256], index: 1, kind: output, shape index: {}]  }
   0x1   :  { %v4_v0 = vld [vmem:[%s50_s0] sm:$0xf]  ;;  %s11_s0 = smov 3 }
   0x2   :  { %5 = vst [vmem:[#allocation1] sm:$0xf] %v4_v0 }
   0x9   :  { %v12_v1 = vld [vmem:[#allocation1 + $0x1] ss:$2 sm:%s11_s0]   ;;  %v7_v2 = vld [vmem:[#allocation1] ss:$2 sm:%s6_s8]  }
   0xa   :  { %13 = vrot.lane.b32.xlu0 %v12_v1, %s30_s9  ;;  %9 = vst.msk [vmem:[#allocation0] ss:$8 sm:$0x3] %vm8_vm0, %v7_v2  }
  0x7c   :  { %v14_v3 = vpop.permute.xlu0 %13  }
  0x7d   :  { %16 = vst.msk [vmem:[#allocation0] ss:$8 sm:$0x3] %vm15_vm1, %v14_v3  }
  0x84   :  { %v20_v4 = vld [vmem:[#allocation0] sm:$0x1]  ;;  %v24_v5 = vld [vmem:[#allocation0 + $0x8] sm:$0x1] }
  0x85   :  { %22 = vst [vmem:[%s51_s1] sm:$0x1] %v20_v4  ;;  %28 = vst [vmem:[%s51_s1 + $0x1] sm:$0x1] %v24_v5 }

// kernel: unet_forward.54
= control target key start
LH: loop header
LB: loop body
LE: loop exit
PB: predicated region body
PF: predicated region fallthrough
CT: control target
= control target key end

     0   :  { %s739_s12 = smov 0   ;;  %s741_s13 = smov 0   ;;  %s827_s0 = inlined_call_operand.vmem [shape: bf16[16,1152], index: 0, kind: input, shape index: {}]   ;;  %s828_s1 = inlined_call_operand.vmem [shape: bf16[1152,128], index: 1, kind: input, shape index: {}]   ;;  %s829_s2 = inlined_call_operand.vmem [shape: f32[1,128], index: 2, kind: input, shape index: {}]   ;;  %s830_s3 = inlined_call_operand.vmem [shape: bf16[16,128], index: 3, kind: output, shape index: {}]  }
   0x1   :  { %s743_s14 = smov 0   ;;  %s745_s15 = smov 0  }
   0x2   :  { %s747_s16 = smov 0  }
   0x3 LB: > { %s25_s17 = sadd.s32 1, %s710_s15  ;;  %p48_p1 = scmp.ne.s32.totalorder %s702_s13, %s698_s12  ;;  %s714_s16 = sphi %s747_s16, %s13_s16   ;;  %s710_s15 = sphi %s745_s15, %s834_s15   ;;  %s706_s14 = sphi %s743_s14, %s833_s14   ;;  %s702_s13 = sphi %s741_s13, %s832_s13   ;;  %s698_s12 = sphi %s739_s12, %s831_s12  }
   0x4   : > { %p26_p0 = scmp.ge.s32.totalorder %s25_s17, 9  ;;  %p49_p2 = scmp.eq.s32.totalorder %s714_s16, 0 }
   0x5   : > { %s41_s19 = sadd.s32 1, %s702_s13  ;;  %p563_p5 = scmp.ge.s32.totalorder %s714_s16, 9 }
   0x6   : > { %s836_s17 = smov (%p26_p0, %s25_s17), 0  ;;  %p50_p3 = por %p49_p2, %p48_p1 }
   0x7   : > { %s37_s18 = ssub.s32 %s710_s15, %s836_s17  ;;  %162 = sbr.rel (%p563_p5) target bundleno = 21 (0x15), region = 20 }
   0x8   : > { %p39_p4 = scmp.eq.s32.totalorder %s37_s18, 0 }
   0xa   : > { %s774_s20 = scalar_select %p39_p4, %s702_s13, %s41_s19  }
   0xe   : > { %165 = sbr.rel (!%p50_p3) target bundleno = 21 (0x15), region = 24  ;;  %s167_s21 = sand.u32 (%p50_p3), 1, %s702_s13  }
   0xf   : > { %s565_s22 = sshll.u32 (%p50_p3), %s710_s15, 2  ;;  %s564_s23 = sshll.u32 (%p50_p3), %s167_s21, 3 }
  0x10   : > { %s174_s26 = scalar_lea.vmem (%p50_p3), %s827_s0, %s565_s22  ;;  %s169_s27 = scalar_lea.vmem (%p50_p3), [#allocation3], %s564_s23 }
  0x11   : > { %v190_v0 = vld [vmem:[%s174_s26] sm:$0xf] (%p50_p3)  ;;  %v192_v1 = vld [vmem:[%s174_s26 + $0x24] sm:$0xf] (%p50_p3) }
  0x12   : > { %191 = vst [vmem:[%s169_s27] sm:$0xf] (%p50_p3), %v190_v0  ;;  %193 = vst [vmem:[%s169_s27 + $0x4] sm:$0xf] (%p50_p3), %v192_v1 }
  0x15 PF: > { %p566_p6 = scmp.ge.s32.totalorder %s714_s16, 1  ;;  %p231_p7 = scmp.lt.s32.totalorder %s714_s16, 10 }
  0x17   : > { %p232_p8 = pnand %p566_p6, %p231_p7 }
  0x18   : > { %s238_s28 = sand.u32 (!%p232_p8), 1, %s698_s12   ;;  %s568_s29 = sshll.u32 (!%p232_p8), %s706_s14, 4 }
  0x19   : > { %235 = sbr.rel (%p232_p8) target bundleno = 303 (0x12f), region = 69  ;;  %s786_s30 = sshll.u32 (!%p232_p8), %s238_s28, 3 }
  0x1a   : > { %p277_p9 = scmp.lt.s32.totalorder (!%p232_p8), %s568_s29, 143  ;;  %s240_s8 = scalar_lea.vmem (!%p232_p8), [#allocation3], %s786_s30 }
  0x1b   : > { %p570_p10 = scmp.ne.s32.totalorder (!%p232_p8), %s706_s14, 0 }
  0x20   : > { %s838_s29 = smov (!%p277_p9, %s568_s29), 143  ;;  %301 = sbr.rel (%p570_p10) target bundleno = 39 (0x27), region = 77 }
  0x21   : > { %s569_s4 = sshll.u32 %s838_s29, 2  ;;  %v716_v2 = vmov (!%p570_p10), 0.0  }
  0x22   : > { %s791_s7 = scalar_lea.vmem %s828_s1, %s569_s4  ;;  %302 = vst [vmem:[#allocation2] sm:$0xff] (!%p570_p10), %v716_v2  ;;  %303 = vst [vmem:[#allocation2 + $0x8] sm:$0xff] (!%p570_p10), %v716_v2 }
  0x27 PF: > { %v667_v3 = vld [vmem:[%s791_s7] sm:$0xff]   ;;  %v717_v4 = vmov 0.0   ;;  %v668_v5 = vld [vmem:[%s791_s7 + $0x8] sm:$0xff]   ;;  %vm718_vm0 = vmmov 0   ;;  %v669_v6 = vld [vmem:[%s791_s7 + $0x10] sm:$0xff]   ;;  %p580_p11 = scmp.ne.s32.totalorder %s706_s14, 8 }
  0x28   : > { %604 = vmatprep.subr.bf16.mxu0 %v717_v4  ;;  %620 = vmatprep.mubr.msk.bf16.mxu0 %vm718_vm0, %v717_v4  ;;  %v670_v7 = vld [vmem:[%s791_s7 + $0x18] sm:$0xff]   ;;  %v671_v8 = vld [vmem:[%s791_s7 + $0x20] sm:$0xff]   ;;  %v672_v9 = vld [vmem:[%s791_s7 + $0x28] sm:$0xff]  }
  0x29   : > { %605 = vmatpush3.bf16.msra.mxu0 %v667_v3  ;;  %v673_v10 = vld [vmem:[%s791_s7 + $0x30] sm:$0xff]   ;;  %v674_v11 = vld [vmem:[%s791_s7 + $0x38] sm:$0xff]   ;;  %v304_v13 = vld [vmem:[#allocation2] sm:$0xff] }
  0x2a   : > { %606 = vmatprep.subr.bf16.mxu0 %v717_v4  ;;  %v675_v12 = vld [vmem:[%s240_s8] sm:$0xff]   ;;  %v305_v15 = vld [vmem:[#allocation2 + $0x8] sm:$0xff]  ;;  %v581_v23 = vld [vmem:[%s829_s2] ss:$0 sm:$0xff] (!%p580_p11) }
  0x2d   : > { %607 = vmatpush3.bf16.msra.mxu0 %v668_v5 }
  0x2e   : > { %608 = vmatprep.subr.bf16.mxu0 %v717_v4 }
  0x31   : > { %609 = vmatpush3.bf16.msra.mxu0 %v669_v6 }
  0x32   : > { %610 = vmatprep.subr.bf16.mxu0 %v717_v4 }
  0x35   : > { %611 = vmatpush3.bf16.msra.mxu0 %v670_v7 }
  0x36   : > { %612 = vmatprep.subr.bf16.mxu0 %v717_v4 }
  0x39   : > { %613 = vmatpush3.bf16.msra.mxu0 %v671_v8 }
  0x3a   : > { %614 = vmatprep.subr.bf16.mxu0 %v717_v4 }
  0x3d   : > { %615 = vmatpush3.bf16.msra.mxu0 %v672_v9 }
  0x3e   : > { %616 = vmatprep.subr.bf16.mxu0 %v717_v4 }
  0x41   : > { %617 = vmatpush3.bf16.msra.mxu0 %v673_v10 }
  0x42   : > { %618 = vmatprep.subr.bf16.mxu0 %v717_v4 }
  0x45   : > { %619 = vmatpush3.bf16.msra.mxu0 %v674_v11 }
  0x48   : > { %621 = vmatmul.mubr.bf16.vlgmr.msra.gmra.mrb[0].mxu0 %v675_v12 }
 0x11a   : > { %426 = sbr.rel (%p580_p11) target bundleno = 303 (0x12f), region = 81 }
 0x11b   : > { %v412_v14 = vpop.f32.mrb[0].mxu0 }
 0x11c   : > { %v419_v16 = vadd.f32 %v412_v14, %v304_v13  ;;  %v622_v17 = vpop.f32.mrb[1].mxu0 }
 0x11d   : > { %v415_v18 = vpop.f32.mrb[2].mxu0 }
 0x11e   : > { %421 = vst [vmem:[#allocation2] sm:$0xff] %v419_v16  ;;  %v420_v19 = vadd.f32 %v415_v18, %v305_v15  ;;  %v623_v20 = vpop.f32.mrb[3].mxu0 }
 0x120   : > { %422 = vst [vmem:[#allocation2 + $0x8] sm:$0xff] %v420_v19 }
 0x125   : > { %v427_v21 = vld [vmem:[#allocation2] sm:$0xff] }
 0x126   : > { %v436_v24 = vadd.f32 %v581_v23, %v427_v21 }
 0x127   : > { %v428_v22 = vld [vmem:[#allocation2 + $0x8] sm:$0xff] }
 0x128   : > { %v437_v25 = vadd.f32 %v581_v23, %v428_v22  ;;  %v438_v26 = vmax.f32 %v436_v24, 0.0 }
 0x12a   : > { %v439_v27 = vmax.f32 %v437_v25, 0.0 }
 0x12c   : > { %v593_v28 = vpack.c.bf16 %v439_v27, %v438_v26 }
 0x12e   : > { %594 = vst [vmem:[%s830_s3] sm:$0xff] %v593_v28  }
 0x12f PF: > { %s13_s16 = sadd.s32 1, %s714_s16   ;;  %s831_s12 = smov %s702_s13 }
 0x130   : > { %p10_p12 = scmp.ge.s32.totalorder %s13_s16, 11   ;;  %s832_s13 = smov %s774_s20 }
 0x131   : > { %s833_s14 = smov %s710_s15  ;;  %s834_s15 = smov %s836_s17 }
 0x132   :  { %12 = sbr.rel (!%p10_p12) target bundleno = 3 (0x3), region = 122 }

// kernel: unet_forward.55
= control target key start
LH: loop header
LB: loop body
LE: loop exit
PB: predicated region body
PF: predicated region fallthrough
CT: control target
= control target key end

     0   :  { %v270_v1 = vmov 0   ;;  %v191_v18 = vlaneseq  ;;  %s351_s1 = inlined_call_operand.vmem [shape: bf16[128,256], index: 1, kind: input, shape index: {}]   ;;  %s352_s0 = inlined_call_operand.vmem [shape: bf16[16,128], index: 0, kind: input, shape index: {}]   ;;  %s353_s2 = inlined_call_operand.vmem [shape: f32[1,256], index: 2, kind: input, shape index: {}]   ;;  %s354_s3 = inlined_call_operand.vmem [shape: bf16[16,256], index: 3, kind: output, shape index: {}]  }
   0x1   :  { %v245_v0 = vld [vmem:[%s351_s1 + $0x4] ss:$8 sps:$4 sm:$0xff]   ;;  %163 = vmatprep.mubr.bf16.mxu0 %v270_v1  ;;  %v247_v2 = vld [vmem:[%s351_s1] ss:$8 sps:$4 sm:$0xff]   ;;  %v248_v3 = vld [vmem:[%s351_s1 + $0x14] ss:$8 sps:$4 sm:$0xff]  }
   0x2   :  { %131 = vmatprep.subr.bf16.mxu0 %v245_v0  ;;  %v250_v4 = vld [vmem:[%s351_s1 + $0x10] ss:$8 sps:$4 sm:$0xff]   ;;  %v251_v5 = vld [vmem:[%s351_s1 + $0x24] ss:$8 sps:$4 sm:$0xff]   ;;  %v253_v6 = vld [vmem:[%s351_s1 + $0x20] ss:$8 sps:$4 sm:$0xff]  }
   0x3   :  { %132 = vmatpush1.bf16.msra.mxu0 %v247_v2  ;;  %v254_v7 = vld [vmem:[%s351_s1 + $0x34] ss:$8 sps:$4 sm:$0xff]   ;;  %v256_v8 = vld [vmem:[%s351_s1 + $0x30] ss:$8 sps:$4 sm:$0xff]   ;;  %v257_v9 = vld [vmem:[%s351_s1 + $0x44] ss:$8 sps:$4 sm:$0xff]  }
   0x4   :  { %133 = vmatprep.subr.bf16.mxu0 %v248_v3  ;;  %v259_v10 = vld [vmem:[%s351_s1 + $0x40] ss:$8 sps:$4 sm:$0xff]   ;;  %v260_v11 = vld [vmem:[%s351_s1 + $0x54] ss:$8 sps:$4 sm:$0xff]   ;;  %v262_v12 = vld [vmem:[%s351_s1 + $0x50] ss:$8 sps:$4 sm:$0xff]  }
   0x5   :  { %v263_v13 = vld [vmem:[%s351_s1 + $0x64] ss:$8 sps:$4 sm:$0xff]   ;;  %v265_v14 = vld [vmem:[%s351_s1 + $0x60] ss:$8 sps:$4 sm:$0xff]   ;;  %v266_v15 = vld [vmem:[%s351_s1 + $0x74] ss:$8 sps:$4 sm:$0xff]  }
   0x6   :  { %v268_v16 = vld [vmem:[%s351_s1 + $0x70] ss:$8 sps:$4 sm:$0xff]   ;;  %v269_v17 = vld [vmem:[%s352_s0] sm:$0xff]   ;;  %v192_v19 = vshrl.u32 %v191_v18, 7 }
   0x7   :  { %134 = vmatpush1.bf16.msra.mxu0 %v250_v4  ;;  %v189_v21 = vld [vmem:[%s353_s2] sm:$0x3] }
   0x8   :  { %135 = vmatprep.subr.bf16.mxu0 %v251_v5  ;;  %v193_v20 = vsub.s32 0, %v192_v19  ;;  %v197_v22 = vsub.s32 1, %v192_v19 }
   0xa   :  { %v194_v23 = vrot.slane %v189_v21, %v193_v20  ;;  %v198_v24 = vrot.slane %v189_v21, %v197_v22 }
   0xb   :  { %136 = vmatpush1.bf16.msra.mxu0 %v253_v6 }
   0xc   :  { %137 = vmatprep.subr.bf16.mxu0 %v254_v7 }
   0xf   :  { %138 = vmatpush1.bf16.msra.mxu0 %v256_v8 }
  0x10   :  { %139 = vmatprep.subr.bf16.mxu0 %v257_v9 }
  0x13   :  { %140 = vmatpush1.bf16.msra.mxu0 %v259_v10 }
  0x14   :  { %141 = vmatprep.subr.bf16.mxu0 %v260_v11 }
  0x17   :  { %142 = vmatpush1.bf16.msra.mxu0 %v262_v12 }
  0x18   :  { %143 = vmatprep.subr.bf16.mxu0 %v263_v13 }
  0x1b   :  { %144 = vmatpush1.bf16.msra.mxu0 %v265_v14 }
  0x1c   :  { %145 = vmatprep.subr.bf16.mxu0 %v266_v15 }
  0x1f   :  { %146 = vmatpush1.bf16.msra.mxu0 %v268_v16 }
  0x22   :  { %164 = vmatmul.mubr.bf16.vlgmr.msra.gmra.mrb[0].mxu0 %v269_v17 }
  0xf5   :  { %v165_v25 = vpop.f32.mrb[0].mxu0 }
  0xf6   :  { %v201_v26 = vadd.f32 %v194_v23, %v165_v25  ;;  %v167_v27 = vpop.f32.mrb[1].mxu0 }
  0xf7   :  { %v202_v28 = vadd.f32 %v198_v24, %v167_v27  ;;  %v169_v29 = vpop.f32.mrb[2].mxu0 }
  0xf8   :  { %v203_v30 = vadd.f32 %v194_v23, %v169_v29  ;;  %v171_v31 = vpop.f32.mrb[3].mxu0 }
  0xf9   :  { %v242_v32 = vpack.c.bf16 %v202_v28, %v201_v26  ;;  %v204_v33 = vadd.f32 %v198_v24, %v171_v31 }
  0xfb   :  { %217 = vst [vmem:[%s354_s3] sm:$0xff] %v242_v32  ;;  %v243_v34 = vpack.c.bf16 %v204_v33, %v203_v30 }
  0xfd   :  { %218 = vst [vmem:[%s354_s3 + $0x8] sm:$0xff] %v243_v34 }

// kernel: tile.178
= control target key start
LH: loop header
LB: loop body
LE: loop exit
PB: predicated region body
PF: predicated region fallthrough
CT: control target
= control target key end

     0   :  { %s22_s0 = inlined_call_operand.vmem [shape: f32[32], index: 0, kind: input, shape index: {}]   ;;  %s23_s1 = inlined_call_operand.vmem [shape: f32[4,32], index: 1, kind: output, shape index: {}]  }
   0x1   :  { %v4_v0 = vld [vmem:[%s22_s0] ss:$0 sm:$0xff] }
   0x2   :  { %5 = vst [vmem:[%s23_s1] sm:$0xf] %v4_v0 }

// kernel: tile.179
= control target key start
LH: loop header
LB: loop body
LE: loop exit
PB: predicated region body
PF: predicated region fallthrough
CT: control target
= control target key end

     0   :  { %vm7_vm0 = vcmask 261120   ;;  %s37_s8 = smov 32   ;;  %s38_s9 = smov 64   ;;  %vm13_vm1 = vcmask 1048320   ;;  %vm19_vm2 = vcmask 785920   ;;  %vm25_vm3 = vcmask 523520   ;;  %s55_s0 = inlined_call_operand.vmem [shape: f32[4,32], index: 0, kind: input, shape index: {}]   ;;  %s56_s1 = inlined_call_operand.vmem [shape: f32[1,128], index: 1, kind: output, shape index: {}]  }
   0x1   :  { %v4_v0 = vld [vmem:[%s55_s0] sm:$0xf]  ;;  %s36_s0 = smov 96  }
   0x2   :  { %5 = vst [vmem:[#allocation1] sm:$0xf] %v4_v0 }
   0x9   :  { %v10_v1 = vld [vmem:[#allocation1 + $0x3] sm:$0x1]   ;;  %v22_v2 = vld [vmem:[#allocation1 + $0x1] sm:$0x1]   ;;  %v6_v3 = vld [vmem:[#allocation1] sm:$0x1]  }
   0xa   :  { %11 = vrot.lane.b32.xlu0 %v10_v1, %s36_s0  ;;  %23 = vrot.lane.b32.xlu1 %v22_v2, %s37_s8  ;;  %v16_v4 = vld [vmem:[#allocation1 + $0x2] sm:$0x1]   ;;  %8 = vst.msk [vmem:[#allocation0] sm:$0x1] %vm7_vm0, %v6_v3  }
   0xe   :  { %17 = vrot.lane.b32.xlu0 %v16_v4, %s38_s9 }
  0x7c   :  { %v12_v5 = vpop.permute.xlu0 %11   ;;  %v24_v6 = vpop.permute.xlu1 %23  }
  0x7d   :  { %14 = vst.msk [vmem:[#allocation0] sm:$0x1] %vm13_vm1, %v12_v5  }
  0x80   :  { %v18_v7 = vpop.permute.xlu0 %17  }
  0x81   :  { %20 = vst.msk [vmem:[#allocation0] sm:$0x1] %vm19_vm2, %v18_v7  }
  0x82   :  { %26 = vst.msk [vmem:[#allocation0] sm:$0x1] %vm25_vm3, %v24_v6  }
  0x89   :  { %v30_v8 = vld [vmem:[#allocation0] sm:$0x1] }
  0x8a   :  { %32 = vst [vmem:[%s56_s1] sm:$0x1] %v30_v8 }

// kernel: unet_forward.56
= control target key start
LH: loop header
LB: loop body
LE: loop exit
PB: predicated region body
PF: predicated region fallthrough
CT: control target
= control target key end

     0   :  { %s901_s18 = smov 0   ;;  %s903_s19 = smov 0   ;;  %s998_s0 = inlined_call_operand.vmem [shape: bf16[16,1152], index: 0, kind: input, shape index: {}]   ;;  %s999_s1 = inlined_call_operand.vmem [shape: bf16[1152,128], index: 1, kind: input, shape index: {}]   ;;  %s1000_s2 = inlined_call_operand.vmem [shape: f32[1,128], index: 2, kind: input, shape index: {}]   ;;  %s1001_s3 = inlined_call_operand.vmem [shape: f32[16,128], index: 3, kind: output, shape index: {0}]   ;;  %s1002_s4 = inlined_call_operand.vmem [shape: f32[1,1,128], index: 4, kind: output, shape index: {1}]   ;;  %s1003_s5 = inlined_call_operand.vmem [shape: f32[1,1,128], index: 5, kind: output, shape index: {2}]  }
   0x1   :  { %s905_s20 = smov 0   ;;  %s907_s21 = smov 0  }
   0x2   :  { %s909_s22 = smov 0  }
   0x3 LB: > { %s28_s23 = sadd.s32 1, %s862_s21  ;;  %p51_p1 = scmp.ne.s32.totalorder %s854_s19, %s850_s18  ;;  %s866_s22 = sphi %s909_s22, %s16_s22   ;;  %s862_s21 = sphi %s907_s21, %s1007_s21   ;;  %s858_s20 = sphi %s905_s20, %s1006_s20   ;;  %s854_s19 = sphi %s903_s19, %s1005_s19   ;;  %s850_s18 = sphi %s901_s18, %s1004_s18  }
   0x4   : > { %p29_p0 = scmp.ge.s32.totalorder %s28_s23, 9  ;;  %p52_p2 = scmp.eq.s32.totalorder %s866_s22, 0 }
   0x5   : > { %s44_s25 = sadd.s32 1, %s854_s19  ;;  %p722_p5 = scmp.ge.s32.totalorder %s866_s22, 9 }
   0x6   : > { %s1009_s23 = smov (%p29_p0, %s28_s23), 0  ;;  %p53_p3 = por %p52_p2, %p51_p1 }
   0x7   : > { %s40_s24 = ssub.s32 %s862_s21, %s1009_s23  ;;  %221 = sbr.rel (%p722_p5) target bundleno = 21 (0x15), region = 20 }
   0x8   : > { %p42_p4 = scmp.eq.s32.totalorder %s40_s24, 0 }
   0xa   : > { %s936_s26 = scalar_select %p42_p4, %s854_s19, %s44_s25  }
   0xe   : > { %224 = sbr.rel (!%p53_p3) target bundleno = 21 (0x15), region = 24  ;;  %s226_s27 = sand.u32 (%p53_p3), 1, %s854_s19  }
   0xf   : > { %s724_s28 = sshll.u32 (%p53_p3), %s862_s21, 2  ;;  %s723_s29 = sshll.u32 (%p53_p3), %s226_s27, 3 }
  0x10   : > { %s233_s7 = scalar_lea.vmem (%p53_p3), %s998_s0, %s724_s28  ;;  %s228_s8 = scalar_lea.vmem (%p53_p3), [#allocation3], %s723_s29 }
  0x11   : > { %v249_v0 = vld [vmem:[%s233_s7] sm:$0xf] (%p53_p3)  ;;  %v251_v1 = vld [vmem:[%s233_s7 + $0x24] sm:$0xf] (%p53_p3) }
  0x12   : > { %250 = vst [vmem:[%s228_s8] sm:$0xf] (%p53_p3), %v249_v0  ;;  %252 = vst [vmem:[%s228_s8 + $0x4] sm:$0xf] (%p53_p3), %v251_v1 }
  0x15 PF: > { %p725_p6 = scmp.ge.s32.totalorder %s866_s22, 1  ;;  %p290_p7 = scmp.lt.s32.totalorder %s866_s22, 10 }
  0x17   : > { %p291_p8 = pnand %p725_p6, %p290_p7 }
  0x18   : > { %s297_s9 = sand.u32 (!%p291_p8), 1, %s850_s18   ;;  %s727_s10 = sshll.u32 (!%p291_p8), %s858_s20, 4 }
  0x19   : > { %294 = sbr.rel (%p291_p8) target bundleno = 315 (0x13b), region = 69  ;;  %s948_s11 = sshll.u32 (!%p291_p8), %s297_s9, 3 }
  0x1a   : > { %p352_p9 = scmp.lt.s32.totalorder (!%p291_p8), %s727_s10, 143  ;;  %s299_s16 = scalar_lea.vmem (!%p291_p8), [#allocation3], %s948_s11 }
  0x1b   : > { %p729_p10 = scmp.ne.s32.totalorder (!%p291_p8), %s858_s20, 0 }
  0x20   : > { %s1011_s10 = smov (!%p352_p9, %s727_s10), 143  ;;  %388 = sbr.rel (%p729_p10) target bundleno = 39 (0x27), region = 77 }
  0x21   : > { %s728_s12 = sshll.u32 %s1011_s10, 2  ;;  %v868_v2 = vmov (!%p729_p10), 0.0  }
  0x22   : > { %s953_s15 = scalar_lea.vmem %s999_s1, %s728_s12  ;;  %389 = vst [vmem:[#allocation2] sm:$0xff] (!%p729_p10), %v868_v2  ;;  %390 = vst [vmem:[#allocation2 + $0x8] sm:$0xff] (!%p729_p10), %v868_v2 }
  0x27 PF: > { %v819_v3 = vld [vmem:[%s953_s15] sm:$0xff]   ;;  %v869_v4 = vmov 0.0   ;;  %v820_v5 = vld [vmem:[%s953_s15 + $0x8] sm:$0xff]   ;;  %vm870_vm0 = vmmov 0   ;;  %v821_v6 = vld [vmem:[%s953_s15 + $0x10] sm:$0xff]   ;;  %p739_p11 = scmp.ne.s32.totalorder %s858_s20, 8 }
  0x28   : > { %756 = vmatprep.subr.bf16.mxu0 %v869_v4  ;;  %772 = vmatprep.mubr.msk.bf16.mxu0 %vm870_vm0, %v869_v4  ;;  %v822_v7 = vld [vmem:[%s953_s15 + $0x18] sm:$0xff]   ;;  %v823_v8 = vld [vmem:[%s953_s15 + $0x20] sm:$0xff]   ;;  %v824_v9 = vld [vmem:[%s953_s15 + $0x28] sm:$0xff]  }
  0x29   : > { %757 = vmatpush3.bf16.msra.mxu0 %v819_v3  ;;  %v825_v10 = vld [vmem:[%s953_s15 + $0x30] sm:$0xff]   ;;  %v826_v11 = vld [vmem:[%s953_s15 + $0x38] sm:$0xff]   ;;  %v391_v13 = vld [vmem:[#allocation2] sm:$0xff] }
  0x2a   : > { %758 = vmatprep.subr.bf16.mxu0 %v869_v4  ;;  %v827_v12 = vld [vmem:[%s299_s16] sm:$0xff]   ;;  %v392_v15 = vld [vmem:[#allocation2 + $0x8] sm:$0xff]  ;;  %v740_v22 = vld [vmem:[%s1000_s2] ss:$0 sm:$0xff] (!%p739_p11) }
  0x2d   : > { %759 = vmatpush3.bf16.msra.mxu0 %v820_v5 }
  0x2e   : > { %760 = vmatprep.subr.bf16.mxu0 %v869_v4 }
  0x31   : > { %761 = vmatpush3.bf16.msra.mxu0 %v821_v6 }
  0x32   : > { %762 = vmatprep.subr.bf16.mxu0 %v869_v4 }
  0x35   : > { %763 = vmatpush3.bf16.msra.mxu0 %v822_v7 }
  0x36   : > { %764 = vmatprep.subr.bf16.mxu0 %v869_v4 }
  0x39   : > { %765 = vmatpush3.bf16.msra.mxu0 %v823_v8 }
  0x3a   : > { %766 = vmatprep.subr.bf16.mxu0 %v869_v4 }
  0x3d   : > { %767 = vmatpush3.bf16.msra.mxu0 %v824_v9 }
  0x3e   : > { %768 = vmatprep.subr.bf16.mxu0 %v869_v4 }
  0x41   : > { %769 = vmatpush3.bf16.msra.mxu0 %v825_v10 }
  0x42   : > { %770 = vmatprep.subr.bf16.mxu0 %v869_v4 }
  0x45   : > { %771 = vmatpush3.bf16.msra.mxu0 %v826_v11 }
  0x48   : > { %773 = vmatmul.mubr.bf16.vlgmr.msra.gmra.mrb[0].mxu0 %v827_v12 }
 0x11a   : > { %513 = sbr.rel (%p739_p11) target bundleno = 315 (0x13b), region = 81 }
 0x11b   : > { %v499_v14 = vpop.f32.mrb[0].mxu0 }
 0x11c   : > { %v506_v16 = vadd.f32 %v499_v14, %v391_v13  ;;  %v774_v17 = vpop.f32.mrb[1].mxu0 }
 0x11d   : > { %v502_v18 = vpop.f32.mrb[2].mxu0 }
 0x11e   : > { %508 = vst [vmem:[#allocation2] sm:$0xff] %v506_v16  ;;  %v507_v19 = vadd.f32 %v502_v18, %v392_v15  ;;  %v775_v20 = vpop.f32.mrb[3].mxu0 }
 0x120   : > { %509 = vst [vmem:[#allocation2 + $0x8] sm:$0xff] %v507_v19 }
 0x125   : > { %v514_v21 = vld [vmem:[#allocation2] sm:$0xff] }
 0x126   : > { %v523_v24 = vadd.f32 %v740_v22, %v514_v21 }
 0x127   : > { %v515_v23 = vld [vmem:[#allocation2 + $0x8] sm:$0xff] }
 0x128   : > { %v524_v25 = vadd.f32 %v740_v22, %v515_v23  ;;  %525 = vst [vmem:[%s1001_s3] sm:$0xff] %v523_v24  ;;  %v535_v27 = vmul.f32 %v523_v24, %v523_v24 }
 0x12a   : > { %526 = vst [vmem:[%s1001_s3 + $0x8] sm:$0xff] %v524_v25  ;;  %v527_v26 = vadd.f32 %v524_v25, %v523_v24  ;;  %v536_v28 = vmul.f32 %v524_v25, %v524_v25 }
 0x12c   : > { %v528_v29 = vrot.slane %v527_v26, 4  ;;  %v537_v30 = vadd.f32 %v536_v28, %v535_v27 }
 0x12e   : > { %v529_v31 = vadd.f32 %v528_v29, %v527_v26  ;;  %v538_v32 = vrot.slane %v537_v30, 4 }
 0x130   : > { %v530_v33 = vrot.slane %v529_v31, 2  ;;  %v539_v34 = vadd.f32 %v538_v32, %v537_v30 }
 0x132   : > { %v531_v35 = vadd.f32 %v530_v33, %v529_v31  ;;  %v540_v36 = vrot.slane %v539_v34, 2 }
 0x134   : > { %v532_v37 = vrot.slane %v531_v35, 1  ;;  %v541_v38 = vadd.f32 %v540_v36, %v539_v34 }
 0x136   : > { %v533_v39 = vadd.f32 %v532_v37, %v531_v35  ;;  %v542_v40 = vrot.slane %v541_v38, 1 }
 0x138   : > { %534 = vst [vmem:[%s1002_s4] sm:$0x1] %v533_v39  ;;  %v543_v41 = vadd.f32 %v542_v40, %v541_v38 }
 0x13a   : > { %544 = vst [vmem:[%s1003_s5] sm:$0x1] %v543_v41 }
 0x13b PF: > { %s16_s22 = sadd.s32 1, %s866_s22   ;;  %s1004_s18 = smov %s854_s19 }
 0x13c   : > { %p13_p12 = scmp.ge.s32.totalorder %s16_s22, 11   ;;  %s1005_s19 = smov %s936_s26 }
 0x13d   : > { %s1006_s20 = smov %s862_s21  ;;  %s1007_s21 = smov %s1009_s23 }
 0x13e   :  { %15 = sbr.rel (!%p13_p12) target bundleno = 3 (0x3), region = 146 }

// kernel: unet_forward.59
= control target key start
LH: loop header
LB: loop body
LE: loop exit
PB: predicated region body
PF: predicated region fallthrough
CT: control target
= control target key end

     0   :  { %v227_v0 = vmov 0.0   ;;  %vm228_vm0 = vmmov 0   ;;  %s282_s1 = inlined_call_operand.vmem [shape: bf16[128,128], index: 1, kind: input, shape index: {}]   ;;  %s283_s0 = inlined_call_operand.vmem [shape: bf16[16,128], index: 0, kind: input, shape index: {}]   ;;  %s284_s2 = inlined_call_operand.vmem [shape: f32[1,128], index: 2, kind: input, shape index: {}]   ;;  %s285_s3 = inlined_call_operand.vmem [shape: bf16[16,128], index: 3, kind: output, shape index: {}]  }
   0x1   :  { %196 = vmatprep.subr.bf16.mxu0 %v227_v0  ;;  %v218_v1 = vld [vmem:[%s282_s1] sm:$0xff]   ;;  %212 = vmatprep.mubr.msk.bf16.mxu0 %vm228_vm0, %v227_v0  ;;  %v219_v2 = vld [vmem:[%s282_s1 + $0x8] sm:$0xff]   ;;  %v220_v3 = vld [vmem:[%s282_s1 + $0x10] sm:$0xff]  }
   0x2   :  { %197 = vmatpush3.bf16.msra.mxu0 %v218_v1  ;;  %v221_v4 = vld [vmem:[%s282_s1 + $0x18] sm:$0xff]   ;;  %v222_v5 = vld [vmem:[%s282_s1 + $0x20] sm:$0xff]   ;;  %v223_v6 = vld [vmem:[%s282_s1 + $0x28] sm:$0xff]  }
   0x3   :  { %198 = vmatprep.subr.bf16.mxu0 %v227_v0  ;;  %v224_v7 = vld [vmem:[%s282_s1 + $0x30] sm:$0xff]   ;;  %v225_v8 = vld [vmem:[%s282_s1 + $0x38] sm:$0xff]   ;;  %v226_v9 = vld [vmem:[%s283_s0] sm:$0xff]  }
   0x4   :  { %v177_v11 = vld [vmem:[%s284_s2] ss:$0 sm:$0xff] }
   0x6   :  { %199 = vmatpush3.bf16.msra.mxu0 %v219_v2 }
   0x7   :  { %200 = vmatprep.subr.bf16.mxu0 %v227_v0 }
   0xa   :  { %201 = vmatpush3.bf16.msra.mxu0 %v220_v3 }
   0xb   :  { %202 = vmatprep.subr.bf16.mxu0 %v227_v0 }
   0xe   :  { %203 = vmatpush3.bf16.msra.mxu0 %v221_v4 }
   0xf   :  { %204 = vmatprep.subr.bf16.mxu0 %v227_v0 }
  0x12   :  { %205 = vmatpush3.bf16.msra.mxu0 %v222_v5 }
  0x13   :  { %206 = vmatprep.subr.bf16.mxu0 %v227_v0 }
  0x16   :  { %207 = vmatpush3.bf16.msra.mxu0 %v223_v6 }
  0x17   :  { %208 = vmatprep.subr.bf16.mxu0 %v227_v0 }
  0x1a   :  { %209 = vmatpush3.bf16.msra.mxu0 %v224_v7 }
  0x1b   :  { %210 = vmatprep.subr.bf16.mxu0 %v227_v0 }
  0x1e   :  { %211 = vmatpush3.bf16.msra.mxu0 %v225_v8 }
  0x21   :  { %213 = vmatmul.mubr.bf16.vlgmr.msra.gmra.mrb[0].mxu0 %v226_v9 }
  0xf4   :  { %v129_v10 = vpop.f32.mrb[0].mxu0 }
  0xf5   :  { %v214_v12 = vpop.f32.mrb[1].mxu0  ;;  %v152_v14 = vadd.f32 %v177_v11, %v129_v10 }
  0xf6   :  { %v132_v13 = vpop.f32.mrb[2].mxu0 }
  0xf7   :  { %v153_v15 = vadd.f32 %v177_v11, %v132_v13  ;;  %v215_v16 = vpop.f32.mrb[3].mxu0 }
  0xf9   :  { %v185_v17 = vpack.c.bf16 %v153_v15, %v152_v14 }
  0xfb   :  { %186 = vst [vmem:[%s285_s3] sm:$0xff] %v185_v17  }

// kernel: tile.193
= control target key start
LH: loop header
LB: loop body
LE: loop exit
PB: predicated region body
PF: predicated region fallthrough
CT: control target
= control target key end

     0   :  { %s22_s0 = inlined_call_operand.vmem [shape: f32[16], index: 0, kind: input, shape index: {}]   ;;  %s23_s1 = inlined_call_operand.vmem [shape: f32[4,16], index: 1, kind: output, shape index: {}]  }
   0x1   :  { %v4_v0 = vld [vmem:[%s22_s0] ss:$0 sm:$0xff] }
   0x2   :  { %5 = vst [vmem:[%s23_s1] sm:$0xf] %v4_v0 }

// kernel: tile.194
= control target key start
LH: loop header
LB: loop body
LE: loop exit
PB: predicated region body
PF: predicated region fallthrough
CT: control target
= control target key end

     0   :  { %vm7_vm0 = vcmask 130048   ;;  %s37_s8 = smov 16   ;;  %s38_s9 = smov 32   ;;  %vm13_vm1 = vcmask 523648   ;;  %vm19_vm2 = vcmask 392448   ;;  %vm25_vm3 = vcmask 261248   ;;  %s55_s0 = inlined_call_operand.vmem [shape: f32[4,16], index: 0, kind: input, shape index: {}]   ;;  %s56_s1 = inlined_call_operand.vmem [shape: f32[1,64], index: 1, kind: output, shape index: {}]  }
   0x1   :  { %v4_v0 = vld [vmem:[%s55_s0] sm:$0xf]  ;;  %s36_s0 = smov 48  }
   0x2   :  { %5 = vst [vmem:[#allocation1] sm:$0xf] %v4_v0 }
   0x9   :  { %v10_v1 = vld [vmem:[#allocation1 + $0x3] sm:$0x1]   ;;  %v22_v2 = vld [vmem:[#allocation1 + $0x1] sm:$0x1]   ;;  %v6_v3 = vld [vmem:[#allocation1] sm:$0x1]  }
   0xa   :  { %11 = vrot.lane.b32.xlu0 %v10_v1, %s36_s0  ;;  %23 = vrot.lane.b32.xlu1 %v22_v2, %s37_s8  ;;  %v16_v4 = vld [vmem:[#allocation1 + $0x2] sm:$0x1]   ;;  %8 = vst.msk [vmem:[#allocation0] sm:$0x1] %vm7_vm0, %v6_v3  }
   0xe   :  { %17 = vrot.lane.b32.xlu0 %v16_v4, %s38_s9 }
  0x7c   :  { %v12_v5 = vpop.permute.xlu0 %11   ;;  %v24_v6 = vpop.permute.xlu1 %23  }
  0x7d   :  { %14 = vst.msk [vmem:[#allocation0] sm:$0x1] %vm13_vm1, %v12_v5  }
  0x80   :  { %v18_v7 = vpop.permute.xlu0 %17  }
  0x81   :  { %20 = vst.msk [vmem:[#allocation0] sm:$0x1] %vm19_vm2, %v18_v7  }
  0x82   :  { %26 = vst.msk [vmem:[#allocation0] sm:$0x1] %vm25_vm3, %v24_v6  }
  0x89   :  { %v30_v8 = vld [vmem:[#allocation0] sm:$0x1] }
  0x8a   :  { %32 = vst [vmem:[%s56_s1] sm:$0x1] %v30_v8 }

// kernel: unet_forward.60
= control target key start
LH: loop header
LB: loop body
LE: loop exit
PB: predicated region body
PF: predicated region fallthrough
CT: control target
= control target key end

     0   :  { %s944_s18 = smov 0   ;;  %s946_s19 = smov 0   ;;  %s1049_s0 = inlined_call_operand.vmem [shape: bf16[32,640], index: 0, kind: input, shape index: {}]   ;;  %s1050_s1 = inlined_call_operand.vmem [shape: bf16[640,128], index: 1, kind: input, shape index: {}]   ;;  %s1051_s2 = inlined_call_operand.vmem [shape: f32[1,128], index: 2, kind: input, shape index: {}]   ;;  %s1052_s3 = inlined_call_operand.vmem [shape: f32[32,128], index: 3, kind: output, shape index: {0}]   ;;  %s1053_s4 = inlined_call_operand.vmem [shape: f32[1,1,128], index: 4, kind: output, shape index: {1}]   ;;  %s1054_s5 = inlined_call_operand.vmem [shape: f32[1,1,128], index: 5, kind: output, shape index: {2}]  }
   0x1   :  { %s948_s20 = smov 0   ;;  %s950_s21 = smov 0  }
   0x2   :  { %s952_s22 = smov 0  }
   0x3 LB: > { %s28_s23 = sadd.s32 1, %s907_s21  ;;  %p51_p1 = scmp.ne.s32.totalorder %s899_s19, %s895_s18  ;;  %s911_s22 = sphi %s952_s22, %s16_s22   ;;  %s907_s21 = sphi %s950_s21, %s1058_s21   ;;  %s903_s20 = sphi %s948_s20, %s1057_s20   ;;  %s899_s19 = sphi %s946_s19, %s1056_s19   ;;  %s895_s18 = sphi %s944_s18, %s1055_s18  }
   0x4   : > { %p29_p0 = scmp.ge.s32.totalorder %s28_s23, 5  ;;  %p52_p2 = scmp.eq.s32.totalorder %s911_s22, 0 }
   0x5   : > { %s44_s25 = sadd.s32 1, %s899_s19  ;;  %p766_p5 = scmp.ge.s32.totalorder %s911_s22, 5 }
   0x6   : > { %s1060_s23 = smov (%p29_p0, %s28_s23), 0  ;;  %p53_p3 = por %p52_p2, %p51_p1 }
   0x7   : > { %s40_s24 = ssub.s32 %s907_s21, %s1060_s23  ;;  %221 = sbr.rel (%p766_p5) target bundleno = 21 (0x15), region = 20 }
   0x8   : > { %p42_p4 = scmp.eq.s32.totalorder %s40_s24, 0 }
   0xa   : > { %s979_s26 = scalar_select %p42_p4, %s899_s19, %s44_s25  }
   0xe   : > { %224 = sbr.rel (!%p53_p3) target bundleno = 21 (0x15), region = 24  ;;  %s226_s27 = sand.u32 (%p53_p3), 1, %s899_s19  }
   0xf   : > { %s768_s28 = sshll.u32 (%p53_p3), %s907_s21, 2  ;;  %s767_s29 = sshll.u32 (%p53_p3), %s226_s27, 4 }
  0x10   : > { %s233_s7 = scalar_lea.vmem (%p53_p3), %s1049_s0, %s768_s28  ;;  %s228_s8 = scalar_lea.vmem (%p53_p3), [#allocation3], %s767_s29 }
  0x11   : > { %v249_v0 = vld [vmem:[%s233_s7] sm:$0xf] (%p53_p3)  ;;  %v251_v1 = vld [vmem:[%s233_s7 + $0x14] sm:$0xf] (%p53_p3)  ;;  %v253_v2 = vld [vmem:[%s233_s7 + $0x28] sm:$0xf] (%p53_p3) }
  0x12   : > { %250 = vst [vmem:[%s228_s8] sm:$0xf] (%p53_p3), %v249_v0  ;;  %252 = vst [vmem:[%s228_s8 + $0x4] sm:$0xf] (%p53_p3), %v251_v1  ;;  %v255_v3 = vld [vmem:[%s233_s7 + $0x3c] sm:$0xf] (%p53_p3) }
  0x13   : > { %254 = vst [vmem:[%s228_s8 + $0x8] sm:$0xf] (%p53_p3), %v253_v2  ;;  %256 = vst [vmem:[%s228_s8 + $0xc] sm:$0xf] (%p53_p3), %v255_v3 }
  0x15 PF: > { %p769_p6 = scmp.ge.s32.totalorder %s911_s22, 1  ;;  %p298_p7 = scmp.lt.s32.totalorder %s911_s22, 6 }
  0x17   : > { %p299_p8 = pnand %p769_p6, %p298_p7 }
  0x18   : > { %s305_s9 = sand.u32 (!%p299_p8), 1, %s895_s18   ;;  %s771_s10 = sshll.u32 (!%p299_p8), %s903_s20, 4 }
  0x19   : > { %302 = sbr.rel (%p299_p8) target bundleno = 320 (0x140), region = 69  ;;  %s991_s11 = sshll.u32 (!%p299_p8), %s305_s9, 4 }
  0x1a   : > { %p360_p9 = scmp.lt.s32.totalorder (!%p299_p8), %s771_s10, 79  ;;  %s307_s16 = scalar_lea.vmem (!%p299_p8), [#allocation3], %s991_s11 }
  0x1b   : > { %p773_p10 = scmp.ne.s32.totalorder (!%p299_p8), %s903_s20, 0 }
  0x20   : > { %s1062_s10 = smov (!%p360_p9, %s771_s10), 79  ;;  %396 = sbr.rel (%p773_p10) target bundleno = 39 (0x27), region = 77 }
  0x21   : > { %s772_s12 = sshll.u32 %s1062_s10, 2  ;;  %v913_v4 = vmov (!%p773_p10), 0.0  }
  0x22   : > { %s996_s15 = scalar_lea.vmem %s1050_s1, %s772_s12  ;;  %397 = vst [vmem:[#allocation2] sm:$0xff] (!%p773_p10), %v913_v4  ;;  %398 = vst [vmem:[#allocation2 + $0x8] sm:$0xff] (!%p773_p10), %v913_v4 }
  0x23   : > { %399 = vst [vmem:[#allocation2 + $0x10] sm:$0xff] (!%p773_p10), %v913_v4  ;;  %400 = vst [vmem:[#allocation2 + $0x18] sm:$0xff] (!%p773_p10), %v913_v4 }
  0x27 PF: > { %v863_v5 = vld [vmem:[%s996_s15] sm:$0xff]   ;;  %v864_v6 = vld [vmem:[%s996_s15 + $0x8] sm:$0xff]   ;;  %v865_v7 = vld [vmem:[%s996_s15 + $0x10] sm:$0xff]   ;;  %p784_p11 = scmp.ne.s32.totalorder %s903_s20, 4 }
  0x28   : > { %802 = vmatprep.subr.bf16.mxu0 %v863_v5  ;;  %v866_v8 = vld [vmem:[%s996_s15 + $0x18] sm:$0xff]   ;;  %v871_v9 = vld [vmem:[%s307_s16] sm:$0xff]   ;;  %v868_v11 = vld [vmem:[%s996_s15 + $0x28] sm:$0xff]  }
  0x29   : > { %803 = vmatpush3.bf16.msra.mxu0 %v863_v5  ;;  %818 = vmatprep.mubr.bf16.mxu0 %v871_v9  ;;  %v867_v10 = vld [vmem:[%s996_s15 + $0x20] sm:$0xff]   ;;  %v869_v12 = vld [vmem:[%s996_s15 + $0x30] sm:$0xff]   ;;  %v870_v13 = vld [vmem:[%s996_s15 + $0x38] sm:$0xff]  }
  0x2a   : > { %804 = vmatprep.subr.bf16.mxu0 %v864_v6  ;;  %v872_v14 = vld [vmem:[%s307_s16 + $0x8] sm:$0xff]   ;;  %v403_v15 = vld [vmem:[#allocation2 + $0x10] sm:$0xff]  ;;  %v401_v16 = vld [vmem:[#allocation2] sm:$0xff] }
  0x2b   : > { %v404_v18 = vld [vmem:[#allocation2 + $0x18] sm:$0xff]  ;;  %v402_v21 = vld [vmem:[#allocation2 + $0x8] sm:$0xff]  ;;  %v785_v28 = vld [vmem:[%s1051_s2] ss:$0 sm:$0xff] (!%p784_p11) }
  0x2d   : > { %805 = vmatpush3.bf16.msra.mxu0 %v864_v6 }
  0x2e   : > { %806 = vmatprep.subr.bf16.mxu0 %v865_v7 }
  0x31   : > { %807 = vmatpush3.bf16.msra.mxu0 %v865_v7 }
  0x32   : > { %808 = vmatprep.subr.bf16.mxu0 %v866_v8 }
  0x35   : > { %809 = vmatpush3.bf16.msra.mxu0 %v866_v8 }
  0x36   : > { %810 = vmatprep.subr.bf16.mxu0 %v867_v10 }
  0x39   : > { %811 = vmatpush3.bf16.msra.mxu0 %v867_v10 }
  0x3a   : > { %812 = vmatprep.subr.bf16.mxu0 %v868_v11 }
  0x3d   : > { %813 = vmatpush3.bf16.msra.mxu0 %v868_v11 }
  0x3e   : > { %814 = vmatprep.subr.bf16.mxu0 %v869_v12 }
  0x41   : > { %815 = vmatpush3.bf16.msra.mxu0 %v869_v12 }
  0x42   : > { %816 = vmatprep.subr.bf16.mxu0 %v870_v13 }
  0x45   : > { %817 = vmatpush3.bf16.msra.mxu0 %v870_v13 }
  0x48   : > { %819 = vmatmul.mubr.bf16.vlgmr.msra.gmra.mrb[0].mxu0 %v872_v14 }
 0x11b   : > { %v820_v17 = vpop.f32.mrb[0].mxu0  ;;  %545 = sbr.rel (%p784_p11) target bundleno = 320 (0x140), region = 81 }
 0x11c   : > { %v536_v19 = vadd.f32 %v820_v17, %v403_v15  ;;  %v519_v20 = vpop.f32.mrb[1].mxu0 }
 0x11d   : > { %v534_v22 = vadd.f32 %v519_v20, %v401_v16  ;;  %v821_v23 = vpop.f32.mrb[2].mxu0 }
 0x11e   : > { %540 = vst [vmem:[#allocation2 + $0x10] sm:$0xff] %v536_v19  ;;  %v537_v24 = vadd.f32 %v821_v23, %v404_v18  ;;  %v522_v25 = vpop.f32.mrb[3].mxu0 }
 0x11f   : > { %538 = vst [vmem:[#allocation2] sm:$0xff] %v534_v22  ;;  %v535_v26 = vadd.f32 %v522_v25, %v402_v21 }
 0x120   : > { %541 = vst [vmem:[#allocation2 + $0x18] sm:$0xff] %v537_v24 }
 0x121   : > { %539 = vst [vmem:[#allocation2 + $0x8] sm:$0xff] %v535_v26 }
 0x125   : > { %v548_v32 = vld [vmem:[#allocation2 + $0x10] sm:$0xff] }
 0x126   : > { %v546_v27 = vld [vmem:[#allocation2] sm:$0xff]  ;;  %v559_v34 = vadd.f32 %v785_v28, %v548_v32 }
 0x127   : > { %v557_v30 = vadd.f32 %v785_v28, %v546_v27  ;;  %v549_v33 = vld [vmem:[#allocation2 + $0x18] sm:$0xff] }
 0x128   : > { %v547_v29 = vld [vmem:[#allocation2 + $0x8] sm:$0xff]  ;;  %v560_v35 = vadd.f32 %v785_v28, %v549_v33  ;;  %563 = vst [vmem:[%s1052_s3 + $0x10] sm:$0xff] %v559_v34  ;;  %v577_v39 = vmul.f32 %v559_v34, %v559_v34 }
 0x129   : > { %v558_v31 = vadd.f32 %v785_v28, %v547_v29  ;;  %561 = vst [vmem:[%s1052_s3] sm:$0xff] %v557_v30  ;;  %v575_v36 = vmul.f32 %v557_v30, %v557_v30 }
 0x12a   : > { %564 = vst [vmem:[%s1052_s3 + $0x18] sm:$0xff] %v560_v35  ;;  %v578_v41 = vmul.f32 %v560_v35, %v560_v35 }
 0x12b   : > { %562 = vst [vmem:[%s1052_s3 + $0x8] sm:$0xff] %v558_v31  ;;  %v565_v37 = vadd.f32 %v558_v31, %v557_v30  ;;  %v576_v38 = vmul.f32 %v558_v31, %v558_v31 }
 0x12d   : > { %v566_v40 = vadd.f32 %v565_v37, %v559_v34  ;;  %v579_v42 = vadd.f32 %v576_v38, %v575_v36 }
 0x12f   : > { %v567_v43 = vadd.f32 %v566_v40, %v560_v35  ;;  %v580_v44 = vadd.f32 %v579_v42, %v577_v39 }
 0x131   : > { %v568_v45 = vrot.slane %v567_v43, 4  ;;  %v581_v46 = vadd.f32 %v580_v44, %v578_v41 }
 0x133   : > { %v569_v47 = vadd.f32 %v568_v45, %v567_v43  ;;  %v582_v48 = vrot.slane %v581_v46, 4 }
 0x135   : > { %v570_v49 = vrot.slane %v569_v47, 2  ;;  %v583_v50 = vadd.f32 %v582_v48, %v581_v46 }
 0x137   : > { %v571_v51 = vadd.f32 %v570_v49, %v569_v47  ;;  %v584_v52 = vrot.slane %v583_v50, 2 }
 0x139   : > { %v572_v53 = vrot.slane %v571_v51, 1  ;;  %v585_v54 = vadd.f32 %v584_v52, %v583_v50 }
 0x13b   : > { %v573_v55 = vadd.f32 %v572_v53, %v571_v51  ;;  %v586_v56 = vrot.slane %v585_v54, 1 }
 0x13d   : > { %574 = vst [vmem:[%s1053_s4] sm:$0x1] %v573_v55  ;;  %v587_v57 = vadd.f32 %v586_v56, %v585_v54 }
 0x13f   : > { %588 = vst [vmem:[%s1054_s5] sm:$0x1] %v587_v57 }
 0x140 PF: > { %s16_s22 = sadd.s32 1, %s911_s22   ;;  %s1055_s18 = smov %s899_s19 }
 0x141   : > { %p13_p12 = scmp.ge.s32.totalorder %s16_s22, 7   ;;  %s1056_s19 = smov %s979_s26 }
 0x142   : > { %s1057_s20 = smov %s907_s21  ;;  %s1058_s21 = smov %s1060_s23 }
 0x143   :  { %15 = sbr.rel (!%p13_p12) target bundleno = 3 (0x3), region = 146 }

// kernel: unet_forward.63
= control target key start
LH: loop header
LB: loop body
LE: loop exit
PB: predicated region body
PF: predicated region fallthrough
CT: control target
= control target key end

     0   :  { %s335_s1 = inlined_call_operand.vmem [shape: bf16[128,128], index: 1, kind: input, shape index: {}]   ;;  %s336_s0 = inlined_call_operand.vmem [shape: bf16[32,128], index: 0, kind: input, shape index: {}]   ;;  %s337_s2 = inlined_call_operand.vmem [shape: f32[1,128], index: 2, kind: input, shape index: {}]   ;;  %s338_s3 = inlined_call_operand.vmem [shape: bf16[32,128], index: 3, kind: output, shape index: {}]  }
   0x1   :  { %v266_v0 = vld [vmem:[%s335_s1] sm:$0xff]   ;;  %v267_v1 = vld [vmem:[%s335_s1 + $0x8] sm:$0xff]   ;;  %v268_v2 = vld [vmem:[%s335_s1 + $0x10] sm:$0xff]  }
   0x2   :  { %246 = vmatprep.subr.bf16.mxu0 %v266_v0  ;;  %v269_v3 = vld [vmem:[%s335_s1 + $0x18] sm:$0xff]   ;;  %v274_v4 = vld [vmem:[%s336_s0] sm:$0xff]   ;;  %v271_v6 = vld [vmem:[%s335_s1 + $0x28] sm:$0xff]  }
   0x3   :  { %247 = vmatpush3.bf16.msra.mxu0 %v266_v0  ;;  %262 = vmatprep.mubr.bf16.mxu0 %v274_v4  ;;  %v270_v5 = vld [vmem:[%s335_s1 + $0x20] sm:$0xff]   ;;  %v272_v7 = vld [vmem:[%s335_s1 + $0x30] sm:$0xff]   ;;  %v273_v8 = vld [vmem:[%s335_s1 + $0x38] sm:$0xff]  }
   0x4   :  { %248 = vmatprep.subr.bf16.mxu0 %v267_v1  ;;  %v275_v9 = vld [vmem:[%s336_s0 + $0x8] sm:$0xff]   ;;  %v216_v11 = vld [vmem:[%s337_s2] ss:$0 sm:$0xff] }
   0x7   :  { %249 = vmatpush3.bf16.msra.mxu0 %v267_v1 }
   0x8   :  { %250 = vmatprep.subr.bf16.mxu0 %v268_v2 }
   0xb   :  { %251 = vmatpush3.bf16.msra.mxu0 %v268_v2 }
   0xc   :  { %252 = vmatprep.subr.bf16.mxu0 %v269_v3 }
   0xf   :  { %253 = vmatpush3.bf16.msra.mxu0 %v269_v3 }
  0x10   :  { %254 = vmatprep.subr.bf16.mxu0 %v270_v5 }
  0x13   :  { %255 = vmatpush3.bf16.msra.mxu0 %v270_v5 }
  0x14   :  { %256 = vmatprep.subr.bf16.mxu0 %v271_v6 }
  0x17   :  { %257 = vmatpush3.bf16.msra.mxu0 %v271_v6 }
  0x18   :  { %258 = vmatprep.subr.bf16.mxu0 %v272_v7 }
  0x1b   :  { %259 = vmatpush3.bf16.msra.mxu0 %v272_v7 }
  0x1c   :  { %260 = vmatprep.subr.bf16.mxu0 %v273_v8 }
  0x1f   :  { %261 = vmatpush3.bf16.msra.mxu0 %v273_v8 }
  0x22   :  { %263 = vmatmul.mubr.bf16.vlgmr.msra.gmra.mrb[0].mxu0 %v275_v9 }
  0xf5   :  { %v264_v10 = vpop.f32.mrb[0].mxu0 }
  0xf6   :  { %v141_v12 = vpop.f32.mrb[1].mxu0  ;;  %v180_v14 = vadd.f32 %v264_v10, %v216_v11 }
  0xf7   :  { %v265_v13 = vpop.f32.mrb[2].mxu0  ;;  %v178_v17 = vadd.f32 %v216_v11, %v141_v12 }
  0xf8   :  { %v181_v15 = vadd.f32 %v265_v13, %v216_v11  ;;  %v144_v16 = vpop.f32.mrb[3].mxu0 }
  0xf9   :  { %v179_v18 = vadd.f32 %v216_v11, %v144_v16 }
  0xfa   :  { %v233_v19 = vpack.c.bf16 %v181_v15, %v180_v14 }
  0xfb   :  { %v228_v20 = vpack.c.bf16 %v179_v18, %v178_v17 }
  0xfc   :  { %235 = vst [vmem:[%s338_s3 + $0x8] sm:$0xff] %v233_v19  }
  0xfd   :  { %229 = vst [vmem:[%s338_s3] sm:$0xff] %v228_v20  }

// kernel: tile.208
= control target key start
LH: loop header
LB: loop body
LE: loop exit
PB: predicated region body
PF: predicated region fallthrough
CT: control target
= control target key end

     0   :  { %s22_s0 = inlined_call_operand.vmem [shape: f32[8], index: 0, kind: input, shape index: {}]   ;;  %s23_s1 = inlined_call_operand.vmem [shape: f32[4,8], index: 1, kind: output, shape index: {}]  }
   0x1   :  { %v4_v0 = vld [vmem:[%s22_s0] ss:$0 sm:$0xff] }
   0x2   :  { %5 = vst [vmem:[%s23_s1] sm:$0xf] %v4_v0 }

// kernel: tile.209
= control target key start
LH: loop header
LB: loop body
LE: loop exit
PB: predicated region body
PF: predicated region fallthrough
CT: control target
= control target key end

     0   :  { %vm7_vm0 = vcmask 64512   ;;  %s37_s8 = smov 8   ;;  %s38_s9 = smov 16   ;;  %vm13_vm1 = vcmask 261312   ;;  %vm19_vm2 = vcmask 195712   ;;  %vm25_vm3 = vcmask 130112   ;;  %s55_s0 = inlined_call_operand.vmem [shape: f32[4,8], index: 0, kind: input, shape index: {}]   ;;  %s56_s1 = inlined_call_operand.vmem [shape: f32[1,32], index: 1, kind: output, shape index: {}]  }
   0x1   :  { %v4_v0 = vld [vmem:[%s55_s0] sm:$0xf]  ;;  %s36_s0 = smov 24  }
   0x2   :  { %5 = vst [vmem:[#allocation1] sm:$0xf] %v4_v0 }
   0x9   :  { %v10_v1 = vld [vmem:[#allocation1 + $0x3] sm:$0x1]   ;;  %v22_v2 = vld [vmem:[#allocation1 + $0x1] sm:$0x1]   ;;  %v6_v3 = vld [vmem:[#allocation1] sm:$0x1]  }
   0xa   :  { %11 = vrot.lane.b32.xlu0 %v10_v1, %s36_s0  ;;  %23 = vrot.lane.b32.xlu1 %v22_v2, %s37_s8  ;;  %v16_v4 = vld [vmem:[#allocation1 + $0x2] sm:$0x1]   ;;  %8 = vst.msk [vmem:[#allocation0] sm:$0x1] %vm7_vm0, %v6_v3  }
   0xe   :  { %17 = vrot.lane.b32.xlu0 %v16_v4, %s38_s9 }
  0x7c   :  { %v12_v5 = vpop.permute.xlu0 %11   ;;  %v24_v6 = vpop.permute.xlu1 %23  }
  0x7d   :  { %14 = vst.msk [vmem:[#allocation0] sm:$0x1] %vm13_vm1, %v12_v5  }
  0x80   :  { %v18_v7 = vpop.permute.xlu0 %17  }
  0x81   :  { %20 = vst.msk [vmem:[#allocation0] sm:$0x1] %vm19_vm2, %v18_v7  }
  0x82   :  { %26 = vst.msk [vmem:[#allocation0] sm:$0x1] %vm25_vm3, %v24_v6  }
  0x89   :  { %v30_v8 = vld [vmem:[#allocation0] sm:$0x1] }
  0x8a   :  { %32 = vst [vmem:[%s56_s1] sm:$0x1] %v30_v8 }

// kernel: unet_forward.64
= control target key start
LH: loop header
LB: loop body
LE: loop exit
PB: predicated region body
PF: predicated region fallthrough
CT: control target
= control target key end

     0   :  { %s1254_s18 = smov 0   ;;  %s1256_s19 = smov 0   ;;  %s1416_s0 = inlined_call_operand.vmem [shape: bf16[128,384], index: 0, kind: input, shape index: {}]   ;;  %s1417_s1 = inlined_call_operand.vmem [shape: bf16[384,128], index: 1, kind: input, shape index: {}]   ;;  %s1418_s2 = inlined_call_operand.vmem [shape: f32[1,128], index: 2, kind: input, shape index: {}]   ;;  %s1419_s3 = inlined_call_operand.vmem [shape: f32[128,128], index: 3, kind: output, shape index: {0}]   ;;  %s1420_s4 = inlined_call_operand.vmem [shape: f32[1,1,128], index: 4, kind: output, shape index: {1}]   ;;  %s1421_s5 = inlined_call_operand.vmem [shape: f32[1,1,128], index: 5, kind: output, shape index: {2}]  }
   0x1   :  { %s1258_s20 = smov 0   ;;  %s1260_s21 = smov 0  }
   0x2   :  { %s1262_s22 = smov 0  }
   0x3 LB: > { %s28_s23 = sadd.s32 1, %s1217_s21  ;;  %p51_p1 = scmp.ne.s32.totalorder %s1209_s19, %s1205_s18  ;;  %s1221_s22 = sphi %s1262_s22, %s16_s22   ;;  %s1217_s21 = sphi %s1260_s21, %s1425_s21   ;;  %s1213_s20 = sphi %s1258_s20, %s1424_s20   ;;  %s1209_s19 = sphi %s1256_s19, %s1423_s19   ;;  %s1205_s18 = sphi %s1254_s18, %s1422_s18  }
   0x4   : > { %p29_p0 = scmp.ge.s32.totalorder %s28_s23, 3  ;;  %p52_p2 = scmp.eq.s32.totalorder %s1221_s22, 0 }
   0x5   : > { %s44_s25 = sadd.s32 1, %s1209_s19  ;;  %p1030_p5 = scmp.ge.s32.totalorder %s1221_s22, 3 }
   0x6   : > { %s1427_s23 = smov (%p29_p0, %s28_s23), 0  ;;  %p53_p3 = por %p52_p2, %p51_p1 }
   0x7   : > { %s40_s24 = ssub.s32 %s1217_s21, %s1427_s23  ;;  %221 = sbr.rel (%p1030_p5) target bundleno = 28 (0x1c), region = 20 }
   0x8   : > { %p42_p4 = scmp.eq.s32.totalorder %s40_s24, 0 }
   0xa   : > { %s1289_s26 = scalar_select %p42_p4, %s1209_s19, %s44_s25  }
   0xe   : > { %224 = sbr.rel (!%p53_p3) target bundleno = 28 (0x1c), region = 24  ;;  %s226_s27 = sand.u32 (%p53_p3), 1, %s1209_s19  }
   0xf   : > { %s1032_s28 = sshll.u32 (%p53_p3), %s1217_s21, 2  ;;  %s1031_s29 = sshll.u32 (%p53_p3), %s226_s27, 6 }
  0x10   : > { %s1297_s7 = scalar_lea.vmem (%p53_p3), %s1416_s0, %s1032_s28  ;;  %s228_s8 = scalar_lea.vmem (%p53_p3), [#allocation3], %s1031_s29 }
  0x11   : > { %v249_v0 = vld [vmem:[%s1297_s7] sm:$0xf] (%p53_p3)  ;;  %v251_v1 = vld [vmem:[%s1297_s7 + $0xc] sm:$0xf] (%p53_p3)  ;;  %v253_v2 = vld [vmem:[%s1297_s7 + $0x18] sm:$0xf] (%p53_p3) }
  0x12   : > { %250 = vst [vmem:[%s228_s8] sm:$0xf] (%p53_p3), %v249_v0  ;;  %252 = vst [vmem:[%s228_s8 + $0x4] sm:$0xf] (%p53_p3), %v251_v1  ;;  %v255_v3 = vld [vmem:[%s1297_s7 + $0x24] sm:$0xf] (%p53_p3) }
  0x13   : > { %v257_v4 = vld [vmem:[%s1297_s7 + $0x30] sm:$0xf] (%p53_p3)  ;;  %254 = vst [vmem:[%s228_s8 + $0x8] sm:$0xf] (%p53_p3), %v253_v2  ;;  %256 = vst [vmem:[%s228_s8 + $0xc] sm:$0xf] (%p53_p3), %v255_v3 }
  0x14   : > { %258 = vst [vmem:[%s228_s8 + $0x10] sm:$0xf] (%p53_p3), %v257_v4  ;;  %v259_v5 = vld [vmem:[%s1297_s7 + $0x3c] sm:$0xf] (%p53_p3)  ;;  %v261_v6 = vld [vmem:[%s1297_s7 + $0x48] sm:$0xf] (%p53_p3) }
  0x15   : > { %v263_v7 = vld [vmem:[%s1297_s7 + $0x54] sm:$0xf]  ;;  %260 = vst [vmem:[%s228_s8 + $0x14] sm:$0xf] %v259_v5  ;;  %262 = vst [vmem:[%s228_s8 + $0x18] sm:$0xf] %v261_v6 }
  0x16   : > { %264 = vst [vmem:[%s228_s8 + $0x1c] sm:$0xf] %v263_v7  ;;  %v265_v8 = vld [vmem:[%s1297_s7 + $0x60] sm:$0xf]  ;;  %v267_v9 = vld [vmem:[%s1297_s7 + $0x6c] sm:$0xf] }
  0x17   : > { %v269_v10 = vld [vmem:[%s1297_s7 + $0x78] sm:$0xf]  ;;  %266 = vst [vmem:[%s228_s8 + $0x20] sm:$0xf] %v265_v8  ;;  %268 = vst [vmem:[%s228_s8 + $0x24] sm:$0xf] %v267_v9 }
  0x18   : > { %270 = vst [vmem:[%s228_s8 + $0x28] sm:$0xf] %v269_v10  ;;  %v271_v11 = vld [vmem:[%s1297_s7 + $0x84] sm:$0xf]  ;;  %v273_v12 = vld [vmem:[%s1297_s7 + $0x90] sm:$0xf] }
  0x19   : > { %v275_v13 = vld [vmem:[%s1297_s7 + $0x9c] sm:$0xf]  ;;  %272 = vst [vmem:[%s228_s8 + $0x2c] sm:$0xf] %v271_v11  ;;  %274 = vst [vmem:[%s228_s8 + $0x30] sm:$0xf] %v273_v12 }
  0x1a   : > { %276 = vst [vmem:[%s228_s8 + $0x34] sm:$0xf] %v275_v13  ;;  %v277_v14 = vld [vmem:[%s1297_s7 + $0xa8] sm:$0xf]  ;;  %v279_v15 = vld [vmem:[%s1297_s7 + $0xb4] sm:$0xf] }
  0x1b   : > { %278 = vst [vmem:[%s228_s8 + $0x38] sm:$0xf] %v277_v14  ;;  %280 = vst [vmem:[%s228_s8 + $0x3c] sm:$0xf] %v279_v15 }
  0x1c PF: > { %p1033_p6 = scmp.ge.s32.totalorder %s1221_s22, 1  ;;  %p346_p7 = scmp.lt.s32.totalorder %s1221_s22, 4 }
  0x1e   : > { %p347_p8 = pnand %p1033_p6, %p346_p7 }
  0x1f   : > { %s353_s9 = sand.u32 (!%p347_p8), 1, %s1205_s18   ;;  %s1035_s10 = sshll.u32 (!%p347_p8), %s1213_s20, 4 }
  0x20   : > { %350 = sbr.rel (%p347_p8) target bundleno = 354 (0x162), region = 69  ;;  %s1034_s11 = sshll.u32 (!%p347_p8), %s353_s9, 6 }
  0x21   : > { %p408_p9 = scmp.lt.s32.totalorder (!%p347_p8), %s1035_s10, 47  ;;  %s1324_s16 = scalar_lea.vmem (!%p347_p8), [#allocation3], %s1034_s11 }
  0x22   : > { %p1037_p10 = scmp.ne.s32.totalorder (!%p347_p8), %s1213_s20, 0 }
  0x27   : > { %s1429_s10 = smov (!%p408_p9, %s1035_s10), 47  ;;  %444 = sbr.rel (%p1037_p10) target bundleno = 49 (0x31), region = 77 }
  0x28   : > { %s1036_s12 = sshll.u32 %s1429_s10, 2  ;;  %v1223_v16 = vmov (!%p1037_p10), 0.0  }
  0x29   : > { %s1322_s15 = scalar_lea.vmem %s1417_s1, %s1036_s12  ;;  %445 = vst [vmem:[#allocation2] sm:$0xff] (!%p1037_p10), %v1223_v16  ;;  %446 = vst [vmem:[#allocation2 + $0x8] sm:$0xff] (!%p1037_p10), %v1223_v16 }
  0x2a   : > { %447 = vst [vmem:[#allocation2 + $0x10] sm:$0xff] (!%p1037_p10), %v1223_v16  ;;  %448 = vst [vmem:[#allocation2 + $0x18] sm:$0xff] (!%p1037_p10), %v1223_v16 }
  0x2b   : > { %449 = vst [vmem:[#allocation2 + $0x20] sm:$0xff] (!%p1037_p10), %v1223_v16  ;;  %450 = vst [vmem:[#allocation2 + $0x28] sm:$0xff] (!%p1037_p10), %v1223_v16 }
  0x2c   : > { %451 = vst [vmem:[#allocation2 + $0x30] sm:$0xff] (!%p1037_p10), %v1223_v16  ;;  %452 = vst [vmem:[#allocation2 + $0x38] sm:$0xff] (!%p1037_p10), %v1223_v16 }
  0x2d   : > { %453 = vst [vmem:[#allocation2 + $0x40] sm:$0xff] (!%p1037_p10), %v1223_v16  ;;  %454 = vst [vmem:[#allocation2 + $0x48] sm:$0xff] (!%p1037_p10), %v1223_v16 }
  0x2e   : > { %455 = vst [vmem:[#allocation2 + $0x50] sm:$0xff] %v1223_v16  ;;  %456 = vst [vmem:[#allocation2 + $0x58] sm:$0xff] %v1223_v16 }
  0x2f   : > { %457 = vst [vmem:[#allocation2 + $0x60] sm:$0xff] %v1223_v16  ;;  %458 = vst [vmem:[#allocation2 + $0x68] sm:$0xff] %v1223_v16 }
  0x30   : > { %459 = vst [vmem:[#allocation2 + $0x70] sm:$0xff] %v1223_v16  ;;  %460 = vst [vmem:[#allocation2 + $0x78] sm:$0xff] %v1223_v16 }
  0x31 PF: > { %v1167_v17 = vld [vmem:[%s1322_s15] sm:$0xff]   ;;  %v1168_v18 = vld [vmem:[%s1322_s15 + $0x8] sm:$0xff]   ;;  %v1169_v19 = vld [vmem:[%s1322_s15 + $0x10] sm:$0xff]   ;;  %p1054_p11 = scmp.ne.s32.totalorder %s1213_s20, 2 }
  0x32   : > { %1078 = vmatprep.subr.bf16.mxu0 %v1167_v17  ;;  %1110 = vmatprep.subr.bf16.mxu1 %v1167_v17  ;;  %v1170_v20 = vld [vmem:[%s1322_s15 + $0x18] sm:$0xff]   ;;  %v1175_v21 = vld [vmem:[%s1324_s16] sm:$0xff]   ;;  %v1172_v24 = vld [vmem:[%s1322_s15 + $0x28] sm:$0xff]  }
  0x33   : > { %1079 = vmatpush3.bf16.msra.mxu0 %v1167_v17  ;;  %1118 = vmatpush3.bf16.msra.mxu1 %v1167_v17  ;;  %v1176_v22 = vld [vmem:[%s1324_s16 + $0x20] sm:$0xff]   ;;  %v1173_v25 = vld [vmem:[%s1322_s15 + $0x30] sm:$0xff]   ;;  %v1174_v26 = vld [vmem:[%s1322_s15 + $0x38] sm:$0xff]  }
  0x34   : > { %1080 = vmatprep.subr.bf16.mxu0 %v1168_v18  ;;  %1111 = vmatprep.subr.bf16.mxu1 %v1168_v18  ;;  %v1171_v23 = vld [vmem:[%s1322_s15 + $0x20] sm:$0xff]   ;;  %v1177_v27 = vld [vmem:[%s1324_s16 + $0x8] sm:$0xff]   ;;  %v1179_v29 = vld [vmem:[%s1324_s16 + $0x10] sm:$0xff]  }
  0x35   : > { %1094 = vmatprep.mubr.bf16.mxu0 %v1175_v21  ;;  %1102 = vmatprep.mubr.bf16.mxu1 %v1176_v22  ;;  %v1178_v28 = vld [vmem:[%s1324_s16 + $0x28] sm:$0xff]   ;;  %v1180_v30 = vld [vmem:[%s1324_s16 + $0x30] sm:$0xff]   ;;  %v1181_v31 = vld [vmem:[%s1324_s16 + $0x18] sm:$0xff]  }
  0x36   : > { %v1182_v32 = vld [vmem:[%s1324_s16 + $0x38] sm:$0xff]   ;;  %v463_v33 = vld [vmem:[#allocation2 + $0x10] sm:$0xff]  ;;  %v461_v35 = vld [vmem:[#allocation2] sm:$0xff] }
  0x37   : > { %1081 = vmatpush3.bf16.msra.mxu0 %v1168_v18  ;;  %1119 = vmatpush3.bf16.msra.mxu1 %v1168_v18  ;;  %v471_v34 = vld [vmem:[#allocation2 + $0x50] sm:$0xff]  ;;  %v469_v36 = vld [vmem:[#allocation2 + $0x40] sm:$0xff]  ;;  %v464_v39 = vld [vmem:[#allocation2 + $0x18] sm:$0xff] }
  0x38   : > { %1082 = vmatprep.subr.bf16.mxu0 %v1169_v19  ;;  %1112 = vmatprep.subr.bf16.mxu1 %v1169_v19  ;;  %v472_v40 = vld [vmem:[#allocation2 + $0x58] sm:$0xff]  ;;  %v462_v45 = vld [vmem:[#allocation2 + $0x8] sm:$0xff]  ;;  %v467_v57 = vld [vmem:[#allocation2 + $0x30] sm:$0xff] }
  0x39   : > { %v470_v46 = vld [vmem:[#allocation2 + $0x48] sm:$0xff]  ;;  %v475_v58 = vld [vmem:[#allocation2 + $0x70] sm:$0xff]  ;;  %v465_v59 = vld [vmem:[#allocation2 + $0x20] sm:$0xff] }
  0x3a   : > { %v473_v60 = vld [vmem:[#allocation2 + $0x60] sm:$0xff]  ;;  %v468_v63 = vld [vmem:[#allocation2 + $0x38] sm:$0xff]  ;;  %v466_v5 = vld [vmem:[#allocation2 + $0x28] sm:$0xff] }
  0x3b   : > { %1083 = vmatpush3.bf16.msra.mxu0 %v1169_v19  ;;  %1120 = vmatpush3.bf16.msra.mxu1 %v1169_v19  ;;  %v476_v0 = vld [vmem:[#allocation2 + $0x78] sm:$0xff]  ;;  %v474_v6 = vld [vmem:[#allocation2 + $0x68] sm:$0xff]  ;;  %v1055_v18 = vld [vmem:[%s1418_s2] ss:$0 sm:$0xff] (!%p1054_p11) }
  0x3c   : > { %1084 = vmatprep.subr.bf16.mxu0 %v1170_v20  ;;  %1113 = vmatprep.subr.bf16.mxu1 %v1170_v20 }
  0x3f   : > { %1085 = vmatpush3.bf16.msra.mxu0 %v1170_v20  ;;  %1121 = vmatpush3.bf16.msra.mxu1 %v1170_v20 }
  0x40   : > { %1086 = vmatprep.subr.bf16.mxu0 %v1171_v23  ;;  %1114 = vmatprep.subr.bf16.mxu1 %v1171_v23 }
  0x43   : > { %1087 = vmatpush3.bf16.msra.mxu0 %v1171_v23  ;;  %1122 = vmatpush3.bf16.msra.mxu1 %v1171_v23 }
  0x44   : > { %1088 = vmatprep.subr.bf16.mxu0 %v1172_v24  ;;  %1115 = vmatprep.subr.bf16.mxu1 %v1172_v24 }
  0x47   : > { %1089 = vmatpush3.bf16.msra.mxu0 %v1172_v24  ;;  %1123 = vmatpush3.bf16.msra.mxu1 %v1172_v24 }
  0x48   : > { %1090 = vmatprep.subr.bf16.mxu0 %v1173_v25  ;;  %1116 = vmatprep.subr.bf16.mxu1 %v1173_v25 }
  0x4b   : > { %1091 = vmatpush3.bf16.msra.mxu0 %v1173_v25  ;;  %1124 = vmatpush3.bf16.msra.mxu1 %v1173_v25 }
  0x4c   : > { %1092 = vmatprep.subr.bf16.mxu0 %v1174_v26  ;;  %1117 = vmatprep.subr.bf16.mxu1 %v1174_v26 }
  0x4f   : > { %1093 = vmatpush3.bf16.msra.mxu0 %v1174_v26  ;;  %1125 = vmatpush3.bf16.msra.mxu1 %v1174_v26 }
  0x52   : > { %1095 = vmatmul.mubr.bf16.vlgmr.msra.gmra.mrb[0].mxu0 %v1177_v27  ;;  %1103 = vmatmul.mubr.bf16.vlgmr.msra.gmra.mrb[0].mxu1 %v1178_v28 }
  0x53   : > { %1098 = vmatprep.mubr.bf16.mxu0 %v1179_v29  ;;  %1106 = vmatprep.mubr.bf16.mxu1 %v1180_v30 }
  0x5a   : > { %1099 = vmatmul.mubr.bf16.gmra.mrb[4].mxu0 %v1181_v31  ;;  %1107 = vmatmul.mubr.bf16.gmra.mrb[4].mxu1 %v1182_v32 }
 0x125   : > { %v1096_v37 = vpop.f32.mrb[0].mxu0  ;;  %v1104_v38 = vpop.f32.mrb[0].mxu1 }
 0x126   : > { %v704_v41 = vadd.f32 %v1096_v37, %v463_v33  ;;  %v712_v42 = vadd.f32 %v1104_v38, %v471_v34  ;;  %v639_v43 = vpop.f32.mrb[1].mxu0  ;;  %v671_v44 = vpop.f32.mrb[1].mxu1 }
 0x127   : > { %v702_v47 = vadd.f32 %v639_v43, %v461_v35  ;;  %v710_v48 = vadd.f32 %v671_v44, %v469_v36  ;;  %v1097_v49 = vpop.f32.mrb[2].mxu0  ;;  %v1105_v50 = vpop.f32.mrb[2].mxu1 }
 0x128   : > { %720 = vst [vmem:[#allocation2 + $0x10] sm:$0xff] %v704_v41  ;;  %728 = vst [vmem:[#allocation2 + $0x50] sm:$0xff] %v712_v42  ;;  %v705_v51 = vadd.f32 %v1097_v49, %v464_v39  ;;  %v713_v52 = vadd.f32 %v1105_v50, %v472_v40  ;;  %v642_v53 = vpop.f32.mrb[3].mxu0  ;;  %v674_v54 = vpop.f32.mrb[3].mxu1 }
 0x129   : > { %718 = vst [vmem:[#allocation2] sm:$0xff] %v702_v47  ;;  %726 = vst [vmem:[#allocation2 + $0x40] sm:$0xff] %v710_v48  ;;  %v703_v55 = vadd.f32 %v642_v53, %v462_v45  ;;  %v711_v56 = vadd.f32 %v674_v54, %v470_v46 }
 0x12a   : > { %721 = vst [vmem:[#allocation2 + $0x18] sm:$0xff] %v705_v51  ;;  %729 = vst [vmem:[#allocation2 + $0x58] sm:$0xff] %v713_v52 }
 0x12b   : > { %719 = vst [vmem:[#allocation2 + $0x8] sm:$0xff] %v703_v55  ;;  %727 = vst [vmem:[#allocation2 + $0x48] sm:$0xff] %v711_v56 }
 0x12d   : > { %v1100_v61 = vpop.f32.mrb[4].mxu0  ;;  %v1108_v62 = vpop.f32.mrb[4].mxu1  ;;  %737 = sbr.rel (%p1054_p11) target bundleno = 354 (0x162), region = 81 }
 0x12e   : > { %v708_v1 = vadd.f32 %v1100_v61, %v467_v57  ;;  %v716_v2 = vadd.f32 %v1108_v62, %v475_v58  ;;  %v655_v3 = vpop.f32.mrb[5].mxu0  ;;  %v687_v4 = vpop.f32.mrb[5].mxu1 }
 0x12f   : > { %v706_v7 = vadd.f32 %v655_v3, %v465_v59  ;;  %v714_v8 = vadd.f32 %v687_v4, %v473_v60  ;;  %v1101_v9 = vpop.f32.mrb[6].mxu0  ;;  %v1109_v10 = vpop.f32.mrb[6].mxu1  ;;  %v740_v22 = vld [vmem:[#allocation2 + $0x10] sm:$0xff] (!%p1054_p11) }
 0x130   : > { %724 = vst [vmem:[#allocation2 + $0x30] sm:$0xff] %v708_v1  ;;  %732 = vst [vmem:[#allocation2 + $0x70] sm:$0xff] %v716_v2  ;;  %v709_v11 = vadd.f32 %v1101_v9, %v468_v63  ;;  %v717_v12 = vadd.f32 %v1109_v10, %v476_v0  ;;  %v658_v13 = vpop.f32.mrb[7].mxu0  ;;  %v690_v14 = vpop.f32.mrb[7].mxu1  ;;  %v738_v17 = vld [vmem:[#allocation2] sm:$0xff] (!%p1054_p11)  ;;  %v763_v25 = vadd.f32 (!%p1054_p11), %v1055_v18, %v740_v22  ;;  %v748_v37 = vld [vmem:[#allocation2 + $0x50] sm:$0xff] (!%p1054_p11) }
 0x131   : > { %722 = vst [vmem:[#allocation2 + $0x20] sm:$0xff] %v706_v7  ;;  %730 = vst [vmem:[#allocation2 + $0x60] sm:$0xff] %v714_v8  ;;  %v707_v15 = vadd.f32 %v658_v13, %v466_v5  ;;  %v715_v16 = vadd.f32 %v690_v14, %v474_v6  ;;  %v761_v20 = vadd.f32 (!%p1054_p11), %v1055_v18, %v738_v17  ;;  %v741_v23 = vld [vmem:[#allocation2 + $0x18] sm:$0xff] (!%p1054_p11)  ;;  %v746_v35 = vld [vmem:[#allocation2 + $0x40] sm:$0xff] (!%p1054_p11) }
 0x132   : > { %725 = vst [vmem:[#allocation2 + $0x38] sm:$0xff] %v709_v11  ;;  %733 = vst [vmem:[#allocation2 + $0x78] sm:$0xff] %v717_v12  ;;  %v739_v19 = vld [vmem:[#allocation2 + $0x8] sm:$0xff] (!%p1054_p11)  ;;  %v764_v26 = vadd.f32 (!%p1054_p11), %v1055_v18, %v741_v23  ;;  %v817_v38 = vmul.f32 (!%p1054_p11), %v763_v25, %v763_v25  ;;  %v749_v40 = vld [vmem:[#allocation2 + $0x58] sm:$0xff] (!%p1054_p11)  ;;  %v769_v46 = vadd.f32 (!%p1054_p11), %v1055_v18, %v746_v35 }
 0x133   : > { %723 = vst [vmem:[#allocation2 + $0x28] sm:$0xff] %v707_v15  ;;  %731 = vst [vmem:[#allocation2 + $0x68] sm:$0xff] %v715_v16  ;;  %v762_v21 = vadd.f32 (!%p1054_p11), %v1055_v18, %v739_v19  ;;  %v815_v31 = vmul.f32 (!%p1054_p11), %v761_v20, %v761_v20  ;;  %v747_v36 = vld [vmem:[#allocation2 + $0x48] sm:$0xff] (!%p1054_p11)  ;;  %v771_v48 = vadd.f32 (!%p1054_p11), %v1055_v18, %v748_v37 }
 0x134   : > { %777 = vst [vmem:[%s1419_s3] sm:$0xff] %v761_v20  ;;  %779 = vst [vmem:[%s1419_s3 + $0x10] sm:$0xff] %v763_v25  ;;  %v818_v43 = vmul.f32 %v764_v26, %v764_v26  ;;  %v770_v47 = vadd.f32 %v1055_v18, %v747_v36  ;;  %v772_v53 = vadd.f32 %v1055_v18, %v749_v40 }
 0x135   : > { %778 = vst [vmem:[%s1419_s3 + $0x8] sm:$0xff] %v762_v21  ;;  %v793_v32 = vadd.f32 %v762_v21, %v761_v20  ;;  %v816_v33 = vmul.f32 %v762_v21, %v762_v21  ;;  %780 = vst [vmem:[%s1419_s3 + $0x18] sm:$0xff] %v764_v26  ;;  %v823_v7 = vmul.f32 %v769_v46, %v769_v46 }
 0x136   : > { %785 = vst [vmem:[%s1419_s3 + $0x40] sm:$0xff] %v769_v46  ;;  %786 = vst [vmem:[%s1419_s3 + $0x48] sm:$0xff] %v770_v47  ;;  %v824_v10 = vmul.f32 %v770_v47, %v770_v47  ;;  %v825_v13 = vmul.f32 %v771_v48, %v771_v48  ;;  %v826_v16 = vmul.f32 %v772_v53, %v772_v53 }
 0x137   : > { %v744_v29 = vld [vmem:[#allocation2 + $0x30] sm:$0xff]  ;;  %v831_v41 = vadd.f32 %v816_v33, %v815_v31  ;;  %v794_v42 = vadd.f32 %v793_v32, %v763_v25  ;;  %787 = vst [vmem:[%s1419_s3 + $0x50] sm:$0xff] %v771_v48  ;;  %788 = vst [vmem:[%s1419_s3 + $0x58] sm:$0xff] %v772_v53 }
 0x138   : > { %v742_v24 = vld [vmem:[#allocation2 + $0x20] sm:$0xff]  ;;  %v767_v39 = vadd.f32 %v1055_v18, %v744_v29  ;;  %v752_v54 = vld [vmem:[#allocation2 + $0x70] sm:$0xff] }
 0x139   : > { %v765_v27 = vadd.f32 %v1055_v18, %v742_v24  ;;  %v745_v30 = vld [vmem:[#allocation2 + $0x38] sm:$0xff]  ;;  %v750_v45 = vld [vmem:[#allocation2 + $0x60] sm:$0xff]  ;;  %v832_v50 = vadd.f32 %v831_v41, %v817_v38  ;;  %v795_v51 = vadd.f32 %v794_v42, %v764_v26  ;;  %v775_v61 = vadd.f32 %v1055_v18, %v752_v54 }
 0x13a   : > { %v743_v28 = vld [vmem:[#allocation2 + $0x28] sm:$0xff]  ;;  %v768_v44 = vadd.f32 %v1055_v18, %v745_v30  ;;  %783 = vst [vmem:[%s1419_s3 + $0x30] sm:$0xff] %v767_v39  ;;  %v753_v55 = vld [vmem:[#allocation2 + $0x78] sm:$0xff]  ;;  %v773_v56 = vadd.f32 %v1055_v18, %v750_v45  ;;  %v821_v1 = vmul.f32 %v767_v39, %v767_v39 }
 0x13b   : > { %v766_v34 = vadd.f32 %v1055_v18, %v743_v28  ;;  %781 = vst [vmem:[%s1419_s3 + $0x20] sm:$0xff] %v765_v27  ;;  %v751_v49 = vld [vmem:[#allocation2 + $0x68] sm:$0xff]  ;;  %v819_v52 = vmul.f32 %v765_v27, %v765_v27  ;;  %v833_v57 = vadd.f32 %v832_v50, %v818_v43  ;;  %v796_v58 = vadd.f32 %v795_v51, %v765_v27 }
 0x13c   : > { %784 = vst [vmem:[%s1419_s3 + $0x38] sm:$0xff] %v768_v44  ;;  %v774_v60 = vadd.f32 %v1055_v18, %v751_v49  ;;  %789 = vst [vmem:[%s1419_s3 + $0x60] sm:$0xff] %v773_v56  ;;  %v776_v62 = vadd.f32 %v1055_v18, %v753_v55  ;;  %v822_v4 = vmul.f32 %v768_v44, %v768_v44 }
 0x13d   : > { %782 = vst [vmem:[%s1419_s3 + $0x28] sm:$0xff] %v766_v34  ;;  %v820_v59 = vmul.f32 %v766_v34, %v766_v34  ;;  %v834_v63 = vadd.f32 %v833_v57, %v819_v52  ;;  %v797_v0 = vadd.f32 %v796_v58, %v766_v34  ;;  %791 = vst [vmem:[%s1419_s3 + $0x70] sm:$0xff] %v775_v61 }
 0x13e   : > { %790 = vst [vmem:[%s1419_s3 + $0x68] sm:$0xff] %v774_v60  ;;  %792 = vst [vmem:[%s1419_s3 + $0x78] sm:$0xff] %v776_v62  ;;  %v827_v19 = vmul.f32 %v773_v56, %v773_v56  ;;  %v828_v22 = vmul.f32 %v774_v60, %v774_v60  ;;  %v829_v25 = vmul.f32 %v775_v61, %v775_v61 }
 0x13f   : > { %v835_v2 = vadd.f32 %v834_v63, %v820_v59  ;;  %v798_v3 = vadd.f32 %v797_v0, %v767_v39  ;;  %v830_v27 = vmul.f32 %v776_v62, %v776_v62 }
 0x141   : > { %v836_v5 = vadd.f32 %v835_v2, %v821_v1  ;;  %v799_v6 = vadd.f32 %v798_v3, %v768_v44 }
 0x143   : > { %v837_v8 = vadd.f32 %v836_v5, %v822_v4  ;;  %v800_v9 = vadd.f32 %v799_v6, %v769_v46 }
 0x145   : > { %v838_v11 = vadd.f32 %v837_v8, %v823_v7  ;;  %v801_v12 = vadd.f32 %v800_v9, %v770_v47 }
 0x147   : > { %v839_v14 = vadd.f32 %v838_v11, %v824_v10  ;;  %v802_v15 = vadd.f32 %v801_v12, %v771_v48 }
 0x149   : > { %v840_v17 = vadd.f32 %v839_v14, %v825_v13  ;;  %v803_v18 = vadd.f32 %v802_v15, %v772_v53 }
 0x14b   : > { %v841_v20 = vadd.f32 %v840_v17, %v826_v16  ;;  %v804_v21 = vadd.f32 %v803_v18, %v773_v56 }
 0x14d   : > { %v842_v23 = vadd.f32 %v841_v20, %v827_v19  ;;  %v805_v24 = vadd.f32 %v804_v21, %v774_v60 }
 0x14f   : > { %v806_v26 = vadd.f32 %v805_v24, %v775_v61  ;;  %v843_v28 = vadd.f32 %v842_v23, %v828_v22 }
 0x151   : > { %v807_v29 = vadd.f32 %v806_v26, %v776_v62  ;;  %v844_v30 = vadd.f32 %v843_v28, %v829_v25 }
 0x153   : > { %v808_v31 = vrot.slane %v807_v29, 4  ;;  %v845_v32 = vadd.f32 %v844_v30, %v830_v27 }
 0x155   : > { %v809_v33 = vadd.f32 %v808_v31, %v807_v29  ;;  %v846_v34 = vrot.slane %v845_v32, 4 }
 0x157   : > { %v810_v35 = vrot.slane %v809_v33, 2  ;;  %v847_v36 = vadd.f32 %v846_v34, %v845_v32 }
 0x159   : > { %v811_v37 = vadd.f32 %v810_v35, %v809_v33  ;;  %v848_v38 = vrot.slane %v847_v36, 2 }
 0x15b   : > { %v812_v39 = vrot.slane %v811_v37, 1  ;;  %v849_v40 = vadd.f32 %v848_v38, %v847_v36 }
 0x15d   : > { %v813_v41 = vadd.f32 %v812_v39, %v811_v37  ;;  %v850_v42 = vrot.slane %v849_v40, 1 }
 0x15f   : > { %814 = vst [vmem:[%s1420_s4] sm:$0x1] %v813_v41  ;;  %v851_v43 = vadd.f32 %v850_v42, %v849_v40 }
 0x161   : > { %852 = vst [vmem:[%s1421_s5] sm:$0x1] %v851_v43 }
 0x162 PF: > { %s16_s22 = sadd.s32 1, %s1221_s22   ;;  %s1422_s18 = smov %s1209_s19 }
 0x163   : > { %p13_p12 = scmp.ge.s32.totalorder %s16_s22, 5   ;;  %s1423_s19 = smov %s1289_s26 }
 0x164   : > { %s1424_s20 = smov %s1217_s21  ;;  %s1425_s21 = smov %s1427_s23 }
 0x165   :  { %15 = sbr.rel (!%p13_p12) target bundleno = 3 (0x3), region = 146 }

// kernel: unet_forward.67
= control target key start
LH: loop header
LB: loop body
LE: loop exit
PB: predicated region body
PF: predicated region fallthrough
CT: control target
= control target key end

     0   :  { %s705_s1 = inlined_call_operand.vmem [shape: bf16[128,128], index: 1, kind: input, shape index: {}]   ;;  %s706_s0 = inlined_call_operand.vmem [shape: bf16[128,128], index: 0, kind: input, shape index: {}]   ;;  %s707_s2 = inlined_call_operand.vmem [shape: f32[1,128], index: 2, kind: input, shape index: {}]   ;;  %s708_s3 = inlined_call_operand.vmem [shape: bf16[128,128], index: 3, kind: output, shape index: {}]  }
   0x1   :  { %v594_v0 = vld [vmem:[%s705_s1] sm:$0xff]   ;;  %v595_v1 = vld [vmem:[%s705_s1 + $0x8] sm:$0xff]   ;;  %v596_v2 = vld [vmem:[%s705_s1 + $0x10] sm:$0xff]  }
   0x2   :  { %546 = vmatprep.subr.bf16.mxu0 %v594_v0  ;;  %578 = vmatprep.subr.bf16.mxu1 %v594_v0  ;;  %v597_v3 = vld [vmem:[%s705_s1 + $0x18] sm:$0xff]   ;;  %v602_v4 = vld [vmem:[%s706_s0] sm:$0xff]   ;;  %v599_v7 = vld [vmem:[%s705_s1 + $0x28] sm:$0xff]  }
   0x3   :  { %547 = vmatpush3.bf16.msra.mxu0 %v594_v0  ;;  %586 = vmatpush3.bf16.msra.mxu1 %v594_v0  ;;  %v603_v5 = vld [vmem:[%s706_s0 + $0x20] sm:$0xff]   ;;  %v600_v8 = vld [vmem:[%s705_s1 + $0x30] sm:$0xff]   ;;  %v601_v9 = vld [vmem:[%s705_s1 + $0x38] sm:$0xff]  }
   0x4   :  { %548 = vmatprep.subr.bf16.mxu0 %v595_v1  ;;  %579 = vmatprep.subr.bf16.mxu1 %v595_v1  ;;  %v598_v6 = vld [vmem:[%s705_s1 + $0x20] sm:$0xff]   ;;  %v604_v10 = vld [vmem:[%s706_s0 + $0x8] sm:$0xff]   ;;  %v606_v12 = vld [vmem:[%s706_s0 + $0x10] sm:$0xff]  }
   0x5   :  { %562 = vmatprep.mubr.bf16.mxu0 %v602_v4  ;;  %570 = vmatprep.mubr.bf16.mxu1 %v603_v5  ;;  %v605_v11 = vld [vmem:[%s706_s0 + $0x28] sm:$0xff]   ;;  %v607_v13 = vld [vmem:[%s706_s0 + $0x30] sm:$0xff]   ;;  %v608_v14 = vld [vmem:[%s706_s0 + $0x18] sm:$0xff]  }
   0x6   :  { %v609_v15 = vld [vmem:[%s706_s0 + $0x38] sm:$0xff]   ;;  %v450_v17 = vld [vmem:[%s707_s2] ss:$0 sm:$0xff] }
   0x7   :  { %549 = vmatpush3.bf16.msra.mxu0 %v595_v1  ;;  %587 = vmatpush3.bf16.msra.mxu1 %v595_v1 }
   0x8   :  { %550 = vmatprep.subr.bf16.mxu0 %v596_v2  ;;  %580 = vmatprep.subr.bf16.mxu1 %v596_v2 }
   0xb   :  { %551 = vmatpush3.bf16.msra.mxu0 %v596_v2  ;;  %588 = vmatpush3.bf16.msra.mxu1 %v596_v2 }
   0xc   :  { %552 = vmatprep.subr.bf16.mxu0 %v597_v3  ;;  %581 = vmatprep.subr.bf16.mxu1 %v597_v3 }
   0xf   :  { %553 = vmatpush3.bf16.msra.mxu0 %v597_v3  ;;  %589 = vmatpush3.bf16.msra.mxu1 %v597_v3 }
  0x10   :  { %554 = vmatprep.subr.bf16.mxu0 %v598_v6  ;;  %582 = vmatprep.subr.bf16.mxu1 %v598_v6 }
  0x13   :  { %555 = vmatpush3.bf16.msra.mxu0 %v598_v6  ;;  %590 = vmatpush3.bf16.msra.mxu1 %v598_v6 }
  0x14   :  { %556 = vmatprep.subr.bf16.mxu0 %v599_v7  ;;  %583 = vmatprep.subr.bf16.mxu1 %v599_v7 }
  0x17   :  { %557 = vmatpush3.bf16.msra.mxu0 %v599_v7  ;;  %591 = vmatpush3.bf16.msra.mxu1 %v599_v7 }
  0x18   :  { %558 = vmatprep.subr.bf16.mxu0 %v600_v8  ;;  %584 = vmatprep.subr.bf16.mxu1 %v600_v8 }
  0x1b   :  { %559 = vmatpush3.bf16.msra.mxu0 %v600_v8  ;;  %592 = vmatpush3.bf16.msra.mxu1 %v600_v8 }
  0x1c   :  { %560 = vmatprep.subr.bf16.mxu0 %v601_v9  ;;  %585 = vmatprep.subr.bf16.mxu1 %v601_v9 }
  0x1f   :  { %561 = vmatpush3.bf16.msra.mxu0 %v601_v9  ;;  %593 = vmatpush3.bf16.msra.mxu1 %v601_v9 }
  0x22   :  { %563 = vmatmul.mubr.bf16.vlgmr.msra.gmra.mrb[0].mxu0 %v604_v10  ;;  %571 = vmatmul.mubr.bf16.vlgmr.msra.gmra.mrb[0].mxu1 %v605_v11 }
  0x23   :  { %566 = vmatprep.mubr.bf16.mxu0 %v606_v12  ;;  %574 = vmatprep.mubr.bf16.mxu1 %v607_v13 }
  0x2a   :  { %567 = vmatmul.mubr.bf16.gmra.mrb[4].mxu0 %v608_v14  ;;  %575 = vmatmul.mubr.bf16.gmra.mrb[4].mxu1 %v609_v15 }
  0xf5   :  { %v564_v16 = vpop.f32.mrb[0].mxu0  ;;  %v572_v18 = vpop.f32.mrb[0].mxu1 }
  0xf6   :  { %v213_v19 = vpop.f32.mrb[1].mxu0  ;;  %v245_v20 = vpop.f32.mrb[1].mxu1  ;;  %v336_v23 = vadd.f32 %v564_v16, %v450_v17  ;;  %v344_v24 = vadd.f32 %v572_v18, %v450_v17 }
  0xf7   :  { %v565_v21 = vpop.f32.mrb[2].mxu0  ;;  %v573_v22 = vpop.f32.mrb[2].mxu1  ;;  %v334_v29 = vadd.f32 %v450_v17, %v213_v19  ;;  %v342_v30 = vadd.f32 %v450_v17, %v245_v20 }
  0xf8   :  { %v337_v25 = vadd.f32 %v565_v21, %v450_v17  ;;  %v345_v26 = vadd.f32 %v573_v22, %v450_v17  ;;  %v216_v27 = vpop.f32.mrb[3].mxu0  ;;  %v248_v28 = vpop.f32.mrb[3].mxu1 }
  0xf9   :  { %v335_v31 = vadd.f32 %v450_v17, %v216_v27  ;;  %v343_v32 = vadd.f32 %v450_v17, %v248_v28 }
  0xfa   :  { %v491_v33 = vpack.c.bf16 %v337_v25, %v336_v23  ;;  %v511_v34 = vpack.c.bf16 %v345_v26, %v344_v24 }
  0xfb   :  { %v486_v35 = vpack.c.bf16 %v335_v31, %v334_v29  ;;  %v506_v36 = vpack.c.bf16 %v343_v32, %v342_v30 }
  0xfc   :  { %523 = vst [vmem:[%s708_s3 + $0x8] sm:$0xff] %v491_v33   ;;  %527 = vst [vmem:[%s708_s3 + $0x28] sm:$0xff] %v511_v34  }
  0xfd   :  { %487 = vst [vmem:[%s708_s3] sm:$0xff] %v486_v35   ;;  %526 = vst [vmem:[%s708_s3 + $0x20] sm:$0xff] %v506_v36   ;;  %v568_v37 = vpop.f32.mrb[4].mxu0  ;;  %v576_v38 = vpop.f32.mrb[4].mxu1 }
  0xfe   :  { %v229_v39 = vpop.f32.mrb[5].mxu0  ;;  %v261_v40 = vpop.f32.mrb[5].mxu1  ;;  %v340_v43 = vadd.f32 %v568_v37, %v450_v17  ;;  %v348_v44 = vadd.f32 %v576_v38, %v450_v17 }
  0xff   :  { %v569_v41 = vpop.f32.mrb[6].mxu0  ;;  %v577_v42 = vpop.f32.mrb[6].mxu1  ;;  %v338_v49 = vadd.f32 %v450_v17, %v229_v39  ;;  %v346_v50 = vadd.f32 %v450_v17, %v261_v40 }
 0x100   :  { %v341_v45 = vadd.f32 %v569_v41, %v450_v17  ;;  %v349_v46 = vadd.f32 %v577_v42, %v450_v17  ;;  %v232_v47 = vpop.f32.mrb[7].mxu0  ;;  %v264_v48 = vpop.f32.mrb[7].mxu1 }
 0x101   :  { %v339_v51 = vadd.f32 %v450_v17, %v232_v47  ;;  %v347_v52 = vadd.f32 %v450_v17, %v264_v48 }
 0x102   :  { %v501_v53 = vpack.c.bf16 %v341_v45, %v340_v43  ;;  %v521_v54 = vpack.c.bf16 %v349_v46, %v348_v44 }
 0x103   :  { %v496_v55 = vpack.c.bf16 %v339_v51, %v338_v49  ;;  %v516_v56 = vpack.c.bf16 %v347_v52, %v346_v50 }
 0x104   :  { %525 = vst [vmem:[%s708_s3 + $0x18] sm:$0xff] %v501_v53   ;;  %529 = vst [vmem:[%s708_s3 + $0x38] sm:$0xff] %v521_v54  }
 0x105   :  { %524 = vst [vmem:[%s708_s3 + $0x10] sm:$0xff] %v496_v55   ;;  %528 = vst [vmem:[%s708_s3 + $0x30] sm:$0xff] %v516_v56  }

// kernel: unet_forward.68
= control target key start
LH: loop header
LB: loop body
LE: loop exit
PB: predicated region body
PF: predicated region fallthrough
CT: control target
= control target key end

     0   :  { %v1723_v0 = vmov 0   ;;  %s2485_s1 = inlined_call_operand.vmem [shape: bf16[256,128], index: 1, kind: input, shape index: {}]   ;;  %s2486_s0 = inlined_call_operand.vmem [shape: bf16[512,256], index: 0, kind: input, shape index: {}]   ;;  %s2487_s2 = inlined_call_operand.vmem [shape: f32[1,128], index: 2, kind: input, shape index: {}]   ;;  %s2488_s3 = inlined_call_operand.vmem [shape: f32[512,128], index: 3, kind: output, shape index: {0}]   ;;  %s2489_s4 = inlined_call_operand.vmem [shape: f32[1,1,128], index: 4, kind: output, shape index: {1}]   ;;  %s2490_s5 = inlined_call_operand.vmem [shape: f32[1,1,128], index: 5, kind: output, shape index: {2}]  }
   0x1   :  { %662 = vmatprep.subr.bf16.mxu0 %v1723_v0  ;;  %v1611_v1 = vld [vmem:[%s2485_s1] sm:$0xff]   ;;  %1578 = vmatprep.subr.bf16.mxu1 %v1723_v0  ;;  %v1612_v2 = vld [vmem:[%s2485_s1 + $0x8] sm:$0xff]   ;;  %v1613_v3 = vld [vmem:[%s2485_s1 + $0x10] sm:$0xff]  }
   0x2   :  { %663 = vmatpush1.bf16.msra.mxu0 %v1611_v1  ;;  %1594 = vmatpush1.bf16.msra.mxu1 %v1611_v1  ;;  %v1614_v4 = vld [vmem:[%s2485_s1 + $0x18] sm:$0xff]   ;;  %v1615_v5 = vld [vmem:[%s2485_s1 + $0x20] sm:$0xff]   ;;  %v1616_v7 = vld [vmem:[%s2485_s1 + $0x28] sm:$0xff]  }
   0x3   :  { %664 = vmatprep.subr.bf16.mxu0 %v1723_v0  ;;  %1579 = vmatprep.subr.bf16.mxu1 %v1723_v0  ;;  %v1629_v6 = vld [vmem:[%s2486_s0 + $0x4] ss:$8 sps:$4 sm:$0xff]   ;;  %v1617_v8 = vld [vmem:[%s2485_s1 + $0x30] sm:$0xff]   ;;  %v1618_v9 = vld [vmem:[%s2485_s1 + $0x38] sm:$0xff]  }
   0x4   :  { %694 = vmatprep.mubr.bf16.mxu0 %v1629_v6  ;;  %v1653_v10 = vld [vmem:[%s2486_s0 + $0x104] ss:$8 sps:$4 sm:$0xff]   ;;  %v1621_v13 = vld [vmem:[%s2485_s1 + $0x50] sm:$0xff]   ;;  %v1622_v14 = vld [vmem:[%s2485_s1 + $0x58] sm:$0xff]  }
   0x5   :  { %822 = vmatprep.mubr.bf16.mxu1 %v1653_v10  ;;  %v1619_v11 = vld [vmem:[%s2485_s1 + $0x40] sm:$0xff]   ;;  %v1620_v12 = vld [vmem:[%s2485_s1 + $0x48] sm:$0xff]   ;;  %v1625_v17 = vld [vmem:[%s2485_s1 + $0x70] sm:$0xff]  }
   0x6   :  { %665 = vmatpush1.bf16.msra.mxu0 %v1612_v2  ;;  %1595 = vmatpush1.bf16.msra.mxu1 %v1612_v2  ;;  %v1623_v15 = vld [vmem:[%s2485_s1 + $0x60] sm:$0xff]   ;;  %v1624_v16 = vld [vmem:[%s2485_s1 + $0x68] sm:$0xff]   ;;  %v1626_v18 = vld [vmem:[%s2485_s1 + $0x78] sm:$0xff]  }
   0x7   :  { %666 = vmatprep.subr.bf16.mxu0 %v1723_v0  ;;  %1580 = vmatprep.subr.bf16.mxu1 %v1723_v0  ;;  %v1627_v19 = vld [vmem:[%s2486_s0] ss:$8 sps:$4 sm:$0xff]   ;;  %v1630_v21 = vld [vmem:[%s2486_s0 + $0x14] ss:$8 sps:$4 sm:$0xff]   ;;  %v1632_v23 = vld [vmem:[%s2486_s0 + $0x10] ss:$8 sps:$4 sm:$0xff]  }
   0x8   :  { %v1651_v20 = vld [vmem:[%s2486_s0 + $0x100] ss:$8 sps:$4 sm:$0xff]   ;;  %v1657_v22 = vld [vmem:[%s2486_s0 + $0x114] ss:$8 sps:$4 sm:$0xff]   ;;  %v1659_v24 = vld [vmem:[%s2486_s0 + $0x110] ss:$8 sps:$4 sm:$0xff]  }
   0x9   :  { %v1633_v25 = vld [vmem:[%s2486_s0 + $0x24] ss:$8 sps:$4 sm:$0xff]   ;;  %v1635_v27 = vld [vmem:[%s2486_s0 + $0x20] ss:$8 sps:$4 sm:$0xff]   ;;  %v1636_v29 = vld [vmem:[%s2486_s0 + $0x34] ss:$8 sps:$4 sm:$0xff]  }
   0xa   :  { %667 = vmatpush1.bf16.msra.mxu0 %v1613_v3  ;;  %1596 = vmatpush1.bf16.msra.mxu1 %v1613_v3  ;;  %v1663_v26 = vld [vmem:[%s2486_s0 + $0x124] ss:$8 sps:$4 sm:$0xff]   ;;  %v1665_v28 = vld [vmem:[%s2486_s0 + $0x120] ss:$8 sps:$4 sm:$0xff]   ;;  %v1669_v30 = vld [vmem:[%s2486_s0 + $0x134] ss:$8 sps:$4 sm:$0xff]  }
   0xb   :  { %668 = vmatprep.subr.bf16.mxu0 %v1723_v0  ;;  %1581 = vmatprep.subr.bf16.mxu1 %v1723_v0  ;;  %v1638_v31 = vld [vmem:[%s2486_s0 + $0x30] ss:$8 sps:$4 sm:$0xff]   ;;  %v1639_v33 = vld [vmem:[%s2486_s0 + $0x44] ss:$8 sps:$4 sm:$0xff]   ;;  %v1641_v35 = vld [vmem:[%s2486_s0 + $0x40] ss:$8 sps:$4 sm:$0xff]  }
   0xc   :  { %v1671_v32 = vld [vmem:[%s2486_s0 + $0x130] ss:$8 sps:$4 sm:$0xff]   ;;  %v1675_v34 = vld [vmem:[%s2486_s0 + $0x144] ss:$8 sps:$4 sm:$0xff]   ;;  %v1677_v36 = vld [vmem:[%s2486_s0 + $0x140] ss:$8 sps:$4 sm:$0xff]  }
   0xd   :  { %v1642_v37 = vld [vmem:[%s2486_s0 + $0x54] ss:$8 sps:$4 sm:$0xff]   ;;  %v1644_v39 = vld [vmem:[%s2486_s0 + $0x50] ss:$8 sps:$4 sm:$0xff]   ;;  %v1645_v41 = vld [vmem:[%s2486_s0 + $0x64] ss:$8 sps:$4 sm:$0xff]  }
   0xe   :  { %669 = vmatpush1.bf16.msra.mxu0 %v1614_v4  ;;  %1597 = vmatpush1.bf16.msra.mxu1 %v1614_v4  ;;  %v1681_v38 = vld [vmem:[%s2486_s0 + $0x154] ss:$8 sps:$4 sm:$0xff]   ;;  %v1683_v40 = vld [vmem:[%s2486_s0 + $0x150] ss:$8 sps:$4 sm:$0xff]   ;;  %v1687_v42 = vld [vmem:[%s2486_s0 + $0x164] ss:$8 sps:$4 sm:$0xff]  }
   0xf   :  { %670 = vmatprep.subr.bf16.mxu0 %v1723_v0  ;;  %1582 = vmatprep.subr.bf16.mxu1 %v1723_v0  ;;  %v1647_v43 = vld [vmem:[%s2486_s0 + $0x60] ss:$8 sps:$4 sm:$0xff]   ;;  %v1648_v45 = vld [vmem:[%s2486_s0 + $0x74] ss:$8 sps:$4 sm:$0xff]   ;;  %v1650_v47 = vld [vmem:[%s2486_s0 + $0x70] ss:$8 sps:$4 sm:$0xff]  }
  0x10   :  { %v1689_v44 = vld [vmem:[%s2486_s0 + $0x160] ss:$8 sps:$4 sm:$0xff]   ;;  %v1693_v46 = vld [vmem:[%s2486_s0 + $0x174] ss:$8 sps:$4 sm:$0xff]   ;;  %v1695_v48 = vld [vmem:[%s2486_s0 + $0x170] ss:$8 sps:$4 sm:$0xff]  }
  0x11   :  { %v1654_v49 = vld [vmem:[%s2486_s0 + $0x84] ss:$8 sps:$4 sm:$0xff]   ;;  %v1656_v51 = vld [vmem:[%s2486_s0 + $0x80] ss:$8 sps:$4 sm:$0xff]   ;;  %v1660_v53 = vld [vmem:[%s2486_s0 + $0x94] ss:$8 sps:$4 sm:$0xff]  }
  0x12   :  { %671 = vmatpush1.bf16.msra.mxu0 %v1615_v5  ;;  %1598 = vmatpush1.bf16.msra.mxu1 %v1615_v5  ;;  %v1699_v50 = vld [vmem:[%s2486_s0 + $0x184] ss:$8 sps:$4 sm:$0xff]   ;;  %v1701_v52 = vld [vmem:[%s2486_s0 + $0x180] ss:$8 sps:$4 sm:$0xff]   ;;  %v1702_v54 = vld [vmem:[%s2486_s0 + $0x194] ss:$8 sps:$4 sm:$0xff]  }
  0x13   :  { %672 = vmatprep.subr.bf16.mxu0 %v1723_v0  ;;  %1583 = vmatprep.subr.bf16.mxu1 %v1723_v0  ;;  %v1662_v55 = vld [vmem:[%s2486_s0 + $0x90] ss:$8 sps:$4 sm:$0xff]   ;;  %v1666_v57 = vld [vmem:[%s2486_s0 + $0xa4] ss:$8 sps:$4 sm:$0xff]   ;;  %v1668_v59 = vld [vmem:[%s2486_s0 + $0xa0] ss:$8 sps:$4 sm:$0xff]  }
  0x14   :  { %v1704_v56 = vld [vmem:[%s2486_s0 + $0x190] ss:$8 sps:$4 sm:$0xff]   ;;  %v1705_v58 = vld [vmem:[%s2486_s0 + $0x1a4] ss:$8 sps:$4 sm:$0xff]   ;;  %v1707_v60 = vld [vmem:[%s2486_s0 + $0x1a0] ss:$8 sps:$4 sm:$0xff]  }
  0x15   :  { %v1672_v61 = vld [vmem:[%s2486_s0 + $0xb4] ss:$8 sps:$4 sm:$0xff]   ;;  %v1674_v63 = vld [vmem:[%s2486_s0 + $0xb0] ss:$8 sps:$4 sm:$0xff]   ;;  %v1678_v1 = vld [vmem:[%s2486_s0 + $0xc4] ss:$8 sps:$4 sm:$0xff]  }
  0x16   :  { %673 = vmatpush1.bf16.msra.mxu0 %v1616_v7  ;;  %1599 = vmatpush1.bf16.msra.mxu1 %v1616_v7  ;;  %v1708_v62 = vld [vmem:[%s2486_s0 + $0x1b4] ss:$8 sps:$4 sm:$0xff]   ;;  %v1711_v2 = vld [vmem:[%s2486_s0 + $0x1c4] ss:$8 sps:$4 sm:$0xff]   ;;  %v1680_v3 = vld [vmem:[%s2486_s0 + $0xc0] ss:$8 sps:$4 sm:$0xff]  }
  0x17   :  { %674 = vmatprep.subr.bf16.mxu0 %v1723_v0  ;;  %1584 = vmatprep.subr.bf16.mxu1 %v1723_v0  ;;  %v1713_v4 = vld [vmem:[%s2486_s0 + $0x1c0] ss:$8 sps:$4 sm:$0xff]   ;;  %v1684_v5 = vld [vmem:[%s2486_s0 + $0xd4] ss:$8 sps:$4 sm:$0xff]   ;;  %v1686_v7 = vld [vmem:[%s2486_s0 + $0xd0] ss:$8 sps:$4 sm:$0xff]  }
  0x18   :  { %v1714_v6 = vld [vmem:[%s2486_s0 + $0x1d4] ss:$8 sps:$4 sm:$0xff]   ;;  %v1717_v10 = vld [vmem:[%s2486_s0 + $0x1e4] ss:$8 sps:$4 sm:$0xff]  }
  0x1a   :  { %675 = vmatpush1.bf16.msra.mxu0 %v1617_v8  ;;  %1600 = vmatpush1.bf16.msra.mxu1 %v1617_v8  ;;  %v1716_v8 = vld [vmem:[%s2486_s0 + $0x1d0] ss:$8 sps:$4 sm:$0xff]  }
  0x1b   :  { %676 = vmatprep.subr.bf16.mxu0 %v1723_v0  ;;  %1585 = vmatprep.subr.bf16.mxu1 %v1723_v0 }
  0x1e   :  { %677 = vmatpush1.bf16.msra.mxu0 %v1618_v9  ;;  %1601 = vmatpush1.bf16.msra.mxu1 %v1618_v9  ;;  %v1690_v9 = vld [vmem:[%s2486_s0 + $0xe4] ss:$8 sps:$4 sm:$0xff]  }
  0x1f   :  { %678 = vmatprep.subr.bf16.mxu0 %v1723_v0  ;;  %1586 = vmatprep.subr.bf16.mxu1 %v1723_v0 }
  0x22   :  { %679 = vmatpush1.bf16.msra.mxu0 %v1619_v11  ;;  %1602 = vmatpush1.bf16.msra.mxu1 %v1619_v11  ;;  %v1692_v11 = vld [vmem:[%s2486_s0 + $0xe0] ss:$8 sps:$4 sm:$0xff]  }
  0x23   :  { %680 = vmatprep.subr.bf16.mxu0 %v1723_v0  ;;  %1587 = vmatprep.subr.bf16.mxu1 %v1723_v0 }
  0x26   :  { %681 = vmatpush1.bf16.msra.mxu0 %v1620_v12  ;;  %1603 = vmatpush1.bf16.msra.mxu1 %v1620_v12  ;;  %v1719_v12 = vld [vmem:[%s2486_s0 + $0x1e0] ss:$8 sps:$4 sm:$0xff]  }
  0x27   :  { %682 = vmatprep.subr.bf16.mxu0 %v1723_v0  ;;  %1588 = vmatprep.subr.bf16.mxu1 %v1723_v0 }
  0x2a   :  { %683 = vmatpush1.bf16.msra.mxu0 %v1621_v13  ;;  %1604 = vmatpush1.bf16.msra.mxu1 %v1621_v13  ;;  %v1696_v13 = vld [vmem:[%s2486_s0 + $0xf4] ss:$8 sps:$4 sm:$0xff]  }
  0x2b   :  { %684 = vmatprep.subr.bf16.mxu0 %v1723_v0  ;;  %1589 = vmatprep.subr.bf16.mxu1 %v1723_v0 }
  0x2e   :  { %685 = vmatpush1.bf16.msra.mxu0 %v1622_v14  ;;  %1605 = vmatpush1.bf16.msra.mxu1 %v1622_v14  ;;  %v1720_v14 = vld [vmem:[%s2486_s0 + $0x1f4] ss:$8 sps:$4 sm:$0xff]  }
  0x2f   :  { %686 = vmatprep.subr.bf16.mxu0 %v1723_v0  ;;  %1590 = vmatprep.subr.bf16.mxu1 %v1723_v0 }
  0x32   :  { %687 = vmatpush1.bf16.msra.mxu0 %v1623_v15  ;;  %1606 = vmatpush1.bf16.msra.mxu1 %v1623_v15  ;;  %v1698_v15 = vld [vmem:[%s2486_s0 + $0xf0] ss:$8 sps:$4 sm:$0xff]  }
  0x33   :  { %688 = vmatprep.subr.bf16.mxu0 %v1723_v0  ;;  %1591 = vmatprep.subr.bf16.mxu1 %v1723_v0 }
  0x36   :  { %689 = vmatpush1.bf16.msra.mxu0 %v1624_v16  ;;  %1607 = vmatpush1.bf16.msra.mxu1 %v1624_v16  ;;  %v1722_v16 = vld [vmem:[%s2486_s0 + $0x1f0] ss:$8 sps:$4 sm:$0xff]  }
  0x37   :  { %690 = vmatprep.subr.bf16.mxu0 %v1723_v0  ;;  %1592 = vmatprep.subr.bf16.mxu1 %v1723_v0 }
  0x3a   :  { %691 = vmatpush1.bf16.msra.mxu0 %v1625_v17  ;;  %1608 = vmatpush1.bf16.msra.mxu1 %v1625_v17  ;;  %v2029_v17 = vld [vmem:[%s2487_s2] ss:$0 sm:$0xff] }
  0x3b   :  { %692 = vmatprep.subr.bf16.mxu0 %v1723_v0  ;;  %1593 = vmatprep.subr.bf16.mxu1 %v1723_v0  ;;  %v1710_v0 = vld [vmem:[%s2486_s0 + $0x1b0] ss:$8 sps:$4 sm:$0xff]  }
  0x3e   :  { %693 = vmatpush1.bf16.msra.mxu0 %v1626_v18  ;;  %1609 = vmatpush1.bf16.msra.mxu1 %v1626_v18 }
  0x41   :  { %695 = vmatmul.mubr.bf16.vlgmr.msra.gmra.mrb[0].mxu0 %v1627_v19  ;;  %823 = vmatmul.mubr.bf16.vlgmr.msra.gmra.mrb[0].mxu1 %v1651_v20 }
  0x42   :  { %702 = vmatprep.mubr.bf16.mxu0 %v1630_v21  ;;  %830 = vmatprep.mubr.bf16.mxu1 %v1657_v22 }
  0x49   :  { %703 = vmatmul.mubr.bf16.gmra.mrb[4].mxu0 %v1632_v23  ;;  %831 = vmatmul.mubr.bf16.gmra.mrb[4].mxu1 %v1659_v24 }
  0x4a   :  { %710 = vmatprep.mubr.bf16.mxu0 %v1633_v25  ;;  %838 = vmatprep.mubr.bf16.mxu1 %v1663_v26 }
  0x51   :  { %711 = vmatmul.mubr.bf16.gmra.mrb[8].mxu0 %v1635_v27  ;;  %839 = vmatmul.mubr.bf16.gmra.mrb[8].mxu1 %v1665_v28 }
  0x52   :  { %718 = vmatprep.mubr.bf16.mxu0 %v1636_v29  ;;  %846 = vmatprep.mubr.bf16.mxu1 %v1669_v30 }
  0x59   :  { %719 = vmatmul.mubr.bf16.gmra.mrb[12].mxu0 %v1638_v31  ;;  %847 = vmatmul.mubr.bf16.gmra.mrb[12].mxu1 %v1671_v32 }
  0x5a   :  { %726 = vmatprep.mubr.bf16.mxu0 %v1639_v33  ;;  %854 = vmatprep.mubr.bf16.mxu1 %v1675_v34 }
  0x61   :  { %727 = vmatmul.mubr.bf16.gmra.mrb[16].mxu0 %v1641_v35  ;;  %855 = vmatmul.mubr.bf16.gmra.mrb[16].mxu1 %v1677_v36 }
  0x62   :  { %734 = vmatprep.mubr.bf16.mxu0 %v1642_v37  ;;  %862 = vmatprep.mubr.bf16.mxu1 %v1681_v38 }
  0x69   :  { %735 = vmatmul.mubr.bf16.gmra.mrb[20].mxu0 %v1644_v39  ;;  %863 = vmatmul.mubr.bf16.gmra.mrb[20].mxu1 %v1683_v40 }
  0x6a   :  { %742 = vmatprep.mubr.bf16.mxu0 %v1645_v41  ;;  %870 = vmatprep.mubr.bf16.mxu1 %v1687_v42 }
  0x71   :  { %743 = vmatmul.mubr.bf16.gmra.mrb[24].mxu0 %v1647_v43  ;;  %871 = vmatmul.mubr.bf16.gmra.mrb[24].mxu1 %v1689_v44 }
  0x72   :  { %750 = vmatprep.mubr.bf16.mxu0 %v1648_v45  ;;  %878 = vmatprep.mubr.bf16.mxu1 %v1693_v46 }
  0x79   :  { %751 = vmatmul.mubr.bf16.gmra.mrb[28].mxu0 %v1650_v47  ;;  %879 = vmatmul.mubr.bf16.gmra.mrb[28].mxu1 %v1695_v48 }
  0x7a   :  { %758 = vmatprep.mubr.bf16.mxu0 %v1654_v49  ;;  %886 = vmatprep.mubr.bf16.mxu1 %v1699_v50 }
  0x81   :  { %759 = vmatmul.mubr.bf16.gmra.mrb[32].mxu0 %v1656_v51  ;;  %887 = vmatmul.mubr.bf16.gmra.mrb[32].mxu1 %v1701_v52 }
  0x82   :  { %766 = vmatprep.mubr.bf16.mxu0 %v1660_v53  ;;  %894 = vmatprep.mubr.bf16.mxu1 %v1702_v54 }
  0x89   :  { %767 = vmatmul.mubr.bf16.gmra.mrb[36].mxu0 %v1662_v55  ;;  %895 = vmatmul.mubr.bf16.gmra.mrb[36].mxu1 %v1704_v56 }
  0x8a   :  { %774 = vmatprep.mubr.bf16.mxu0 %v1666_v57  ;;  %902 = vmatprep.mubr.bf16.mxu1 %v1705_v58 }
  0x91   :  { %775 = vmatmul.mubr.bf16.gmra.mrb[40].mxu0 %v1668_v59  ;;  %903 = vmatmul.mubr.bf16.gmra.mrb[40].mxu1 %v1707_v60 }
  0x92   :  { %782 = vmatprep.mubr.bf16.mxu0 %v1672_v61  ;;  %910 = vmatprep.mubr.bf16.mxu1 %v1708_v62 }
  0x99   :  { %783 = vmatmul.mubr.bf16.gmra.mrb[44].mxu0 %v1674_v63  ;;  %911 = vmatmul.mubr.bf16.gmra.mrb[44].mxu1 %v1710_v0 }
  0x9a   :  { %790 = vmatprep.mubr.bf16.mxu0 %v1678_v1  ;;  %918 = vmatprep.mubr.bf16.mxu1 %v1711_v2 }
  0xa1   :  { %791 = vmatmul.mubr.bf16.gmra.mrb[48].mxu0 %v1680_v3  ;;  %919 = vmatmul.mubr.bf16.gmra.mrb[48].mxu1 %v1713_v4 }
  0xa2   :  { %798 = vmatprep.mubr.bf16.mxu0 %v1684_v5  ;;  %926 = vmatprep.mubr.bf16.mxu1 %v1714_v6 }
  0xa9   :  { %799 = vmatmul.mubr.bf16.gmra.mrb[52].mxu0 %v1686_v7  ;;  %927 = vmatmul.mubr.bf16.gmra.mrb[52].mxu1 %v1716_v8 }
  0xaa   :  { %806 = vmatprep.mubr.bf16.mxu0 %v1690_v9  ;;  %934 = vmatprep.mubr.bf16.mxu1 %v1717_v10 }
  0xb1   :  { %807 = vmatmul.mubr.bf16.gmra.mrb[56].mxu0 %v1692_v11  ;;  %935 = vmatmul.mubr.bf16.gmra.mrb[56].mxu1 %v1719_v12 }
  0xb2   :  { %814 = vmatprep.mubr.bf16.mxu0 %v1696_v13  ;;  %942 = vmatprep.mubr.bf16.mxu1 %v1720_v14 }
  0xb9   :  { %815 = vmatmul.mubr.bf16.gmra.mrb[60].mxu0 %v1698_v15  ;;  %943 = vmatmul.mubr.bf16.gmra.mrb[60].mxu1 %v1722_v16 }
 0x114   :  { %v696_v18 = vpop.f32.mrb[0].mxu0  ;;  %v824_v19 = vpop.f32.mrb[0].mxu1 }
 0x115   :  { %v1153_v20 = vadd.f32 %v2029_v17, %v696_v18  ;;  %v698_v21 = vpop.f32.mrb[1].mxu0  ;;  %v2033_v22 = vadd.f32 %v2029_v17, %v824_v19  ;;  %v826_v23 = vpop.f32.mrb[1].mxu1 }
 0x116   :  { %v699_v24 = vpop.f32.mrb[2].mxu0  ;;  %v827_v25 = vpop.f32.mrb[2].mxu1 }
 0x117   :  { %1217 = vst [vmem:[%s2488_s3] sm:$0xff] %v1153_v20  ;;  %v1154_v26 = vadd.f32 %v2029_v17, %v699_v24  ;;  %v701_v27 = vpop.f32.mrb[3].mxu0  ;;  %1249 = vst [vmem:[%s2488_s3 + $0x100] sm:$0xff] %v2033_v22  ;;  %v2044_v28 = vadd.f32 %v2029_v17, %v827_v25  ;;  %v829_v29 = vpop.f32.mrb[3].mxu1  ;;  %v1351_v30 = vmul.f32 %v1153_v20, %v1153_v20 }
 0x119   :  { %1218 = vst [vmem:[%s2488_s3 + $0x8] sm:$0xff] %v1154_v26  ;;  %v1281_v31 = vadd.f32 %v1154_v26, %v1153_v20  ;;  %v1352_v32 = vmul.f32 %v1154_v26, %v1154_v26  ;;  %1250 = vst [vmem:[%s2488_s3 + $0x108] sm:$0xff] %v2044_v28 }
 0x11b   :  { %v1415_v33 = vadd.f32 %v1352_v32, %v1351_v30 }
 0x11c   :  { %v704_v34 = vpop.f32.mrb[4].mxu0  ;;  %v832_v35 = vpop.f32.mrb[4].mxu1 }
 0x11d   :  { %v1155_v36 = vadd.f32 %v2029_v17, %v704_v34  ;;  %v706_v37 = vpop.f32.mrb[5].mxu0  ;;  %v2055_v38 = vadd.f32 %v2029_v17, %v832_v35  ;;  %v834_v39 = vpop.f32.mrb[5].mxu1 }
 0x11e   :  { %v707_v40 = vpop.f32.mrb[6].mxu0  ;;  %v835_v41 = vpop.f32.mrb[6].mxu1 }
 0x11f   :  { %1219 = vst [vmem:[%s2488_s3 + $0x10] sm:$0xff] %v1155_v36  ;;  %v1282_v42 = vadd.f32 %v1281_v31, %v1155_v36  ;;  %v1353_v43 = vmul.f32 %v1155_v36, %v1155_v36  ;;  %v1156_v44 = vadd.f32 %v2029_v17, %v707_v40  ;;  %v709_v45 = vpop.f32.mrb[7].mxu0  ;;  %1251 = vst [vmem:[%s2488_s3 + $0x110] sm:$0xff] %v2055_v38  ;;  %v837_v46 = vpop.f32.mrb[7].mxu1 }
 0x120   :  { %v2066_v47 = vadd.f32 %v2029_v17, %v835_v41 }
 0x121   :  { %v1416_v48 = vadd.f32 %v1415_v33, %v1353_v43  ;;  %1220 = vst [vmem:[%s2488_s3 + $0x18] sm:$0xff] %v1156_v44  ;;  %v1283_v49 = vadd.f32 %v1282_v42, %v1156_v44  ;;  %v1354_v50 = vmul.f32 %v1156_v44, %v1156_v44 }
 0x122   :  { %1252 = vst [vmem:[%s2488_s3 + $0x118] sm:$0xff] %v2066_v47 }
 0x123   :  { %v1417_v51 = vadd.f32 %v1416_v48, %v1354_v50 }
 0x124   :  { %v712_v52 = vpop.f32.mrb[8].mxu0  ;;  %v840_v53 = vpop.f32.mrb[8].mxu1 }
 0x125   :  { %v1157_v54 = vadd.f32 %v2029_v17, %v712_v52  ;;  %v714_v55 = vpop.f32.mrb[9].mxu0  ;;  %v2077_v56 = vadd.f32 %v2029_v17, %v840_v53  ;;  %v842_v57 = vpop.f32.mrb[9].mxu1 }
 0x126   :  { %v715_v58 = vpop.f32.mrb[10].mxu0  ;;  %v843_v59 = vpop.f32.mrb[10].mxu1 }
 0x127   :  { %1221 = vst [vmem:[%s2488_s3 + $0x20] sm:$0xff] %v1157_v54  ;;  %v1284_v60 = vadd.f32 %v1283_v49, %v1157_v54  ;;  %v1355_v61 = vmul.f32 %v1157_v54, %v1157_v54  ;;  %v1158_v62 = vadd.f32 %v2029_v17, %v715_v58  ;;  %v717_v63 = vpop.f32.mrb[11].mxu0  ;;  %1253 = vst [vmem:[%s2488_s3 + $0x120] sm:$0xff] %v2077_v56  ;;  %v845_v0 = vpop.f32.mrb[11].mxu1 }
 0x128   :  { %v2088_v1 = vadd.f32 %v2029_v17, %v843_v59 }
 0x129   :  { %v1418_v2 = vadd.f32 %v1417_v51, %v1355_v61  ;;  %1222 = vst [vmem:[%s2488_s3 + $0x28] sm:$0xff] %v1158_v62  ;;  %v1285_v3 = vadd.f32 %v1284_v60, %v1158_v62  ;;  %v1356_v4 = vmul.f32 %v1158_v62, %v1158_v62 }
 0x12a   :  { %1254 = vst [vmem:[%s2488_s3 + $0x128] sm:$0xff] %v2088_v1 }
 0x12b   :  { %v1419_v5 = vadd.f32 %v1418_v2, %v1356_v4 }
 0x12c   :  { %v720_v6 = vpop.f32.mrb[12].mxu0  ;;  %v848_v7 = vpop.f32.mrb[12].mxu1 }
 0x12d   :  { %v1159_v8 = vadd.f32 %v2029_v17, %v720_v6  ;;  %v722_v9 = vpop.f32.mrb[13].mxu0  ;;  %v2099_v10 = vadd.f32 %v2029_v17, %v848_v7  ;;  %v850_v11 = vpop.f32.mrb[13].mxu1 }
 0x12e   :  { %v723_v12 = vpop.f32.mrb[14].mxu0  ;;  %v851_v13 = vpop.f32.mrb[14].mxu1 }
 0x12f   :  { %1223 = vst [vmem:[%s2488_s3 + $0x30] sm:$0xff] %v1159_v8  ;;  %v1286_v14 = vadd.f32 %v1285_v3, %v1159_v8  ;;  %v1357_v15 = vmul.f32 %v1159_v8, %v1159_v8  ;;  %v1160_v16 = vadd.f32 %v2029_v17, %v723_v12  ;;  %v725_v18 = vpop.f32.mrb[15].mxu0  ;;  %1255 = vst [vmem:[%s2488_s3 + $0x130] sm:$0xff] %v2099_v10  ;;  %v853_v19 = vpop.f32.mrb[15].mxu1 }
 0x130   :  { %v2110_v20 = vadd.f32 %v2029_v17, %v851_v13 }
 0x131   :  { %v1420_v21 = vadd.f32 %v1419_v5, %v1357_v15  ;;  %1224 = vst [vmem:[%s2488_s3 + $0x38] sm:$0xff] %v1160_v16  ;;  %v1287_v23 = vadd.f32 %v1286_v14, %v1160_v16  ;;  %v1358_v24 = vmul.f32 %v1160_v16, %v1160_v16 }
 0x132   :  { %1256 = vst [vmem:[%s2488_s3 + $0x138] sm:$0xff] %v2110_v20 }
 0x133   :  { %v1421_v25 = vadd.f32 %v1420_v21, %v1358_v24 }
 0x134   :  { %v728_v26 = vpop.f32.mrb[16].mxu0  ;;  %v856_v27 = vpop.f32.mrb[16].mxu1 }
 0x135   :  { %v1161_v29 = vadd.f32 %v2029_v17, %v728_v26  ;;  %v730_v30 = vpop.f32.mrb[17].mxu0  ;;  %v2121_v31 = vadd.f32 %v2029_v17, %v856_v27  ;;  %v858_v32 = vpop.f32.mrb[17].mxu1 }
 0x136   :  { %v731_v33 = vpop.f32.mrb[18].mxu0  ;;  %v859_v34 = vpop.f32.mrb[18].mxu1 }
 0x137   :  { %1225 = vst [vmem:[%s2488_s3 + $0x40] sm:$0xff] %v1161_v29  ;;  %v1288_v35 = vadd.f32 %v1287_v23, %v1161_v29  ;;  %v1359_v36 = vmul.f32 %v1161_v29, %v1161_v29  ;;  %v1162_v37 = vadd.f32 %v2029_v17, %v731_v33  ;;  %v733_v39 = vpop.f32.mrb[19].mxu0  ;;  %1257 = vst [vmem:[%s2488_s3 + $0x140] sm:$0xff] %v2121_v31  ;;  %v861_v40 = vpop.f32.mrb[19].mxu1 }
 0x138   :  { %v2132_v41 = vadd.f32 %v2029_v17, %v859_v34 }
 0x139   :  { %v1422_v42 = vadd.f32 %v1421_v25, %v1359_v36  ;;  %1226 = vst [vmem:[%s2488_s3 + $0x48] sm:$0xff] %v1162_v37  ;;  %v1289_v43 = vadd.f32 %v1288_v35, %v1162_v37  ;;  %v1360_v44 = vmul.f32 %v1162_v37, %v1162_v37 }
 0x13a   :  { %1258 = vst [vmem:[%s2488_s3 + $0x148] sm:$0xff] %v2132_v41 }
 0x13b   :  { %v1423_v45 = vadd.f32 %v1422_v42, %v1360_v44 }
 0x13c   :  { %v736_v46 = vpop.f32.mrb[20].mxu0  ;;  %v864_v48 = vpop.f32.mrb[20].mxu1 }
 0x13d   :  { %v1163_v49 = vadd.f32 %v2029_v17, %v736_v46  ;;  %v738_v50 = vpop.f32.mrb[21].mxu0  ;;  %v2143_v51 = vadd.f32 %v2029_v17, %v864_v48  ;;  %v866_v52 = vpop.f32.mrb[21].mxu1 }
 0x13e   :  { %v739_v53 = vpop.f32.mrb[22].mxu0  ;;  %v867_v54 = vpop.f32.mrb[22].mxu1 }
 0x13f   :  { %1227 = vst [vmem:[%s2488_s3 + $0x50] sm:$0xff] %v1163_v49  ;;  %v1290_v55 = vadd.f32 %v1289_v43, %v1163_v49  ;;  %v1361_v57 = vmul.f32 %v1163_v49, %v1163_v49  ;;  %v1164_v58 = vadd.f32 %v2029_v17, %v739_v53  ;;  %v741_v59 = vpop.f32.mrb[23].mxu0  ;;  %1259 = vst [vmem:[%s2488_s3 + $0x150] sm:$0xff] %v2143_v51  ;;  %v869_v60 = vpop.f32.mrb[23].mxu1 }
 0x140   :  { %v2154_v61 = vadd.f32 %v2029_v17, %v867_v54 }
 0x141   :  { %v1424_v62 = vadd.f32 %v1423_v45, %v1361_v57  ;;  %1228 = vst [vmem:[%s2488_s3 + $0x58] sm:$0xff] %v1164_v58  ;;  %v1291_v63 = vadd.f32 %v1290_v55, %v1164_v58  ;;  %v1362_v0 = vmul.f32 %v1164_v58, %v1164_v58 }
 0x142   :  { %1260 = vst [vmem:[%s2488_s3 + $0x158] sm:$0xff] %v2154_v61 }
 0x143   :  { %v1425_v2 = vadd.f32 %v1424_v62, %v1362_v0 }
 0x144   :  { %v744_v3 = vpop.f32.mrb[24].mxu0  ;;  %v872_v4 = vpop.f32.mrb[24].mxu1 }
 0x145   :  { %v1165_v5 = vadd.f32 %v2029_v17, %v744_v3  ;;  %v746_v6 = vpop.f32.mrb[25].mxu0  ;;  %v2165_v7 = vadd.f32 %v2029_v17, %v872_v4  ;;  %v874_v8 = vpop.f32.mrb[25].mxu1 }
 0x146   :  { %v747_v9 = vpop.f32.mrb[26].mxu0  ;;  %v875_v11 = vpop.f32.mrb[26].mxu1 }
 0x147   :  { %1229 = vst [vmem:[%s2488_s3 + $0x60] sm:$0xff] %v1165_v5  ;;  %v1292_v12 = vadd.f32 %v1291_v63, %v1165_v5  ;;  %v1363_v13 = vmul.f32 %v1165_v5, %v1165_v5  ;;  %v1166_v14 = vadd.f32 %v2029_v17, %v747_v9  ;;  %v749_v15 = vpop.f32.mrb[27].mxu0  ;;  %1261 = vst [vmem:[%s2488_s3 + $0x160] sm:$0xff] %v2165_v7  ;;  %v877_v16 = vpop.f32.mrb[27].mxu1 }
 0x148   :  { %v2176_v18 = vadd.f32 %v2029_v17, %v875_v11 }
 0x149   :  { %v1426_v19 = vadd.f32 %v1425_v2, %v1363_v13  ;;  %1230 = vst [vmem:[%s2488_s3 + $0x68] sm:$0xff] %v1166_v14  ;;  %v1293_v21 = vadd.f32 %v1292_v12, %v1166_v14  ;;  %v1364_v23 = vmul.f32 %v1166_v14, %v1166_v14 }
 0x14a   :  { %1262 = vst [vmem:[%s2488_s3 + $0x168] sm:$0xff] %v2176_v18 }
 0x14b   :  { %v1427_v24 = vadd.f32 %v1426_v19, %v1364_v23 }
 0x14c   :  { %v752_v25 = vpop.f32.mrb[28].mxu0  ;;  %v880_v26 = vpop.f32.mrb[28].mxu1 }
 0x14d   :  { %v1167_v27 = vadd.f32 %v2029_v17, %v752_v25  ;;  %v754_v29 = vpop.f32.mrb[29].mxu0  ;;  %v2187_v30 = vadd.f32 %v2029_v17, %v880_v26  ;;  %v882_v32 = vpop.f32.mrb[29].mxu1 }
 0x14e   :  { %v755_v33 = vpop.f32.mrb[30].mxu0  ;;  %v883_v34 = vpop.f32.mrb[30].mxu1 }
 0x14f   :  { %1231 = vst [vmem:[%s2488_s3 + $0x70] sm:$0xff] %v1167_v27  ;;  %v1294_v35 = vadd.f32 %v1293_v21, %v1167_v27  ;;  %v1365_v36 = vmul.f32 %v1167_v27, %v1167_v27  ;;  %v1168_v37 = vadd.f32 %v2029_v17, %v755_v33  ;;  %v757_v39 = vpop.f32.mrb[31].mxu0  ;;  %1263 = vst [vmem:[%s2488_s3 + $0x170] sm:$0xff] %v2187_v30  ;;  %v885_v40 = vpop.f32.mrb[31].mxu1 }
 0x150   :  { %v2198_v42 = vadd.f32 %v2029_v17, %v883_v34 }
 0x151   :  { %v1428_v43 = vadd.f32 %v1427_v24, %v1365_v36  ;;  %1232 = vst [vmem:[%s2488_s3 + $0x78] sm:$0xff] %v1168_v37  ;;  %v1295_v44 = vadd.f32 %v1294_v35, %v1168_v37  ;;  %v1366_v45 = vmul.f32 %v1168_v37, %v1168_v37 }
 0x152   :  { %1264 = vst [vmem:[%s2488_s3 + $0x178] sm:$0xff] %v2198_v42 }
 0x153   :  { %v1429_v46 = vadd.f32 %v1428_v43, %v1366_v45 }
 0x154   :  { %v760_v48 = vpop.f32.mrb[32].mxu0  ;;  %v888_v49 = vpop.f32.mrb[32].mxu1 }
 0x155   :  { %v1169_v50 = vadd.f32 %v2029_v17, %v760_v48  ;;  %v762_v52 = vpop.f32.mrb[33].mxu0  ;;  %v2209_v53 = vadd.f32 %v2029_v17, %v888_v49  ;;  %v890_v54 = vpop.f32.mrb[33].mxu1 }
 0x156   :  { %v763_v55 = vpop.f32.mrb[34].mxu0  ;;  %v891_v57 = vpop.f32.mrb[34].mxu1 }
 0x157   :  { %1233 = vst [vmem:[%s2488_s3 + $0x80] sm:$0xff] %v1169_v50  ;;  %v1296_v58 = vadd.f32 %v1295_v44, %v1169_v50  ;;  %v1367_v59 = vmul.f32 %v1169_v50, %v1169_v50  ;;  %v1170_v60 = vadd.f32 %v2029_v17, %v763_v55  ;;  %v765_v62 = vpop.f32.mrb[35].mxu0  ;;  %1265 = vst [vmem:[%s2488_s3 + $0x180] sm:$0xff] %v2209_v53  ;;  %v893_v63 = vpop.f32.mrb[35].mxu1 }
 0x158   :  { %v2220_v0 = vadd.f32 %v2029_v17, %v891_v57 }
 0x159   :  { %v1430_v2 = vadd.f32 %v1429_v46, %v1367_v59  ;;  %1234 = vst [vmem:[%s2488_s3 + $0x88] sm:$0xff] %v1170_v60  ;;  %v1297_v3 = vadd.f32 %v1296_v58, %v1170_v60  ;;  %v1368_v4 = vmul.f32 %v1170_v60, %v1170_v60 }
 0x15a   :  { %1266 = vst [vmem:[%s2488_s3 + $0x188] sm:$0xff] %v2220_v0 }
 0x15b   :  { %v1431_v5 = vadd.f32 %v1430_v2, %v1368_v4 }
 0x15c   :  { %v768_v6 = vpop.f32.mrb[36].mxu0  ;;  %v896_v8 = vpop.f32.mrb[36].mxu1 }
 0x15d   :  { %v1171_v9 = vadd.f32 %v2029_v17, %v768_v6  ;;  %v770_v11 = vpop.f32.mrb[37].mxu0  ;;  %v2231_v12 = vadd.f32 %v2029_v17, %v896_v8  ;;  %v898_v13 = vpop.f32.mrb[37].mxu1 }
 0x15e   :  { %v771_v14 = vpop.f32.mrb[38].mxu0  ;;  %v899_v15 = vpop.f32.mrb[38].mxu1 }
 0x15f   :  { %1235 = vst [vmem:[%s2488_s3 + $0x90] sm:$0xff] %v1171_v9  ;;  %v1298_v16 = vadd.f32 %v1297_v3, %v1171_v9  ;;  %v1369_v19 = vmul.f32 %v1171_v9, %v1171_v9  ;;  %v1172_v21 = vadd.f32 %v2029_v17, %v771_v14  ;;  %v773_v23 = vpop.f32.mrb[39].mxu0  ;;  %1267 = vst [vmem:[%s2488_s3 + $0x190] sm:$0xff] %v2231_v12  ;;  %v901_v24 = vpop.f32.mrb[39].mxu1 }
 0x160   :  { %v2242_v25 = vadd.f32 %v2029_v17, %v899_v15 }
 0x161   :  { %v1432_v26 = vadd.f32 %v1431_v5, %v1369_v19  ;;  %1236 = vst [vmem:[%s2488_s3 + $0x98] sm:$0xff] %v1172_v21  ;;  %v1299_v27 = vadd.f32 %v1298_v16, %v1172_v21  ;;  %v1370_v29 = vmul.f32 %v1172_v21, %v1172_v21 }
 0x162   :  { %1268 = vst [vmem:[%s2488_s3 + $0x198] sm:$0xff] %v2242_v25 }
 0x163   :  { %v1433_v32 = vadd.f32 %v1432_v26, %v1370_v29 }
 0x164   :  { %v776_v33 = vpop.f32.mrb[40].mxu0  ;;  %v904_v34 = vpop.f32.mrb[40].mxu1 }
 0x165   :  { %v1173_v35 = vadd.f32 %v2029_v17, %v776_v33  ;;  %v778_v36 = vpop.f32.mrb[41].mxu0  ;;  %v2253_v37 = vadd.f32 %v2029_v17, %v904_v34  ;;  %v906_v39 = vpop.f32.mrb[41].mxu1 }
 0x166   :  { %v779_v40 = vpop.f32.mrb[42].mxu0  ;;  %v907_v43 = vpop.f32.mrb[42].mxu1 }
 0x167   :  { %1237 = vst [vmem:[%s2488_s3 + $0xa0] sm:$0xff] %v1173_v35  ;;  %v1300_v44 = vadd.f32 %v1299_v27, %v1173_v35  ;;  %v1371_v45 = vmul.f32 %v1173_v35, %v1173_v35  ;;  %v1174_v46 = vadd.f32 %v2029_v17, %v779_v40  ;;  %v781_v48 = vpop.f32.mrb[43].mxu0  ;;  %1269 = vst [vmem:[%s2488_s3 + $0x1a0] sm:$0xff] %v2253_v37  ;;  %v909_v49 = vpop.f32.mrb[43].mxu1 }
 0x168   :  { %v2264_v50 = vadd.f32 %v2029_v17, %v907_v43 }
 0x169   :  { %v1434_v52 = vadd.f32 %v1433_v32, %v1371_v45  ;;  %1238 = vst [vmem:[%s2488_s3 + $0xa8] sm:$0xff] %v1174_v46  ;;  %v1301_v54 = vadd.f32 %v1300_v44, %v1174_v46  ;;  %v1372_v55 = vmul.f32 %v1174_v46, %v1174_v46 }
 0x16a   :  { %1270 = vst [vmem:[%s2488_s3 + $0x1a8] sm:$0xff] %v2264_v50 }
 0x16b   :  { %v1435_v57 = vadd.f32 %v1434_v52, %v1372_v55 }
 0x16c   :  { %v784_v58 = vpop.f32.mrb[44].mxu0  ;;  %v912_v59 = vpop.f32.mrb[44].mxu1 }
 0x16d   :  { %v1175_v60 = vadd.f32 %v2029_v17, %v784_v58  ;;  %v786_v62 = vpop.f32.mrb[45].mxu0  ;;  %v2275_v63 = vadd.f32 %v2029_v17, %v912_v59  ;;  %v914_v2 = vpop.f32.mrb[45].mxu1 }
 0x16e   :  { %v787_v3 = vpop.f32.mrb[46].mxu0  ;;  %v915_v4 = vpop.f32.mrb[46].mxu1 }
 0x16f   :  { %1239 = vst [vmem:[%s2488_s3 + $0xb0] sm:$0xff] %v1175_v60  ;;  %v1302_v5 = vadd.f32 %v1301_v54, %v1175_v60  ;;  %v1373_v6 = vmul.f32 %v1175_v60, %v1175_v60  ;;  %v1176_v8 = vadd.f32 %v2029_v17, %v787_v3  ;;  %v789_v9 = vpop.f32.mrb[47].mxu0  ;;  %1271 = vst [vmem:[%s2488_s3 + $0x1b0] sm:$0xff] %v2275_v63  ;;  %v917_v11 = vpop.f32.mrb[47].mxu1 }
 0x170   :  { %v2286_v13 = vadd.f32 %v2029_v17, %v915_v4 }
 0x171   :  { %v1436_v14 = vadd.f32 %v1435_v57, %v1373_v6  ;;  %1240 = vst [vmem:[%s2488_s3 + $0xb8] sm:$0xff] %v1176_v8  ;;  %v1303_v15 = vadd.f32 %v1302_v5, %v1176_v8  ;;  %v1374_v16 = vmul.f32 %v1176_v8, %v1176_v8 }
 0x172   :  { %1272 = vst [vmem:[%s2488_s3 + $0x1b8] sm:$0xff] %v2286_v13 }
 0x173   :  { %v1437_v19 = vadd.f32 %v1436_v14, %v1374_v16 }
 0x174   :  { %v792_v21 = vpop.f32.mrb[48].mxu0  ;;  %v920_v23 = vpop.f32.mrb[48].mxu1 }
 0x175   :  { %v1177_v24 = vadd.f32 %v2029_v17, %v792_v21  ;;  %v794_v26 = vpop.f32.mrb[49].mxu0  ;;  %v2297_v27 = vadd.f32 %v2029_v17, %v920_v23  ;;  %v922_v29 = vpop.f32.mrb[49].mxu1 }
 0x176   :  { %v795_v32 = vpop.f32.mrb[50].mxu0  ;;  %v923_v33 = vpop.f32.mrb[50].mxu1 }
 0x177   :  { %1241 = vst [vmem:[%s2488_s3 + $0xc0] sm:$0xff] %v1177_v24  ;;  %v1304_v34 = vadd.f32 %v1303_v15, %v1177_v24  ;;  %v1375_v35 = vmul.f32 %v1177_v24, %v1177_v24  ;;  %v1178_v36 = vadd.f32 %v2029_v17, %v795_v32  ;;  %v797_v39 = vpop.f32.mrb[51].mxu0  ;;  %1273 = vst [vmem:[%s2488_s3 + $0x1c0] sm:$0xff] %v2297_v27  ;;  %v925_v40 = vpop.f32.mrb[51].mxu1 }
 0x178   :  { %v2308_v43 = vadd.f32 %v2029_v17, %v923_v33 }
 0x179   :  { %v1438_v44 = vadd.f32 %v1437_v19, %v1375_v35  ;;  %1242 = vst [vmem:[%s2488_s3 + $0xc8] sm:$0xff] %v1178_v36  ;;  %v1305_v45 = vadd.f32 %v1304_v34, %v1178_v36  ;;  %v1376_v46 = vmul.f32 %v1178_v36, %v1178_v36 }
 0x17a   :  { %1274 = vst [vmem:[%s2488_s3 + $0x1c8] sm:$0xff] %v2308_v43 }
 0x17b   :  { %v1439_v48 = vadd.f32 %v1438_v44, %v1376_v46 }
 0x17c   :  { %v800_v49 = vpop.f32.mrb[52].mxu0  ;;  %v928_v52 = vpop.f32.mrb[52].mxu1 }
 0x17d   :  { %v1179_v54 = vadd.f32 %v2029_v17, %v800_v49  ;;  %v802_v55 = vpop.f32.mrb[53].mxu0  ;;  %v2319_v57 = vadd.f32 %v2029_v17, %v928_v52  ;;  %v930_v58 = vpop.f32.mrb[53].mxu1 }
 0x17e   :  { %v803_v59 = vpop.f32.mrb[54].mxu0  ;;  %v931_v60 = vpop.f32.mrb[54].mxu1 }
 0x17f   :  { %1243 = vst [vmem:[%s2488_s3 + $0xd0] sm:$0xff] %v1179_v54  ;;  %v1306_v62 = vadd.f32 %v1305_v45, %v1179_v54  ;;  %v1377_v2 = vmul.f32 %v1179_v54, %v1179_v54  ;;  %v1180_v3 = vadd.f32 %v2029_v17, %v803_v59  ;;  %v805_v4 = vpop.f32.mrb[55].mxu0  ;;  %1275 = vst [vmem:[%s2488_s3 + $0x1d0] sm:$0xff] %v2319_v57  ;;  %v933_v5 = vpop.f32.mrb[55].mxu1 }
 0x180   :  { %v2330_v6 = vadd.f32 %v2029_v17, %v931_v60 }
 0x181   :  { %v1440_v8 = vadd.f32 %v1439_v48, %v1377_v2  ;;  %1244 = vst [vmem:[%s2488_s3 + $0xd8] sm:$0xff] %v1180_v3  ;;  %v1307_v9 = vadd.f32 %v1306_v62, %v1180_v3  ;;  %v1378_v11 = vmul.f32 %v1180_v3, %v1180_v3 }
 0x182   :  { %1276 = vst [vmem:[%s2488_s3 + $0x1d8] sm:$0xff] %v2330_v6 }
 0x183   :  { %v1441_v14 = vadd.f32 %v1440_v8, %v1378_v11 }
 0x184   :  { %v808_v15 = vpop.f32.mrb[56].mxu0  ;;  %v936_v16 = vpop.f32.mrb[56].mxu1 }
 0x185   :  { %v1181_v19 = vadd.f32 %v2029_v17, %v808_v15  ;;  %v810_v21 = vpop.f32.mrb[57].mxu0  ;;  %v2341_v23 = vadd.f32 %v2029_v17, %v936_v16  ;;  %v938_v24 = vpop.f32.mrb[57].mxu1  ;;  %v1383_v15 = vmul.f32 %v2033_v22, %v2033_v22 }
 0x186   :  { %v811_v26 = vpop.f32.mrb[58].mxu0  ;;  %v939_v29 = vpop.f32.mrb[58].mxu1 }
 0x187   :  { %1245 = vst [vmem:[%s2488_s3 + $0xe0] sm:$0xff] %v1181_v19  ;;  %v1308_v32 = vadd.f32 %v1307_v9, %v1181_v19  ;;  %v1379_v33 = vmul.f32 %v1181_v19, %v1181_v19  ;;  %v1182_v34 = vadd.f32 %v2029_v17, %v811_v26  ;;  %v813_v35 = vpop.f32.mrb[59].mxu0  ;;  %1277 = vst [vmem:[%s2488_s3 + $0x1e0] sm:$0xff] %v2341_v23  ;;  %v941_v36 = vpop.f32.mrb[59].mxu1 }
 0x188   :  { %v2352_v39 = vadd.f32 %v2029_v17, %v939_v29  ;;  %v1385_v26 = vmul.f32 %v2055_v38, %v2055_v38 }
 0x189   :  { %v1442_v40 = vadd.f32 %v1441_v14, %v1379_v33  ;;  %1246 = vst [vmem:[%s2488_s3 + $0xe8] sm:$0xff] %v1182_v34  ;;  %v1309_v44 = vadd.f32 %v1308_v32, %v1182_v34  ;;  %v1380_v45 = vmul.f32 %v1182_v34, %v1182_v34  ;;  %v1386_v33 = vmul.f32 %v2066_v47, %v2066_v47 }
 0x18a   :  { %1278 = vst [vmem:[%s2488_s3 + $0x1e8] sm:$0xff] %v2352_v39 }
 0x18b   :  { %v1443_v46 = vadd.f32 %v1442_v40, %v1380_v45 }
 0x18c   :  { %v816_v48 = vpop.f32.mrb[60].mxu0  ;;  %v944_v49 = vpop.f32.mrb[60].mxu1 }
 0x18d   :  { %v1183_v52 = vadd.f32 %v2029_v17, %v816_v48  ;;  %v818_v54 = vpop.f32.mrb[61].mxu0  ;;  %v2363_v55 = vadd.f32 %v2029_v17, %v944_v49  ;;  %v946_v58 = vpop.f32.mrb[61].mxu1 }
 0x18e   :  { %v819_v59 = vpop.f32.mrb[62].mxu0  ;;  %v947_v60 = vpop.f32.mrb[62].mxu1 }
 0x18f   :  { %1247 = vst [vmem:[%s2488_s3 + $0xf0] sm:$0xff] %v1183_v52  ;;  %v1310_v62 = vadd.f32 %v1309_v44, %v1183_v52  ;;  %v1381_v2 = vmul.f32 %v1183_v52, %v1183_v52  ;;  %v1184_v3 = vadd.f32 %v2029_v17, %v819_v59  ;;  %v821_v4 = vpop.f32.mrb[63].mxu0  ;;  %1279 = vst [vmem:[%s2488_s3 + $0x1f0] sm:$0xff] %v2363_v55  ;;  %v949_v5 = vpop.f32.mrb[63].mxu1 }
 0x190   :  { %v2374_v8 = vadd.f32 %v2029_v17, %v947_v60  ;;  %v1384_v17 = vmul.f32 %v2044_v28, %v2044_v28 }
 0x191   :  { %v1444_v9 = vadd.f32 %v1443_v46, %v1381_v2  ;;  %1248 = vst [vmem:[%s2488_s3 + $0xf8] sm:$0xff] %v1184_v3  ;;  %v1311_v11 = vadd.f32 %v1310_v62, %v1184_v3  ;;  %v1382_v14 = vmul.f32 %v1184_v3, %v1184_v3 }
 0x192   :  { %1280 = vst [vmem:[%s2488_s3 + $0x1f8] sm:$0xff] %v2374_v8 }
 0x193   :  { %v1312_v16 = vadd.f32 %v1311_v11, %v2033_v22  ;;  %v1445_v19 = vadd.f32 %v1444_v9, %v1382_v14  ;;  %v1387_v22 = vmul.f32 %v2077_v56, %v2077_v56 }
 0x195   :  { %v1313_v21 = vadd.f32 %v1312_v16, %v2044_v28  ;;  %v1446_v24 = vadd.f32 %v1445_v19, %v1383_v15  ;;  %v1388_v28 = vmul.f32 %v2088_v1, %v2088_v1 }
 0x197   :  { %v1314_v29 = vadd.f32 %v1313_v21, %v2055_v38  ;;  %v1447_v32 = vadd.f32 %v1446_v24, %v1384_v17  ;;  %v1389_v38 = vmul.f32 %v2099_v10, %v2099_v10  ;;  %v1399_v21 = vmul.f32 %v2209_v53, %v2209_v53 }
 0x199   :  { %v1315_v34 = vadd.f32 %v1314_v29, %v2066_v47  ;;  %v1448_v35 = vadd.f32 %v1447_v32, %v1385_v26  ;;  %v1390_v47 = vmul.f32 %v2110_v20, %v2110_v20  ;;  %v1400_v29 = vmul.f32 %v2220_v0, %v2220_v0 }
 0x19b   :  { %v1316_v36 = vadd.f32 %v1315_v34, %v2077_v56  ;;  %v1449_v40 = vadd.f32 %v1448_v35, %v1386_v33  ;;  %v1391_v56 = vmul.f32 %v2121_v31, %v2121_v31  ;;  %v1401_v33 = vmul.f32 %v2231_v12, %v2231_v12 }
 0x19c   :  { %v1402_v35 = vmul.f32 %v2242_v25, %v2242_v25 }
 0x19d   :  { %v1317_v44 = vadd.f32 %v1316_v36, %v2088_v1  ;;  %v1450_v45 = vadd.f32 %v1449_v40, %v1387_v22  ;;  %v1392_v1 = vmul.f32 %v2132_v41, %v2132_v41  ;;  %v1403_v36 = vmul.f32 %v2253_v37, %v2253_v37 }
 0x19f   :  { %v1318_v46 = vadd.f32 %v1317_v44, %v2099_v10  ;;  %v1451_v48 = vadd.f32 %v1450_v45, %v1388_v28  ;;  %v1393_v10 = vmul.f32 %v2143_v51, %v2143_v51  ;;  %v1404_v28 = vmul.f32 %v2264_v50, %v2264_v50 }
 0x1a0   :  { %v1405_v45 = vmul.f32 %v2275_v63, %v2275_v63 }
 0x1a1   :  { %v1319_v49 = vadd.f32 %v1318_v46, %v2110_v20  ;;  %v1452_v52 = vadd.f32 %v1451_v48, %v1389_v38  ;;  %v1394_v20 = vmul.f32 %v2154_v61, %v2154_v61  ;;  %v1406_v46 = vmul.f32 %v2286_v13, %v2286_v13 }
 0x1a3   :  { %v1453_v54 = vadd.f32 %v1452_v52, %v1390_v47  ;;  %v1320_v58 = vadd.f32 %v1319_v49, %v2121_v31  ;;  %v1395_v31 = vmul.f32 %v2165_v7, %v2165_v7  ;;  %v1407_v47 = vmul.f32 %v2297_v27, %v2297_v27 }
 0x1a4   :  { %v1408_v52 = vmul.f32 %v2308_v43, %v2308_v43 }
 0x1a5   :  { %v1321_v59 = vadd.f32 %v1320_v58, %v2132_v41  ;;  %v1454_v60 = vadd.f32 %v1453_v54, %v1391_v56  ;;  %v1396_v41 = vmul.f32 %v2176_v18, %v2176_v18  ;;  %v1409_v54 = vmul.f32 %v2319_v57, %v2319_v57 }
 0x1a7   :  { %v1322_v62 = vadd.f32 %v1321_v59, %v2143_v51  ;;  %v1455_v2 = vadd.f32 %v1454_v60, %v1392_v1  ;;  %v1397_v51 = vmul.f32 %v2187_v30, %v2187_v30  ;;  %v1410_v1 = vmul.f32 %v2330_v6, %v2330_v6 }
 0x1a8   :  { %v1411_v60 = vmul.f32 %v2341_v23, %v2341_v23 }
 0x1a9   :  { %v1323_v3 = vadd.f32 %v1322_v62, %v2154_v61  ;;  %v1456_v4 = vadd.f32 %v1455_v2, %v1393_v10  ;;  %v1398_v61 = vmul.f32 %v2198_v42, %v2198_v42  ;;  %v1412_v62 = vmul.f32 %v2352_v39, %v2352_v39 }
 0x1ab   :  { %v1324_v5 = vadd.f32 %v1323_v3, %v2165_v7  ;;  %v1457_v9 = vadd.f32 %v1456_v4, %v1394_v20  ;;  %v1414_v4 = vmul.f32 %v2374_v8, %v2374_v8 }
 0x1ad   :  { %v1325_v11 = vadd.f32 %v1324_v5, %v2176_v18  ;;  %v1458_v14 = vadd.f32 %v1457_v9, %v1395_v31 }
 0x1af   :  { %v1326_v15 = vadd.f32 %v1325_v11, %v2187_v30  ;;  %v1459_v16 = vadd.f32 %v1458_v14, %v1396_v41 }
 0x1b1   :  { %v1327_v19 = vadd.f32 %v1326_v15, %v2198_v42  ;;  %v1460_v17 = vadd.f32 %v1459_v16, %v1397_v51 }
 0x1b3   :  { %v1328_v7 = vadd.f32 %v1327_v19, %v2209_v53  ;;  %v1461_v24 = vadd.f32 %v1460_v17, %v1398_v61 }
 0x1b5   :  { %v1462_v18 = vadd.f32 %v1461_v24, %v1399_v21  ;;  %v1329_v26 = vadd.f32 %v1328_v7, %v2220_v0 }
 0x1b7   :  { %v1463_v30 = vadd.f32 %v1462_v18, %v1400_v29  ;;  %v1330_v32 = vadd.f32 %v1329_v26, %v2231_v12 }
 0x1b9   :  { %v1464_v42 = vadd.f32 %v1463_v30, %v1401_v33  ;;  %v1331_v34 = vadd.f32 %v1330_v32, %v2242_v25 }
 0x1bb   :  { %v1465_v53 = vadd.f32 %v1464_v42, %v1402_v35  ;;  %v1332_v22 = vadd.f32 %v1331_v34, %v2253_v37 }
 0x1bd   :  { %v1466_v40 = vadd.f32 %v1465_v53, %v1403_v36  ;;  %v1333_v0 = vadd.f32 %v1332_v22, %v2264_v50 }
 0x1bf   :  { %v1467_v44 = vadd.f32 %v1466_v40, %v1404_v28  ;;  %v1334_v12 = vadd.f32 %v1333_v0, %v2275_v63 }
 0x1c1   :  { %v1468_v38 = vadd.f32 %v1467_v44, %v1405_v45  ;;  %v1335_v25 = vadd.f32 %v1334_v12, %v2286_v13 }
 0x1c3   :  { %v1469_v48 = vadd.f32 %v1468_v38, %v1406_v46  ;;  %v1336_v37 = vadd.f32 %v1335_v25, %v2297_v27 }
 0x1c5   :  { %v1470_v49 = vadd.f32 %v1469_v48, %v1407_v47  ;;  %v1337_v50 = vadd.f32 %v1336_v37, %v2308_v43 }
 0x1c7   :  { %v1471_v56 = vadd.f32 %v1470_v49, %v1408_v52  ;;  %v1338_v63 = vadd.f32 %v1337_v50, %v2319_v57  ;;  %v1413_v57 = vmul.f32 %v2363_v55, %v2363_v55 }
 0x1c9   :  { %v1472_v58 = vadd.f32 %v1471_v56, %v1409_v54  ;;  %v1339_v13 = vadd.f32 %v1338_v63, %v2330_v6 }
 0x1cb   :  { %v1473_v59 = vadd.f32 %v1472_v58, %v1410_v1  ;;  %v1340_v27 = vadd.f32 %v1339_v13, %v2341_v23 }
 0x1cd   :  { %v1474_v10 = vadd.f32 %v1473_v59, %v1411_v60  ;;  %v1341_v43 = vadd.f32 %v1340_v27, %v2352_v39 }
 0x1cf   :  { %v1475_v2 = vadd.f32 %v1474_v10, %v1412_v62  ;;  %v1342_v20 = vadd.f32 %v1341_v43, %v2363_v55 }
 0x1d1   :  { %v1476_v3 = vadd.f32 %v1475_v2, %v1413_v57  ;;  %v1343_v6 = vadd.f32 %v1342_v20, %v2374_v8 }
 0x1d3   :  { %v1344_v31 = vrot.slane %v1343_v6, 4  ;;  %v1477_v23 = vadd.f32 %v1476_v3, %v1414_v4 }
 0x1d5   :  { %v1345_v5 = vadd.f32 %v1344_v31, %v1343_v6  ;;  %v1478_v9 = vrot.slane %v1477_v23, 4 }
 0x1d7   :  { %v1346_v41 = vrot.slane %v1345_v5, 2  ;;  %v1479_v11 = vadd.f32 %v1478_v9, %v1477_v23 }
 0x1d9   :  { %v1347_v14 = vadd.f32 %v1346_v41, %v1345_v5  ;;  %v1480_v39 = vrot.slane %v1479_v11, 2 }
 0x1db   :  { %v1348_v51 = vrot.slane %v1347_v14, 1  ;;  %v1481_v15 = vadd.f32 %v1480_v39, %v1479_v11 }
 0x1dd   :  { %v1349_v16 = vadd.f32 %v1348_v51, %v1347_v14  ;;  %v1482_v61 = vrot.slane %v1481_v15, 1 }
 0x1df   :  { %1350 = vst [vmem:[%s2489_s4] sm:$0x1] %v1349_v16  ;;  %v1483_v55 = vadd.f32 %v1482_v61, %v1481_v15 }
 0x1e1   :  { %1484 = vst [vmem:[%s2490_s5] sm:$0x1] %v1483_v55 }

// kernel: unet_forward.71
= control target key start
LH: loop header
LB: loop body
LE: loop exit
PB: predicated region body
PF: predicated region fallthrough
CT: control target
= control target key end

     0   :  { %s1708_s1 = inlined_call_operand.vmem [shape: bf16[128,128], index: 1, kind: input, shape index: {}]   ;;  %s1709_s0 = inlined_call_operand.vmem [shape: bf16[512,128], index: 0, kind: input, shape index: {}]   ;;  %s1710_s2 = inlined_call_operand.vmem [shape: f32[1,128], index: 2, kind: input, shape index: {}]   ;;  %s1711_s3 = inlined_call_operand.vmem [shape: f32[512,128], index: 3, kind: output, shape index: {}]  }
   0x1   :  { %v1267_v0 = vld [vmem:[%s1708_s1] sm:$0xff]   ;;  %v1268_v1 = vld [vmem:[%s1708_s1 + $0x8] sm:$0xff]   ;;  %v1269_v2 = vld [vmem:[%s1708_s1 + $0x10] sm:$0xff]  }
   0x2   :  { %1171 = vmatprep.subr.bf16.mxu0 %v1267_v0  ;;  %1251 = vmatprep.subr.bf16.mxu1 %v1267_v0  ;;  %v1270_v3 = vld [vmem:[%s1708_s1 + $0x18] sm:$0xff]   ;;  %v1275_v4 = vld [vmem:[%s1709_s0] sm:$0xff]   ;;  %v1272_v7 = vld [vmem:[%s1708_s1 + $0x28] sm:$0xff]  }
   0x3   :  { %1172 = vmatpush3.bf16.msra.mxu0 %v1267_v0  ;;  %1259 = vmatpush3.bf16.msra.mxu1 %v1267_v0  ;;  %v1276_v5 = vld [vmem:[%s1709_s0 + $0x80] sm:$0xff]   ;;  %v1273_v8 = vld [vmem:[%s1708_s1 + $0x30] sm:$0xff]   ;;  %v1274_v9 = vld [vmem:[%s1708_s1 + $0x38] sm:$0xff]  }
   0x4   :  { %1173 = vmatprep.subr.bf16.mxu0 %v1268_v1  ;;  %1252 = vmatprep.subr.bf16.mxu1 %v1268_v1  ;;  %v1271_v6 = vld [vmem:[%s1708_s1 + $0x20] sm:$0xff]   ;;  %v1277_v10 = vld [vmem:[%s1709_s0 + $0x8] sm:$0xff]   ;;  %v1279_v12 = vld [vmem:[%s1709_s0 + $0x10] sm:$0xff]  }
   0x5   :  { %1187 = vmatprep.mubr.bf16.mxu0 %v1275_v4  ;;  %1219 = vmatprep.mubr.bf16.mxu1 %v1276_v5  ;;  %v1278_v11 = vld [vmem:[%s1709_s0 + $0x88] sm:$0xff]   ;;  %v1280_v13 = vld [vmem:[%s1709_s0 + $0x90] sm:$0xff]   ;;  %v1281_v14 = vld [vmem:[%s1709_s0 + $0x18] sm:$0xff]  }
   0x6   :  { %v1282_v15 = vld [vmem:[%s1709_s0 + $0x98] sm:$0xff]   ;;  %v1283_v16 = vld [vmem:[%s1709_s0 + $0x20] sm:$0xff]   ;;  %v1285_v18 = vld [vmem:[%s1709_s0 + $0x28] sm:$0xff]  }
   0x7   :  { %1174 = vmatpush3.bf16.msra.mxu0 %v1268_v1  ;;  %1260 = vmatpush3.bf16.msra.mxu1 %v1268_v1  ;;  %v1284_v17 = vld [vmem:[%s1709_s0 + $0xa0] sm:$0xff]   ;;  %v1286_v19 = vld [vmem:[%s1709_s0 + $0xa8] sm:$0xff]   ;;  %v1287_v20 = vld [vmem:[%s1709_s0 + $0x30] sm:$0xff]  }
   0x8   :  { %1175 = vmatprep.subr.bf16.mxu0 %v1269_v2  ;;  %1253 = vmatprep.subr.bf16.mxu1 %v1269_v2  ;;  %v1288_v21 = vld [vmem:[%s1709_s0 + $0xb0] sm:$0xff]   ;;  %v1289_v22 = vld [vmem:[%s1709_s0 + $0x38] sm:$0xff]   ;;  %v1291_v24 = vld [vmem:[%s1709_s0 + $0x40] sm:$0xff]  }
   0x9   :  { %v1290_v23 = vld [vmem:[%s1709_s0 + $0xb8] sm:$0xff]   ;;  %v1292_v25 = vld [vmem:[%s1709_s0 + $0xc0] sm:$0xff]   ;;  %v1293_v26 = vld [vmem:[%s1709_s0 + $0x48] sm:$0xff]  }
   0xa   :  { %v1294_v27 = vld [vmem:[%s1709_s0 + $0xc8] sm:$0xff]   ;;  %v1295_v28 = vld [vmem:[%s1709_s0 + $0x50] sm:$0xff]   ;;  %v1297_v30 = vld [vmem:[%s1709_s0 + $0x58] sm:$0xff]  }
   0xb   :  { %1176 = vmatpush3.bf16.msra.mxu0 %v1269_v2  ;;  %1261 = vmatpush3.bf16.msra.mxu1 %v1269_v2  ;;  %v1296_v29 = vld [vmem:[%s1709_s0 + $0xd0] sm:$0xff]   ;;  %v1298_v31 = vld [vmem:[%s1709_s0 + $0xd8] sm:$0xff]   ;;  %v1299_v32 = vld [vmem:[%s1709_s0 + $0x60] sm:$0xff]  }
   0xc   :  { %1177 = vmatprep.subr.bf16.mxu0 %v1270_v3  ;;  %1254 = vmatprep.subr.bf16.mxu1 %v1270_v3  ;;  %v1300_v33 = vld [vmem:[%s1709_s0 + $0xe0] sm:$0xff]   ;;  %v1301_v34 = vld [vmem:[%s1709_s0 + $0x68] sm:$0xff]   ;;  %v1303_v36 = vld [vmem:[%s1709_s0 + $0x70] sm:$0xff]  }
   0xd   :  { %v1302_v35 = vld [vmem:[%s1709_s0 + $0xe8] sm:$0xff]   ;;  %v1304_v37 = vld [vmem:[%s1709_s0 + $0xf0] sm:$0xff]   ;;  %v1305_v38 = vld [vmem:[%s1709_s0 + $0x78] sm:$0xff]  }
   0xe   :  { %v1306_v39 = vld [vmem:[%s1709_s0 + $0xf8] sm:$0xff]   ;;  %v1450_v40 = vld [vmem:[%s1710_s2] ss:$0 sm:$0xff] }
   0xf   :  { %1178 = vmatpush3.bf16.msra.mxu0 %v1270_v3  ;;  %1262 = vmatpush3.bf16.msra.mxu1 %v1270_v3 }
  0x10   :  { %1179 = vmatprep.subr.bf16.mxu0 %v1271_v6  ;;  %1255 = vmatprep.subr.bf16.mxu1 %v1271_v6 }
  0x13   :  { %1180 = vmatpush3.bf16.msra.mxu0 %v1271_v6  ;;  %1263 = vmatpush3.bf16.msra.mxu1 %v1271_v6 }
  0x14   :  { %1181 = vmatprep.subr.bf16.mxu0 %v1272_v7  ;;  %1256 = vmatprep.subr.bf16.mxu1 %v1272_v7 }
  0x17   :  { %1182 = vmatpush3.bf16.msra.mxu0 %v1272_v7  ;;  %1264 = vmatpush3.bf16.msra.mxu1 %v1272_v7 }
  0x18   :  { %1183 = vmatprep.subr.bf16.mxu0 %v1273_v8  ;;  %1257 = vmatprep.subr.bf16.mxu1 %v1273_v8 }
  0x1b   :  { %1184 = vmatpush3.bf16.msra.mxu0 %v1273_v8  ;;  %1265 = vmatpush3.bf16.msra.mxu1 %v1273_v8 }
  0x1c   :  { %1185 = vmatprep.subr.bf16.mxu0 %v1274_v9  ;;  %1258 = vmatprep.subr.bf16.mxu1 %v1274_v9 }
  0x1f   :  { %1186 = vmatpush3.bf16.msra.mxu0 %v1274_v9  ;;  %1266 = vmatpush3.bf16.msra.mxu1 %v1274_v9 }
  0x22   :  { %1188 = vmatmul.mubr.bf16.vlgmr.msra.gmra.mrb[0].mxu0 %v1277_v10  ;;  %1220 = vmatmul.mubr.bf16.vlgmr.msra.gmra.mrb[0].mxu1 %v1278_v11 }
  0x23   :  { %1191 = vmatprep.mubr.bf16.mxu0 %v1279_v12  ;;  %1223 = vmatprep.mubr.bf16.mxu1 %v1280_v13 }
  0x2a   :  { %1192 = vmatmul.mubr.bf16.gmra.mrb[4].mxu0 %v1281_v14  ;;  %1224 = vmatmul.mubr.bf16.gmra.mrb[4].mxu1 %v1282_v15 }
  0x2b   :  { %1195 = vmatprep.mubr.bf16.mxu0 %v1283_v16  ;;  %1227 = vmatprep.mubr.bf16.mxu1 %v1284_v17 }
  0x32   :  { %1196 = vmatmul.mubr.bf16.gmra.mrb[8].mxu0 %v1285_v18  ;;  %1228 = vmatmul.mubr.bf16.gmra.mrb[8].mxu1 %v1286_v19 }
  0x33   :  { %1199 = vmatprep.mubr.bf16.mxu0 %v1287_v20  ;;  %1231 = vmatprep.mubr.bf16.mxu1 %v1288_v21 }
  0x3a   :  { %1200 = vmatmul.mubr.bf16.gmra.mrb[12].mxu0 %v1289_v22  ;;  %1232 = vmatmul.mubr.bf16.gmra.mrb[12].mxu1 %v1290_v23 }
  0x3b   :  { %1203 = vmatprep.mubr.bf16.mxu0 %v1291_v24  ;;  %1235 = vmatprep.mubr.bf16.mxu1 %v1292_v25 }
  0x42   :  { %1204 = vmatmul.mubr.bf16.gmra.mrb[16].mxu0 %v1293_v26  ;;  %1236 = vmatmul.mubr.bf16.gmra.mrb[16].mxu1 %v1294_v27 }
  0x43   :  { %1207 = vmatprep.mubr.bf16.mxu0 %v1295_v28  ;;  %1239 = vmatprep.mubr.bf16.mxu1 %v1296_v29 }
  0x4a   :  { %1208 = vmatmul.mubr.bf16.gmra.mrb[20].mxu0 %v1297_v30  ;;  %1240 = vmatmul.mubr.bf16.gmra.mrb[20].mxu1 %v1298_v31 }
  0x4b   :  { %1211 = vmatprep.mubr.bf16.mxu0 %v1299_v32  ;;  %1243 = vmatprep.mubr.bf16.mxu1 %v1300_v33 }
  0x52   :  { %1212 = vmatmul.mubr.bf16.gmra.mrb[24].mxu0 %v1301_v34  ;;  %1244 = vmatmul.mubr.bf16.gmra.mrb[24].mxu1 %v1302_v35 }
  0x53   :  { %1215 = vmatprep.mubr.bf16.mxu0 %v1303_v36  ;;  %1247 = vmatprep.mubr.bf16.mxu1 %v1304_v37 }
  0x5a   :  { %1216 = vmatmul.mubr.bf16.gmra.mrb[28].mxu0 %v1305_v38  ;;  %1248 = vmatmul.mubr.bf16.gmra.mrb[28].mxu1 %v1306_v39 }
  0xf5   :  { %v1189_v41 = vpop.f32.mrb[0].mxu0  ;;  %v1221_v42 = vpop.f32.mrb[0].mxu1 }
  0xf6   :  { %v960_v43 = vadd.f32 %v1189_v41, %v1450_v40  ;;  %v992_v44 = vadd.f32 %v1221_v42, %v1450_v40  ;;  %v501_v45 = vpop.f32.mrb[1].mxu0  ;;  %v629_v46 = vpop.f32.mrb[1].mxu1 }
  0xf7   :  { %v958_v47 = vadd.f32 %v1450_v40, %v501_v45  ;;  %v990_v48 = vadd.f32 %v1450_v40, %v629_v46  ;;  %v1190_v49 = vpop.f32.mrb[2].mxu0  ;;  %v1222_v50 = vpop.f32.mrb[2].mxu1 }
  0xf8   :  { %1024 = vst [vmem:[%s1711_s3 + $0x10] sm:$0xff] %v960_v43  ;;  %1056 = vst [vmem:[%s1711_s3 + $0x110] sm:$0xff] %v992_v44  ;;  %v961_v51 = vadd.f32 %v1190_v49, %v1450_v40  ;;  %v993_v52 = vadd.f32 %v1222_v50, %v1450_v40  ;;  %v504_v53 = vpop.f32.mrb[3].mxu0  ;;  %v632_v54 = vpop.f32.mrb[3].mxu1 }
  0xf9   :  { %1022 = vst [vmem:[%s1711_s3] sm:$0xff] %v958_v47  ;;  %1054 = vst [vmem:[%s1711_s3 + $0x100] sm:$0xff] %v990_v48  ;;  %v959_v55 = vadd.f32 %v1450_v40, %v504_v53  ;;  %v991_v56 = vadd.f32 %v1450_v40, %v632_v54 }
  0xfa   :  { %1025 = vst [vmem:[%s1711_s3 + $0x18] sm:$0xff] %v961_v51  ;;  %1057 = vst [vmem:[%s1711_s3 + $0x118] sm:$0xff] %v993_v52 }
  0xfb   :  { %1023 = vst [vmem:[%s1711_s3 + $0x8] sm:$0xff] %v959_v55  ;;  %1055 = vst [vmem:[%s1711_s3 + $0x108] sm:$0xff] %v991_v56 }
  0xfd   :  { %v1193_v57 = vpop.f32.mrb[4].mxu0  ;;  %v1225_v58 = vpop.f32.mrb[4].mxu1 }
  0xfe   :  { %v964_v59 = vadd.f32 %v1193_v57, %v1450_v40  ;;  %v996_v60 = vadd.f32 %v1225_v58, %v1450_v40  ;;  %v517_v61 = vpop.f32.mrb[5].mxu0  ;;  %v645_v62 = vpop.f32.mrb[5].mxu1 }
  0xff   :  { %v962_v63 = vadd.f32 %v1450_v40, %v517_v61  ;;  %v994_v0 = vadd.f32 %v1450_v40, %v645_v62  ;;  %v1194_v1 = vpop.f32.mrb[6].mxu0  ;;  %v1226_v2 = vpop.f32.mrb[6].mxu1 }
 0x100   :  { %1028 = vst [vmem:[%s1711_s3 + $0x30] sm:$0xff] %v964_v59  ;;  %1060 = vst [vmem:[%s1711_s3 + $0x130] sm:$0xff] %v996_v60  ;;  %v965_v3 = vadd.f32 %v1194_v1, %v1450_v40  ;;  %v997_v4 = vadd.f32 %v1226_v2, %v1450_v40  ;;  %v520_v5 = vpop.f32.mrb[7].mxu0  ;;  %v648_v6 = vpop.f32.mrb[7].mxu1 }
 0x101   :  { %1026 = vst [vmem:[%s1711_s3 + $0x20] sm:$0xff] %v962_v63  ;;  %1058 = vst [vmem:[%s1711_s3 + $0x120] sm:$0xff] %v994_v0  ;;  %v963_v7 = vadd.f32 %v1450_v40, %v520_v5  ;;  %v995_v8 = vadd.f32 %v1450_v40, %v648_v6 }
 0x102   :  { %1029 = vst [vmem:[%s1711_s3 + $0x38] sm:$0xff] %v965_v3  ;;  %1061 = vst [vmem:[%s1711_s3 + $0x138] sm:$0xff] %v997_v4 }
 0x103   :  { %1027 = vst [vmem:[%s1711_s3 + $0x28] sm:$0xff] %v963_v7  ;;  %1059 = vst [vmem:[%s1711_s3 + $0x128] sm:$0xff] %v995_v8 }
 0x105   :  { %v1197_v9 = vpop.f32.mrb[8].mxu0  ;;  %v1229_v10 = vpop.f32.mrb[8].mxu1 }
 0x106   :  { %v968_v11 = vadd.f32 %v1197_v9, %v1450_v40  ;;  %v1000_v12 = vadd.f32 %v1229_v10, %v1450_v40  ;;  %v533_v13 = vpop.f32.mrb[9].mxu0  ;;  %v661_v14 = vpop.f32.mrb[9].mxu1 }
 0x107   :  { %v966_v15 = vadd.f32 %v1450_v40, %v533_v13  ;;  %v998_v16 = vadd.f32 %v1450_v40, %v661_v14  ;;  %v1198_v17 = vpop.f32.mrb[10].mxu0  ;;  %v1230_v18 = vpop.f32.mrb[10].mxu1 }
 0x108   :  { %1032 = vst [vmem:[%s1711_s3 + $0x50] sm:$0xff] %v968_v11  ;;  %1064 = vst [vmem:[%s1711_s3 + $0x150] sm:$0xff] %v1000_v12  ;;  %v969_v19 = vadd.f32 %v1198_v17, %v1450_v40  ;;  %v1001_v20 = vadd.f32 %v1230_v18, %v1450_v40  ;;  %v536_v21 = vpop.f32.mrb[11].mxu0  ;;  %v664_v22 = vpop.f32.mrb[11].mxu1 }
 0x109   :  { %1030 = vst [vmem:[%s1711_s3 + $0x40] sm:$0xff] %v966_v15  ;;  %1062 = vst [vmem:[%s1711_s3 + $0x140] sm:$0xff] %v998_v16  ;;  %v967_v23 = vadd.f32 %v1450_v40, %v536_v21  ;;  %v999_v24 = vadd.f32 %v1450_v40, %v664_v22 }
 0x10a   :  { %1033 = vst [vmem:[%s1711_s3 + $0x58] sm:$0xff] %v969_v19  ;;  %1065 = vst [vmem:[%s1711_s3 + $0x158] sm:$0xff] %v1001_v20 }
 0x10b   :  { %1031 = vst [vmem:[%s1711_s3 + $0x48] sm:$0xff] %v967_v23  ;;  %1063 = vst [vmem:[%s1711_s3 + $0x148] sm:$0xff] %v999_v24 }
 0x10d   :  { %v1201_v25 = vpop.f32.mrb[12].mxu0  ;;  %v1233_v26 = vpop.f32.mrb[12].mxu1 }
 0x10e   :  { %v972_v27 = vadd.f32 %v1201_v25, %v1450_v40  ;;  %v1004_v28 = vadd.f32 %v1233_v26, %v1450_v40  ;;  %v549_v29 = vpop.f32.mrb[13].mxu0  ;;  %v677_v30 = vpop.f32.mrb[13].mxu1 }
 0x10f   :  { %v970_v31 = vadd.f32 %v1450_v40, %v549_v29  ;;  %v1002_v32 = vadd.f32 %v1450_v40, %v677_v30  ;;  %v1202_v33 = vpop.f32.mrb[14].mxu0  ;;  %v1234_v34 = vpop.f32.mrb[14].mxu1 }
 0x110   :  { %1036 = vst [vmem:[%s1711_s3 + $0x70] sm:$0xff] %v972_v27  ;;  %1068 = vst [vmem:[%s1711_s3 + $0x170] sm:$0xff] %v1004_v28  ;;  %v973_v35 = vadd.f32 %v1202_v33, %v1450_v40  ;;  %v1005_v36 = vadd.f32 %v1234_v34, %v1450_v40  ;;  %v552_v37 = vpop.f32.mrb[15].mxu0  ;;  %v680_v38 = vpop.f32.mrb[15].mxu1 }
 0x111   :  { %1034 = vst [vmem:[%s1711_s3 + $0x60] sm:$0xff] %v970_v31  ;;  %1066 = vst [vmem:[%s1711_s3 + $0x160] sm:$0xff] %v1002_v32  ;;  %v971_v39 = vadd.f32 %v1450_v40, %v552_v37  ;;  %v1003_v41 = vadd.f32 %v1450_v40, %v680_v38 }
 0x112   :  { %1037 = vst [vmem:[%s1711_s3 + $0x78] sm:$0xff] %v973_v35  ;;  %1069 = vst [vmem:[%s1711_s3 + $0x178] sm:$0xff] %v1005_v36 }
 0x113   :  { %1035 = vst [vmem:[%s1711_s3 + $0x68] sm:$0xff] %v971_v39  ;;  %1067 = vst [vmem:[%s1711_s3 + $0x168] sm:$0xff] %v1003_v41 }
 0x115   :  { %v1205_v42 = vpop.f32.mrb[16].mxu0  ;;  %v1237_v43 = vpop.f32.mrb[16].mxu1 }
 0x116   :  { %v976_v44 = vadd.f32 %v1205_v42, %v1450_v40  ;;  %v1008_v45 = vadd.f32 %v1237_v43, %v1450_v40  ;;  %v565_v46 = vpop.f32.mrb[17].mxu0  ;;  %v693_v47 = vpop.f32.mrb[17].mxu1 }
 0x117   :  { %v974_v48 = vadd.f32 %v1450_v40, %v565_v46  ;;  %v1006_v49 = vadd.f32 %v1450_v40, %v693_v47  ;;  %v1206_v50 = vpop.f32.mrb[18].mxu0  ;;  %v1238_v51 = vpop.f32.mrb[18].mxu1 }
 0x118   :  { %1040 = vst [vmem:[%s1711_s3 + $0x90] sm:$0xff] %v976_v44  ;;  %1072 = vst [vmem:[%s1711_s3 + $0x190] sm:$0xff] %v1008_v45  ;;  %v977_v52 = vadd.f32 %v1206_v50, %v1450_v40  ;;  %v1009_v53 = vadd.f32 %v1238_v51, %v1450_v40  ;;  %v568_v54 = vpop.f32.mrb[19].mxu0  ;;  %v696_v55 = vpop.f32.mrb[19].mxu1 }
 0x119   :  { %1038 = vst [vmem:[%s1711_s3 + $0x80] sm:$0xff] %v974_v48  ;;  %1070 = vst [vmem:[%s1711_s3 + $0x180] sm:$0xff] %v1006_v49  ;;  %v975_v56 = vadd.f32 %v1450_v40, %v568_v54  ;;  %v1007_v57 = vadd.f32 %v1450_v40, %v696_v55 }
 0x11a   :  { %1041 = vst [vmem:[%s1711_s3 + $0x98] sm:$0xff] %v977_v52  ;;  %1073 = vst [vmem:[%s1711_s3 + $0x198] sm:$0xff] %v1009_v53 }
 0x11b   :  { %1039 = vst [vmem:[%s1711_s3 + $0x88] sm:$0xff] %v975_v56  ;;  %1071 = vst [vmem:[%s1711_s3 + $0x188] sm:$0xff] %v1007_v57 }
 0x11d   :  { %v1209_v58 = vpop.f32.mrb[20].mxu0  ;;  %v1241_v59 = vpop.f32.mrb[20].mxu1 }
 0x11e   :  { %v980_v60 = vadd.f32 %v1209_v58, %v1450_v40  ;;  %v1012_v61 = vadd.f32 %v1241_v59, %v1450_v40  ;;  %v581_v62 = vpop.f32.mrb[21].mxu0  ;;  %v709_v63 = vpop.f32.mrb[21].mxu1 }
 0x11f   :  { %v978_v0 = vadd.f32 %v1450_v40, %v581_v62  ;;  %v1010_v1 = vadd.f32 %v1450_v40, %v709_v63  ;;  %v1210_v2 = vpop.f32.mrb[22].mxu0  ;;  %v1242_v3 = vpop.f32.mrb[22].mxu1 }
 0x120   :  { %1044 = vst [vmem:[%s1711_s3 + $0xb0] sm:$0xff] %v980_v60  ;;  %1076 = vst [vmem:[%s1711_s3 + $0x1b0] sm:$0xff] %v1012_v61  ;;  %v981_v4 = vadd.f32 %v1210_v2, %v1450_v40  ;;  %v1013_v5 = vadd.f32 %v1242_v3, %v1450_v40  ;;  %v584_v6 = vpop.f32.mrb[23].mxu0  ;;  %v712_v7 = vpop.f32.mrb[23].mxu1 }
 0x121   :  { %1042 = vst [vmem:[%s1711_s3 + $0xa0] sm:$0xff] %v978_v0  ;;  %1074 = vst [vmem:[%s1711_s3 + $0x1a0] sm:$0xff] %v1010_v1  ;;  %v979_v8 = vadd.f32 %v1450_v40, %v584_v6  ;;  %v1011_v9 = vadd.f32 %v1450_v40, %v712_v7 }
 0x122   :  { %1045 = vst [vmem:[%s1711_s3 + $0xb8] sm:$0xff] %v981_v4  ;;  %1077 = vst [vmem:[%s1711_s3 + $0x1b8] sm:$0xff] %v1013_v5 }
 0x123   :  { %1043 = vst [vmem:[%s1711_s3 + $0xa8] sm:$0xff] %v979_v8  ;;  %1075 = vst [vmem:[%s1711_s3 + $0x1a8] sm:$0xff] %v1011_v9 }
 0x125   :  { %v1213_v10 = vpop.f32.mrb[24].mxu0  ;;  %v1245_v11 = vpop.f32.mrb[24].mxu1 }
 0x126   :  { %v984_v12 = vadd.f32 %v1213_v10, %v1450_v40  ;;  %v1016_v13 = vadd.f32 %v1245_v11, %v1450_v40  ;;  %v597_v14 = vpop.f32.mrb[25].mxu0  ;;  %v725_v15 = vpop.f32.mrb[25].mxu1 }
 0x127   :  { %v982_v16 = vadd.f32 %v1450_v40, %v597_v14  ;;  %v1014_v17 = vadd.f32 %v1450_v40, %v725_v15  ;;  %v1214_v18 = vpop.f32.mrb[26].mxu0  ;;  %v1246_v19 = vpop.f32.mrb[26].mxu1 }
 0x128   :  { %1048 = vst [vmem:[%s1711_s3 + $0xd0] sm:$0xff] %v984_v12  ;;  %1080 = vst [vmem:[%s1711_s3 + $0x1d0] sm:$0xff] %v1016_v13  ;;  %v985_v20 = vadd.f32 %v1214_v18, %v1450_v40  ;;  %v1017_v21 = vadd.f32 %v1246_v19, %v1450_v40  ;;  %v600_v22 = vpop.f32.mrb[27].mxu0  ;;  %v728_v23 = vpop.f32.mrb[27].mxu1 }
 0x129   :  { %1046 = vst [vmem:[%s1711_s3 + $0xc0] sm:$0xff] %v982_v16  ;;  %1078 = vst [vmem:[%s1711_s3 + $0x1c0] sm:$0xff] %v1014_v17  ;;  %v983_v24 = vadd.f32 %v1450_v40, %v600_v22  ;;  %v1015_v25 = vadd.f32 %v1450_v40, %v728_v23 }
 0x12a   :  { %1049 = vst [vmem:[%s1711_s3 + $0xd8] sm:$0xff] %v985_v20  ;;  %1081 = vst [vmem:[%s1711_s3 + $0x1d8] sm:$0xff] %v1017_v21 }
 0x12b   :  { %1047 = vst [vmem:[%s1711_s3 + $0xc8] sm:$0xff] %v983_v24  ;;  %1079 = vst [vmem:[%s1711_s3 + $0x1c8] sm:$0xff] %v1015_v25 }
 0x12d   :  { %v1217_v26 = vpop.f32.mrb[28].mxu0  ;;  %v1249_v27 = vpop.f32.mrb[28].mxu1 }
 0x12e   :  { %v988_v28 = vadd.f32 %v1217_v26, %v1450_v40  ;;  %v1020_v29 = vadd.f32 %v1249_v27, %v1450_v40  ;;  %v613_v30 = vpop.f32.mrb[29].mxu0  ;;  %v741_v31 = vpop.f32.mrb[29].mxu1 }
 0x12f   :  { %v986_v32 = vadd.f32 %v1450_v40, %v613_v30  ;;  %v1018_v33 = vadd.f32 %v1450_v40, %v741_v31  ;;  %v1218_v34 = vpop.f32.mrb[30].mxu0  ;;  %v1250_v35 = vpop.f32.mrb[30].mxu1 }
 0x130   :  { %1052 = vst [vmem:[%s1711_s3 + $0xf0] sm:$0xff] %v988_v28  ;;  %1084 = vst [vmem:[%s1711_s3 + $0x1f0] sm:$0xff] %v1020_v29  ;;  %v989_v36 = vadd.f32 %v1218_v34, %v1450_v40  ;;  %v1021_v37 = vadd.f32 %v1250_v35, %v1450_v40  ;;  %v616_v38 = vpop.f32.mrb[31].mxu0  ;;  %v744_v39 = vpop.f32.mrb[31].mxu1 }
 0x131   :  { %1050 = vst [vmem:[%s1711_s3 + $0xe0] sm:$0xff] %v986_v32  ;;  %1082 = vst [vmem:[%s1711_s3 + $0x1e0] sm:$0xff] %v1018_v33  ;;  %v987_v41 = vadd.f32 %v1450_v40, %v616_v38  ;;  %v1019_v42 = vadd.f32 %v1450_v40, %v744_v39 }
 0x132   :  { %1053 = vst [vmem:[%s1711_s3 + $0xf8] sm:$0xff] %v989_v36  ;;  %1085 = vst [vmem:[%s1711_s3 + $0x1f8] sm:$0xff] %v1021_v37 }
 0x133   :  { %1051 = vst [vmem:[%s1711_s3 + $0xe8] sm:$0xff] %v987_v41  ;;  %1083 = vst [vmem:[%s1711_s3 + $0x1e8] sm:$0xff] %v1019_v42 }

</bundles_post_ra>
